<compile_context>
chip_gen: v5e
topology: v5e:2x2
jax: 0.10.0
libtpu: 0.0.40
codegen_flags: <defaults>
</compile_context>

<pallas_src>
import math
from functools import partial

import jax
import jax.numpy as jnp
from jax import lax
from jax.experimental import pallas as pl
from jax.experimental.pallas import tpu as pltpu

LN_EPS = 1e-5            # nn.LayerNorm default
DIM_FEEDFORWARD = 2048   # nn.TransformerEncoderLayer default
MASK_VALUE = -1e9        # additive mask for cross-sequence attention pairs


def positional_encoding(seq_len, d_model):
    position = jnp.arange(seq_len, dtype=jnp.float32)[:, None]
    div_term = jnp.exp(jnp.arange(0, d_model, 2, dtype=jnp.float32)
                       * (-math.log(10000.0) / d_model))
    pe = jnp.zeros((seq_len, d_model), dtype=jnp.float32)
    pe = pe.at[:, 0::2].set(jnp.sin(position * div_term))
    pe = pe.at[:, 1::2].set(jnp.cos(position * div_term))
    return pe


# -----------------------------------------------------------------------------
# Fused kernel: embed + positional encoding + n_layers x TransformerEncoderLayer.
# One grid step processes TB sequences, flattened token-major: row = s*TB + b.
#   * every projection / FFN matmul is a plain 2-D dot with M = S*TB rows,
#   * self-attention is one masked (S*TB, S*TB) matmul per head,
#   * the cls representations are simply the first TB rows (s == 0) at the end.
# -----------------------------------------------------------------------------
def _fused_encoder_kernel(xcol_ref, w_in_ref, addend_ref, mask_ref, *refs,
                          n_heads, n_layers):
    layer_refs = refs[:12 * n_layers]
    o_ref = refs[12 * n_layers]
    tb = o_ref.shape[1]

    f = w_in_ref.shape[-1]
    dh = f // n_heads
    scale = 1.0 / math.sqrt(dh)

    # Linear(1 -> F) embedding; `addend` already holds pos-enc (+ bias on non-cls rows).
    x = xcol_ref[0] * w_in_ref[...] + addend_ref[...]          # (S*TB, F) f32
    mask = mask_ref[...]                                       # (S*TB, S*TB) additive

    def layer_norm(y, w, b):
        mu = jnp.mean(y, axis=-1, keepdims=True)
        var = jnp.mean((y - mu) ** 2, axis=-1, keepdims=True)
        return (y - mu) * jax.lax.rsqrt(var + LN_EPS) * w + b

    for li in range(n_layers):                                 # static unroll
        (wqkv_r, bqkv_r, wo_r, bo_r, ln1w_r, ln1b_r, ln2w_r, ln2b_r,
         w1_r, b1_r, w2_r, b2_r) = layer_refs[12 * li:12 * (li + 1)]
        wqkv = wqkv_r[...]          # (F, 3F)   bf16 (or f32)
        wo = wo_r[...]              # (F, F)
        w1 = w1_r[...]              # (F, FF)
        w2 = w2_r[...]              # (FF, F)
        mm_t = wqkv.dtype

        # ---- multi-head self-attention (post-norm) ----
        qkv = jnp.dot(x.astype(mm_t), wqkv,
                      preferred_element_type=jnp.float32) + bqkv_r[...]   # (S*TB, 3F)
        attn = None
        for h in range(n_heads):                               # static; lane slices
            q_h = qkv[:, h * dh:(h + 1) * dh]
            k_h = qkv[:, f + h * dh:f + (h + 1) * dh]
            v_h = qkv[:, 2 * f + h * dh:2 * f + (h + 1) * dh]
            sc = lax.dot_general(q_h, k_h, (((1,), (1,)), ((), ())),
                                 preferred_element_type=jnp.float32) * scale + mask
            sc = sc - jnp.max(sc, axis=-1, keepdims=True)
            p = jnp.exp(sc)
            p = p * pl.reciprocal(jnp.sum(p, axis=-1, keepdims=True), approx=True)
            o_h = jnp.dot(p, v_h, preferred_element_type=jnp.float32)     # (S*TB, dh)
            # fold this head's slice of the output projection (no lane concat)
            part = jnp.dot(o_h.astype(mm_t), wo[h * dh:(h + 1) * dh, :],
                           preferred_element_type=jnp.float32)
            attn = part if attn is None else attn + part
        y = layer_norm(x + attn + bo_r[...], ln1w_r[...], ln1b_r[...])

        # ---- feed-forward: Linear -> ReLU -> Linear ----
        h1 = jnp.dot(y.astype(mm_t), w1, preferred_element_type=jnp.float32) + b1_r[...]
        h1 = jnp.maximum(h1, 0.0)
        h2 = jnp.dot(h1.astype(mm_t), w2, preferred_element_type=jnp.float32) + b2_r[...]
        x = layer_norm(y + h2, ln2w_r[...], ln2b_r[...])

    # cls tokens are rows [0, TB): row = s*TB + b with s == 0.
    o_ref[0] = x[:tb, :]


# -----------------------------------------------------------------------------
# Host-side plumbing.
# -----------------------------------------------------------------------------
def _prepare_layer(lp, matmul_dtype):
    """PyTorch-layout params -> (in, out)-layout, matmul weights cast to bf16."""
    (wqkv, bqkv, wo, bo, ln1w, ln1b, ln2w, ln2b, w1, b1, w2, b2) = lp
    f32 = jnp.float32
    return (wqkv.T.astype(matmul_dtype), bqkv.astype(f32),
            wo.T.astype(matmul_dtype), bo.astype(f32),
            ln1w.astype(f32), ln1b.astype(f32),
            ln2w.astype(f32), ln2b.astype(f32),
            w1.T.astype(matmul_dtype), b1.astype(f32),
            w2.T.astype(matmul_dtype), b2.astype(f32))


def _choose_blocks(bn, s, max_tokens=512):
    """#grid blocks / sequences-per-block: >=2 blocks (v7x dual TC), bounded size."""
    if bn <= 1:
        return 1, bn
    max_seqs = max(1, max_tokens // s)
    nb = max(2, -(-bn // max_seqs))
    while bn % nb:                      # need an exact divisor of BN
        nb += 1
    return nb, bn // nb


def _const_spec(arr):
    zero = (0,) * arr.ndim
    return pl.BlockSpec(arr.shape, lambda i, zero=zero: zero)


def temporal_encoder_forward(x, params, matmul_dtype=jnp.bfloat16):
    b, n, t = x.shape
    f = params['w_in'].shape[-1]
    nh = params['n_heads']
    n_layers = len(params['layers'])
    assert f % nh == 0
    s = t + 1                           # +1 for the cls token
    bn = b * n
    nb, tb = _choose_blocks(bn, s)
    tok = s * tb

    # --- tiny host-side constant preparation ---
    pe = positional_encoding(s, f)
    # cls row (s == 0) gets neither the input value nor the Linear bias.
    addend = pe + jnp.where(jnp.arange(s)[:, None] > 0, params['b_in'], 0.0)
    addend_rep = jnp.repeat(addend, tb, axis=0).astype(jnp.float32)   # row s*TB+b
    w_in = params['w_in'].astype(jnp.float32)

    seq_id = jnp.arange(tok, dtype=jnp.int32) % tb
    attn_mask = jnp.where(seq_id[:, None] == seq_id[None, :],
                          0.0, MASK_VALUE).astype(jnp.float32)

    # token-major layout: row = s*TB + b; cls column (zeros) prepended at s = 0
    xp = jnp.pad(x.reshape(bn, t).astype(jnp.float32), ((0, 0), (1, 0)))
    xcol = xp.reshape(nb, tb, s).transpose(0, 2, 1).reshape(nb, tok, 1)

    flat_params = []
    for lp in params['layers']:
        flat_params.extend(_prepare_layer(lp, matmul_dtype))

    in_specs = ([pl.BlockSpec((1, tok, 1), lambda i: (i, 0, 0)),
                 _const_spec(w_in), _const_spec(addend_rep), _const_spec(attn_mask)]
                + [_const_spec(p) for p in flat_params])
    out_specs = pl.BlockSpec((1, tb, f), lambda i: (i, 0, 0))

    out = pl.pallas_call(
        partial(_fused_encoder_kernel, n_heads=nh, n_layers=n_layers),
        grid=(nb,),
        in_specs=in_specs,
        out_specs=out_specs,
        out_shape=jax.ShapeDtypeStruct((nb, tb, f), jnp.float32),
        compiler_params=pltpu.CompilerParams(dimension_semantics=("parallel",)),
    )(xcol, w_in, addend_rep, attn_mask, *flat_params)
    return out.reshape(b, n, f)


# -----------------------------------------------------------------------------
# Deterministic synthetic parameters (shapes from the module's __init__,
# stored in PyTorch layout).
# -----------------------------------------------------------------------------
def init_params(key, hidden_dim, n_heads, n_layers, ff_dim=DIM_FEEDFORWARD):
    keys = jax.random.split(key, 2 + n_layers)
    f = hidden_dim
    w_in = 0.2 * jax.random.normal(keys[0], (1, f), jnp.float32)   # Linear(1,F).weight.T
    b_in = 0.1 * jax.random.normal(keys[1], (1, f), jnp.float32)
    layers = []
    for li in range(n_layers):
        ks = jax.random.split(keys[2 + li], 12)
        layers.append((
            0.2 * jax.random.normal(ks[0], (3 * f, f), jnp.float32),    # in_proj_weight
            0.05 * jax.random.normal(ks[1], (1, 3 * f), jnp.float32),   # in_proj_bias
            0.2 * jax.random.normal(ks[2], (f, f), jnp.float32),        # out_proj.weight
            0.05 * jax.random.normal(ks[3], (1, f), jnp.float32),       # out_proj.bias
            1.0 + 0.05 * jax.random.normal(ks[4], (1, f), jnp.float32), # norm1.weight
            0.05 * jax.random.normal(ks[5], (1, f), jnp.float32),       # norm1.bias
            1.0 + 0.05 * jax.random.normal(ks[6], (1, f), jnp.float32), # norm2.weight
            0.05 * jax.random.normal(ks[7], (1, f), jnp.float32),       # norm2.bias
            0.05 * jax.random.normal(ks[8], (ff_dim, f), jnp.float32),  # linear1.weight
            0.05 * jax.random.normal(ks[9], (1, ff_dim), jnp.float32),  # linear1.bias
            0.05 * jax.random.normal(ks[10], (f, ff_dim), jnp.float32), # linear2.weight
            0.05 * jax.random.normal(ks[11], (1, f), jnp.float32),      # linear2.bias
        ))
    return {'w_in': w_in, 'b_in': b_in, 'layers': layers, 'n_heads': n_heads}


# -----------------------------------------------------------------------------
# Pure-JAX reference for correctness checking.  matmul_dtype=bf16 mirrors the
# kernel's bf16-operand / f32-accumulate matmuls exactly.
# -----------------------------------------------------------------------------
def _ln_ref(y, w, b):
    mu = y.mean(-1, keepdims=True)
    var = ((y - mu) ** 2).mean(-1, keepdims=True)
    return (y - mu) * jax.lax.rsqrt(var + LN_EPS) * w + b


def reference_forward(x, params, matmul_dtype=jnp.float32):
    b, n, t = x.shape
    f = params['w_in'].shape[-1]
    nh = params['n_heads']
    dh = f // nh
    s = t + 1

    def mm(a, w):
        return jnp.dot(a.astype(matmul_dtype), w.astype(matmul_dtype),
                       preferred_element_type=jnp.float32)

    pe = positional_encoding(s, f)
    xe = x[..., None] * params['w_in'][0] + params['b_in'][0]        # (B,N,T,F)
    cls = jnp.zeros((b, n, 1, f), jnp.float32)
    h = jnp.concatenate([cls, xe], axis=2).reshape(b * n, s, f) + pe[None]
    for (wqkv, bqkv, wo, bo, ln1w, ln1b, ln2w, ln2b, w1, b1, w2, b2) in params['layers']:
        qkv = mm(h, wqkv.T) + bqkv[0]
        q, k, v = qkv[..., :f], qkv[..., f:2 * f], qkv[..., 2 * f:]
        qh = q.reshape(b * n, s, nh, dh)
        kh = k.reshape(b * n, s, nh, dh)
        vh = v.reshape(b * n, s, nh, dh)
        sc = jnp.einsum('bqhd,bkhd->bhqk', qh, kh,
                        preferred_element_type=jnp.float32) / math.sqrt(dh)
        p = jax.nn.softmax(sc, axis=-1)
        ao = jnp.einsum('bhqk,bkhd->bqhd', p, vh,
                        preferred_element_type=jnp.float32).reshape(b * n, s, f)
        ao = mm(ao, wo.T) + bo[0]
        h = _ln_ref(h + ao, ln1w[0], ln1b[0])
        ff = mm(jnp.maximum(mm(h, w1.T) + b1[0], 0.0), w2.T) + b2[0]
        h = _ln_ref(h + ff, ln2w[0], ln2b[0])
    return h[:, 0, :].reshape(b, n, f)


if __name__ == "__main__":
    specs = dict(trm_input_dim=1, hidden_dim=32, n_heads=4,
                 n_trm_layers=2, max_seq_len=64)
    B, N, T = 2, 4, 8
    key = jax.random.PRNGKey(0)
    kx, kp = jax.random.split(key)
    x = jax.random.normal(kx, (B, N, T), jnp.float32)
    params = init_params(kp, specs['hidden_dim'], specs['n_heads'],
                         specs['n_trm_layers'])

    out = jax.block_until_ready(temporal_encoder_forward(x, params))

    # tight check vs a reference using the same bf16-operand / f32-accumulate matmuls,
    # coarse sanity check vs the pure-f32 reference (bf16 weight/activation rounding).
    ref_bf16 = reference_forward(x, params, matmul_dtype=jnp.bfloat16)
    ref_f32 = reference_forward(x, params, matmul_dtype=jnp.float32)

    assert out.shape == (B, N, specs['hidden_dim'])
    err_m = float(jnp.max(jnp.abs(out - ref_bf16)))
    err_f = float(jnp.max(jnp.abs(out - ref_f32)))
    assert err_m < 2e-2, f"mismatch vs bf16-matmul reference: {err_m}"
    assert err_f < 2.5e-1, f"mismatch vs f32 reference: {err_f}"
    print("KERNEL_OK")
</pallas_src>

<mosaic_0001>
module attributes {stable_mosaic.version = 11 : i64} {
  func.func @_fused_encoder_kernel(%arg0: i32, %arg1: memref<1x36x1xf32, #tpu.memory_space<vmem>>, %arg2: memref<1x32xf32, #tpu.memory_space<vmem>>, %arg3: memref<36x32xf32, #tpu.memory_space<vmem>>, %arg4: memref<36x36xf32, #tpu.memory_space<vmem>>, %arg5: memref<32x96xbf16, #tpu.memory_space<vmem>>, %arg6: memref<1x96xf32, #tpu.memory_space<vmem>>, %arg7: memref<32x32xbf16, #tpu.memory_space<vmem>>, %arg8: memref<1x32xf32, #tpu.memory_space<vmem>>, %arg9: memref<1x32xf32, #tpu.memory_space<vmem>>, %arg10: memref<1x32xf32, #tpu.memory_space<vmem>>, %arg11: memref<1x32xf32, #tpu.memory_space<vmem>>, %arg12: memref<1x32xf32, #tpu.memory_space<vmem>>, %arg13: memref<32x2048xbf16, #tpu.memory_space<vmem>>, %arg14: memref<1x2048xf32, #tpu.memory_space<vmem>>, %arg15: memref<2048x32xbf16, #tpu.memory_space<vmem>>, %arg16: memref<1x32xf32, #tpu.memory_space<vmem>>, %arg17: memref<32x96xbf16, #tpu.memory_space<vmem>>, %arg18: memref<1x96xf32, #tpu.memory_space<vmem>>, %arg19: memref<32x32xbf16, #tpu.memory_space<vmem>>, %arg20: memref<1x32xf32, #tpu.memory_space<vmem>>, %arg21: memref<1x32xf32, #tpu.memory_space<vmem>>, %arg22: memref<1x32xf32, #tpu.memory_space<vmem>>, %arg23: memref<1x32xf32, #tpu.memory_space<vmem>>, %arg24: memref<1x32xf32, #tpu.memory_space<vmem>>, %arg25: memref<32x2048xbf16, #tpu.memory_space<vmem>>, %arg26: memref<1x2048xf32, #tpu.memory_space<vmem>>, %arg27: memref<2048x32xbf16, #tpu.memory_space<vmem>>, %arg28: memref<1x32xf32, #tpu.memory_space<vmem>>, %arg29: memref<1x4x32xf32, #tpu.memory_space<vmem>>) attributes {dimension_semantics = [#tpu.dimension_semantics<parallel>], iteration_bounds = array<i64: 2>, scalar_prefetch = 0 : i64, scratch_operands = 0 : i64, tpu.core_type = #tpu.core_type<tc>, window_params = [{transform_indices = @transform_0, window_bounds = array<i64: 1, 36, 1>}, {pipeline_mode = #tpu.pipeline_mode<synchronous>, transform_indices = @transform_1, window_bounds = array<i64: 1, 32>}, {pipeline_mode = #tpu.pipeline_mode<synchronous>, transform_indices = @transform_2, window_bounds = array<i64: 36, 32>}, {pipeline_mode = #tpu.pipeline_mode<synchronous>, transform_indices = @transform_3, window_bounds = array<i64: 36, 36>}, {pipeline_mode = #tpu.pipeline_mode<synchronous>, transform_indices = @transform_4, window_bounds = array<i64: 32, 96>}, {pipeline_mode = #tpu.pipeline_mode<synchronous>, transform_indices = @transform_5, window_bounds = array<i64: 1, 96>}, {pipeline_mode = #tpu.pipeline_mode<synchronous>, transform_indices = @transform_6, window_bounds = array<i64: 32, 32>}, {pipeline_mode = #tpu.pipeline_mode<synchronous>, transform_indices = @transform_7, window_bounds = array<i64: 1, 32>}, {pipeline_mode = #tpu.pipeline_mode<synchronous>, transform_indices = @transform_8, window_bounds = array<i64: 1, 32>}, {pipeline_mode = #tpu.pipeline_mode<synchronous>, transform_indices = @transform_9, window_bounds = array<i64: 1, 32>}, {pipeline_mode = #tpu.pipeline_mode<synchronous>, transform_indices = @transform_10, window_bounds = array<i64: 1, 32>}, {pipeline_mode = #tpu.pipeline_mode<synchronous>, transform_indices = @transform_11, window_bounds = array<i64: 1, 32>}, {pipeline_mode = #tpu.pipeline_mode<synchronous>, transform_indices = @transform_12, window_bounds = array<i64: 32, 2048>}, {pipeline_mode = #tpu.pipeline_mode<synchronous>, transform_indices = @transform_13, window_bounds = array<i64: 1, 2048>}, {pipeline_mode = #tpu.pipeline_mode<synchronous>, transform_indices = @transform_14, window_bounds = array<i64: 2048, 32>}, {pipeline_mode = #tpu.pipeline_mode<synchronous>, transform_indices = @transform_15, window_bounds = array<i64: 1, 32>}, {pipeline_mode = #tpu.pipeline_mode<synchronous>, transform_indices = @transform_16, window_bounds = array<i64: 32, 96>}, {pipeline_mode = #tpu.pipeline_mode<synchronous>, transform_indices = @transform_17, window_bounds = array<i64: 1, 96>}, {pipeline_mode = #tpu.pipeline_mode<synchronous>, transform_indices = @transform_18, window_bounds = array<i64: 32, 32>}, {pipeline_mode = #tpu.pipeline_mode<synchronous>, transform_indices = @transform_19, window_bounds = array<i64: 1, 32>}, {pipeline_mode = #tpu.pipeline_mode<synchronous>, transform_indices = @transform_20, window_bounds = array<i64: 1, 32>}, {pipeline_mode = #tpu.pipeline_mode<synchronous>, transform_indices = @transform_21, window_bounds = array<i64: 1, 32>}, {pipeline_mode = #tpu.pipeline_mode<synchronous>, transform_indices = @transform_22, window_bounds = array<i64: 1, 32>}, {pipeline_mode = #tpu.pipeline_mode<synchronous>, transform_indices = @transform_23, window_bounds = array<i64: 1, 32>}, {pipeline_mode = #tpu.pipeline_mode<synchronous>, transform_indices = @transform_24, window_bounds = array<i64: 32, 2048>}, {pipeline_mode = #tpu.pipeline_mode<synchronous>, transform_indices = @transform_25, window_bounds = array<i64: 1, 2048>}, {pipeline_mode = #tpu.pipeline_mode<synchronous>, transform_indices = @transform_26, window_bounds = array<i64: 2048, 32>}, {pipeline_mode = #tpu.pipeline_mode<synchronous>, transform_indices = @transform_27, window_bounds = array<i64: 1, 32>}, {transform_indices = @transform_28, window_bounds = array<i64: 1, 4, 32>}]} {
    %c0 = arith.constant 0 : index
    %c0_0 = arith.constant 0 : index
    %c0_1 = arith.constant 0 : index
    %0 = vector.load %arg1[%c0, %c0_0, %c0_1] : memref<1x36x1xf32, #tpu.memory_space<vmem>>, vector<1x36x1xf32>
    %1 = vector.shape_cast %0 : vector<1x36x1xf32> to vector<36x1xf32>
    %c0_2 = arith.constant 0 : index
    %c0_3 = arith.constant 0 : index
    %2 = vector.load %arg2[%c0_2, %c0_3] : memref<1x32xf32, #tpu.memory_space<vmem>>, vector<1x32xf32>
    %3 = vector.broadcast %1 : vector<36x1xf32> to vector<36x32xf32>
    %4 = vector.broadcast %2 : vector<1x32xf32> to vector<36x32xf32>
    %5 = arith.mulf %3, %4 : vector<36x32xf32>
    %c0_4 = arith.constant 0 : index
    %c0_5 = arith.constant 0 : index
    %6 = vector.load %arg3[%c0_4, %c0_5] : memref<36x32xf32, #tpu.memory_space<vmem>>, vector<36x32xf32>
    %7 = arith.addf %5, %6 : vector<36x32xf32>
    %c0_6 = arith.constant 0 : index
    %c0_7 = arith.constant 0 : index
    %8 = vector.load %arg4[%c0_6, %c0_7] : memref<36x36xf32, #tpu.memory_space<vmem>>, vector<36x36xf32>
    %c0_8 = arith.constant 0 : index
    %c0_9 = arith.constant 0 : index
    %9 = vector.load %arg5[%c0_8, %c0_9] : memref<32x96xbf16, #tpu.memory_space<vmem>>, vector<32x96xbf16>
    %c0_10 = arith.constant 0 : index
    %c0_11 = arith.constant 0 : index
    %10 = vector.load %arg7[%c0_10, %c0_11] : memref<32x32xbf16, #tpu.memory_space<vmem>>, vector<32x32xbf16>
    %c0_12 = arith.constant 0 : index
    %c0_13 = arith.constant 0 : index
    %11 = vector.load %arg13[%c0_12, %c0_13] : memref<32x2048xbf16, #tpu.memory_space<vmem>>, vector<32x2048xbf16>
    %c0_14 = arith.constant 0 : index
    %c0_15 = arith.constant 0 : index
    %12 = vector.load %arg15[%c0_14, %c0_15] : memref<2048x32xbf16, #tpu.memory_space<vmem>>, vector<2048x32xbf16>
    %13 = arith.truncf %7 : vector<36x32xf32> to vector<36x32xbf16>
    %cst = arith.constant dense<0.000000e+00> : vector<36x96xf32>
    %14 = tpu.matmul %13, %9, %cst {dimension_numbers = #tpu.dot_dimension_numbers<[1], [0], [0], [1], [0, 0, 1, 1], [], []>} : vector<36x32xbf16>, vector<32x96xbf16>, vector<36x96xf32> -> vector<36x96xf32>
    %c0_16 = arith.constant 0 : index
    %c0_17 = arith.constant 0 : index
    %15 = vector.load %arg6[%c0_16, %c0_17] : memref<1x96xf32, #tpu.memory_space<vmem>>, vector<1x96xf32>
    %16 = vector.broadcast %15 : vector<1x96xf32> to vector<36x96xf32>
    %17 = arith.addf %14, %16 : vector<36x96xf32>
    %18 = vector.extract_strided_slice %17 {offsets = [0, 0], sizes = [36, 8], strides = [1, 1]} : vector<36x96xf32> to vector<36x8xf32>
    %19 = vector.extract_strided_slice %17 {offsets = [0, 32], sizes = [36, 8], strides = [1, 1]} : vector<36x96xf32> to vector<36x8xf32>
    %20 = vector.extract_strided_slice %17 {offsets = [0, 64], sizes = [36, 8], strides = [1, 1]} : vector<36x96xf32> to vector<36x8xf32>
    %cst_18 = arith.constant dense<0.000000e+00> : vector<36x36xf32>
    %21 = tpu.matmul %18, %19, %cst_18 {dimension_numbers = #tpu.dot_dimension_numbers<[1], [1], [0], [0], [0, 0, 1, 0], [], []>} : vector<36x8xf32>, vector<36x8xf32>, vector<36x36xf32> -> vector<36x36xf32>
    %cst_19 = arith.constant 0.353553385 : f32
    %22 = vector.broadcast %cst_19 : f32 to vector<36x36xf32>
    %23 = arith.mulf %21, %22 : vector<36x36xf32>
    %24 = arith.addf %23, %8 : vector<36x36xf32>
    %cst_20 = arith.constant dense<0xFF800000> : vector<36xf32>
    %25 = vector.multi_reduction <maximumf>, %24, %cst_20 [1] : vector<36x36xf32> to vector<36xf32>
    %26 = vector.shape_cast %25 : vector<36xf32> to vector<36x1xf32>
    %27 = vector.broadcast %26 : vector<36x1xf32> to vector<36x36xf32>
    %28 = arith.subf %24, %27 : vector<36x36xf32>
    %29 = math.exp %28 : vector<36x36xf32>
    %cst_21 = arith.constant dense<0.000000e+00> : vector<36xf32>
    %30 = vector.multi_reduction <add>, %29, %cst_21 [1] : vector<36x36xf32> to vector<36xf32>
    %31 = vector.shape_cast %30 : vector<36xf32> to vector<36x1xf32>
    %32 = tpu.reciprocal %31 {approx = true} : vector<36x1xf32> -> vector<36x1xf32>
    %33 = vector.broadcast %32 : vector<36x1xf32> to vector<36x36xf32>
    %34 = arith.mulf %29, %33 : vector<36x36xf32>
    %cst_22 = arith.constant dense<0.000000e+00> : vector<36x8xf32>
    %35 = tpu.matmul %34, %20, %cst_22 {dimension_numbers = #tpu.dot_dimension_numbers<[1], [0], [0], [1], [0, 0, 1, 1], [], []>} : vector<36x36xf32>, vector<36x8xf32>, vector<36x8xf32> -> vector<36x8xf32>
    %36 = arith.truncf %35 : vector<36x8xf32> to vector<36x8xbf16>
    %37 = vector.extract_strided_slice %10 {offsets = [0, 0], sizes = [8, 32], strides = [1, 1]} : vector<32x32xbf16> to vector<8x32xbf16>
    %cst_23 = arith.constant dense<0.000000e+00> : vector<36x32xf32>
    %38 = tpu.matmul %36, %37, %cst_23 {dimension_numbers = #tpu.dot_dimension_numbers<[1], [0], [0], [1], [0, 0, 1, 1], [], []>} : vector<36x8xbf16>, vector<8x32xbf16>, vector<36x32xf32> -> vector<36x32xf32>
    %39 = vector.extract_strided_slice %17 {offsets = [0, 8], sizes = [36, 8], strides = [1, 1]} : vector<36x96xf32> to vector<36x8xf32>
    %40 = vector.extract_strided_slice %17 {offsets = [0, 40], sizes = [36, 8], strides = [1, 1]} : vector<36x96xf32> to vector<36x8xf32>
    %41 = vector.extract_strided_slice %17 {offsets = [0, 72], sizes = [36, 8], strides = [1, 1]} : vector<36x96xf32> to vector<36x8xf32>
    %cst_24 = arith.constant dense<0.000000e+00> : vector<36x36xf32>
    %42 = tpu.matmul %39, %40, %cst_24 {dimension_numbers = #tpu.dot_dimension_numbers<[1], [1], [0], [0], [0, 0, 1, 0], [], []>} : vector<36x8xf32>, vector<36x8xf32>, vector<36x36xf32> -> vector<36x36xf32>
    %cst_25 = arith.constant 0.353553385 : f32
    %43 = vector.broadcast %cst_25 : f32 to vector<36x36xf32>
    %44 = arith.mulf %42, %43 : vector<36x36xf32>
    %45 = arith.addf %44, %8 : vector<36x36xf32>
    %cst_26 = arith.constant dense<0xFF800000> : vector<36xf32>
    %46 = vector.multi_reduction <maximumf>, %45, %cst_26 [1] : vector<36x36xf32> to vector<36xf32>
    %47 = vector.shape_cast %46 : vector<36xf32> to vector<36x1xf32>
    %48 = vector.broadcast %47 : vector<36x1xf32> to vector<36x36xf32>
    %49 = arith.subf %45, %48 : vector<36x36xf32>
    %50 = math.exp %49 : vector<36x36xf32>
    %cst_27 = arith.constant dense<0.000000e+00> : vector<36xf32>
    %51 = vector.multi_reduction <add>, %50, %cst_27 [1] : vector<36x36xf32> to vector<36xf32>
    %52 = vector.shape_cast %51 : vector<36xf32> to vector<36x1xf32>
    %53 = tpu.reciprocal %52 {approx = true} : vector<36x1xf32> -> vector<36x1xf32>
    %54 = vector.broadcast %53 : vector<36x1xf32> to vector<36x36xf32>
    %55 = arith.mulf %50, %54 : vector<36x36xf32>
    %cst_28 = arith.constant dense<0.000000e+00> : vector<36x8xf32>
    %56 = tpu.matmul %55, %41, %cst_28 {dimension_numbers = #tpu.dot_dimension_numbers<[1], [0], [0], [1], [0, 0, 1, 1], [], []>} : vector<36x36xf32>, vector<36x8xf32>, vector<36x8xf32> -> vector<36x8xf32>
    %57 = arith.truncf %56 : vector<36x8xf32> to vector<36x8xbf16>
    %58 = vector.extract_strided_slice %10 {offsets = [8, 0], sizes = [8, 32], strides = [1, 1]} : vector<32x32xbf16> to vector<8x32xbf16>
    %cst_29 = arith.constant dense<0.000000e+00> : vector<36x32xf32>
    %59 = tpu.matmul %57, %58, %cst_29 {dimension_numbers = #tpu.dot_dimension_numbers<[1], [0], [0], [1], [0, 0, 1, 1], [], []>} : vector<36x8xbf16>, vector<8x32xbf16>, vector<36x32xf32> -> vector<36x32xf32>
    %60 = arith.addf %38, %59 : vector<36x32xf32>
    %61 = vector.extract_strided_slice %17 {offsets = [0, 16], sizes = [36, 8], strides = [1, 1]} : vector<36x96xf32> to vector<36x8xf32>
    %62 = vector.extract_strided_slice %17 {offsets = [0, 48], sizes = [36, 8], strides = [1, 1]} : vector<36x96xf32> to vector<36x8xf32>
    %63 = vector.extract_strided_slice %17 {offsets = [0, 80], sizes = [36, 8], strides = [1, 1]} : vector<36x96xf32> to vector<36x8xf32>
    %cst_30 = arith.constant dense<0.000000e+00> : vector<36x36xf32>
    %64 = tpu.matmul %61, %62, %cst_30 {dimension_numbers = #tpu.dot_dimension_numbers<[1], [1], [0], [0], [0, 0, 1, 0], [], []>} : vector<36x8xf32>, vector<36x8xf32>, vector<36x36xf32> -> vector<36x36xf32>
    %cst_31 = arith.constant 0.353553385 : f32
    %65 = vector.broadcast %cst_31 : f32 to vector<36x36xf32>
    %66 = arith.mulf %64, %65 : vector<36x36xf32>
    %67 = arith.addf %66, %8 : vector<36x36xf32>
    %cst_32 = arith.constant dense<0xFF800000> : vector<36xf32>
    %68 = vector.multi_reduction <maximumf>, %67, %cst_32 [1] : vector<36x36xf32> to vector<36xf32>
    %69 = vector.shape_cast %68 : vector<36xf32> to vector<36x1xf32>
    %70 = vector.broadcast %69 : vector<36x1xf32> to vector<36x36xf32>
    %71 = arith.subf %67, %70 : vector<36x36xf32>
    %72 = math.exp %71 : vector<36x36xf32>
    %cst_33 = arith.constant dense<0.000000e+00> : vector<36xf32>
    %73 = vector.multi_reduction <add>, %72, %cst_33 [1] : vector<36x36xf32> to vector<36xf32>
    %74 = vector.shape_cast %73 : vector<36xf32> to vector<36x1xf32>
    %75 = tpu.reciprocal %74 {approx = true} : vector<36x1xf32> -> vector<36x1xf32>
    %76 = vector.broadcast %75 : vector<36x1xf32> to vector<36x36xf32>
    %77 = arith.mulf %72, %76 : vector<36x36xf32>
    %cst_34 = arith.constant dense<0.000000e+00> : vector<36x8xf32>
    %78 = tpu.matmul %77, %63, %cst_34 {dimension_numbers = #tpu.dot_dimension_numbers<[1], [0], [0], [1], [0, 0, 1, 1], [], []>} : vector<36x36xf32>, vector<36x8xf32>, vector<36x8xf32> -> vector<36x8xf32>
    %79 = arith.truncf %78 : vector<36x8xf32> to vector<36x8xbf16>
    %80 = vector.extract_strided_slice %10 {offsets = [16, 0], sizes = [8, 32], strides = [1, 1]} : vector<32x32xbf16> to vector<8x32xbf16>
    %cst_35 = arith.constant dense<0.000000e+00> : vector<36x32xf32>
    %81 = tpu.matmul %79, %80, %cst_35 {dimension_numbers = #tpu.dot_dimension_numbers<[1], [0], [0], [1], [0, 0, 1, 1], [], []>} : vector<36x8xbf16>, vector<8x32xbf16>, vector<36x32xf32> -> vector<36x32xf32>
    %82 = arith.addf %60, %81 : vector<36x32xf32>
    %83 = vector.extract_strided_slice %17 {offsets = [0, 24], sizes = [36, 8], strides = [1, 1]} : vector<36x96xf32> to vector<36x8xf32>
    %84 = vector.extract_strided_slice %17 {offsets = [0, 56], sizes = [36, 8], strides = [1, 1]} : vector<36x96xf32> to vector<36x8xf32>
    %85 = vector.extract_strided_slice %17 {offsets = [0, 88], sizes = [36, 8], strides = [1, 1]} : vector<36x96xf32> to vector<36x8xf32>
    %cst_36 = arith.constant dense<0.000000e+00> : vector<36x36xf32>
    %86 = tpu.matmul %83, %84, %cst_36 {dimension_numbers = #tpu.dot_dimension_numbers<[1], [1], [0], [0], [0, 0, 1, 0], [], []>} : vector<36x8xf32>, vector<36x8xf32>, vector<36x36xf32> -> vector<36x36xf32>
    %cst_37 = arith.constant 0.353553385 : f32
    %87 = vector.broadcast %cst_37 : f32 to vector<36x36xf32>
    %88 = arith.mulf %86, %87 : vector<36x36xf32>
    %89 = arith.addf %88, %8 : vector<36x36xf32>
    %cst_38 = arith.constant dense<0xFF800000> : vector<36xf32>
    %90 = vector.multi_reduction <maximumf>, %89, %cst_38 [1] : vector<36x36xf32> to vector<36xf32>
    %91 = vector.shape_cast %90 : vector<36xf32> to vector<36x1xf32>
    %92 = vector.broadcast %91 : vector<36x1xf32> to vector<36x36xf32>
    %93 = arith.subf %89, %92 : vector<36x36xf32>
    %94 = math.exp %93 : vector<36x36xf32>
    %cst_39 = arith.constant dense<0.000000e+00> : vector<36xf32>
    %95 = vector.multi_reduction <add>, %94, %cst_39 [1] : vector<36x36xf32> to vector<36xf32>
    %96 = vector.shape_cast %95 : vector<36xf32> to vector<36x1xf32>
    %97 = tpu.reciprocal %96 {approx = true} : vector<36x1xf32> -> vector<36x1xf32>
    %98 = vector.broadcast %97 : vector<36x1xf32> to vector<36x36xf32>
    %99 = arith.mulf %94, %98 : vector<36x36xf32>
    %cst_40 = arith.constant dense<0.000000e+00> : vector<36x8xf32>
    %100 = tpu.matmul %99, %85, %cst_40 {dimension_numbers = #tpu.dot_dimension_numbers<[1], [0], [0], [1], [0, 0, 1, 1], [], []>} : vector<36x36xf32>, vector<36x8xf32>, vector<36x8xf32> -> vector<36x8xf32>
    %101 = arith.truncf %100 : vector<36x8xf32> to vector<36x8xbf16>
    %102 = vector.extract_strided_slice %10 {offsets = [24, 0], sizes = [8, 32], strides = [1, 1]} : vector<32x32xbf16> to vector<8x32xbf16>
    %cst_41 = arith.constant dense<0.000000e+00> : vector<36x32xf32>
    %103 = tpu.matmul %101, %102, %cst_41 {dimension_numbers = #tpu.dot_dimension_numbers<[1], [0], [0], [1], [0, 0, 1, 1], [], []>} : vector<36x8xbf16>, vector<8x32xbf16>, vector<36x32xf32> -> vector<36x32xf32>
    %104 = arith.addf %82, %103 : vector<36x32xf32>
    %105 = arith.addf %7, %104 : vector<36x32xf32>
    %c0_42 = arith.constant 0 : index
    %c0_43 = arith.constant 0 : index
    %106 = vector.load %arg8[%c0_42, %c0_43] : memref<1x32xf32, #tpu.memory_space<vmem>>, vector<1x32xf32>
    %107 = vector.broadcast %106 : vector<1x32xf32> to vector<36x32xf32>
    %108 = arith.addf %105, %107 : vector<36x32xf32>
    %c0_44 = arith.constant 0 : index
    %c0_45 = arith.constant 0 : index
    %109 = vector.load %arg9[%c0_44, %c0_45] : memref<1x32xf32, #tpu.memory_space<vmem>>, vector<1x32xf32>
    %c0_46 = arith.constant 0 : index
    %c0_47 = arith.constant 0 : index
    %110 = vector.load %arg10[%c0_46, %c0_47] : memref<1x32xf32, #tpu.memory_space<vmem>>, vector<1x32xf32>
    %cst_48 = arith.constant dense<0.000000e+00> : vector<36xf32>
    %111 = vector.multi_reduction <add>, %108, %cst_48 [1] : vector<36x32xf32> to vector<36xf32>
    %112 = vector.shape_cast %111 : vector<36xf32> to vector<36x1xf32>
    %cst_49 = arith.constant 3.200000e+01 : f32
    %113 = vector.broadcast %cst_49 : f32 to vector<36x1xf32>
    %114 = arith.divf %112, %113 : vector<36x1xf32>
    %115 = vector.broadcast %114 : vector<36x1xf32> to vector<36x32xf32>
    %116 = arith.subf %108, %115 : vector<36x32xf32>
    %117 = arith.mulf %116, %116 : vector<36x32xf32>
    %cst_50 = arith.constant dense<0.000000e+00> : vector<36xf32>
    %118 = vector.multi_reduction <add>, %117, %cst_50 [1] : vector<36x32xf32> to vector<36xf32>
    %119 = vector.shape_cast %118 : vector<36xf32> to vector<36x1xf32>
    %cst_51 = arith.constant 3.200000e+01 : f32
    %120 = vector.broadcast %cst_51 : f32 to vector<36x1xf32>
    %121 = arith.divf %119, %120 : vector<36x1xf32>
    %122 = vector.broadcast %114 : vector<36x1xf32> to vector<36x32xf32>
    %123 = arith.subf %108, %122 : vector<36x32xf32>
    %cst_52 = arith.constant 9.99999974E-6 : f32
    %124 = vector.broadcast %cst_52 : f32 to vector<36x1xf32>
    %125 = arith.addf %121, %124 : vector<36x1xf32>
    %126 = math.rsqrt %125 : vector<36x1xf32>
    %127 = vector.broadcast %126 : vector<36x1xf32> to vector<36x32xf32>
    %128 = arith.mulf %123, %127 : vector<36x32xf32>
    %129 = vector.broadcast %109 : vector<1x32xf32> to vector<36x32xf32>
    %130 = arith.mulf %128, %129 : vector<36x32xf32>
    %131 = vector.broadcast %110 : vector<1x32xf32> to vector<36x32xf32>
    %132 = arith.addf %130, %131 : vector<36x32xf32>
    %133 = arith.truncf %132 : vector<36x32xf32> to vector<36x32xbf16>
    %cst_53 = arith.constant dense<0.000000e+00> : vector<36x2048xf32>
    %134 = tpu.matmul %133, %11, %cst_53 {dimension_numbers = #tpu.dot_dimension_numbers<[1], [0], [0], [1], [0, 0, 1, 1], [], []>} : vector<36x32xbf16>, vector<32x2048xbf16>, vector<36x2048xf32> -> vector<36x2048xf32>
    %c0_54 = arith.constant 0 : index
    %c0_55 = arith.constant 0 : index
    %135 = vector.load %arg14[%c0_54, %c0_55] : memref<1x2048xf32, #tpu.memory_space<vmem>>, vector<1x2048xf32>
    %136 = vector.broadcast %135 : vector<1x2048xf32> to vector<36x2048xf32>
    %137 = arith.addf %134, %136 : vector<36x2048xf32>
    %cst_56 = arith.constant 0.000000e+00 : f32
    %138 = vector.broadcast %cst_56 : f32 to vector<36x2048xf32>
    %139 = arith.maximumf %137, %138 : vector<36x2048xf32>
    %140 = arith.truncf %139 : vector<36x2048xf32> to vector<36x2048xbf16>
    %cst_57 = arith.constant dense<0.000000e+00> : vector<36x32xf32>
    %141 = tpu.matmul %140, %12, %cst_57 {dimension_numbers = #tpu.dot_dimension_numbers<[1], [0], [0], [1], [0, 0, 1, 1], [], []>} : vector<36x2048xbf16>, vector<2048x32xbf16>, vector<36x32xf32> -> vector<36x32xf32>
    %c0_58 = arith.constant 0 : index
    %c0_59 = arith.constant 0 : index
    %142 = vector.load %arg16[%c0_58, %c0_59] : memref<1x32xf32, #tpu.memory_space<vmem>>, vector<1x32xf32>
    %143 = vector.broadcast %142 : vector<1x32xf32> to vector<36x32xf32>
    %144 = arith.addf %141, %143 : vector<36x32xf32>
    %145 = arith.addf %132, %144 : vector<36x32xf32>
    %c0_60 = arith.constant 0 : index
    %c0_61 = arith.constant 0 : index
    %146 = vector.load %arg11[%c0_60, %c0_61] : memref<1x32xf32, #tpu.memory_space<vmem>>, vector<1x32xf32>
    %c0_62 = arith.constant 0 : index
    %c0_63 = arith.constant 0 : index
    %147 = vector.load %arg12[%c0_62, %c0_63] : memref<1x32xf32, #tpu.memory_space<vmem>>, vector<1x32xf32>
    %cst_64 = arith.constant dense<0.000000e+00> : vector<36xf32>
    %148 = vector.multi_reduction <add>, %145, %cst_64 [1] : vector<36x32xf32> to vector<36xf32>
    %149 = vector.shape_cast %148 : vector<36xf32> to vector<36x1xf32>
    %cst_65 = arith.constant 3.200000e+01 : f32
    %150 = vector.broadcast %cst_65 : f32 to vector<36x1xf32>
    %151 = arith.divf %149, %150 : vector<36x1xf32>
    %152 = vector.broadcast %151 : vector<36x1xf32> to vector<36x32xf32>
    %153 = arith.subf %145, %152 : vector<36x32xf32>
    %154 = arith.mulf %153, %153 : vector<36x32xf32>
    %cst_66 = arith.constant dense<0.000000e+00> : vector<36xf32>
    %155 = vector.multi_reduction <add>, %154, %cst_66 [1] : vector<36x32xf32> to vector<36xf32>
    %156 = vector.shape_cast %155 : vector<36xf32> to vector<36x1xf32>
    %cst_67 = arith.constant 3.200000e+01 : f32
    %157 = vector.broadcast %cst_67 : f32 to vector<36x1xf32>
    %158 = arith.divf %156, %157 : vector<36x1xf32>
    %159 = vector.broadcast %151 : vector<36x1xf32> to vector<36x32xf32>
    %160 = arith.subf %145, %159 : vector<36x32xf32>
    %cst_68 = arith.constant 9.99999974E-6 : f32
    %161 = vector.broadcast %cst_68 : f32 to vector<36x1xf32>
    %162 = arith.addf %158, %161 : vector<36x1xf32>
    %163 = math.rsqrt %162 : vector<36x1xf32>
    %164 = vector.broadcast %163 : vector<36x1xf32> to vector<36x32xf32>
    %165 = arith.mulf %160, %164 : vector<36x32xf32>
    %166 = vector.broadcast %146 : vector<1x32xf32> to vector<36x32xf32>
    %167 = arith.mulf %165, %166 : vector<36x32xf32>
    %168 = vector.broadcast %147 : vector<1x32xf32> to vector<36x32xf32>
    %169 = arith.addf %167, %168 : vector<36x32xf32>
    %c0_69 = arith.constant 0 : index
    %c0_70 = arith.constant 0 : index
    %170 = vector.load %arg17[%c0_69, %c0_70] : memref<32x96xbf16, #tpu.memory_space<vmem>>, vector<32x96xbf16>
    %c0_71 = arith.constant 0 : index
    %c0_72 = arith.constant 0 : index
    %171 = vector.load %arg19[%c0_71, %c0_72] : memref<32x32xbf16, #tpu.memory_space<vmem>>, vector<32x32xbf16>
    %c0_73 = arith.constant 0 : index
    %c0_74 = arith.constant 0 : index
    %172 = vector.load %arg25[%c0_73, %c0_74] : memref<32x2048xbf16, #tpu.memory_space<vmem>>, vector<32x2048xbf16>
    %c0_75 = arith.constant 0 : index
    %c0_76 = arith.constant 0 : index
    %173 = vector.load %arg27[%c0_75, %c0_76] : memref<2048x32xbf16, #tpu.memory_space<vmem>>, vector<2048x32xbf16>
    %174 = arith.truncf %169 : vector<36x32xf32> to vector<36x32xbf16>
    %cst_77 = arith.constant dense<0.000000e+00> : vector<36x96xf32>
    %175 = tpu.matmul %174, %170, %cst_77 {dimension_numbers = #tpu.dot_dimension_numbers<[1], [0], [0], [1], [0, 0, 1, 1], [], []>} : vector<36x32xbf16>, vector<32x96xbf16>, vector<36x96xf32> -> vector<36x96xf32>
    %c0_78 = arith.constant 0 : index
    %c0_79 = arith.constant 0 : index
    %176 = vector.load %arg18[%c0_78, %c0_79] : memref<1x96xf32, #tpu.memory_space<vmem>>, vector<1x96xf32>
    %177 = vector.broadcast %176 : vector<1x96xf32> to vector<36x96xf32>
    %178 = arith.addf %175, %177 : vector<36x96xf32>
    %179 = vector.extract_strided_slice %178 {offsets = [0, 0], sizes = [36, 8], strides = [1, 1]} : vector<36x96xf32> to vector<36x8xf32>
    %180 = vector.extract_strided_slice %178 {offsets = [0, 32], sizes = [36, 8], strides = [1, 1]} : vector<36x96xf32> to vector<36x8xf32>
    %181 = vector.extract_strided_slice %178 {offsets = [0, 64], sizes = [36, 8], strides = [1, 1]} : vector<36x96xf32> to vector<36x8xf32>
    %cst_80 = arith.constant dense<0.000000e+00> : vector<36x36xf32>
    %182 = tpu.matmul %179, %180, %cst_80 {dimension_numbers = #tpu.dot_dimension_numbers<[1], [1], [0], [0], [0, 0, 1, 0], [], []>} : vector<36x8xf32>, vector<36x8xf32>, vector<36x36xf32> -> vector<36x36xf32>
    %cst_81 = arith.constant 0.353553385 : f32
    %183 = vector.broadcast %cst_81 : f32 to vector<36x36xf32>
    %184 = arith.mulf %182, %183 : vector<36x36xf32>
    %185 = arith.addf %184, %8 : vector<36x36xf32>
    %cst_82 = arith.constant dense<0xFF800000> : vector<36xf32>
    %186 = vector.multi_reduction <maximumf>, %185, %cst_82 [1] : vector<36x36xf32> to vector<36xf32>
    %187 = vector.shape_cast %186 : vector<36xf32> to vector<36x1xf32>
    %188 = vector.broadcast %187 : vector<36x1xf32> to vector<36x36xf32>
    %189 = arith.subf %185, %188 : vector<36x36xf32>
    %190 = math.exp %189 : vector<36x36xf32>
    %cst_83 = arith.constant dense<0.000000e+00> : vector<36xf32>
    %191 = vector.multi_reduction <add>, %190, %cst_83 [1] : vector<36x36xf32> to vector<36xf32>
    %192 = vector.shape_cast %191 : vector<36xf32> to vector<36x1xf32>
    %193 = tpu.reciprocal %192 {approx = true} : vector<36x1xf32> -> vector<36x1xf32>
    %194 = vector.broadcast %193 : vector<36x1xf32> to vector<36x36xf32>
    %195 = arith.mulf %190, %194 : vector<36x36xf32>
    %cst_84 = arith.constant dense<0.000000e+00> : vector<36x8xf32>
    %196 = tpu.matmul %195, %181, %cst_84 {dimension_numbers = #tpu.dot_dimension_numbers<[1], [0], [0], [1], [0, 0, 1, 1], [], []>} : vector<36x36xf32>, vector<36x8xf32>, vector<36x8xf32> -> vector<36x8xf32>
    %197 = arith.truncf %196 : vector<36x8xf32> to vector<36x8xbf16>
    %198 = vector.extract_strided_slice %171 {offsets = [0, 0], sizes = [8, 32], strides = [1, 1]} : vector<32x32xbf16> to vector<8x32xbf16>
    %cst_85 = arith.constant dense<0.000000e+00> : vector<36x32xf32>
    %199 = tpu.matmul %197, %198, %cst_85 {dimension_numbers = #tpu.dot_dimension_numbers<[1], [0], [0], [1], [0, 0, 1, 1], [], []>} : vector<36x8xbf16>, vector<8x32xbf16>, vector<36x32xf32> -> vector<36x32xf32>
    %200 = vector.extract_strided_slice %178 {offsets = [0, 8], sizes = [36, 8], strides = [1, 1]} : vector<36x96xf32> to vector<36x8xf32>
    %201 = vector.extract_strided_slice %178 {offsets = [0, 40], sizes = [36, 8], strides = [1, 1]} : vector<36x96xf32> to vector<36x8xf32>
    %202 = vector.extract_strided_slice %178 {offsets = [0, 72], sizes = [36, 8], strides = [1, 1]} : vector<36x96xf32> to vector<36x8xf32>
    %cst_86 = arith.constant dense<0.000000e+00> : vector<36x36xf32>
    %203 = tpu.matmul %200, %201, %cst_86 {dimension_numbers = #tpu.dot_dimension_numbers<[1], [1], [0], [0], [0, 0, 1, 0], [], []>} : vector<36x8xf32>, vector<36x8xf32>, vector<36x36xf32> -> vector<36x36xf32>
    %cst_87 = arith.constant 0.353553385 : f32
    %204 = vector.broadcast %cst_87 : f32 to vector<36x36xf32>
    %205 = arith.mulf %203, %204 : vector<36x36xf32>
    %206 = arith.addf %205, %8 : vector<36x36xf32>
    %cst_88 = arith.constant dense<0xFF800000> : vector<36xf32>
    %207 = vector.multi_reduction <maximumf>, %206, %cst_88 [1] : vector<36x36xf32> to vector<36xf32>
    %208 = vector.shape_cast %207 : vector<36xf32> to vector<36x1xf32>
    %209 = vector.broadcast %208 : vector<36x1xf32> to vector<36x36xf32>
    %210 = arith.subf %206, %209 : vector<36x36xf32>
    %211 = math.exp %210 : vector<36x36xf32>
    %cst_89 = arith.constant dense<0.000000e+00> : vector<36xf32>
    %212 = vector.multi_reduction <add>, %211, %cst_89 [1] : vector<36x36xf32> to vector<36xf32>
    %213 = vector.shape_cast %212 : vector<36xf32> to vector<36x1xf32>
    %214 = tpu.reciprocal %213 {approx = true} : vector<36x1xf32> -> vector<36x1xf32>
    %215 = vector.broadcast %214 : vector<36x1xf32> to vector<36x36xf32>
    %216 = arith.mulf %211, %215 : vector<36x36xf32>
    %cst_90 = arith.constant dense<0.000000e+00> : vector<36x8xf32>
    %217 = tpu.matmul %216, %202, %cst_90 {dimension_numbers = #tpu.dot_dimension_numbers<[1], [0], [0], [1], [0, 0, 1, 1], [], []>} : vector<36x36xf32>, vector<36x8xf32>, vector<36x8xf32> -> vector<36x8xf32>
    %218 = arith.truncf %217 : vector<36x8xf32> to vector<36x8xbf16>
    %219 = vector.extract_strided_slice %171 {offsets = [8, 0], sizes = [8, 32], strides = [1, 1]} : vector<32x32xbf16> to vector<8x32xbf16>
    %cst_91 = arith.constant dense<0.000000e+00> : vector<36x32xf32>
    %220 = tpu.matmul %218, %219, %cst_91 {dimension_numbers = #tpu.dot_dimension_numbers<[1], [0], [0], [1], [0, 0, 1, 1], [], []>} : vector<36x8xbf16>, vector<8x32xbf16>, vector<36x32xf32> -> vector<36x32xf32>
    %221 = arith.addf %199, %220 : vector<36x32xf32>
    %222 = vector.extract_strided_slice %178 {offsets = [0, 16], sizes = [36, 8], strides = [1, 1]} : vector<36x96xf32> to vector<36x8xf32>
    %223 = vector.extract_strided_slice %178 {offsets = [0, 48], sizes = [36, 8], strides = [1, 1]} : vector<36x96xf32> to vector<36x8xf32>
    %224 = vector.extract_strided_slice %178 {offsets = [0, 80], sizes = [36, 8], strides = [1, 1]} : vector<36x96xf32> to vector<36x8xf32>
    %cst_92 = arith.constant dense<0.000000e+00> : vector<36x36xf32>
    %225 = tpu.matmul %222, %223, %cst_92 {dimension_numbers = #tpu.dot_dimension_numbers<[1], [1], [0], [0], [0, 0, 1, 0], [], []>} : vector<36x8xf32>, vector<36x8xf32>, vector<36x36xf32> -> vector<36x36xf32>
    %cst_93 = arith.constant 0.353553385 : f32
    %226 = vector.broadcast %cst_93 : f32 to vector<36x36xf32>
    %227 = arith.mulf %225, %226 : vector<36x36xf32>
    %228 = arith.addf %227, %8 : vector<36x36xf32>
    %cst_94 = arith.constant dense<0xFF800000> : vector<36xf32>
    %229 = vector.multi_reduction <maximumf>, %228, %cst_94 [1] : vector<36x36xf32> to vector<36xf32>
    %230 = vector.shape_cast %229 : vector<36xf32> to vector<36x1xf32>
    %231 = vector.broadcast %230 : vector<36x1xf32> to vector<36x36xf32>
    %232 = arith.subf %228, %231 : vector<36x36xf32>
    %233 = math.exp %232 : vector<36x36xf32>
    %cst_95 = arith.constant dense<0.000000e+00> : vector<36xf32>
    %234 = vector.multi_reduction <add>, %233, %cst_95 [1] : vector<36x36xf32> to vector<36xf32>
    %235 = vector.shape_cast %234 : vector<36xf32> to vector<36x1xf32>
    %236 = tpu.reciprocal %235 {approx = true} : vector<36x1xf32> -> vector<36x1xf32>
    %237 = vector.broadcast %236 : vector<36x1xf32> to vector<36x36xf32>
    %238 = arith.mulf %233, %237 : vector<36x36xf32>
    %cst_96 = arith.constant dense<0.000000e+00> : vector<36x8xf32>
    %239 = tpu.matmul %238, %224, %cst_96 {dimension_numbers = #tpu.dot_dimension_numbers<[1], [0], [0], [1], [0, 0, 1, 1], [], []>} : vector<36x36xf32>, vector<36x8xf32>, vector<36x8xf32> -> vector<36x8xf32>
    %240 = arith.truncf %239 : vector<36x8xf32> to vector<36x8xbf16>
    %241 = vector.extract_strided_slice %171 {offsets = [16, 0], sizes = [8, 32], strides = [1, 1]} : vector<32x32xbf16> to vector<8x32xbf16>
    %cst_97 = arith.constant dense<0.000000e+00> : vector<36x32xf32>
    %242 = tpu.matmul %240, %241, %cst_97 {dimension_numbers = #tpu.dot_dimension_numbers<[1], [0], [0], [1], [0, 0, 1, 1], [], []>} : vector<36x8xbf16>, vector<8x32xbf16>, vector<36x32xf32> -> vector<36x32xf32>
    %243 = arith.addf %221, %242 : vector<36x32xf32>
    %244 = vector.extract_strided_slice %178 {offsets = [0, 24], sizes = [36, 8], strides = [1, 1]} : vector<36x96xf32> to vector<36x8xf32>
    %245 = vector.extract_strided_slice %178 {offsets = [0, 56], sizes = [36, 8], strides = [1, 1]} : vector<36x96xf32> to vector<36x8xf32>
    %246 = vector.extract_strided_slice %178 {offsets = [0, 88], sizes = [36, 8], strides = [1, 1]} : vector<36x96xf32> to vector<36x8xf32>
    %cst_98 = arith.constant dense<0.000000e+00> : vector<36x36xf32>
    %247 = tpu.matmul %244, %245, %cst_98 {dimension_numbers = #tpu.dot_dimension_numbers<[1], [1], [0], [0], [0, 0, 1, 0], [], []>} : vector<36x8xf32>, vector<36x8xf32>, vector<36x36xf32> -> vector<36x36xf32>
    %cst_99 = arith.constant 0.353553385 : f32
    %248 = vector.broadcast %cst_99 : f32 to vector<36x36xf32>
    %249 = arith.mulf %247, %248 : vector<36x36xf32>
    %250 = arith.addf %249, %8 : vector<36x36xf32>
    %cst_100 = arith.constant dense<0xFF800000> : vector<36xf32>
    %251 = vector.multi_reduction <maximumf>, %250, %cst_100 [1] : vector<36x36xf32> to vector<36xf32>
    %252 = vector.shape_cast %251 : vector<36xf32> to vector<36x1xf32>
    %253 = vector.broadcast %252 : vector<36x1xf32> to vector<36x36xf32>
    %254 = arith.subf %250, %253 : vector<36x36xf32>
    %255 = math.exp %254 : vector<36x36xf32>
    %cst_101 = arith.constant dense<0.000000e+00> : vector<36xf32>
    %256 = vector.multi_reduction <add>, %255, %cst_101 [1] : vector<36x36xf32> to vector<36xf32>
    %257 = vector.shape_cast %256 : vector<36xf32> to vector<36x1xf32>
    %258 = tpu.reciprocal %257 {approx = true} : vector<36x1xf32> -> vector<36x1xf32>
    %259 = vector.broadcast %258 : vector<36x1xf32> to vector<36x36xf32>
    %260 = arith.mulf %255, %259 : vector<36x36xf32>
    %cst_102 = arith.constant dense<0.000000e+00> : vector<36x8xf32>
    %261 = tpu.matmul %260, %246, %cst_102 {dimension_numbers = #tpu.dot_dimension_numbers<[1], [0], [0], [1], [0, 0, 1, 1], [], []>} : vector<36x36xf32>, vector<36x8xf32>, vector<36x8xf32> -> vector<36x8xf32>
    %262 = arith.truncf %261 : vector<36x8xf32> to vector<36x8xbf16>
    %263 = vector.extract_strided_slice %171 {offsets = [24, 0], sizes = [8, 32], strides = [1, 1]} : vector<32x32xbf16> to vector<8x32xbf16>
    %cst_103 = arith.constant dense<0.000000e+00> : vector<36x32xf32>
    %264 = tpu.matmul %262, %263, %cst_103 {dimension_numbers = #tpu.dot_dimension_numbers<[1], [0], [0], [1], [0, 0, 1, 1], [], []>} : vector<36x8xbf16>, vector<8x32xbf16>, vector<36x32xf32> -> vector<36x32xf32>
    %265 = arith.addf %243, %264 : vector<36x32xf32>
    %266 = arith.addf %169, %265 : vector<36x32xf32>
    %c0_104 = arith.constant 0 : index
    %c0_105 = arith.constant 0 : index
    %267 = vector.load %arg20[%c0_104, %c0_105] : memref<1x32xf32, #tpu.memory_space<vmem>>, vector<1x32xf32>
    %268 = vector.broadcast %267 : vector<1x32xf32> to vector<36x32xf32>
    %269 = arith.addf %266, %268 : vector<36x32xf32>
    %c0_106 = arith.constant 0 : index
    %c0_107 = arith.constant 0 : index
    %270 = vector.load %arg21[%c0_106, %c0_107] : memref<1x32xf32, #tpu.memory_space<vmem>>, vector<1x32xf32>
    %c0_108 = arith.constant 0 : index
    %c0_109 = arith.constant 0 : index
    %271 = vector.load %arg22[%c0_108, %c0_109] : memref<1x32xf32, #tpu.memory_space<vmem>>, vector<1x32xf32>
    %cst_110 = arith.constant dense<0.000000e+00> : vector<36xf32>
    %272 = vector.multi_reduction <add>, %269, %cst_110 [1] : vector<36x32xf32> to vector<36xf32>
    %273 = vector.shape_cast %272 : vector<36xf32> to vector<36x1xf32>
    %cst_111 = arith.constant 3.200000e+01 : f32
    %274 = vector.broadcast %cst_111 : f32 to vector<36x1xf32>
    %275 = arith.divf %273, %274 : vector<36x1xf32>
    %276 = vector.broadcast %275 : vector<36x1xf32> to vector<36x32xf32>
    %277 = arith.subf %269, %276 : vector<36x32xf32>
    %278 = arith.mulf %277, %277 : vector<36x32xf32>
    %cst_112 = arith.constant dense<0.000000e+00> : vector<36xf32>
    %279 = vector.multi_reduction <add>, %278, %cst_112 [1] : vector<36x32xf32> to vector<36xf32>
    %280 = vector.shape_cast %279 : vector<36xf32> to vector<36x1xf32>
    %cst_113 = arith.constant 3.200000e+01 : f32
    %281 = vector.broadcast %cst_113 : f32 to vector<36x1xf32>
    %282 = arith.divf %280, %281 : vector<36x1xf32>
    %283 = vector.broadcast %275 : vector<36x1xf32> to vector<36x32xf32>
    %284 = arith.subf %269, %283 : vector<36x32xf32>
    %cst_114 = arith.constant 9.99999974E-6 : f32
    %285 = vector.broadcast %cst_114 : f32 to vector<36x1xf32>
    %286 = arith.addf %282, %285 : vector<36x1xf32>
    %287 = math.rsqrt %286 : vector<36x1xf32>
    %288 = vector.broadcast %287 : vector<36x1xf32> to vector<36x32xf32>
    %289 = arith.mulf %284, %288 : vector<36x32xf32>
    %290 = vector.broadcast %270 : vector<1x32xf32> to vector<36x32xf32>
    %291 = arith.mulf %289, %290 : vector<36x32xf32>
    %292 = vector.broadcast %271 : vector<1x32xf32> to vector<36x32xf32>
    %293 = arith.addf %291, %292 : vector<36x32xf32>
    %294 = arith.truncf %293 : vector<36x32xf32> to vector<36x32xbf16>
    %cst_115 = arith.constant dense<0.000000e+00> : vector<36x2048xf32>
    %295 = tpu.matmul %294, %172, %cst_115 {dimension_numbers = #tpu.dot_dimension_numbers<[1], [0], [0], [1], [0, 0, 1, 1], [], []>} : vector<36x32xbf16>, vector<32x2048xbf16>, vector<36x2048xf32> -> vector<36x2048xf32>
    %c0_116 = arith.constant 0 : index
    %c0_117 = arith.constant 0 : index
    %296 = vector.load %arg26[%c0_116, %c0_117] : memref<1x2048xf32, #tpu.memory_space<vmem>>, vector<1x2048xf32>
    %297 = vector.broadcast %296 : vector<1x2048xf32> to vector<36x2048xf32>
    %298 = arith.addf %295, %297 : vector<36x2048xf32>
    %cst_118 = arith.constant 0.000000e+00 : f32
    %299 = vector.broadcast %cst_118 : f32 to vector<36x2048xf32>
    %300 = arith.maximumf %298, %299 : vector<36x2048xf32>
    %301 = arith.truncf %300 : vector<36x2048xf32> to vector<36x2048xbf16>
    %cst_119 = arith.constant dense<0.000000e+00> : vector<36x32xf32>
    %302 = tpu.matmul %301, %173, %cst_119 {dimension_numbers = #tpu.dot_dimension_numbers<[1], [0], [0], [1], [0, 0, 1, 1], [], []>} : vector<36x2048xbf16>, vector<2048x32xbf16>, vector<36x32xf32> -> vector<36x32xf32>
    %c0_120 = arith.constant 0 : index
    %c0_121 = arith.constant 0 : index
    %303 = vector.load %arg28[%c0_120, %c0_121] : memref<1x32xf32, #tpu.memory_space<vmem>>, vector<1x32xf32>
    %304 = vector.broadcast %303 : vector<1x32xf32> to vector<36x32xf32>
    %305 = arith.addf %302, %304 : vector<36x32xf32>
    %306 = arith.addf %293, %305 : vector<36x32xf32>
    %c0_122 = arith.constant 0 : index
    %c0_123 = arith.constant 0 : index
    %307 = vector.load %arg23[%c0_122, %c0_123] : memref<1x32xf32, #tpu.memory_space<vmem>>, vector<1x32xf32>
    %c0_124 = arith.constant 0 : index
    %c0_125 = arith.constant 0 : index
    %308 = vector.load %arg24[%c0_124, %c0_125] : memref<1x32xf32, #tpu.memory_space<vmem>>, vector<1x32xf32>
    %cst_126 = arith.constant dense<0.000000e+00> : vector<36xf32>
    %309 = vector.multi_reduction <add>, %306, %cst_126 [1] : vector<36x32xf32> to vector<36xf32>
    %310 = vector.shape_cast %309 : vector<36xf32> to vector<36x1xf32>
    %cst_127 = arith.constant 3.200000e+01 : f32
    %311 = vector.broadcast %cst_127 : f32 to vector<36x1xf32>
    %312 = arith.divf %310, %311 : vector<36x1xf32>
    %313 = vector.broadcast %312 : vector<36x1xf32> to vector<36x32xf32>
    %314 = arith.subf %306, %313 : vector<36x32xf32>
    %315 = arith.mulf %314, %314 : vector<36x32xf32>
    %cst_128 = arith.constant dense<0.000000e+00> : vector<36xf32>
    %316 = vector.multi_reduction <add>, %315, %cst_128 [1] : vector<36x32xf32> to vector<36xf32>
    %317 = vector.shape_cast %316 : vector<36xf32> to vector<36x1xf32>
    %cst_129 = arith.constant 3.200000e+01 : f32
    %318 = vector.broadcast %cst_129 : f32 to vector<36x1xf32>
    %319 = arith.divf %317, %318 : vector<36x1xf32>
    %320 = vector.broadcast %312 : vector<36x1xf32> to vector<36x32xf32>
    %321 = arith.subf %306, %320 : vector<36x32xf32>
    %cst_130 = arith.constant 9.99999974E-6 : f32
    %322 = vector.broadcast %cst_130 : f32 to vector<36x1xf32>
    %323 = arith.addf %319, %322 : vector<36x1xf32>
    %324 = math.rsqrt %323 : vector<36x1xf32>
    %325 = vector.broadcast %324 : vector<36x1xf32> to vector<36x32xf32>
    %326 = arith.mulf %321, %325 : vector<36x32xf32>
    %327 = vector.broadcast %307 : vector<1x32xf32> to vector<36x32xf32>
    %328 = arith.mulf %326, %327 : vector<36x32xf32>
    %329 = vector.broadcast %308 : vector<1x32xf32> to vector<36x32xf32>
    %330 = arith.addf %328, %329 : vector<36x32xf32>
    %331 = vector.extract_strided_slice %330 {offsets = [0, 0], sizes = [4, 32], strides = [1, 1]} : vector<36x32xf32> to vector<4x32xf32>
    %c0_131 = arith.constant 0 : index
    %c0_132 = arith.constant 0 : index
    %c0_133 = arith.constant 0 : index
    %332 = vector.load %arg29[%c0_131, %c0_132, %c0_133] : memref<1x4x32xf32, #tpu.memory_space<vmem>>, vector<1x4x32xf32>
    %333 = vector.shape_cast %332 : vector<1x4x32xf32> to vector<4x32xf32>
    %334 = vector.shape_cast %331 : vector<4x32xf32> to vector<1x4x32xf32>
    tpu.vector_store %arg29[%c0_131, %c0_132, %c0_133], %334 {strides = array<i32>} : memref<1x4x32xf32, #tpu.memory_space<vmem>>, vector<1x4x32xf32>,
    return
  }
  func.func @transform_0(%arg0: i32) -> (i32, i32, i32) {
    %c0_i32 = arith.constant 0 : i32
    %c0_i32_0 = arith.constant 0 : i32
    %c0_i32_1 = arith.constant 0 : i32
    return %arg0, %c0_i32, %c0_i32_0 : i32, i32, i32
  }
  func.func @transform_1(%arg0: i32) -> (i32, i32) {
    %c0_i32 = arith.constant 0 : i32
    %c0_i32_0 = arith.constant 0 : i32
    %c0_i32_1 = arith.constant 0 : i32
    return %c0_i32, %c0_i32_0 : i32, i32
  }
  func.func @transform_2(%arg0: i32) -> (i32, i32) {
    %c0_i32 = arith.constant 0 : i32
    %c0_i32_0 = arith.constant 0 : i32
    %c0_i32_1 = arith.constant 0 : i32
    return %c0_i32, %c0_i32_0 : i32, i32
  }
  func.func @transform_3(%arg0: i32) -> (i32, i32) {
    %c0_i32 = arith.constant 0 : i32
    %c0_i32_0 = arith.constant 0 : i32
    %c0_i32_1 = arith.constant 0 : i32
    return %c0_i32, %c0_i32_0 : i32, i32
  }
  func.func @transform_4(%arg0: i32) -> (i32, i32) {
    %c0_i32 = arith.constant 0 : i32
    %c0_i32_0 = arith.constant 0 : i32
    %c0_i32_1 = arith.constant 0 : i32
    return %c0_i32, %c0_i32_0 : i32, i32
  }
  func.func @transform_5(%arg0: i32) -> (i32, i32) {
    %c0_i32 = arith.constant 0 : i32
    %c0_i32_0 = arith.constant 0 : i32
    %c0_i32_1 = arith.constant 0 : i32
    return %c0_i32, %c0_i32_0 : i32, i32
  }
  func.func @transform_6(%arg0: i32) -> (i32, i32) {
    %c0_i32 = arith.constant 0 : i32
    %c0_i32_0 = arith.constant 0 : i32
    %c0_i32_1 = arith.constant 0 : i32
    return %c0_i32, %c0_i32_0 : i32, i32
  }
  func.func @transform_7(%arg0: i32) -> (i32, i32) {
    %c0_i32 = arith.constant 0 : i32
    %c0_i32_0 = arith.constant 0 : i32
    %c0_i32_1 = arith.constant 0 : i32
    return %c0_i32, %c0_i32_0 : i32, i32
  }
  func.func @transform_8(%arg0: i32) -> (i32, i32) {
    %c0_i32 = arith.constant 0 : i32
    %c0_i32_0 = arith.constant 0 : i32
    %c0_i32_1 = arith.constant 0 : i32
    return %c0_i32, %c0_i32_0 : i32, i32
  }
  func.func @transform_9(%arg0: i32) -> (i32, i32) {
    %c0_i32 = arith.constant 0 : i32
    %c0_i32_0 = arith.constant 0 : i32
    %c0_i32_1 = arith.constant 0 : i32
    return %c0_i32, %c0_i32_0 : i32, i32
  }
  func.func @transform_10(%arg0: i32) -> (i32, i32) {
    %c0_i32 = arith.constant 0 : i32
    %c0_i32_0 = arith.constant 0 : i32
    %c0_i32_1 = arith.constant 0 : i32
    return %c0_i32, %c0_i32_0 : i32, i32
  }
  func.func @transform_11(%arg0: i32) -> (i32, i32) {
    %c0_i32 = arith.constant 0 : i32
    %c0_i32_0 = arith.constant 0 : i32
    %c0_i32_1 = arith.constant 0 : i32
    return %c0_i32, %c0_i32_0 : i32, i32
  }
  func.func @transform_12(%arg0: i32) -> (i32, i32) {
    %c0_i32 = arith.constant 0 : i32
    %c0_i32_0 = arith.constant 0 : i32
    %c0_i32_1 = arith.constant 0 : i32
    return %c0_i32, %c0_i32_0 : i32, i32
  }
  func.func @transform_13(%arg0: i32) -> (i32, i32) {
    %c0_i32 = arith.constant 0 : i32
    %c0_i32_0 = arith.constant 0 : i32
    %c0_i32_1 = arith.constant 0 : i32
    return %c0_i32, %c0_i32_0 : i32, i32
  }
  func.func @transform_14(%arg0: i32) -> (i32, i32) {
    %c0_i32 = arith.constant 0 : i32
    %c0_i32_0 = arith.constant 0 : i32
    %c0_i32_1 = arith.constant 0 : i32
    return %c0_i32, %c0_i32_0 : i32, i32
  }
  func.func @transform_15(%arg0: i32) -> (i32, i32) {
    %c0_i32 = arith.constant 0 : i32
    %c0_i32_0 = arith.constant 0 : i32
    %c0_i32_1 = arith.constant 0 : i32
    return %c0_i32, %c0_i32_0 : i32, i32
  }
  func.func @transform_16(%arg0: i32) -> (i32, i32) {
    %c0_i32 = arith.constant 0 : i32
    %c0_i32_0 = arith.constant 0 : i32
    %c0_i32_1 = arith.constant 0 : i32
    return %c0_i32, %c0_i32_0 : i32, i32
  }
  func.func @transform_17(%arg0: i32) -> (i32, i32) {
    %c0_i32 = arith.constant 0 : i32
    %c0_i32_0 = arith.constant 0 : i32
    %c0_i32_1 = arith.constant 0 : i32
    return %c0_i32, %c0_i32_0 : i32, i32
  }
  func.func @transform_18(%arg0: i32) -> (i32, i32) {
    %c0_i32 = arith.constant 0 : i32
    %c0_i32_0 = arith.constant 0 : i32
    %c0_i32_1 = arith.constant 0 : i32
    return %c0_i32, %c0_i32_0 : i32, i32
  }
  func.func @transform_19(%arg0: i32) -> (i32, i32) {
    %c0_i32 = arith.constant 0 : i32
    %c0_i32_0 = arith.constant 0 : i32
    %c0_i32_1 = arith.constant 0 : i32
    return %c0_i32, %c0_i32_0 : i32, i32
  }
  func.func @transform_20(%arg0: i32) -> (i32, i32) {
    %c0_i32 = arith.constant 0 : i32
    %c0_i32_0 = arith.constant 0 : i32
    %c0_i32_1 = arith.constant 0 : i32
    return %c0_i32, %c0_i32_0 : i32, i32
  }
  func.func @transform_21(%arg0: i32) -> (i32, i32) {
    %c0_i32 = arith.constant 0 : i32
    %c0_i32_0 = arith.constant 0 : i32
    %c0_i32_1 = arith.constant 0 : i32
    return %c0_i32, %c0_i32_0 : i32, i32
  }
  func.func @transform_22(%arg0: i32) -> (i32, i32) {
    %c0_i32 = arith.constant 0 : i32
    %c0_i32_0 = arith.constant 0 : i32
    %c0_i32_1 = arith.constant 0 : i32
    return %c0_i32, %c0_i32_0 : i32, i32
  }
  func.func @transform_23(%arg0: i32) -> (i32, i32) {
    %c0_i32 = arith.constant 0 : i32
    %c0_i32_0 = arith.constant 0 : i32
    %c0_i32_1 = arith.constant 0 : i32
    return %c0_i32, %c0_i32_0 : i32, i32
  }
  func.func @transform_24(%arg0: i32) -> (i32, i32) {
    %c0_i32 = arith.constant 0 : i32
    %c0_i32_0 = arith.constant 0 : i32
    %c0_i32_1 = arith.constant 0 : i32
    return %c0_i32, %c0_i32_0 : i32, i32
  }
  func.func @transform_25(%arg0: i32) -> (i32, i32) {
    %c0_i32 = arith.constant 0 : i32
    %c0_i32_0 = arith.constant 0 : i32
    %c0_i32_1 = arith.constant 0 : i32
    return %c0_i32, %c0_i32_0 : i32, i32
  }
  func.func @transform_26(%arg0: i32) -> (i32, i32) {
    %c0_i32 = arith.constant 0 : i32
    %c0_i32_0 = arith.constant 0 : i32
    %c0_i32_1 = arith.constant 0 : i32
    return %c0_i32, %c0_i32_0 : i32, i32
  }
  func.func @transform_27(%arg0: i32) -> (i32, i32) {
    %c0_i32 = arith.constant 0 : i32
    %c0_i32_0 = arith.constant 0 : i32
    %c0_i32_1 = arith.constant 0 : i32
    return %c0_i32, %c0_i32_0 : i32, i32
  }
  func.func @transform_28(%arg0: i32) -> (i32, i32, i32) {
    %c0_i32 = arith.constant 0 : i32
    %c0_i32_0 = arith.constant 0 : i32
    %c0_i32_1 = arith.constant 0 : i32
    return %arg0, %c0_i32, %c0_i32_0 : i32, i32, i32
  }
}

</mosaic_0001>

<bundles_post_ra>
// kernel: tpu_custom_call.1
= control target key start
LH: loop header
LB: loop body
LE: loop exit
PB: predicated region body
PF: predicated region fallthrough
CT: control target
= control target key end

     0   :  { %s13644_s0 = inlined_call_operand.vmem [shape: f32[2,36,1], index: 0, kind: input, shape index: {}]   ;;  %s13645_s1 = inlined_call_operand.vmem [shape: f32[1,32], index: 1, kind: input, shape index: {}]   ;;  %s13646_s2 = inlined_call_operand.vmem [shape: f32[36,32], index: 2, kind: input, shape index: {}]   ;;  %s13647_s3 = inlined_call_operand.vmem [shape: f32[36,36], index: 3, kind: input, shape index: {}]   ;;  %s13648_s4 = inlined_call_operand.vmem [shape: bf16[32,96], index: 4, kind: input, shape index: {}]   ;;  %s13649_s5 = inlined_call_operand.vmem [shape: f32[1,96], index: 5, kind: input, shape index: {}]   ;;  %s13650_s6 = inlined_call_operand.vmem [shape: bf16[32,32], index: 6, kind: input, shape index: {}]   ;;  %s13651_s7 = inlined_call_operand.vmem [shape: f32[1,32], index: 7, kind: input, shape index: {}]   ;;  %s13652_s8 = inlined_call_operand.vmem [shape: f32[1,32], index: 8, kind: input, shape index: {}]   ;;  %s13653_s9 = inlined_call_operand.vmem [shape: f32[1,32], index: 9, kind: input, shape index: {}]   ;;  %s13654_s10 = inlined_call_operand.vmem [shape: f32[1,32], index: 10, kind: input, shape index: {}]   ;;  %s13655_s11 = inlined_call_operand.vmem [shape: f32[1,32], index: 11, kind: input, shape index: {}]   ;;  %s13656_s12 = inlined_call_operand.vmem [shape: bf16[32,2048], index: 12, kind: input, shape index: {}]   ;;  %s13657_s13 = inlined_call_operand.vmem [shape: f32[1,2048], index: 13, kind: input, shape index: {}]   ;;  %s13658_s14 = inlined_call_operand.vmem [shape: bf16[2048,32], index: 14, kind: input, shape index: {}]   ;;  %s13659_s15 = inlined_call_operand.vmem [shape: f32[1,32], index: 15, kind: input, shape index: {}]   ;;  %s13660_s16 = inlined_call_operand.vmem [shape: bf16[32,96], index: 16, kind: input, shape index: {}]   ;;  %s13661_s17 = inlined_call_operand.vmem [shape: f32[1,96], index: 17, kind: input, shape index: {}]   ;;  %s13662_s18 = inlined_call_operand.vmem [shape: bf16[32,32], index: 18, kind: input, shape index: {}]   ;;  %s13663_s19 = inlined_call_operand.vmem [shape: f32[1,32], index: 19, kind: input, shape index: {}]   ;;  %s13664_s20 = inlined_call_operand.vmem [shape: f32[1,32], index: 20, kind: input, shape index: {}]   ;;  %s13665_s21 = inlined_call_operand.vmem [shape: f32[1,32], index: 21, kind: input, shape index: {}]   ;;  %s13666_s22 = inlined_call_operand.vmem [shape: f32[1,32], index: 22, kind: input, shape index: {}]   ;;  %s13667_s23 = inlined_call_operand.vmem [shape: f32[1,32], index: 23, kind: input, shape index: {}]   ;;  %s13668_s24 = inlined_call_operand.vmem [shape: bf16[32,2048], index: 24, kind: input, shape index: {}]   ;;  %s13669_s25 = inlined_call_operand.vmem [shape: f32[1,2048], index: 25, kind: input, shape index: {}]   ;;  %s13670_s26 = inlined_call_operand.vmem [shape: bf16[2048,32], index: 26, kind: input, shape index: {}]   ;;  %s13671_s27 = inlined_call_operand.vmem [shape: f32[1,32], index: 27, kind: input, shape index: {}]   ;;  %s13672_s28 = inlined_call_operand.hbm [shape: f32[2,4,32], index: 28, kind: output, shape index: {}]  }
   0x1   :  { %13711 = sst [smem:[#allocation11_spill]] %s13644_s0 }
   0x2   :  { %13712 = sst [smem:[#allocation12_spill]] %s13645_s1 }
   0x3   :  { %13713 = sst [smem:[#allocation13_spill]] %s13646_s2 }
   0x4   :  { %13714 = sst [smem:[#allocation14_spill]] %s13647_s3 }
   0x5   :  { %13715 = sst [smem:[#allocation15_spill]] %s13648_s4 }
   0x6   :  { %13716 = sst [smem:[#allocation16_spill]] %s13649_s5 }
   0x7   :  { %13717 = sst [smem:[#allocation17_spill]] %s13650_s6 }
   0x8   :  { %13718 = sst [smem:[#allocation18_spill]] %s13651_s7 }
   0x9   :  { %13719 = sst [smem:[#allocation19_spill]] %s13652_s8 }
   0xa   :  { %13720 = sst [smem:[#allocation20_spill]] %s13653_s9 }
   0xb   :  { %13721 = sst [smem:[#allocation21_spill]] %s13654_s10 }
   0xc   :  { %13722 = sst [smem:[#allocation22_spill]] %s13655_s11 }
   0xd   :  { %13723 = sst [smem:[#allocation23_spill]] %s13656_s12 }
   0xe   :  { %13724 = sst [smem:[#allocation24_spill]] %s13667_s23 }
   0xf   :  { %33 = vsyncpa [#allocation3], 0 }
  0x10   :  { %35 = vsyncpa [#allocation3 + $0x1], 0  ;;  %s10131_s8 = smov 0   ;;  %s10133_s5 = smov 0  }
  0x11   :  { %s10135_s9 = smov 0   ;;  %s10137_s30 = smov 0  }
  0x12 LB: > { %13725 = sst [smem:[#allocation5_spill]] %s9959_s8  ;;  %s10152_s3 = sadd.s32 4294967295, %s9971_s30   ;;  %s9971_s30 = sphi %s10137_s30, %s13767_s30   ;;  %s9967_s9 = sphi %s10135_s9, %s13769_s9   ;;  %s9963_s5 = sphi %s10133_s5, %s13771_s5   ;;  %s9959_s8 = sphi %s10131_s8, %s13770_s8  }
  0x13   : > { %13726 = sst [smem:[#allocation6_spill]] %s9967_s9  ;;  %s7670_s6 = sadd.s32 4294967294, %s9971_s30  }
  0x14   : > { %13727 = sst [smem:[#allocation7_spill]] %s9971_s30  ;;  %s10156_s10 = sadd.s32 1, %s9971_s30  }
  0x15   : > { %13728 = sst [smem:[#allocation8_spill]] %s10156_s10  ;;  %s641_s0 = sadd.s32 1, %s9967_s9 }
  0x16   : > { %s638_s11 = ssub.s32 %s9971_s30, %s10156_s10  ;;  %p651_p0 = scmp.ne.s32.totalorder %s9967_s9, %s9963_s5 }
  0x17   : > { %p639_p1 = scmp.eq.s32.totalorder %s638_s11, 0  ;;  %p652_p2 = scmp.eq.s32.totalorder %s10152_s3, 1 }
  0x18   : > { %p657_p3 = scmp.ne.s32.totalorder %s9963_s5, %s9959_s8  ;;  %p658_p4 = scmp.eq.s32.totalorder %s7670_s6, 1 }
  0x19   : > { %s10167_s29 = scalar_select %p639_p1, %s9967_s9, %s641_s0  }
  0x1a   : > { %p10169_p5 = por %p652_p2, %p651_p0  ;;  %p10173_p6 = por %p658_p4, %p657_p3 }
  0x1b   : > { %13729 = sst [smem:[#allocation9_spill]] %s10167_s29  ;;  %p7673_p7 = scmp.ge.s32.totalorder %s9971_s30, 1 }
  0x1c   : > { %s13731_s7 = scalar_select %p10173_p6, 1, 0 }
  0x1d   : > { %p765_p8 = scmp.lt.s32.totalorder %s9971_s30, 3 }
  0x1e   : > { %13732 = sst [smem:[#allocation10_spill]] %s13731_s7 }
  0x1f   : > { %p766_p9 = pnand %p7673_p7, %p765_p8 }
  0x20   : > { %p839_p10 = scmp.lt.s32.totalorder (!%p766_p9), %s10152_s3, 1  ;;  %s13733_s0 = sld [smem:[#allocation11_spill]] (!%p766_p9) }
  0x21   : > { %769 = sbr.rel (%p766_p9) target bundleno = 5575 (0x15c7), region = 132  ;;  %s13734_s10 = sld [smem:[#allocation15_spill]] (!%p766_p9) }
  0x22   : > { %s13735_s6 = sld [smem:[#allocation12_spill]] (!%p766_p9)  ;;  %s13702_s9 = smov (!%p766_p9), 88  }
  0x23   : > { %s13736_s8 = sld [smem:[#allocation13_spill]] (!%p766_p9)  ;;  %s13684_s4 = smov (!%p766_p9), 56  }
  0x24   : > { %s13739_s7 = sld [smem:[#allocation14_spill]] (!%p766_p9)  ;;  %s13698_s29 = smov (!%p766_p9), 72  }
  0x25   : > { %s13696_s30 = smov (!%p766_p9), 112  }
  0x26   : > { %v9973_v0 = vmov 0   ;;  %s840_s12 = scalar_select %p839_p10, %s10152_s3, 1  ;;  %vm1214_vm0 = vcmask 261120   ;;  %vm1262_vm1 = vcmask 64512   ;;  %vm1325_vm2 = vcmask 293888  }
  0x27   : > { %9612 = vset.pattern.permute.xlu0 %v9973_v0  ;;  %9613 = vset.pattern.permute.xlu1 %v9973_v0  ;;  %v9231_v6 = vld [vmem:[%s13734_s10 + $0x8] sm:$0xff]  ;;  %v9230_v7 = vld [vmem:[%s13734_s10] sm:$0xff]  ;;  %vm1338_vm3 = vcmask 289792   ;;  %vm1411_vm4 = vcmask 1043456   ;;  %vm2236_vm5 = vcmask 257024   ;;  %s13755_s10 = smov 72  }
  0x28   : > { %9614 = vset.pattern.permute.xlu2 %v9973_v0  ;;  %s9559_s1 = smul.u32 40, %s840_s12  ;;  %1230 = vmatpush.bf16.msra.mxu0 %v9231_v6  ;;  %v9695_v9 = vld [vmem:[%s13735_s6] ss:$0 sm:$0xff]  ;;  %s13700_s6 = smov 80  }
  0x29   : > { %s13737_s23 = smov %s13736_s8  ;;  %v884_v11 = vld [vmem:[%s13736_s8] sm:$0xff]  ;;  %s13686_s8 = smov 120  }
  0x2a   : > { %s843_s11 = scalar_lea.vmem %s13733_s0, %s9559_s1  ;;  %v885_v13 = vld [vmem:[%s13737_s23 + $0x8] sm:$0xff]  ;;  %v886_v22 = vld [vmem:[%s13737_s23 + $0x10] sm:$0xff]  ;;  %v887_v23 = vld [vmem:[%s13737_s23 + $0x18] sm:$0xff]  ;;  %s13738_s0 = sld [smem:[#allocation16_spill]] }
  0x2b   : > { %v845_v1 = vld [vmem:[%s843_s11] sm:$0xff]  ;;  %v847_v2 = vld [vmem:[%s843_s11 + $0x10] sm:$0xff]  ;;  %v846_v4 = vld [vmem:[%s843_s11 + $0x8] sm:$0xff]  ;;  %s13694_s12 = smov 104   ;;  %s13692_s1 = smov 48  }
  0x2c   : > { %853 = vperm.xlu0 %9612, %v845_v1   ;;  %863 = vperm.xlu1 %9613, %v847_v2   ;;  %v849_v3 = vld [vmem:[%s843_s11 + $0x20] sm:$0xf]  ;;  %v848_v5 = vld [vmem:[%s843_s11 + $0x18] sm:$0xff]  ;;  %s13704_s11 = smov 96   ;;  %v10303_v61 = vld [vmem:[%s13739_s7 + $0x10] sm:$0xff] }
  0x2d   : > { %873 = vperm.xlu2 %9614, %v849_v3   ;;  %1231 = vmatpush.bf16.msra.mxu0 %v9230_v7  ;;  %v888_v29 = vld [vmem:[%s13737_s23 + $0x20] sm:$0xf]  ;;  %s13748_s23 = sld [smem:[#allocation21_spill]] }
  0x2e   : > { %v10308_v62 = vld [vmem:[%s13739_s7] sm:$0xff] }
  0x30   : > { %v9696_v34 = vld [vmem:[%s13738_s0] ss:$0 sm:$0xff]  ;;  %s13688_s0 = smov 64  }
  0x34   : > { %858 = vperm.xlu0 %9612, %v846_v4   ;;  %868 = vperm.xlu1 %9613, %v848_v5  }
  0x87   : > { %v874_v27 = vpop.permute.xlu2 %873 }
  0x88   : > { %v883_v28 = vmul.f32 %v9695_v9, %v874_v27 }
  0x8a   : > { %v10222_v30 = vadd.f32 %v888_v29, %v883_v28 }
  0x8c   : > { %v1197_v31 = vpack.c.bf16 %v10222_v30, %v10222_v30 }
  0x9e   : > { %v854_v8 = vpop.permute.xlu0 %853  ;;  %v864_v12 = vpop.permute.xlu1 %863 }
  0x9f   : > { %v879_v10 = vmul.f32 %v9695_v9, %v854_v8  ;;  %v881_v20 = vmul.f32 %v9695_v9, %v864_v12 }
  0xa1   : > { %v10199_v16 = vadd.f32 %v884_v11, %v879_v10  ;;  %v10212_v24 = vadd.f32 %v886_v22, %v881_v20  ;;  %v10319_v11 = vld [vmem:[%s13739_s7 + $0x8] sm:$0xff]  ;;  %v10340_v22 = vld [vmem:[%s13739_s7 + $0x18] sm:$0xff] }
  0xa6   : > { %v859_v14 = vpop.permute.xlu0 %858  ;;  %v869_v19 = vpop.permute.xlu1 %868 }
  0xa7   : > { %v880_v15 = vmul.f32 %v9695_v9, %v859_v14  ;;  %v882_v21 = vmul.f32 %v9695_v9, %v869_v19 }
  0xa9   : > { %v10201_v17 = vadd.f32 %v885_v13, %v880_v15  ;;  %v10214_v25 = vadd.f32 %v887_v23, %v882_v21 }
  0xab   : > { %v1195_v18 = vpack.c.bf16 %v10201_v17, %v10199_v16  ;;  %v1196_v26 = vpack.c.bf16 %v10214_v25, %v10212_v24 }
  0xad   : > { %7684 = vmatmul.msk.bf16.vlgmr.msra.gmra.mxu0 %vm1214_vm0, %v1195_v18 }
  0xbd   : > { %7685 = vmatmul.msk.bf16.gmra.mxu0 %vm1214_vm0, %v1196_v26 }
  0xcd   : > { %7686 = vmatmul.msk.bf16.gmra.mxu0 %vm1214_vm0, %v1197_v31 }
 0x12a   : > { %v1233_v32 = vpop.f32.mrf.mxu0 }
 0x12b   : > { %v10240_v41 = vadd.f32 %v9696_v34, %v1233_v32 }
 0x132   : > { %v1235_v33 = vpop.f32.mrf.mxu0 }
 0x133   : > { %v10248_v43 = vadd.f32 %v9696_v34, %v1235_v33  ;;  %v10353_v33 = vld [vmem:[%s13739_s7 + $0x20] sm:$0xf] }
 0x135   : > { %v10323_v12 = vpack.i.bf16 %v10240_v41, %v10248_v43 }
 0x13a   : > { %v1238_v35 = vpop.f32.mrf.mxu0 }
 0x13b   : > { %v10230_v36 = vadd.f32 %v9696_v34, %v1238_v35 }
 0x13d   : > { %1256 = vrot.lane.b32.xlu1 %v10230_v36, %s13704_s11 }
 0x142   : > { %v1240_v37 = vpop.f32.mrf.mxu0 }
 0x143   : > { %v10234_v38 = vadd.f32 %v9696_v34, %v1240_v37 }
 0x145   : > { %1258 = vrot.lane.b32.xlu0 %v10234_v38, %s13704_s11  ;;  %v10328_v14 = vpack.i.bf16 %v10230_v36, %v10234_v38 }
 0x14a   : > { %v1243_v39 = vpop.f32.mrf.mxu0 }
 0x14b   : > { %v10238_v40 = vadd.f32 %v9696_v34, %v1243_v39 }
 0x14d   : > { %1260 = vrot.lane.b32.xlu2 %v10238_v40, %s13704_s11  ;;  %1467 = vrot.lane.b32.xlu1 %v10238_v40, %s13702_s9 }
 0x14e   : > { %1252 = vrot.lane.b32.xlu0 %v10240_v41, %s13704_s11 }
 0x152   : > { %v1245_v42 = vpop.f32.mrf.mxu0 }
 0x155   : > { %1461 = vrot.lane.b32.xlu1 %v10248_v43, %s13702_s9  ;;  %1254 = vrot.lane.b32.xlu2 %v10248_v43, %s13704_s11  ;;  %s13757_s11 = smov 104  }
 0x156   : > { %1463 = vrot.lane.b32.xlu0 %v10230_v36, %s13702_s9 }
 0x15d   : > { %1451 = vrot.lane.b32.xlu1 %v10248_v43, %s13686_s8  ;;  %1465 = vrot.lane.b32.xlu2 %v10234_v38, %s13702_s9 }
 0x15e   : > { %1449 = vrot.lane.b32.xlu0 %v10240_v41, %s13686_s8 }
 0x165   : > { %1457 = vrot.lane.b32.xlu1 %v10238_v40, %s13686_s8  ;;  %1459 = vrot.lane.b32.xlu2 %v10240_v41, %s13702_s9  ;;  %s836_s9 = sand.u32 1, %s9963_s5  }
 0x166   : > { %1455 = vrot.lane.b32.xlu0 %v10234_v38, %s13686_s8 }
 0x16d   : > { %1453 = vrot.lane.b32.xlu2 %v10230_v36, %s13686_s8  ;;  %s13740_s8 = sld [smem:[#allocation17_spill]] }
 0x1a7   : > { %v1261_v44 = vpop.permute.xlu2 %1260 }
 0x1a8   : > { %7687 = vmatpush.xpose.msk.msrb.mxu0 %vm1262_vm1, %v1261_v44  ;;  %9554 = vmatpush.xpose.msk.msra.mxu1 %vm1262_vm1, %v1261_v44 }
 0x1af   : > { %v1257_v45 = vpop.permute.xlu1 %1256  ;;  %v1255_v47 = vpop.permute.xlu2 %1254 }
 0x1b7   : > { %v1259_v46 = vpop.permute.xlu0 %1258  ;;  %v1466_v50 = vpop.permute.xlu2 %1465 }
 0x1b8   : > { %7688 = vmatpush.xpose.msk.msrb.mxu0 %vm1262_vm1, %v1259_v46  ;;  %9555 = vmatpush.xpose.msk.msra.mxu1 %vm1262_vm1, %v1259_v46 }
 0x1bc   : > { %7689 = vmatpush.xpose.msk.msrb.mxu0 %vm1262_vm1, %v1257_v45  ;;  %9556 = vmatpush.xpose.msk.msra.mxu1 %vm1262_vm1, %v1257_v45 }
 0x1bf   : > { %v1468_v48 = vpop.permute.xlu1 %1467  ;;  %v1460_v53 = vpop.permute.xlu2 %1459 }
 0x1c0   : > { %v1253_v49 = vpop.permute.xlu0 %1252  ;;  %7690 = vmatpush.xpose.msk.msrb.mxu0 %vm1262_vm1, %v1255_v47  ;;  %9557 = vmatpush.xpose.msk.msra.mxu1 %vm1262_vm1, %v1255_v47 }
 0x1c1   : > { %7703 = vmatpush.xpose.msk.msra.mxu3 %vm1262_vm1, %v1468_v48 }
 0x1c4   : > { %7691 = vmatpush.xpose.msk.msrb.mxu0 %vm1262_vm1, %v1253_v49  ;;  %9558 = vmatpush.xpose.msk.msra.mxu1 %vm1262_vm1, %v1253_v49 }
 0x1c5   : > { %7704 = vmatpush.xpose.msk.msra.mxu3 %vm1262_vm1, %v1466_v50 }
 0x1c7   : > { %7692 = vmatmul.msk.f32.vlgmr.msrb.gmra.mxu0 %vm1262_vm1, %v10240_v41  ;;  %7694 = vmatmul.msk.f32.vlgmr.msra.gmra.mxu1 %vm1262_vm1, %v10230_v36  ;;  %v1462_v52 = vpop.permute.xlu1 %1461  ;;  %v1454_v56 = vpop.permute.xlu2 %1453 }
 0x1c8   : > { %v1464_v51 = vpop.permute.xlu0 %1463 }
 0x1c9   : > { %7705 = vmatpush.xpose.msk.msra.mxu3 %vm1262_vm1, %v1464_v51 }
 0x1cd   : > { %7706 = vmatpush.xpose.msk.msra.mxu3 %vm1262_vm1, %v1462_v52 }
 0x1cf   : > { %7693 = vmatmul.msk.f32.gmra.mxu0 %vm1262_vm1, %v10248_v43  ;;  %7695 = vmatmul.msk.f32.gmra.mxu1 %vm1262_vm1, %v10234_v38  ;;  %v1452_v55 = vpop.permute.xlu1 %1451 }
 0x1d0   : > { %v1450_v54 = vpop.permute.xlu0 %1449 }
 0x1d1   : > { %7707 = vmatpush.xpose.msk.msra.mxu3 %vm1262_vm1, %v1460_v53 }
 0x1d4   : > { %7708 = vmatmul.msk.f32.vlgmr.msra.gmra.mxu3 %vm1262_vm1, %v1450_v54 }
 0x1d7   : > { %7696 = vmatmul.msk.f32.gmra.mxu1 %vm1262_vm1, %v10238_v40  ;;  %v1458_v58 = vpop.permute.xlu1 %1457 }
 0x1d8   : > { %v1456_v57 = vpop.permute.xlu0 %1455 }
 0x1dc   : > { %7709 = vmatmul.msk.f32.gmra.mxu3 %vm1262_vm1, %v1452_v55 }
 0x1e4   : > { %7710 = vmatmul.msk.f32.gmra.mxu3 %vm1262_vm1, %v1454_v56 }
 0x1ec   : > { %7711 = vmatmul.msk.f32.gmra.mxu3 %vm1262_vm1, %v1456_v57 }
 0x1f4   : > { %7712 = vmatmul.msk.f32.gmra.mxu3 %vm1262_vm1, %v1458_v58 }
 0x244   : > { %v1300_v59 = vpop.f32.mrf.mxu0  ;;  %v1306_v60 = vpop.f32.mrf.mxu1 }
 0x245   : > { %v1315_v63 = vmul.f32 0.35355338, %v1300_v59  ;;  %v1317_v0 = vmul.f32 0.35355338, %v1306_v60 }
 0x247   : > { %v1322_v1 = vadd.f32 %v1317_v0, %v10303_v61  ;;  %v1320_v2 = vadd.f32 %v1315_v63, %v10308_v62 }
 0x249   : > { %v1332_v3 = vsel %vm1325_vm2, %v1322_v1, -inf  ;;  %v1326_v4 = vsel %vm1325_vm2, %v1320_v2, -inf }
 0x24a   : > { %1333 = vmax.xlane.f32.xlu1 %v1332_v3  ;;  %1327 = vmax.xlane.f32.xlu2 %v1326_v4 }
 0x24c   : > { %v1303_v7 = vpop.f32.mrf.mxu0  ;;  %v1309_v19 = vpop.f32.mrf.mxu1 }
 0x24d   : > { %v1316_v9 = vmul.f32 0.35355338, %v1303_v7  ;;  %v1318_v21 = vmul.f32 0.35355338, %v1309_v19 }
 0x24f   : > { %v1321_v13 = vadd.f32 %v1316_v9, %v10319_v11  ;;  %v10343_v26 = vadd.f32 %v1318_v21, %v10340_v22 }
 0x251   : > { %v1329_v15 = vsel %vm1325_vm2, %v1321_v13, -inf  ;;  %v1335_v32 = vsel %vm1325_vm2, %v10343_v26, -inf }
 0x254   : > { %v1312_v27 = vpop.f32.mrf.mxu1 }
 0x255   : > { %v1319_v31 = vmul.f32 0.35355338, %v1312_v27 }
 0x257   : > { %v1506_v5 = vpop.f32.mrf.mxu3  ;;  %v10358_v37 = vadd.f32 %v1319_v31, %v10353_v33 }
 0x258   : > { %v1521_v6 = vmul.f32 0.35355338, %v1506_v5 }
 0x259   : > { %v1339_v45 = vsel %vm1338_vm3, %v10358_v37, -inf }
 0x25a   : > { %v1526_v8 = vadd.f32 %v1521_v6, %v10308_v62 }
 0x25c   : > { %v1531_v10 = vsel %vm1325_vm2, %v1526_v8, -inf }
 0x25d   : > { %1532 = vmax.xlane.f32.xlu0 %v1531_v10 }
 0x25f   : > { %v1509_v18 = vpop.f32.mrf.mxu3 }
 0x260   : > { %v1522_v23 = vmul.f32 0.35355338, %v1509_v18 }
 0x262   : > { %9621 = vrot.lane.b32.xlu2 %v10323_v12, %s13688_s0  ;;  %v10346_v29 = vadd.f32 %v1522_v23, %v10319_v11 }
 0x263   : > { %9616 = vrot.lane.b32.xlu1 %v10328_v14, %s13688_s0 }
 0x264   : > { %v1534_v35 = vsel %vm1325_vm2, %v10346_v29, -inf }
 0x265   : > { %1330 = vmax.xlane.f32.xlu0 %v1329_v15 }
 0x267   : > { %v1512_v20 = vpop.f32.mrf.mxu3 }
 0x268   : > { %v1523_v44 = vmul.f32 0.35355338, %v1512_v20 }
 0x26a   : > { %v10368_v48 = vadd.f32 %v1523_v44, %v10303_v61 }
 0x26c   : > { %v1537_v50 = vsel %vm1325_vm2, %v10368_v48, -inf }
 0x26f   : > { %v1515_v28 = vpop.f32.mrf.mxu3 }
 0x270   : > { %v1524_v34 = vmul.f32 0.35355338, %v1515_v28 }
 0x272   : > { %v10361_v39 = vadd.f32 %v1524_v34, %v10340_v22 }
 0x274   : > { %v1540_v47 = vsel %vm1325_vm2, %v10361_v39, -inf }
 0x277   : > { %v1518_v42 = vpop.f32.mrf.mxu3 }
 0x278   : > { %v1525_v46 = vmul.f32 0.35355338, %v1518_v42 }
 0x279   : > { %1390 = vrot.lane.b32.xlu0 %v10238_v40, %s13688_s0  ;;  %s13741_s0 = smov %s13740_s8 }
 0x27a   : > { %v10371_v49 = vadd.f32 %v1525_v46, %v10353_v33 }
 0x27c   : > { %v1543_v51 = vsel %vm1338_vm3, %v10371_v49, -inf }
 0x28b   : > { %1336 = vmax.xlane.f32.xlu2 %v1335_v32 }
 0x28d   : > { %1535 = vmax.xlane.f32.xlu1 %v1534_v35 }
 0x293   : > { %1340 = vmax.xlane.f32.xlu2 %v1339_v45 }
 0x295   : > { %1541 = vmax.xlane.f32.xlu1 %v1540_v47 }
 0x29b   : > { %1538 = vmax.xlane.f32.xlu2 %v1537_v50 }
 0x29d   : > { %1544 = vmax.xlane.f32.xlu1 %v1543_v51 }
 0x2bd   : > { %v1328_v52 = vpop.xlane.xlu2 %1327  ;;  %v1334_v53 = vpop.xlane.xlu1 %1333 }
 0x2be   : > { %v1342_v54 = vsub.f32 %v1320_v2, %v1328_v52  ;;  %v1344_v56 = vsub.f32 %v1322_v1, %v1334_v53 }
 0x2c0   : > { %v1347_v55 = vmul.f32 1.442695, %v1342_v54  ;;  %v1351_v57 = vmul.f32 1.442695, %v1344_v56 }
 0x2c2   : > { %9710 = vpow2.f32 %v1347_v55 }
 0x2c3   : > { %9712 = vpow2.f32 %v1351_v57 }
 0x2c5   : > { %v9622_v18 = vpop.permute.xlu2 %9621 }
 0x2c6   : > { %v9623_v20 = vunpack.i.l.bf16 %v9622_v18  ;;  %v9624_v21 = vunpack.i.h.bf16 %v9622_v18 }
 0x2c8   : > { %v10377_v58 = vpop.eup %9710 }
 0x2c9   : > { %v1357_v59 = vsel %vm1325_vm2, %v10377_v58, 0.0  ;;  %v10381_v60 = vpop.eup %9712 }
 0x2ca   : > { %1358 = vadd.xlane.f32.xlu2 %v1357_v59  ;;  %v1363_v3 = vsel %vm1325_vm2, %v10381_v60, 0.0 }
 0x2d0   : > { %v1533_v63 = vpop.xlane.xlu0 %1532 }
 0x2d1   : > { %v1546_v0 = vsub.f32 %v1526_v8, %v1533_v63 }
 0x2d2   : > { %1364 = vadd.xlane.f32.xlu2 %v1363_v3 }
 0x2d3   : > { %v1551_v4 = vmul.f32 1.442695, %v1546_v0 }
 0x2d5   : > { %9714 = vpow2.f32 %v1551_v4  ;;  %v9617_v10 = vpop.permute.xlu1 %9616 }
 0x2d6   : > { %v9618_v15 = vunpack.i.l.bf16 %v9617_v10  ;;  %v9619_v19 = vunpack.i.h.bf16 %v9617_v10 }
 0x2d8   : > { %v1331_v1 = vpop.xlane.xlu0 %1330 }
 0x2d9   : > { %v1343_v2 = vsub.f32 %v1321_v13, %v1331_v1 }
 0x2db   : > { %v10385_v5 = vpop.eup %9714  ;;  %v1349_v6 = vmul.f32 1.442695, %v1343_v2 }
 0x2dc   : > { %v1561_v7 = vsel %vm1325_vm2, %v10385_v5, 0.0 }
 0x2dd   : > { %9716 = vpow2.f32 %v1349_v6  ;;  %1562 = vadd.xlane.f32.xlu1 %v1561_v7 }
 0x2e3   : > { %v10389_v9 = vpop.eup %9716 }
 0x2e4   : > { %v1360_v8 = vsel %vm1325_vm2, %v10389_v9, 0.0 }
 0x2e5   : > { %1361 = vadd.xlane.f32.xlu0 %v1360_v8 }
 0x2ea   : > { %9626 = vrot.lane.b32.xlu2 %v10328_v14, %s13684_s4 }
 0x2eb   : > { %v1391_v13 = vpop.permute.xlu0 %1390 }
 0x2ec   : > { %7697 = vmatpush.msk.msra.mxu2 %vm1411_vm4, %v1391_v13 }
 0x2ee   : > { %1426 = vmatpush.msra.mxu2 %v9618_v15 }
 0x2f0   : > { %1427 = vmatpush.msra.mxu2 %v9619_v19 }
 0x2f2   : > { %1428 = vmatpush.msra.mxu2 %v9623_v20 }
 0x2f4   : > { %1429 = vmatpush.msra.mxu2 %v9624_v21 }
 0x2f6   : > { %9631 = vrot.lane.b32.xlu1 %v10323_v12, %s13684_s4 }
 0x2fe   : > { %v1337_v23 = vpop.xlane.xlu2 %1336 }
 0x2ff   : > { %v1345_v27 = vsub.f32 %v10343_v26, %v1337_v23 }
 0x300   : > { %v1536_v31 = vpop.xlane.xlu1 %1535 }
 0x301   : > { %v1353_v28 = vmul.f32 1.442695, %v1345_v27  ;;  %v1547_v56 = vsub.f32 %v10346_v29, %v1536_v31 }
 0x303   : > { %9718 = vpow2.f32 %v1353_v28  ;;  %v1553_v57 = vmul.f32 1.442695, %v1547_v56 }
 0x306   : > { %v1341_v32 = vpop.xlane.xlu2 %1340 }
 0x307   : > { %v1346_v34 = vsub.f32 %v10358_v37, %v1341_v32 }
 0x308   : > { %v1542_v45 = vpop.xlane.xlu1 %1541 }
 0x309   : > { %v10400_v35 = vpop.eup %9718  ;;  %v1355_v42 = vmul.f32 1.442695, %v1346_v34  ;;  %v1549_v46 = vsub.f32 %v10361_v39, %v1542_v45 }
 0x30a   : > { %v1366_v44 = vsel %vm1325_vm2, %v10400_v35, 0.0 }
 0x30b   : > { %9720 = vpow2.f32 %v1355_v42  ;;  %1367 = vadd.xlane.f32.xlu0 %v1366_v44  ;;  %v1557_v52 = vmul.f32 1.442695, %v1549_v46  ;;  %v903_v46 = vld [vmem:[%s13741_s0] sm:$0xf] }
 0x30e   : > { %v1539_v47 = vpop.xlane.xlu2 %1538 }
 0x30f   : > { %v1548_v26 = vsub.f32 %v10368_v48, %v1539_v47 }
 0x310   : > { %v1545_v59 = vpop.xlane.xlu1 %1544 }
 0x311   : > { %v10406_v50 = vpop.eup %9720  ;;  %v1555_v51 = vmul.f32 1.442695, %v1548_v26  ;;  %v1550_v3 = vsub.f32 %v10371_v49, %v1545_v59  ;;  %v1697_v26 = vsel %vm1411_vm4, %v903_v46, 0 }
 0x312   : > { %v1369_v37 = vsel %vm1338_vm3, %v10406_v50, 0.0  ;;  %1706 = vmatpush.bf16.msrb.mxu1 %v1697_v26 }
 0x313   : > { %9722 = vpow2.f32 %v1555_v51  ;;  %1370 = vadd.xlane.f32.xlu0 %v1369_v37  ;;  %v1559_v29 = vmul.f32 1.442695, %v1550_v3 }
 0x314   : > { %9724 = vpow2.f32 %v1557_v52 }
 0x319   : > { %v10410_v53 = vpop.eup %9722 }
 0x31a   : > { %v1567_v54 = vsel %vm1325_vm2, %v10410_v53, 0.0  ;;  %v10414_v39 = vpop.eup %9724 }
 0x31b   : > { %1568 = vadd.xlane.f32.xlu2 %v1567_v54  ;;  %v1570_v48 = vsel %vm1325_vm2, %v10414_v39, 0.0 }
 0x320   : > { %1571 = vadd.xlane.f32.xlu1 %v1570_v48 }
 0x327   : > { %1594 = vrot.lane.b32.xlu0 %v10238_v40, %s13684_s4  ;;  %s13759_s4 = smov 48  }
 0x333   : > { %1740 = vrot.lane.b32.xlu2 %v10238_v40, %s13700_s6 }
 0x339   : > { %1736 = vrot.lane.b32.xlu1 %v10230_v36, %s13700_s6 }
 0x33b   : > { %1983 = vrot.lane.b32.xlu2 %v10238_v40, %s13698_s29 }
 0x33d   : > { %v1359_v55 = vpop.xlane.xlu2 %1358 }
 0x33e   : > { %9726 = vrcp.f32 %v1359_v55 }
 0x33f   : > { %9728 = vpow2.f32 %v1553_v57 }
 0x340   : > { %9730 = vpow2.f32 %v1559_v29 }
 0x341   : > { %1732 = vrot.lane.b32.xlu1 %v10240_v41, %s13700_s6 }
 0x343   : > { %1722 = vrot.lane.b32.xlu2 %v10240_v41, %s13696_s30 }
 0x344   : > { %v9727_v63 = vpop.eup %9726 }
 0x345   : > { %v1377_v0 = vmul.f32 %v9727_v63, %v10377_v58  ;;  %v10438_v4 = vpop.eup %9728  ;;  %v1365_v6 = vpop.xlane.xlu2 %1364 }
 0x346   : > { %v1564_v1 = vsel %vm1325_vm2, %v10438_v4, 0.0  ;;  %v10446_v49 = vpop.eup %9730 }
 0x347   : > { %7698 = vmatmul.msk.f32.vlgmr.msra.gmra.mxu2 %vm1325_vm2, %v1377_v0  ;;  %v1573_v2 = vsel %vm1338_vm3, %v10446_v49, 0.0 }
 0x349   : > { %1979 = vrot.lane.b32.xlu1 %v10230_v36, %s13698_s29 }
 0x34b   : > { %1724 = vrot.lane.b32.xlu2 %v10248_v43, %s13696_s30 }
 0x34d   : > { %v9627_v18 = vpop.permute.xlu2 %9626 }
 0x34e   : > { %v9628_v32 = vunpack.i.l.bf16 %v9627_v18 }
 0x350   : > { %v1563_v28 = vpop.xlane.xlu1 %1562 }
 0x351   : > { %1975 = vrot.lane.b32.xlu1 %v10240_v41, %s13698_s29  ;;  %1565 = vadd.xlane.f32.xlu0 %v1564_v1 }
 0x353   : > { %1726 = vrot.lane.b32.xlu2 %v10230_v36, %s13696_s30 }
 0x358   : > { %v1362_v58 = vpop.xlane.xlu0 %1361 }
 0x359   : > { %9732 = vrcp.f32 %v1362_v58  ;;  %1967 = vrot.lane.b32.xlu1 %v10248_v43, %s13694_s12  ;;  %1574 = vadd.xlane.f32.xlu0 %v1573_v2 }
 0x35a   : > { %9734 = vrcp.f32 %v1365_v6 }
 0x35b   : > { %1969 = vrot.lane.b32.xlu2 %v10230_v36, %s13694_s12  ;;  %v904_v36 = vld [vmem:[%s13740_s8 + $0x4] sm:$0xf]  ;;  %s13690_s8 = smov 40  }
 0x35c   : > { %v1662_v15 = vsel %vm1411_vm4, %v904_v36, 0 }
 0x35d   : > { %1671 = vmatpush.bf16.msra.mxu0 %v1662_v15 }
 0x35f   : > { %v9733_v7 = vpop.eup %9732 }
 0x360   : > { %v1378_v8 = vmul.f32 %v9733_v7, %v10389_v9  ;;  %v9735_v10 = vpop.eup %9734 }
 0x361   : > { %1971 = vrot.lane.b32.xlu1 %v10234_v38, %s13694_s12  ;;  %v1379_v13 = vmul.f32 %v9735_v10, %v10381_v60 }
 0x362   : > { %7699 = vmatmul.msk.f32.gmra.mxu2 %vm1325_vm2, %v1378_v8 }
 0x363   : > { %1973 = vrot.lane.b32.xlu2 %v10238_v40, %s13694_s12 }
 0x368   : > { %v9632_v34 = vpop.permute.xlu1 %9631 }
 0x369   : > { %v9633_v44 = vunpack.i.l.bf16 %v9632_v34 }
 0x36a   : > { %7700 = vmatmul.msk.f32.gmra.mxu2 %vm1325_vm2, %v1379_v13 }
 0x36d   : > { %1738 = vrot.lane.b32.xlu0 %v10234_v38, %s13700_s6 }
 0x375   : > { %1734 = vrot.lane.b32.xlu0 %v10248_v43, %s13700_s6  ;;  %s13753_s6 = smov 120  }
 0x37d   : > { %1981 = vrot.lane.b32.xlu0 %v10234_v38, %s13698_s29 }
 0x37e   : > { %v1368_v9 = vpop.xlane.xlu0 %1367 }
 0x37f   : > { %9736 = vrcp.f32 %v1368_v9 }
 0x385   : > { %v9737_v60 = vpop.eup %9736  ;;  %1977 = vrot.lane.b32.xlu0 %v10248_v43, %s13698_s29  ;;  %s13745_s29 = sld [smem:[#allocation20_spill]] }
 0x386   : > { %v1371_v19 = vpop.xlane.xlu0 %1370  ;;  %v1380_v20 = vmul.f32 %v9737_v60, %v10400_v35 }
 0x387   : > { %9738 = vrcp.f32 %v1371_v19 }
 0x388   : > { %7701 = vmatmul.msk.f32.gmra.mxu2 %vm1325_vm2, %v1380_v20  ;;  %9740 = vrcp.f32 %v1563_v28 }
 0x38d   : > { %v9739_v21 = vpop.eup %9738  ;;  %1965 = vrot.lane.b32.xlu0 %v10240_v41, %s13694_s12  ;;  %v9629_v41 = vunpack.i.h.bf16 %v9627_v18  ;;  %s13752_s12 = smov 88  }
 0x38e   : > { %v1569_v23 = vpop.xlane.xlu2 %1568  ;;  %v1381_v27 = vmul.f32 %v9739_v21, %v10406_v50  ;;  %v9741_v35 = vpop.eup %9740 }
 0x38f   : > { %v1581_v45 = vmul.f32 %v9741_v35, %v10385_v5 }
 0x390   : > { %7702 = vmatmul.msk.f32.gmra.mxu2 %vm1325_vm2, %v1381_v27 }
 0x393   : > { %v1572_v52 = vpop.xlane.xlu1 %1571 }
 0x395   : > { %1728 = vrot.lane.b32.xlu0 %v10234_v38, %s13696_s30  ;;  %v9634_v38 = vunpack.i.h.bf16 %v9632_v34 }
 0x396   : > { %v1741_v43 = vpop.permute.xlu2 %1740 }
 0x397   : > { %7725 = vmatpush.xpose.msk.msrb.mxu3 %vm1262_vm1, %v1741_v43 }
 0x399   : > { %v1595_v31 = vpop.permute.xlu0 %1594 }
 0x39a   : > { %7713 = vmatpush.msk.msrb.mxu2 %vm1411_vm4, %v1595_v31 }
 0x39c   : > { %1629 = vmatpush.msrb.mxu2 %v9628_v32 }
 0x39d   : > { %1730 = vrot.lane.b32.xlu0 %v10238_v40, %s13696_s30  ;;  %s13744_s30 = sld [smem:[#allocation19_spill]] }
 0x39e   : > { %v1984_v42 = vpop.permute.xlu2 %1983  ;;  %1630 = vmatpush.msrb.mxu2 %v9629_v41 }
 0x39f   : > { %7744 = vmatpush.xpose.msk.msrb.mxu0 %vm1262_vm1, %v1984_v42 }
 0x3a0   : > { %1631 = vmatpush.msrb.mxu2 %v9633_v44 }
 0x3a2   : > { %1632 = vmatpush.msrb.mxu2 %v9634_v38 }
 0x3a3   : > { %7714 = vmatmul.msk.f32.vlgmr.msrb.gmra.mxu2 %vm1325_vm2, %v1581_v45 }
 0x3ab   : > { %v1737_v56 = vpop.permute.xlu1 %1736 }
 0x3b3   : > { %v1733_v29 = vpop.permute.xlu1 %1732 }
 0x3bb   : > { %v1980_v58 = vpop.permute.xlu1 %1979 }
 0x3c3   : > { %v1976_v6 = vpop.permute.xlu1 %1975 }
 0x3c4   : > { %v1566_v47 = vpop.xlane.xlu0 %1565 }
 0x3c5   : > { %9742 = vrcp.f32 %v1566_v47 }
 0x3c6   : > { %9744 = vrcp.f32 %v1569_v23 }
 0x3c7   : > { %9746 = vrcp.f32 %v1572_v52 }
 0x3ca   : > { %v1431_v57 = vpop.f32.mrf.mxu2 }
 0x3cb   : > { %v9743_v50 = vpop.eup %9742 }
 0x3cc   : > { %v1582_v51 = vmul.f32 %v9743_v50, %v10438_v4  ;;  %v9745_v5 = vpop.eup %9744  ;;  %v1575_v54 = vpop.xlane.xlu0 %1574 }
 0x3cd   : > { %v1583_v37 = vmul.f32 %v9745_v5, %v10410_v53  ;;  %v9747_v48 = vpop.eup %9746  ;;  %9748 = vrcp.f32 %v1575_v54  ;;  %v1968_v5 = vpop.permute.xlu1 %1967 }
 0x3ce   : > { %7715 = vmatmul.msk.f32.gmra.mxu2 %vm1325_vm2, %v1582_v51  ;;  %v1584_v55 = vmul.f32 %v9747_v48, %v10414_v39  ;;  %v1723_v39 = vpop.permute.xlu2 %1722 }
 0x3d3   : > { %v9749_v63 = vpop.eup %9748 }
 0x3d4   : > { %v1585_v0 = vmul.f32 %v9749_v63, %v10446_v49 }
 0x3d6   : > { %7716 = vmatmul.msk.f32.gmra.mxu2 %vm1325_vm2, %v1583_v37  ;;  %v1725_v49 = vpop.permute.xlu2 %1724 }
 0x3de   : > { %7717 = vmatmul.msk.f32.gmra.mxu2 %vm1325_vm2, %v1584_v55  ;;  %v1727_v7 = vpop.permute.xlu2 %1726 }
 0x3df   : > { %v1739_v59 = vpop.permute.xlu0 %1738 }
 0x3e0   : > { %7726 = vmatpush.xpose.msk.msrb.mxu3 %vm1262_vm1, %v1739_v59 }
 0x3e4   : > { %7727 = vmatpush.xpose.msk.msrb.mxu3 %vm1262_vm1, %v1737_v56 }
 0x3e5   : > { %v1434_v53 = vpop.f32.mrf.mxu2 }
 0x3e6   : > { %v1446_v3 = vpack.c.bf16 %v1434_v53, %v1431_v57  ;;  %7718 = vmatmul.msk.f32.gmra.mxu2 %vm1325_vm2, %v1585_v0  ;;  %v1970_v57 = vpop.permute.xlu2 %1969 }
 0x3e7   : > { %v1735_v4 = vpop.permute.xlu0 %1734 }
 0x3e8   : > { %7722 = vmatmul.msk.bf16.vlgmr.msrb.gmra.mxu1 %vm1262_vm1, %v1446_v3  ;;  %7728 = vmatpush.xpose.msk.msrb.mxu3 %vm1262_vm1, %v1735_v4 }
 0x3ec   : > { %7729 = vmatpush.xpose.msk.msrb.mxu3 %vm1262_vm1, %v1733_v29  ;;  %v1972_v29 = vpop.permute.xlu1 %1971 }
 0x3ed   : > { %v1437_v10 = vpop.f32.mrf.mxu2 }
 0x3ef   : > { %7730 = vmatmul.msk.f32.vlgmr.msrb.gmra.mxu3 %vm1262_vm1, %v1723_v39  ;;  %v1982_v1 = vpop.permute.xlu0 %1981  ;;  %v1974_v39 = vpop.permute.xlu2 %1973 }
 0x3f0   : > { %7745 = vmatpush.xpose.msk.msrb.mxu0 %vm1262_vm1, %v1982_v1 }
 0x3f4   : > { %7746 = vmatpush.xpose.msk.msrb.mxu0 %vm1262_vm1, %v1980_v58 }
 0x3f7   : > { %7731 = vmatmul.msk.f32.gmra.mxu3 %vm1262_vm1, %v1725_v49  ;;  %v1978_v2 = vpop.permute.xlu0 %1977 }
 0x3f8   : > { %7747 = vmatpush.xpose.msk.msrb.mxu0 %vm1262_vm1, %v1978_v2 }
 0x3fc   : > { %7748 = vmatpush.xpose.msk.msrb.mxu0 %vm1262_vm1, %v1976_v6 }
 0x3ff   : > { %7732 = vmatmul.msk.f32.gmra.mxu3 %vm1262_vm1, %v1727_v7  ;;  %v1966_v8 = vpop.permute.xlu0 %1965 }
 0x407   : > { %v1729_v13 = vpop.permute.xlu0 %1728 }
 0x408   : > { %7733 = vmatmul.msk.f32.gmra.mxu3 %vm1262_vm1, %v1729_v13 }
 0x40b   : > { %v1440_v36 = vpop.f32.mrf.mxu2 }
 0x40c   : > { %v1447_v9 = vpack.c.bf16 %v1440_v36, %v1437_v10 }
 0x40e   : > { %7723 = vmatmul.msk.bf16.gmra.mxu1 %vm1262_vm1, %v1447_v9 }
 0x40f   : > { %v1731_v15 = vpop.permute.xlu0 %1730 }
 0x410   : > { %7734 = vmatmul.msk.f32.gmra.mxu3 %vm1262_vm1, %v1731_v15 }
 0x413   : > { %v1443_v60 = vpop.f32.mrf.mxu2 }
 0x414   : > { %v1448_v18 = vpack.c.bf16 %v1443_v60, %v1443_v60 }
 0x41e   : > { %7724 = vmatmul.msk.bf16.gmra.mxu1 %vm1262_vm1, %v1448_v18 }
 0x426   : > { %v1634_v19 = vpop.f32.mrf.mxu2 }
 0x451   : > { %v1637_v20 = vpop.f32.mrf.mxu2 }
 0x452   : > { %v1649_v21 = vpack.c.bf16 %v1637_v20, %v1634_v19 }
 0x454   : > { %7719 = vmatmul.msk.bf16.vlgmr.msra.gmra.mxu0 %vm1262_vm1, %v1649_v21 }
 0x459   : > { %v1640_v23 = vpop.f32.mrf.mxu2 }
 0x461   : > { %v1643_v27 = vpop.f32.mrf.mxu2 }
 0x462   : > { %v1650_v28 = vpack.c.bf16 %v1643_v27, %v1640_v23 }
 0x464   : > { %7720 = vmatmul.msk.bf16.gmra.mxu0 %vm1262_vm1, %v1650_v28 }
 0x465   : > { %v10522_v42 = vpop.f32.mrf.mxu1 }
 0x469   : > { %v1646_v43 = vpop.f32.mrf.mxu2 }
 0x46a   : > { %v1651_v31 = vpack.c.bf16 %v1646_v43, %v1646_v43 }
 0x46d   : > { %v10529_v26 = vpop.f32.mrf.mxu1 }
 0x472   : > { %v1779_v32 = vpop.f32.mrf.mxu3 }
 0x473   : > { %v1794_v34 = vmul.f32 0.35355338, %v1779_v32 }
 0x474   : > { %7721 = vmatmul.msk.bf16.gmra.mxu0 %vm1262_vm1, %v1651_v31 }
 0x475   : > { %v1799_v41 = vadd.f32 %v1794_v34, %v10308_v62 }
 0x477   : > { %v1804_v35 = vsel %vm1325_vm2, %v1799_v41, -inf }
 0x478   : > { %1805 = vmax.xlane.f32.xlu1 %v1804_v35 }
 0x47a   : > { %v1782_v44 = vpop.f32.mrf.mxu3 }
 0x47b   : > { %v1795_v38 = vmul.f32 0.35355338, %v1782_v44 }
 0x47d   : > { %v10525_v45 = vadd.f32 %v1795_v38, %v10319_v11 }
 0x47f   : > { %v1807_v46 = vsel %vm1325_vm2, %v10525_v45, -inf }
 0x480   : > { %1808 = vmax.xlane.f32.xlu0 %v1807_v46 }
 0x482   : > { %v1785_v47 = vpop.f32.mrf.mxu3 }
 0x483   : > { %v1796_v50 = vmul.f32 0.35355338, %v1785_v47 }
 0x484   : > { %7749 = vmatmul.msk.f32.vlgmr.msrb.gmra.mxu0 %vm1262_vm1, %v1966_v8 }
 0x485   : > { %v10533_v51 = vadd.f32 %v1796_v50, %v10303_v61 }
 0x487   : > { %v1810_v52 = vsel %vm1325_vm2, %v10533_v51, -inf }
 0x488   : > { %1811 = vmax.xlane.f32.xlu1 %v1810_v52 }
 0x48b   : > { %v10537_v37 = vpop.f32.mrf.mxu1  ;;  %v1788_v54 = vpop.f32.mrf.mxu3 }
 0x48c   : > { %v1797_v48 = vmul.f32 0.35355338, %v1788_v54  ;;  %7750 = vmatmul.msk.f32.gmra.mxu0 %vm1262_vm1, %v1968_v5 }
 0x48e   : > { %v10541_v55 = vadd.f32 %v1797_v48, %v10340_v22 }
 0x490   : > { %v1813_v56 = vsel %vm1325_vm2, %v10541_v55, -inf }
 0x491   : > { %1814 = vmax.xlane.f32.xlu2 %v1813_v56 }
 0x493   : > { %v10545_v59 = vpop.f32.mrf.mxu1  ;;  %v1791_v63 = vpop.f32.mrf.mxu3 }
 0x494   : > { %v1798_v0 = vmul.f32 0.35355338, %v1791_v63  ;;  %7751 = vmatmul.msk.f32.gmra.mxu0 %vm1262_vm1, %v1970_v57 }
 0x496   : > { %v10549_v53 = vadd.f32 %v1798_v0, %v10353_v33 }
 0x498   : > { %v1816_v3 = vsel %vm1338_vm3, %v10549_v53, -inf }
 0x499   : > { %1817 = vmax.xlane.f32.xlu2 %v1816_v3 }
 0x49b   : > { %v10553_v4 = vpop.f32.mrf.mxu1 }
 0x49c   : > { %7752 = vmatmul.msk.f32.gmra.mxu0 %vm1262_vm1, %v1972_v29 }
 0x4a3   : > { %v1720_v1 = vpop.f32.mrf.mxu1 }
 0x4a4   : > { %7753 = vmatmul.msk.f32.gmra.mxu0 %vm1262_vm1, %v1974_v39 }
 0x4d1   : > { %v10557_v58 = vpop.f32.mrf.mxu0 }
 0x4d9   : > { %v10559_v49 = vpop.f32.mrf.mxu0 }
 0x4e1   : > { %v10561_v2 = vpop.f32.mrf.mxu0 }
 0x4e9   : > { %v10563_v6 = vpop.f32.mrf.mxu0 }
 0x4eb   : > { %v1806_v7 = vpop.xlane.xlu1 %1805 }
 0x4ec   : > { %v1819_v8 = vsub.f32 %v1799_v41, %v1806_v7 }
 0x4ee   : > { %v1824_v10 = vmul.f32 1.442695, %v1819_v8 }
 0x4f0   : > { %9750 = vpow2.f32 %v1824_v10 }
 0x4f1   : > { %v10565_v13 = vpop.f32.mrf.mxu0 }
 0x4f6   : > { %v10567_v36 = vpop.eup %9750 }
 0x4f7   : > { %v1834_v9 = vsel %vm1325_vm2, %v10567_v36, 0.0 }
 0x4f8   : > { %1835 = vadd.xlane.f32.xlu1 %v1834_v9 }
 0x4f9   : > { %v1685_v15 = vpop.f32.mrf.mxu0 }
 0x4fb   : > { %v1812_v47 = vpop.xlane.xlu1 %1811 }
 0x4fc   : > { %v1821_v50 = vsub.f32 %v10533_v51, %v1812_v47 }
 0x4fe   : > { %v1828_v5 = vmul.f32 1.442695, %v1821_v50 }
 0x501   : > { %v2022_v60 = vpop.f32.mrf.mxu0 }
 0x502   : > { %v2037_v18 = vmul.f32 0.35355338, %v2022_v60 }
 0x504   : > { %v2042_v19 = vadd.f32 %v2037_v18, %v10308_v62 }
 0x506   : > { %v2047_v20 = vsel %vm1325_vm2, %v2042_v19, -inf }
 0x507   : > { %2048 = vmax.xlane.f32.xlu2 %v2047_v20 }
 0x509   : > { %v2025_v21 = vpop.f32.mrf.mxu0 }
 0x50a   : > { %v2038_v23 = vmul.f32 0.35355338, %v2025_v21 }
 0x50c   : > { %v10574_v27 = vadd.f32 %v2038_v23, %v10319_v11 }
 0x50e   : > { %v2050_v28 = vsel %vm1325_vm2, %v10574_v27, -inf }
 0x50f   : > { %2051 = vmax.xlane.f32.xlu0 %v2050_v28 }
 0x511   : > { %v2028_v43 = vpop.f32.mrf.mxu0 }
 0x512   : > { %v2039_v31 = vmul.f32 0.35355338, %v2028_v43 }
 0x514   : > { %v2044_v32 = vadd.f32 %v2039_v31, %v10303_v61  ;;  %v1809_v61 = vpop.xlane.xlu0 %1808 }
 0x515   : > { %v1820_v11 = vsub.f32 %v10525_v45, %v1809_v61 }
 0x516   : > { %v2053_v34 = vsel %vm1325_vm2, %v2044_v32, -inf }
 0x517   : > { %2054 = vmax.xlane.f32.xlu1 %v2053_v34  ;;  %v1826_v46 = vmul.f32 1.442695, %v1820_v11 }
 0x519   : > { %v2031_v62 = vpop.f32.mrf.mxu0  ;;  %9752 = vpow2.f32 %v1826_v46 }
 0x51a   : > { %v2040_v41 = vmul.f32 0.35355338, %v2031_v62  ;;  %9754 = vpow2.f32 %v1828_v5 }
 0x51c   : > { %v2045_v35 = vadd.f32 %v2040_v41, %v10340_v22 }
 0x51e   : > { %v2056_v44 = vsel %vm1325_vm2, %v2045_v35, -inf }
 0x51f   : > { %2057 = vmax.xlane.f32.xlu0 %v2056_v44  ;;  %9636 = vrot.lane.b32.xlu2 %v10328_v14, %s13692_s1  ;;  %v10593_v54 = vpop.eup %9752 }
 0x520   : > { %v1837_v45 = vsel %vm1325_vm2, %v10593_v54, 0.0  ;;  %v10599_v56 = vpop.eup %9754 }
 0x521   : > { %v2034_v38 = vpop.f32.mrf.mxu0  ;;  %v1840_v51 = vsel %vm1325_vm2, %v10599_v56, 0.0 }
 0x522   : > { %v2041_v22 = vmul.f32 0.35355338, %v2034_v38 }
 0x524   : > { %v10591_v52 = vadd.f32 %v2041_v22, %v10353_v33  ;;  %v1815_v33 = vpop.xlane.xlu2 %1814 }
 0x525   : > { %v1822_v3 = vsub.f32 %v10541_v55, %v1815_v33 }
 0x526   : > { %v2059_v48 = vsel %vm1338_vm3, %v10591_v52, -inf }
 0x527   : > { %v1830_v39 = vmul.f32 1.442695, %v1822_v3 }
 0x52c   : > { %v1818_v57 = vpop.xlane.xlu2 %1817 }
 0x52d   : > { %v1823_v55 = vsub.f32 %v10549_v53, %v1818_v57 }
 0x530   : > { %9641 = vrot.lane.b32.xlu1 %v10323_v12, %s13692_s1 }
 0x533   : > { %1867 = vrot.lane.b32.xlu0 %v10238_v40, %s13692_s1  ;;  %s13743_s1 = sld [smem:[#allocation23_spill]] }
 0x55a   : > { %2060 = vmax.xlane.f32.xlu1 %v2059_v48 }
 0x55d   : > { %1838 = vadd.xlane.f32.xlu0 %v1837_v45 }
 0x565   : > { %1841 = vadd.xlane.f32.xlu0 %v1840_v51 }
 0x56b   : > { %v1836_v1 = vpop.xlane.xlu1 %1835 }
 0x573   : > { %2110 = vrot.lane.b32.xlu1 %v10238_v40, %s13690_s8 }
 0x57a   : > { %v2049_v63 = vpop.xlane.xlu2 %2048 }
 0x57b   : > { %v2062_v0 = vsub.f32 %v2042_v19, %v2049_v63  ;;  %9646 = vrot.lane.b32.xlu1 %v10328_v14, %s13690_s8 }
 0x57d   : > { %v2067_v29 = vmul.f32 1.442695, %v2062_v0 }
 0x57f   : > { %9756 = vpow2.f32 %v2067_v29 }
 0x580   : > { %9758 = vpow2.f32 %v1830_v39 }
 0x582   : > { %v2052_v8 = vpop.xlane.xlu0 %2051  ;;  %v9637_v62 = vpop.permute.xlu2 %9636 }
 0x583   : > { %9651 = vrot.lane.b32.xlu1 %v10323_v12, %s13690_s8  ;;  %v1832_v12 = vmul.f32 1.442695, %v1823_v55  ;;  %v2063_v53 = vsub.f32 %v10574_v27, %v2052_v8  ;;  %v9639_v27 = vunpack.i.h.bf16 %v9637_v62  ;;  %s13742_s8 = sld [smem:[#allocation18_spill]] }
 0x585   : > { %v10610_v7 = vpop.eup %9756  ;;  %v2069_v34 = vmul.f32 1.442695, %v2063_v53 }
 0x586   : > { %v2077_v40 = vsel %vm1325_vm2, %v10610_v7, 0.0  ;;  %v10614_v9 = vpop.eup %9758 }
 0x587   : > { %2078 = vadd.xlane.f32.xlu2 %v2077_v40  ;;  %v1843_v60 = vsel %vm1325_vm2, %v10614_v9, 0.0 }
 0x58a   : > { %v2055_v10 = vpop.xlane.xlu1 %2054 }
 0x58b   : > { %v2064_v14 = vsub.f32 %v2044_v32, %v2055_v10 }
 0x58d   : > { %v2071_v15 = vmul.f32 1.442695, %v2064_v14 }
 0x58f   : > { %9760 = vpow2.f32 %v2071_v15  ;;  %1844 = vadd.xlane.f32.xlu2 %v1843_v60 }
 0x590   : > { %9762 = vpow2.f32 %v1832_v12 }
 0x592   : > { %v2058_v18 = vpop.xlane.xlu0 %2057 }
 0x593   : > { %v2065_v19 = vsub.f32 %v2045_v35, %v2058_v18  ;;  %v9638_v35 = vunpack.i.l.bf16 %v9637_v62 }
 0x595   : > { %v10619_v20 = vpop.eup %9760  ;;  %v2073_v21 = vmul.f32 1.442695, %v2065_v19 }
 0x596   : > { %v2083_v23 = vsel %vm1325_vm2, %v10619_v20, 0.0  ;;  %v10623_v28 = vpop.eup %9762 }
 0x597   : > { %9764 = vpow2.f32 %v2073_v21  ;;  %2084 = vadd.xlane.f32.xlu0 %v2083_v23  ;;  %v1846_v31 = vsel %vm1338_vm3, %v10623_v28, 0.0 }
 0x598   : > { %9766 = vpow2.f32 %v2069_v34 }
 0x599   : > { %9768 = vrcp.f32 %v1836_v1 }
 0x59d   : > { %v10626_v43 = vpop.eup %9764 }
 0x59e   : > { %v2086_v32 = vsel %vm1325_vm2, %v10626_v43, 0.0  ;;  %v9767_v61 = vpop.eup %9766 }
 0x59f   : > { %1847 = vadd.xlane.f32.xlu0 %v1846_v31  ;;  %2087 = vadd.xlane.f32.xlu2 %v2086_v32  ;;  %v9769_v11 = vpop.eup %9768  ;;  %v2080_v47 = vsel %vm1325_vm2, %v9767_v61, 0.0 }
 0x5a0   : > { %v1854_v22 = vmul.f32 %v9769_v11, %v10567_v36 }
 0x5a2   : > { %v9642_v44 = vpop.permute.xlu1 %9641 }
 0x5a3   : > { %v9643_v38 = vunpack.i.l.bf16 %v9642_v44  ;;  %v9644_v46 = vunpack.i.h.bf16 %v9642_v44 }
 0x5a5   : > { %v1868_v41 = vpop.permute.xlu0 %1867 }
 0x5a6   : > { %7735 = vmatpush.msk.msra.mxu2 %vm1411_vm4, %v1868_v41 }
 0x5a8   : > { %1902 = vmatpush.msra.mxu2 %v9638_v35 }
 0x5aa   : > { %1903 = vmatpush.msra.mxu2 %v9639_v27 }
 0x5ac   : > { %1904 = vmatpush.msra.mxu2 %v9643_v38 }
 0x5ad   : > { %2081 = vadd.xlane.f32.xlu1 %v2080_v47 }
 0x5ae   : > { %1905 = vmatpush.msra.mxu2 %v9644_v46 }
 0x5af   : > { %7736 = vmatmul.msk.f32.vlgmr.msra.gmra.mxu2 %vm1325_vm2, %v1854_v22 }
 0x5cd   : > { %v2061_v50 = vpop.xlane.xlu1 %2060 }
 0x5ce   : > { %v2066_v5 = vsub.f32 %v10591_v52, %v2061_v50 }
 0x5d0   : > { %v2075_v48 = vmul.f32 1.442695, %v2066_v5  ;;  %v1839_v45 = vpop.xlane.xlu0 %1838 }
 0x5d1   : > { %9770 = vrcp.f32 %v1839_v45 }
 0x5d2   : > { %9772 = vpow2.f32 %v2075_v48 }
 0x5d7   : > { %v9771_v51 = vpop.eup %9770 }
 0x5d8   : > { %v9773_v33 = vpop.eup %9772  ;;  %v1842_v57 = vpop.xlane.xlu0 %1841  ;;  %v1855_v63 = vmul.f32 %v9771_v51, %v10593_v54 }
 0x5d9   : > { %9774 = vrcp.f32 %v1842_v57  ;;  %v2089_v0 = vsel %vm1338_vm3, %v9773_v33, 0.0 }
 0x5da   : > { %2090 = vadd.xlane.f32.xlu2 %v2089_v0  ;;  %7737 = vmatmul.msk.f32.gmra.mxu2 %vm1325_vm2, %v1855_v63 }
 0x5df   : > { %v9775_v36 = vpop.eup %9774 }
 0x5e0   : > { %v1856_v3 = vmul.f32 %v9775_v36, %v10599_v56 }
 0x5e2   : > { %7738 = vmatmul.msk.f32.gmra.mxu2 %vm1325_vm2, %v1856_v3 }
 0x5e5   : > { %v2111_v52 = vpop.permute.xlu1 %2110 }
 0x5e6   : > { %7754 = vmatpush.msk.msra.mxu1 %vm1411_vm4, %v2111_v52 }
 0x5ed   : > { %v9647_v29 = vpop.permute.xlu1 %9646 }
 0x5ee   : > { %v9648_v39 = vunpack.i.l.bf16 %v9647_v29  ;;  %v9649_v1 = vunpack.i.h.bf16 %v9647_v29 }
 0x5f0   : > { %2145 = vmatpush.msra.mxu1 %v9648_v39 }
 0x5f2   : > { %2146 = vmatpush.msra.mxu1 %v9649_v1 }
 0x5f5   : > { %v9652_v54 = vpop.permute.xlu1 %9651 }
 0x5f6   : > { %v9653_v40 = vunpack.i.l.bf16 %v9652_v54  ;;  %v9654_v8 = vunpack.i.h.bf16 %v9652_v54  ;;  %v1709_v54 = vadd.f32 %v10522_v42, %v10557_v58 }
 0x5f8   : > { %2147 = vmatpush.msra.mxu1 %v9653_v40 }
 0x5fa   : > { %2148 = vmatpush.msra.mxu1 %v9654_v8  ;;  %v2079_v10 = vpop.xlane.xlu2 %2078 }
 0x5fb   : > { %9776 = vrcp.f32 %v2079_v10 }
 0x601   : > { %v9777_v14 = vpop.eup %9776 }
 0x602   : > { %v2097_v56 = vmul.f32 %v9777_v14, %v10610_v7  ;;  %v1845_v55 = vpop.xlane.xlu2 %1844 }
 0x603   : > { %9778 = vrcp.f32 %v1845_v55 }
 0x604   : > { %7755 = vmatmul.msk.f32.vlgmr.msra.gmra.mxu1 %vm1325_vm2, %v2097_v56  ;;  %v9697_v56 = vld [vmem:[%s13742_s8] ss:$0 sm:$0xff]  ;;  %s13758_s8 = smov 56  }
 0x609   : > { %v9779_v15 = vpop.eup %9778 }
 0x60a   : > { %v2085_v60 = vpop.xlane.xlu0 %2084  ;;  %v1857_v12 = vmul.f32 %v9779_v15, %v10614_v9  ;;  %v1711_v15 = vadd.f32 %v10529_v26, %v10559_v49  ;;  %v1716_v49 = vadd.f32 %v10545_v59, %v10563_v6 }
 0x60c   : > { %7739 = vmatmul.msk.f32.gmra.mxu2 %vm1325_vm2, %v1857_v12 }
 0x612   : > { %v1848_v18 = vpop.xlane.xlu0 %1847  ;;  %v2088_v31 = vpop.xlane.xlu2 %2087 }
 0x613   : > { %9780 = vrcp.f32 %v1848_v18 }
 0x619   : > { %v9781_v19 = vpop.eup %9780 }
 0x61a   : > { %v1858_v21 = vmul.f32 %v9781_v19, %v10623_v28  ;;  %v905_v28 = vld [vmem:[%s13741_s0 + $0x8] sm:$0xf] }
 0x61b   : > { %v1935_v41 = vsel %vm1411_vm4, %v905_v28, 0 }
 0x61c   : > { %7740 = vmatmul.msk.f32.gmra.mxu2 %vm1325_vm2, %v1858_v21  ;;  %1944 = vmatpush.bf16.msra.mxu3 %v1935_v41  ;;  %v1714_v21 = vadd.f32 %v10537_v37, %v10561_v2  ;;  %v1719_v41 = vadd.f32 %v10553_v4, %v10565_v13 }
 0x620   : > { %v2082_v23 = vpop.xlane.xlu1 %2081 }
 0x621   : > { %9782 = vrcp.f32 %v2082_v23 }
 0x622   : > { %9784 = vrcp.f32 %v2085_v60 }
 0x623   : > { %9786 = vrcp.f32 %v2088_v31 }
 0x627   : > { %v9783_v7 = vpop.eup %9782 }
 0x628   : > { %v2098_v53 = vmul.f32 %v9783_v7, %v9767_v61  ;;  %v9785_v32 = vpop.eup %9784 }
 0x629   : > { %v2099_v9 = vmul.f32 %v9785_v32, %v10619_v20  ;;  %v9787_v34 = vpop.eup %9786 }
 0x62a   : > { %7756 = vmatmul.msk.f32.gmra.mxu1 %vm1325_vm2, %v2098_v53  ;;  %v2100_v62 = vmul.f32 %v9787_v34, %v10626_v43  ;;  %v906_v43 = vld [vmem:[%s13741_s0 + $0xc] sm:$0xf]  ;;  %s13749_s0 = sld [smem:[#allocation22_spill]] }
 0x62b   : > { %v2178_v38 = vsel %vm1411_vm4, %v906_v43, 0 }
 0x62c   : > { %2187 = vmatpush.bf16.msrb.mxu2 %v2178_v38 }
 0x632   : > { %7757 = vmatmul.msk.f32.gmra.mxu1 %vm1325_vm2, %v2099_v9  ;;  %v1907_v27 = vpop.f32.mrf.mxu2 }
 0x63a   : > { %7758 = vmatmul.msk.f32.gmra.mxu1 %vm1325_vm2, %v2100_v62 }
 0x64d   : > { %v2091_v35 = vpop.xlane.xlu2 %2090 }
 0x64e   : > { %9788 = vrcp.f32 %v2091_v35 }
 0x654   : > { %v9789_v44 = vpop.eup %9788 }
 0x655   : > { %v2101_v61 = vmul.f32 %v9789_v44, %v9773_v33 }
 0x657   : > { %7759 = vmatmul.msk.f32.gmra.mxu1 %vm1325_vm2, %v2101_v61 }
 0x65d   : > { %v1910_v20 = vpop.f32.mrf.mxu2 }
 0x65e   : > { %v1922_v11 = vpack.c.bf16 %v1910_v20, %v1907_v27  ;;  %v9985_v20 = vmov 32.0  }
 0x65f   : > { %9790 = vrcp.f32 %v9985_v20 }
 0x660   : > { %7741 = vmatmul.msk.bf16.vlgmr.msra.gmra.mxu3 %vm1262_vm1, %v1922_v11 }
 0x665   : > { %v1913_v46 = vpop.f32.mrf.mxu2 }
 0x681   : > { %v2150_v50 = vpop.f32.mrf.mxu1 }
 0x68f   : > { %v1916_v47 = vpop.f32.mrf.mxu2 }
 0x690   : > { %v1923_v22 = vpack.c.bf16 %v1916_v47, %v1913_v46 }
 0x692   : > { %7742 = vmatmul.msk.bf16.gmra.mxu3 %vm1262_vm1, %v1923_v22 }
 0x69f   : > { %v1919_v5 = vpop.f32.mrf.mxu2 }
 0x6a0   : > { %v1924_v48 = vpack.c.bf16 %v1919_v5, %v1919_v5 }
 0x6a2   : > { %7743 = vmatmul.msk.bf16.gmra.mxu3 %vm1262_vm1, %v1924_v48 }
 0x6a7   : > { %v2153_v45 = vpop.f32.mrf.mxu1 }
 0x6a8   : > { %v2165_v51 = vpack.c.bf16 %v2153_v45, %v2150_v50 }
 0x6aa   : > { %7760 = vmatmul.msk.bf16.vlgmr.msrb.gmra.mxu2 %vm1262_vm1, %v2165_v51 }
 0x6af   : > { %v2156_v33 = vpop.f32.mrf.mxu1 }
 0x6b7   : > { %v2159_v57 = vpop.f32.mrf.mxu1 }
 0x6b8   : > { %v2166_v63 = vpack.c.bf16 %v2159_v57, %v2156_v33 }
 0x6ba   : > { %7761 = vmatmul.msk.bf16.gmra.mxu2 %vm1262_vm1, %v2166_v63 }
 0x6d4   : > { %v2162_v0 = vpop.f32.mrf.mxu1 }
 0x6d5   : > { %v2167_v36 = vpack.c.bf16 %v2162_v0, %v2162_v0 }
 0x6d7   : > { %7762 = vmatmul.msk.bf16.gmra.mxu2 %vm1262_vm1, %v2167_v36 }
 0x6e3   : > { %v1946_v3 = vpop.f32.mrf.mxu3 }
 0x6e4   : > { %v1960_v40 = vadd.f32 %v1946_v3, %v1709_v54 }
 0x6eb   : > { %v1948_v52 = vpop.f32.mrf.mxu3 }
 0x6ec   : > { %v1961_v12 = vadd.f32 %v1948_v52, %v1711_v15  ;;  %v9257_v15 = vld [vmem:[%s13743_s1 + $0xc4] sm:$0xf0] }
 0x715   : > { %v1951_v29 = vpop.f32.mrf.mxu3 }
 0x716   : > { %v1962_v7 = vadd.f32 %v1951_v29, %v1714_v21 }
 0x71d   : > { %v1953_v39 = vpop.f32.mrf.mxu3 }
 0x71e   : > { %v1963_v9 = vadd.f32 %v1953_v39, %v1716_v49  ;;  %v9240_v49 = vld [vmem:[%s13743_s1 + $0x3c] sm:$0xf0] }
 0x725   : > { %v1956_v1 = vpop.f32.mrf.mxu3 }
 0x72d   : > { %v2189_v8 = vpop.f32.mrf.mxu2  ;;  %v1958_v10 = vpop.f32.mrf.mxu3 }
 0x72e   : > { %v2203_v14 = vadd.f32 %v2189_v8, %v1960_v40 }
 0x730   : > { %v2208_v55 = vadd.f32 %v2203_v14, %v10199_v16 }
 0x732   : > { %v2217_v60 = vadd.f32 %v9697_v56, %v2208_v55  ;;  %v7837_v55 = vld [vmem:[%s13743_s1 + $0x88] sm:$0xf] }
 0x734   : > { %v2224_v18 = vsel %vm1214_vm0, %v2217_v60, 0.0 }
 0x735   : > { %2225 = vadd.xlane.f32.xlu0 %v2224_v18  ;;  %v2191_v19 = vpop.f32.mrf.mxu2  ;;  %v7839_v18 = vld [vmem:[%s13743_s1 + $0xc8] sm:$0xf0] }
 0x736   : > { %v2204_v42 = vadd.f32 %v2191_v19, %v1961_v12  ;;  %v7838_v12 = vor.u32 %v9257_v15, %v7837_v55  ;;  %v7829_v19 = vld [vmem:[%s13743_s1 + $0x80] sm:$0xf] }
 0x738   : > { %v2209_v58 = vadd.f32 %v2204_v42, %v10201_v17  ;;  %v9256_v42 = vld [vmem:[%s13743_s1 + $0xbc] sm:$0xf0]  ;;  %2618 = vmatpush.bf16.msrb.mxu3 %v7838_v12 }
 0x73a   : > { %v2218_v23 = vadd.f32 %v9697_v56, %v2209_v58 }
 0x73c   : > { %v2227_v53 = vsel %vm1214_vm0, %v2218_v23, 0.0 }
 0x73d   : > { %2228 = vadd.xlane.f32.xlu2 %v2227_v53  ;;  %v2194_v16 = vpop.f32.mrf.mxu2  ;;  %v7831_v53 = vld [vmem:[%s13743_s1 + $0xc0] sm:$0xf0] }
 0x73e   : > { %v2205_v31 = vadd.f32 %v2194_v16, %v1962_v7  ;;  %v9248_v7 = vld [vmem:[%s13743_s1 + $0x84] sm:$0xf] }
 0x740   : > { %v2210_v26 = vadd.f32 %v2205_v31, %v10212_v24  ;;  %v1964_v24 = vadd.f32 %v1956_v1, %v1719_v41  ;;  %v7834_v31 = vor.u32 %v9248_v7, %v7831_v53  ;;  %v7775_v41 = vld [vmem:[%s13743_s1 + $0x48] sm:$0xf0]  ;;  %v7853_v53 = vld [vmem:[%s13743_s1 + $0x98] sm:$0xf] }
 0x742   : > { %v2219_v32 = vadd.f32 %v9697_v56, %v2210_v26  ;;  %v7765_v26 = vld [vmem:[%s13743_s1] sm:$0xf]  ;;  %2595 = vmatpush.bf16.msrb.mxu1 %v7834_v31 }
 0x744   : > { %v2230_v34 = vsel %vm1214_vm0, %v2219_v32, 0.0 }
 0x745   : > { %2231 = vadd.xlane.f32.xlu0 %v2230_v34  ;;  %v2196_v17 = vpop.f32.mrf.mxu2  ;;  %v7766_v34 = vor.u32 %v9240_v49, %v7765_v26  ;;  %v7845_v49 = vld [vmem:[%s13743_s1 + $0x90] sm:$0xf] }
 0x746   : > { %v2206_v62 = vadd.f32 %v2196_v17, %v1963_v9  ;;  %v7767_v17 = vld [vmem:[%s13743_s1 + $0x40] sm:$0xf0] }
 0x748   : > { %v2211_v37 = vadd.f32 %v2206_v62, %v10214_v25  ;;  %v9791_v25 = vpop.eup %9790  ;;  %v7773_v62 = vld [vmem:[%s13743_s1 + $0x8] sm:$0xf] }
 0x749   : > { %v2241_v11 = vmul.f32 32.0, %v9791_v25  ;;  %vm2245_vm6 = vweird.f32 %v9791_v25 }
 0x74a   : > { %v2220_v2 = vadd.f32 %v9697_v56, %v2211_v37 }
 0x74b   : > { %v2242_v43 = vsub.f32 1.0, %v2241_v11 }
 0x74c   : > { %v2233_v28 = vsel %vm1214_vm0, %v2220_v2, 0.0 }
 0x74d   : > { %2234 = vadd.xlane.f32.xlu2 %v2233_v28  ;;  %v2243_v38 = vmul.f32 %v9791_v25, %v2242_v43  ;;  %v9233_v28 = vld [vmem:[%s13743_s1 + $0xc] sm:$0xf] }
 0x74f   : > { %v2244_v46 = vadd.f32 %v9791_v25, %v2243_v38 }
 0x751   : > { %v10692_v4 = vsel %vm2245_vm6, %v9791_v25, %v2244_v46 }
 0x75a   : > { %v2199_v35 = vpop.f32.mrf.mxu2 }
 0x75b   : > { %v2207_v44 = vadd.f32 %v2199_v35, %v1964_v24  ;;  %v7778_v35 = vor.u32 %v9233_v28, %v7775_v41  ;;  %v9250_v28 = vld [vmem:[%s13743_s1 + $0x94] sm:$0xf] }
 0x75c   : > { %v7847_v41 = vld [vmem:[%s13743_s1 + $0xd0] sm:$0xf0] }
 0x75d   : > { %v2212_v59 = vadd.f32 %v2207_v44, %v10222_v30 }
 0x75f   : > { %v2221_v6 = vadd.f32 %v9697_v56, %v2212_v59 }
 0x761   : > { %v2237_v27 = vsel %vm2236_vm5, %v2221_v6, 0.0 }
 0x762   : > { %v2201_v61 = vpop.f32.mrf.mxu2  ;;  %2238 = vadd.xlane.f32.xlu0 %v2237_v27 }
 0x7a8   : > { %v2226_v13 = vpop.xlane.xlu0 %2225 }
 0x7a9   : > { %v2247_v47 = vmul.f32 %v10692_v4, %v2226_v13 }
 0x7ab   : > { %v10695_v30 = vsub.f32 %v2217_v60, %v2247_v47  ;;  %v9249_v60 = vld [vmem:[%s13743_s1 + $0x8c] sm:$0xf] }
 0x7ac   : > { %v7842_v21 = vor.u32 %v9249_v60, %v7839_v18 }
 0x7ad   : > { %v2257_v22 = vmul.f32 %v10695_v30, %v10695_v30 }
 0x7ae   : > { %2641 = vmatpush.bf16.msra.mxu2 %v7842_v21 }
 0x7af   : > { %v2262_v50 = vsel %vm1214_vm0, %v2257_v22, 0.0 }
 0x7b0   : > { %v2229_v5 = vpop.xlane.xlu2 %2228  ;;  %2263 = vadd.xlane.f32.xlu2 %v2262_v50 }
 0x7b1   : > { %v2248_v48 = vmul.f32 %v10692_v4, %v2229_v5 }
 0x7b2   : > { %2642 = vmatpush.bf16.msra.mxu2 %v7778_v35 }
 0x7b3   : > { %v10701_v45 = vsub.f32 %v2218_v23, %v2248_v48  ;;  %v7830_v23 = vor.u32 %v9256_v42, %v7829_v19 }
 0x7b5   : > { %v2258_v51 = vmul.f32 %v10701_v45, %v10701_v45  ;;  %2572 = vmatpush.bf16.msra.mxu0 %v7830_v23 }
 0x7b7   : > { %v2265_v33 = vsel %vm1214_vm0, %v2258_v51, 0.0 }
 0x7b8   : > { %2266 = vadd.xlane.f32.xlu1 %v2265_v33  ;;  %v2232_v57 = vpop.xlane.xlu0 %2231 }
 0x7b9   : > { %v2249_v63 = vmul.f32 %v10692_v4, %v2232_v57  ;;  %2573 = vmatpush.bf16.msra.mxu0 %v7766_v34 }
 0x7bb   : > { %v10707_v0 = vsub.f32 %v2219_v32, %v2249_v63  ;;  %v9232_v32 = vld [vmem:[%s13743_s1 + $0x4] sm:$0xf] }
 0x7bc   : > { %v7770_v37 = vor.u32 %v9232_v32, %v7767_v17  ;;  %v9258_v32 = vld [vmem:[%s13743_s1 + $0xcc] sm:$0xf0] }
 0x7bd   : > { %v2259_v36 = vmul.f32 %v10707_v0, %v10707_v0 }
 0x7be   : > { %2596 = vmatpush.bf16.msrb.mxu1 %v7770_v37 }
 0x7bf   : > { %v2268_v3 = vsel %vm1214_vm0, %v2259_v36, 0.0  ;;  %v10779_v36 = vld [vmem:[%s13744_s30] ss:$0 sm:$0xff]  ;;  %s13750_s30 = smov 96  }
 0x7c0   : > { %v2235_v52 = vpop.xlane.xlu2 %2234  ;;  %2269 = vadd.xlane.f32.xlu0 %v2268_v3 }
 0x7c1   : > { %v2250_v29 = vmul.f32 %v10692_v4, %v2235_v52 }
 0x7c3   : > { %v10713_v39 = vsub.f32 %v2220_v2, %v2250_v29  ;;  %v9241_v2 = vld [vmem:[%s13743_s1 + $0x44] sm:$0xf0] }
 0x7c4   : > { %v7774_v24 = vor.u32 %v9241_v2, %v7773_v62  ;;  %v7855_v62 = vld [vmem:[%s13743_s1 + $0xd8] sm:$0xf0] }
 0x7c5   : > { %v2260_v1 = vmul.f32 %v10713_v39, %v10713_v39 }
 0x7c6   : > { %2619 = vmatpush.bf16.msrb.mxu3 %v7774_v24  ;;  %v7781_v24 = vld [vmem:[%s13743_s1 + $0x10] sm:$0xf] }
 0x7c7   : > { %v2271_v54 = vsel %vm1214_vm0, %v2260_v1, 0.0 }
 0x7c8   : > { %2272 = vadd.xlane.f32.xlu2 %v2271_v54 }
 0x7d5   : > { %v2239_v40 = vpop.xlane.xlu0 %2238 }
 0x7d6   : > { %v2251_v8 = vmul.f32 %v10692_v4, %v2239_v40 }
 0x7d8   : > { %v10719_v10 = vsub.f32 %v2221_v6, %v2251_v8  ;;  %v10785_v8 = vld [vmem:[%s13745_s29] ss:$0 sm:$0xff]  ;;  %s13754_s29 = smov 80  }
 0x7da   : > { %v2261_v14 = vmul.f32 %v10719_v10, %v10719_v10 }
 0x7dc   : > { %v2274_v56 = vsel %vm2236_vm5, %v2261_v14, 0.0 }
 0x7dd   : > { %2275 = vadd.xlane.f32.xlu1 %v2274_v56 }
 0x823   : > { %v2264_v58 = vpop.xlane.xlu2 %2263 }
 0x824   : > { %v2277_v16 = vmul.f32 %v2264_v58, %v10692_v4 }
 0x826   : > { %v2282_v9 = vadd.f32 1e-05, %v2277_v16  ;;  %v9259_v16 = vld [vmem:[%s13743_s1 + $0xd4] sm:$0xf0] }
 0x827   : > { %v7854_v26 = vor.u32 %v9259_v16, %v7853_v53  ;;  %v9244_v16 = vld [vmem:[%s13743_s1 + $0x5c] sm:$0xf0] }
 0x828   : > { %9792 = vrsqrt.f32 %v2282_v9  ;;  %vm2293_vm8 = vweird.f32 %v2282_v9 }
 0x829   : > { %2710 = vmatpush.bf16.msra.mxu3 %v7854_v26  ;;  %v7799_v26 = vld [vmem:[%s13743_s1 + $0x60] sm:$0xf0] }
 0x82b   : > { %v2267_v44 = vpop.xlane.xlu1 %2266 }
 0x82c   : > { %v2278_v59 = vmul.f32 %v2267_v44, %v10692_v4 }
 0x82e   : > { %v9793_v6 = vpop.eup %9792  ;;  %v2283_v27 = vadd.f32 1e-05, %v2278_v59  ;;  %v7850_v59 = vor.u32 %v9250_v28, %v7847_v41  ;;  %v9263_v28 = vld [vmem:[%s13743_s1 + $0xf4] sm:$0xf0] }
 0x82f   : > { %v2288_v61 = vmul.f32 %v9793_v6, %v2282_v9  ;;  %vm2294_vm7 = vweird.f32 %v9793_v6  ;;  %v9251_v9 = vld [vmem:[%s13743_s1 + $0x9c] sm:$0xf] }
 0x830   : > { %9794 = vrsqrt.f32 %v2283_v27  ;;  %vm2295_vm9 = vmor %vm2293_vm8, %vm2294_vm7  ;;  %vm2303_vm11 = vweird.f32 %v2283_v27  ;;  %v7858_v2 = vor.u32 %v9251_v9, %v7855_v62  ;;  %2687 = vmatpush.bf16.msra.mxu1 %v7850_v59  ;;  %v9245_v9 = vld [vmem:[%s13743_s1 + $0x64] sm:$0xf0]  ;;  %v7807_v62 = vld [vmem:[%s13743_s1 + $0x68] sm:$0xf0] }
 0x831   : > { %v2289_v20 = vmul.f32 %v9793_v6, %v2288_v61  ;;  %v7783_v61 = vld [vmem:[%s13743_s1 + $0x50] sm:$0xf0] }
 0x832   : > { %2733 = vmatpush.bf16.msrb.mxu2 %v7858_v2  ;;  %v7885_v2 = vld [vmem:[%s13743_s1 + $0xb8] sm:$0xf] }
 0x833   : > { %v2290_v25 = vmul.f32 0.5, %v2289_v20  ;;  %v2270_v11 = vpop.xlane.xlu0 %2269  ;;  %v7886_v41 = vor.u32 %v9263_v28, %v7885_v2  ;;  %v9266_v28 = vld [vmem:[%s13658_s14 + $0x10] sm:$0xff] }
 0x834   : > { %v2279_v43 = vmul.f32 %v2270_v11, %v10692_v4 }
 0x835   : > { %v2291_v38 = vsub.f32 1.5, %v2290_v25 }
 0x836   : > { %v9795_v46 = vpop.eup %9794  ;;  %v2284_v13 = vadd.f32 1e-05, %v2279_v43  ;;  %v7789_v43 = vld [vmem:[%s13743_s1 + $0x18] sm:$0xf] }
 0x837   : > { %v2292_v47 = vmul.f32 %v9793_v6, %v2291_v38  ;;  %v2298_v22 = vmul.f32 %v9795_v46, %v2283_v27  ;;  %vm2304_vm10 = vweird.f32 %v9795_v46  ;;  %v9234_v27 = vld [vmem:[%s13743_s1 + $0x14] sm:$0xf]  ;;  %v9243_v38 = vld [vmem:[%s13743_s1 + $0x54] sm:$0xf0] }
 0x838   : > { %9796 = vrsqrt.f32 %v2284_v13  ;;  %vm2305_vm12 = vmor %vm2303_vm11, %vm2304_vm10  ;;  %vm2313_vm14 = vweird.f32 %v2284_v13 }
 0x839   : > { %v2299_v50 = vmul.f32 %v9795_v46, %v2298_v22  ;;  %v2296_v5 = vsel %vm2295_vm9, %v9793_v6, %v2292_v47  ;;  %v9242_v6 = vld [vmem:[%s13743_s1 + $0x4c] sm:$0xf0]  ;;  %v7786_v47 = vor.u32 %v9234_v27, %v7783_v61  ;;  %v7790_v22 = vor.u32 %v9243_v38, %v7789_v43  ;;  %v9254_v61 = vld [vmem:[%s13743_s1 + $0xb4] sm:$0xf] }
 0x83a   : > { %v2337_v3 = vmul.f32 %v2296_v5, %v10695_v30  ;;  %v7782_v11 = vor.u32 %v9242_v6, %v7781_v24  ;;  %v7877_v24 = vld [vmem:[%s13743_s1 + $0xb0] sm:$0xf]  ;;  %v7887_v6 = vld [vmem:[%s13743_s1 + $0xf8] sm:$0xf0]  ;;  %v9238_v38 = vld [vmem:[%s13743_s1 + $0x34] sm:$0xf] }
 0x83b   : > { %v2300_v48 = vmul.f32 0.5, %v2299_v50  ;;  %v2273_v51 = vpop.xlane.xlu2 %2272  ;;  %2711 = vmatpush.bf16.msra.mxu3 %v7790_v22  ;;  %2688 = vmatpush.bf16.msra.mxu1 %v7786_v47  ;;  %v9246_v43 = vld [vmem:[%s13743_s1 + $0x6c] sm:$0xf0]  ;;  %v7821_v47 = vld [vmem:[%s13743_s1 + $0x38] sm:$0xf] }
 0x83c   : > { %v2280_v33 = vmul.f32 %v2273_v51, %v10692_v4  ;;  %v2345_v14 = vmul.f32 %v10779_v36, %v2337_v3  ;;  %v9247_v22 = vld [vmem:[%s13743_s1 + $0x74] sm:$0xf0] }
 0x83d   : > { %v2301_v57 = vsub.f32 1.5, %v2300_v48 }
 0x83e   : > { %v9797_v63 = vpop.eup %9796  ;;  %v2285_v52 = vadd.f32 1e-05, %v2280_v33  ;;  %v10791_v12 = vadd.f32 %v10785_v8, %v2345_v14 }
 0x83f   : > { %v2302_v29 = vmul.f32 %v9795_v46, %v2301_v57  ;;  %v2308_v1 = vmul.f32 %v9797_v63, %v2284_v13  ;;  %vm2314_vm13 = vweird.f32 %v9797_v63 }
 0x840   : > { %9798 = vrsqrt.f32 %v2285_v52  ;;  %vm2315_vm15 = vmor %vm2313_vm14, %vm2314_vm13  ;;  %vm2323_vm7 = vweird.f32 %v2285_v52 }
 0x841   : > { %v2306_v54 = vsel %vm2305_vm12, %v9795_v46, %v2302_v29  ;;  %v2309_v40 = vmul.f32 %v9797_v63, %v2308_v1  ;;  %v9235_v46 = vld [vmem:[%s13743_s1 + $0x1c] sm:$0xf] }
 0x842   : > { %v2338_v56 = vmul.f32 %v2306_v54, %v10701_v45 }
 0x843   : > { %v2310_v55 = vmul.f32 0.5, %v2309_v40 }
 0x844   : > { %v2346_v30 = vmul.f32 %v10779_v36, %v2338_v56 }
 0x845   : > { %v2311_v15 = vsub.f32 1.5, %v2310_v55 }
 0x846   : > { %v9799_v60 = vpop.eup %9798  ;;  %v10794_v18 = vadd.f32 %v10785_v8, %v2346_v30 }
 0x847   : > { %v2312_v19 = vmul.f32 %v9797_v63, %v2311_v15  ;;  %v2318_v42 = vmul.f32 %v9799_v60, %v2285_v52  ;;  %vm2324_vm6 = vweird.f32 %v9799_v60  ;;  %v9260_v15 = vld [vmem:[%s13743_s1 + $0xdc] sm:$0xf0] }
 0x848   : > { %v10798_v58 = vpack.c.bf16 %v10794_v18, %v10791_v12  ;;  %vm10824_vm8 = vmor %vm2323_vm7, %vm2324_vm6 }
 0x849   : > { %v2319_v45 = vmul.f32 %v9799_v60, %v2318_v42  ;;  %v2316_v21 = vsel %vm2315_vm15, %v9797_v63, %v2312_v19  ;;  %v7871_v19 = vld [vmem:[%s13743_s1 + $0xe8] sm:$0xf0] }
 0x84a   : > { %7891 = vmatmul.msk.bf16.vlgmr.msra.gmra.mxu0 %vm1214_vm0, %v10798_v58  ;;  %7894 = vmatmul.msk.bf16.vlgmr.msrb.gmra.mxu1 %vm1214_vm0, %v10798_v58  ;;  %v2339_v31 = vmul.f32 %v2316_v21, %v10707_v0  ;;  %v7846_v0 = vor.u32 %v9258_v32, %v7845_v49  ;;  %v9252_v21 = vld [vmem:[%s13743_s1 + $0xa4] sm:$0xf]  ;;  %v7805_v32 = vld [vmem:[%s13743_s1 + $0x28] sm:$0xf] }
 0x84b   : > { %v2320_v23 = vmul.f32 0.5, %v2319_v45  ;;  %7897 = vmatmul.msk.bf16.vlgmr.msrb.gmra.mxu3 %vm1214_vm0, %v10798_v58  ;;  %7900 = vmatmul.msk.bf16.vlgmr.msra.gmra.mxu2 %vm1214_vm0, %v10798_v58 }
 0x84c   : > { %2664 = vmatpush.bf16.msrb.mxu0 %v7846_v0  ;;  %v2347_v20 = vmul.f32 %v10779_v36, %v2339_v31  ;;  %v9236_v31 = vld [vmem:[%s13743_s1 + $0x24] sm:$0xf]  ;;  %v7806_v0 = vor.u32 %v9245_v9, %v7805_v32 }
 0x84d   : > { %v2321_v7 = vsub.f32 1.5, %v2320_v23  ;;  %v7863_v23 = vld [vmem:[%s13743_s1 + $0xe0] sm:$0xf0]  ;;  %v7802_v17 = vor.u32 %v9236_v31, %v7799_v26 }
 0x84e   : > { %v10868_v48 = vadd.f32 %v10785_v8, %v2347_v20  ;;  %v7866_v53 = vor.u32 %v9252_v21, %v7863_v23  ;;  %v7879_v20 = vld [vmem:[%s13743_s1 + $0xf0] sm:$0xf0]  ;;  %v9269_v21 = vld [vmem:[%s13658_s14 + $0x28] sm:$0xff]  ;;  %v9268_v26 = vld [vmem:[%s13658_s14 + $0x20] sm:$0xff] }
 0x84f   : > { %v2322_v34 = vmul.f32 %v9799_v60, %v2321_v7  ;;  %v7797_v7 = vld [vmem:[%s13743_s1 + $0x20] sm:$0xf]  ;;  %v9277_v23 = vld [vmem:[%s13658_s14 + $0x68] sm:$0xff] }
 0x850   : > { %v2276_v37 = vpop.xlane.xlu1 %2275  ;;  %2665 = vmatpush.bf16.msrb.mxu0 %v7782_v11  ;;  %v7798_v49 = vor.u32 %v9244_v16, %v7797_v7  ;;  %2779 = vmatpush.bf16.msrb.mxu1 %v7866_v53  ;;  %v7813_v11 = vld [vmem:[%s13743_s1 + $0x30] sm:$0xf]  ;;  %v9285_v7 = vld [vmem:[%s13658_s14 + $0xa8] sm:$0xff]  ;;  %v9284_v32 = vld [vmem:[%s13658_s14 + $0xa0] sm:$0xff] }
 0x851   : > { %v2326_v35 = vsel %vm10824_vm8, %v9799_v60, %v2322_v34  ;;  %v2281_v44 = vmul.f32 %v2276_v37, %v10692_v4  ;;  %v9253_v60 = vld [vmem:[%s13743_s1 + $0xac] sm:$0xf]  ;;  %v9292_v9 = vld [vmem:[%s13658_s14 + $0xe0] sm:$0xff] }
 0x852   : > { %v2340_v25 = vmul.f32 %v2326_v35, %v10713_v39  ;;  %v7791_v39 = vld [vmem:[%s13743_s1 + $0x58] sm:$0xf0]  ;;  %v7874_v45 = vor.u32 %v9253_v60, %v7871_v19  ;;  %v9237_v34 = vld [vmem:[%s13743_s1 + $0x2c] sm:$0xf]  ;;  %v9262_v35 = vld [vmem:[%s13743_s1 + $0xec] sm:$0xf0] }
 0x853   : > { %v2286_v13 = vadd.f32 1e-05, %v2281_v44  ;;  %v7794_v5 = vor.u32 %v9235_v46, %v7791_v39  ;;  %v7810_v37 = vor.u32 %v9237_v34, %v7807_v62  ;;  %v9255_v44 = vld [vmem:[%s13743_s1 + $0xbc] sm:$0xf]  ;;  %v7878_v59 = vor.u32 %v9262_v35, %v7877_v24  ;;  %v9286_v60 = vld [vmem:[%s13658_s14 + $0xb0] sm:$0xff]  ;;  %v9293_v53 = vld [vmem:[%s13658_s14 + $0xe8] sm:$0xff] }
 0x854   : > { %v2348_v50 = vmul.f32 %v10779_v36, %v2340_v25  ;;  %2780 = vmatpush.bf16.msrb.mxu1 %v7802_v17  ;;  %v7890_v27 = vor.u32 %v9255_v44, %v7887_v6  ;;  %v7882_v25 = vor.u32 %v9254_v61, %v7879_v20  ;;  %v7814_v46 = vor.u32 %v9246_v43, %v7813_v11  ;;  %v9294_v19 = vld [vmem:[%s13658_s14 + $0xf0] sm:$0xff]  ;;  %v9267_v34 = vld [vmem:[%s13658_s14 + $0x18] sm:$0xff]  ;;  %v9273_v6 = vld [vmem:[%s13658_s14 + $0x48] sm:$0xff] }
 0x855   : > { %9800 = vrsqrt.f32 %v2286_v13  ;;  %2734 = vmatpush.bf16.msrb.mxu2 %v7794_v5  ;;  %vm2333_vm10 = vweird.f32 %v2286_v13  ;;  %v9239_v5 = vld [vmem:[%s13743_s1 + $0x3c] sm:$0xf]  ;;  %v9290_v44 = vld [vmem:[%s13658_s14 + $0xd0] sm:$0xff]  ;;  %v9289_v61 = vld [vmem:[%s13658_s14 + $0xc8] sm:$0xff] }
 0x856   : > { %v10871_v51 = vadd.f32 %v10785_v8, %v2348_v50  ;;  %v7822_v50 = vor.u32 %v9247_v22, %v7821_v47  ;;  %v9275_v17 = vld [vmem:[%s13658_s14 + $0x58] sm:$0xff]  ;;  %v9264_v11 = vld [vmem:[%s13658_s14] sm:$0xff] }
 0x857   : > { %v9291_v62 = vld [vmem:[%s13658_s14 + $0xd8] sm:$0xff]  ;;  %v9272_v43 = vld [vmem:[%s13658_s14 + $0x40] sm:$0xff] }
 0x858   : > { %v10875_v33 = vpack.c.bf16 %v10871_v51, %v10868_v48  ;;  %v9288_v47 = vld [vmem:[%s13658_s14 + $0xc0] sm:$0xff] }
 0x859   : > { %2825 = vmatpush.bf16.msra.mxu2 %v7874_v45 }
 0x85a   : > { %7892 = vmatmul.msk.bf16.gmra.mxu0 %vm1214_vm0, %v10875_v33  ;;  %7895 = vmatmul.msk.bf16.gmra.mxu1 %vm1214_vm0, %v10875_v33 }
 0x85b   : > { %v9801_v57 = vpop.eup %9800  ;;  %7898 = vmatmul.msk.bf16.gmra.mxu3 %vm1214_vm0, %v10875_v33  ;;  %7901 = vmatmul.msk.bf16.gmra.mxu2 %vm1214_vm0, %v10875_v33 }
 0x85c   : > { %v2328_v63 = vmul.f32 %v9801_v57, %v2286_v13  ;;  %vm2334_vm9 = vweird.f32 %v9801_v57  ;;  %v7815_v13 = vld [vmem:[%s13743_s1 + $0x70] sm:$0xf0] }
 0x85d   : > { %vm2335_vm11 = vmor %vm2333_vm10, %vm2334_vm9  ;;  %2826 = vmatpush.bf16.msra.mxu2 %v7810_v37  ;;  %v7818_v39 = vor.u32 %v9238_v38, %v7815_v13  ;;  %v9280_v38 = vld [vmem:[%s13658_s14 + $0x80] sm:$0xff] }
 0x85e   : > { %v2329_v3 = vmul.f32 %v9801_v57, %v2328_v63 }
 0x860   : > { %v2330_v52 = vmul.f32 0.5, %v2329_v3 }
 0x862   : > { %v2331_v29 = vsub.f32 1.5, %v2330_v52 }
 0x864   : > { %v2332_v1 = vmul.f32 %v9801_v57, %v2331_v29 }
 0x866   : > { %v2336_v54 = vsel %vm2335_vm11, %v9801_v57, %v2332_v1  ;;  %v7823_v57 = vld [vmem:[%s13743_s1 + $0x78] sm:$0xf0] }
 0x867   : > { %v2341_v40 = vmul.f32 %v2336_v54, %v10719_v10  ;;  %v7869_v10 = vld [vmem:[%s13743_s1 + $0xa8] sm:$0xf]  ;;  %v7826_v63 = vor.u32 %v9239_v5, %v7823_v57  ;;  %v9271_v54 = vld [vmem:[%s13658_s14 + $0x38] sm:$0xff] }
 0x869   : > { %v2349_v14 = vmul.f32 %v10779_v36, %v2341_v40  ;;  %v9261_v36 = vld [vmem:[%s13743_s1 + $0xe4] sm:$0xf0]  ;;  %v9279_v40 = vld [vmem:[%s13658_s14 + $0x78] sm:$0xff] }
 0x86a   : > { %v7870_v30 = vor.u32 %v9261_v36, %v7869_v10 }
 0x86b   : > { %v10888_v56 = vadd.f32 %v10785_v8, %v2349_v14  ;;  %v7861_v8 = vld [vmem:[%s13743_s1 + $0xa0] sm:$0xf]  ;;  %v9287_v14 = vld [vmem:[%s13658_s14 + $0xb8] sm:$0xff] }
 0x86c   : > { %v7862_v42 = vor.u32 %v9260_v15, %v7861_v8  ;;  %2802 = vmatpush.bf16.msrb.mxu3 %v7870_v30  ;;  %v9295_v8 = vld [vmem:[%s13658_s14 + $0xf8] sm:$0xff]  ;;  %v9270_v30 = vld [vmem:[%s13658_s14 + $0x30] sm:$0xff] }
 0x86d   : > { %v10892_v55 = vpack.c.bf16 %v10888_v56, %v10888_v56  ;;  %v9278_v15 = vld [vmem:[%s13658_s14 + $0x70] sm:$0xff] }
 0x86e   : > { %2756 = vmatpush.bf16.msra.mxu0 %v7862_v42 }
 0x86f   : > { %7893 = vmatmul.msk.bf16.gmra.mxu0 %vm1214_vm0, %v10892_v55  ;;  %7896 = vmatmul.msk.bf16.gmra.mxu1 %vm1214_vm0, %v10892_v55 }
 0x870   : > { %7899 = vmatmul.msk.bf16.gmra.mxu3 %vm1214_vm0, %v10892_v55  ;;  %7902 = vmatmul.msk.bf16.gmra.mxu2 %vm1214_vm0, %v10892_v55 }
 0x871   : > { %2803 = vmatpush.bf16.msrb.mxu3 %v7806_v0  ;;  %v9283_v0 = vld [vmem:[%s13658_s14 + $0x98] sm:$0xff] }
 0x872   : > { %2757 = vmatpush.bf16.msra.mxu0 %v7798_v49  ;;  %v9276_v49 = vld [vmem:[%s13658_s14 + $0x60] sm:$0xff] }
 0x87f   : > { %7903 = vmatmul.msk.bf16.vlgmr.msrb.gmra.mxu0 %vm1214_vm0, %v10798_v58  ;;  %7906 = vmatmul.msk.bf16.vlgmr.msra.gmra.mxu1 %vm1214_vm0, %v10798_v58 }
 0x880   : > { %7909 = vmatmul.msk.bf16.vlgmr.msra.gmra.mxu3 %vm1214_vm0, %v10798_v58  ;;  %7912 = vmatmul.msk.bf16.vlgmr.msrb.gmra.mxu2 %vm1214_vm0, %v10798_v58 }
 0x881   : > { %2894 = vmatpush.bf16.msra.mxu3 %v7886_v41  ;;  %2848 = vmatpush.bf16.msrb.mxu0 %v7878_v59  ;;  %v9282_v41 = vld [vmem:[%s13658_s14 + $0x90] sm:$0xff]  ;;  %v9265_v59 = vld [vmem:[%s13658_s14 + $0x8] sm:$0xff] }
 0x882   : > { %2917 = vmatpush.bf16.msrb.mxu2 %v7890_v27  ;;  %2871 = vmatpush.bf16.msra.mxu1 %v7882_v25  ;;  %v9281_v27 = vld [vmem:[%s13658_s14 + $0x88] sm:$0xff] }
 0x885   : > { %2849 = vmatpush.bf16.msrb.mxu0 %v7814_v46  ;;  %2895 = vmatpush.bf16.msra.mxu3 %v7822_v50 }
 0x886   : > { %2872 = vmatpush.bf16.msra.mxu1 %v7818_v39  ;;  %2918 = vmatpush.bf16.msrb.mxu2 %v7826_v63 }
 0x88f   : > { %7904 = vmatmul.msk.bf16.gmra.mxu0 %vm1214_vm0, %v10875_v33  ;;  %7907 = vmatmul.msk.bf16.gmra.mxu1 %vm1214_vm0, %v10875_v33 }
 0x890   : > { %7910 = vmatmul.msk.bf16.gmra.mxu3 %vm1214_vm0, %v10875_v33  ;;  %7913 = vmatmul.msk.bf16.gmra.mxu2 %vm1214_vm0, %v10875_v33 }
 0x89f   : > { %7905 = vmatmul.msk.bf16.gmra.mxu0 %vm1214_vm0, %v10892_v55  ;;  %7908 = vmatmul.msk.bf16.gmra.mxu1 %vm1214_vm0, %v10892_v55 }
 0x8a0   : > { %7911 = vmatmul.msk.bf16.gmra.mxu3 %vm1214_vm0, %v10892_v55  ;;  %7914 = vmatmul.msk.bf16.gmra.mxu2 %vm1214_vm0, %v10892_v55 }
 0x8af   : > { %7915 = vmatmul.msk.bf16.vlgmr.msra.gmra.mxu0 %vm1214_vm0, %v10798_v58  ;;  %7918 = vmatmul.msk.bf16.vlgmr.msrb.gmra.mxu1 %vm1214_vm0, %v10798_v58 }
 0x8b0   : > { %7921 = vmatmul.msk.bf16.vlgmr.msrb.gmra.mxu3 %vm1214_vm0, %v10798_v58  ;;  %7924 = vmatmul.msk.bf16.vlgmr.msra.gmra.mxu2 %vm1214_vm0, %v10798_v58 }
 0x8b1   : > { %3834 = vmatpush.bf16.msra.mxu0 %v9271_v54  ;;  %3857 = vmatpush.bf16.msrb.mxu1 %v9279_v40 }
 0x8b2   : > { %3880 = vmatpush.bf16.msrb.mxu3 %v9287_v14  ;;  %3903 = vmatpush.bf16.msra.mxu2 %v9295_v8  ;;  %v9311_v14 = vld [vmem:[%s13658_s14 + $0x178] sm:$0xff] }
 0x8b3   : > { %v9319_v8 = vld [vmem:[%s13658_s14 + $0x1b8] sm:$0xff] }
 0x8b5   : > { %3835 = vmatpush.bf16.msra.mxu0 %v9270_v30  ;;  %3858 = vmatpush.bf16.msrb.mxu1 %v9278_v15  ;;  %v11218_v30 = vld [vmem:[%s13657_s13] sm:$0xff]  ;;  %v9327_v15 = vld [vmem:[%s13658_s14 + $0x1f8] sm:$0xff] }
 0x8b6   : > { %3881 = vmatpush.bf16.msrb.mxu3 %v9286_v60  ;;  %3904 = vmatpush.bf16.msra.mxu2 %v9294_v19  ;;  %v11228_v60 = vperm.slane %v11218_v30, 0  ;;  %v11231_v19 = vperm.slane %v11218_v30, 1 }
 0x8b9   : > { %3836 = vmatpush.bf16.msra.mxu0 %v9269_v21  ;;  %3859 = vmatpush.bf16.msrb.mxu1 %v9277_v23 }
 0x8ba   : > { %3882 = vmatpush.bf16.msrb.mxu3 %v9285_v7  ;;  %3905 = vmatpush.bf16.msra.mxu2 %v9293_v53  ;;  %v9310_v7 = vld [vmem:[%s13658_s14 + $0x170] sm:$0xff] }
 0x8bb   : > { %v9318_v53 = vld [vmem:[%s13658_s14 + $0x1b0] sm:$0xff] }
 0x8bd   : > { %3837 = vmatpush.bf16.msra.mxu0 %v9268_v26  ;;  %3860 = vmatpush.bf16.msrb.mxu1 %v9276_v49  ;;  %v11247_v26 = vperm.slane %v11218_v30, 2  ;;  %v11250_v49 = vperm.slane %v11218_v30, 3 }
 0x8be   : > { %3883 = vmatpush.bf16.msrb.mxu3 %v9284_v32  ;;  %3906 = vmatpush.bf16.msra.mxu2 %v9292_v9 }
 0x8bf   : > { %7916 = vmatmul.msk.bf16.gmra.mxu0 %vm1214_vm0, %v10875_v33  ;;  %7919 = vmatmul.msk.bf16.gmra.mxu1 %vm1214_vm0, %v10875_v33 }
 0x8c0   : > { %7922 = vmatmul.msk.bf16.gmra.mxu3 %vm1214_vm0, %v10875_v33  ;;  %7925 = vmatmul.msk.bf16.gmra.mxu2 %vm1214_vm0, %v10875_v33 }
 0x8c1   : > { %3838 = vmatpush.bf16.msra.mxu0 %v9267_v34  ;;  %3861 = vmatpush.bf16.msrb.mxu1 %v9275_v17  ;;  %v9326_v34 = vld [vmem:[%s13658_s14 + $0x1f0] sm:$0xff] }
 0x8c2   : > { %3884 = vmatpush.bf16.msrb.mxu3 %v9283_v0  ;;  %3907 = vmatpush.bf16.msra.mxu2 %v9291_v62 }
 0x8c5   : > { %3839 = vmatpush.bf16.msra.mxu0 %v9266_v28 }
 0x8c6   : > { %3885 = vmatpush.bf16.msrb.mxu3 %v9282_v41  ;;  %3908 = vmatpush.bf16.msra.mxu2 %v9290_v44 }
 0x8c7   : > { %v11038_v3 = vpop.f32.mrf.mxu0  ;;  %v11040_v52 = vpop.f32.mrf.mxu1 }
 0x8c8   : > { %v2599_v41 = vadd.f32 %v11040_v52, %v11231_v19  ;;  %v9325_v52 = vld [vmem:[%s13658_s14 + $0x1e8] sm:$0xff] }
 0x8c9   : > { %3840 = vmatpush.bf16.msra.mxu0 %v9265_v59 }
 0x8ca   : > { %3886 = vmatpush.bf16.msrb.mxu3 %v9281_v27  ;;  %3909 = vmatpush.bf16.msra.mxu2 %v9289_v61 }
 0x8cd   : > { %3841 = vmatpush.bf16.msra.mxu0 %v9264_v11  ;;  %v2935_v11 = vmax.f32 %v2599_v41, 0.0  ;;  %v9314_v41 = vld [vmem:[%s13658_s14 + $0x190] sm:$0xff] }
 0x8ce   : > { %v11042_v29 = vpop.f32.mrf.mxu3  ;;  %v11044_v1 = vpop.f32.mrf.mxu2  ;;  %3887 = vmatpush.bf16.msrb.mxu3 %v9280_v38  ;;  %3910 = vmatpush.bf16.msra.mxu2 %v9288_v47  ;;  %v9308_v38 = vld [vmem:[%s13658_s14 + $0x160] sm:$0xff] }
 0x8cf   : > { %7917 = vmatmul.msk.bf16.gmra.mxu0 %vm1214_vm0, %v10892_v55  ;;  %7920 = vmatmul.msk.bf16.gmra.mxu1 %vm1214_vm0, %v10892_v55  ;;  %v11059_v10 = vpop.f32.mrf.mxu0  ;;  %v11061_v36 = vpop.f32.mrf.mxu1 }
 0x8d0   : > { %7923 = vmatmul.msk.bf16.gmra.mxu3 %vm1214_vm0, %v10892_v55  ;;  %7926 = vmatmul.msk.bf16.gmra.mxu2 %vm1214_vm0, %v10892_v55  ;;  %v2578_v17 = vadd.f32 %v11059_v10, %v11228_v60  ;;  %v2601_v0 = vadd.f32 %v11061_v36, %v11231_v19  ;;  %v9301_v10 = vld [vmem:[%s13658_s14 + $0x128] sm:$0xff] }
 0x8d1   : > { %v9309_v36 = vld [vmem:[%s13658_s14 + $0x168] sm:$0xff] }
 0x8d2   : > { %v2950_v44 = vmax.f32 %v2578_v17, 0.0  ;;  %v2951_v59 = vmax.f32 %v2601_v0, 0.0  ;;  %v9323_v17 = vld [vmem:[%s13658_s14 + $0x1d8] sm:$0xff] }
 0x8d6   : > { %v11082_v42 = vpop.f32.mrf.mxu3  ;;  %v11084_v45 = vpop.f32.mrf.mxu2 }
 0x8d7   : > { %v11098_v16 = vpop.f32.mrf.mxu0  ;;  %v11100_v31 = vpop.f32.mrf.mxu1  ;;  %v2624_v62 = vadd.f32 %v11082_v42, %v11247_v26  ;;  %v2647_v28 = vadd.f32 %v11084_v45, %v11250_v49  ;;  %v9317_v42 = vld [vmem:[%s13658_s14 + $0x1a8] sm:$0xff]  ;;  %v2622_v45 = vadd.f32 %v11042_v29, %v11247_v26 }
 0x8d9   : > { %v2953_v27 = vmax.f32 %v2647_v28, 0.0  ;;  %v2936_v47 = vmax.f32 %v2622_v45, 0.0  ;;  %v9298_v28 = vld [vmem:[%s13658_s14 + $0x110] sm:$0xff] }
 0x8de   : > { %v11134_v37 = vpop.f32.mrf.mxu3  ;;  %v11136_v2 = vpop.f32.mrf.mxu2 }
 0x8df   : > { %7927 = vmatmul.msk.bf16.vlgmr.msrb.gmra.mxu0 %vm1214_vm0, %v10798_v58  ;;  %7930 = vmatmul.msk.bf16.vlgmr.msra.gmra.mxu1 %vm1214_vm0, %v10798_v58  ;;  %v11147_v24 = vpop.f32.mrf.mxu0  ;;  %v11149_v35 = vpop.f32.mrf.mxu1 }
 0x8e0   : > { %7933 = vmatmul.msk.bf16.vlgmr.msra.gmra.mxu3 %vm1214_vm0, %v10798_v58  ;;  %7936 = vmatmul.msk.bf16.vlgmr.msrb.gmra.mxu2 %vm1214_vm0, %v10798_v58  ;;  %v9274_v58 = vld [vmem:[%s13658_s14 + $0x50] sm:$0xff]  ;;  %v2583_v45 = vadd.f32 %v11147_v24, %v11228_v60  ;;  %v9297_v24 = vld [vmem:[%s13658_s14 + $0x108] sm:$0xff] }
 0x8e1   : > { %3862 = vmatpush.bf16.msrb.mxu1 %v9274_v58  ;;  %3972 = vmatpush.bf16.msra.mxu3 %v9319_v8  ;;  %v2576_v58 = vadd.f32 %v11038_v3, %v11228_v60  ;;  %v2645_v3 = vadd.f32 %v11044_v1, %v11250_v49  ;;  %v9300_v1 = vld [vmem:[%s13658_s14 + $0x120] sm:$0xff]  ;;  %v3015_v8 = vpack.c.bf16 %v2951_v59, %v2935_v11 }
 0x8e2   : > { %3995 = vmatpush.bf16.msrb.mxu2 %v9327_v15  ;;  %v2581_v59 = vadd.f32 %v11098_v16, %v11228_v60  ;;  %v2650_v16 = vadd.f32 %v11136_v2, %v11250_v49  ;;  %v9296_v2 = vld [vmem:[%s13658_s14 + $0x100] sm:$0xff] }
 0x8e3   : > { %v2934_v61 = vmax.f32 %v2576_v58, 0.0  ;;  %v9306_v58 = vld [vmem:[%s13658_s14 + $0x150] sm:$0xff] }
 0x8e5   : > { %3863 = vmatpush.bf16.msrb.mxu1 %v9273_v6  ;;  %3973 = vmatpush.bf16.msra.mxu3 %v9318_v53  ;;  %v2952_v6 = vmax.f32 %v2624_v62, 0.0  ;;  %v9307_v53 = vld [vmem:[%s13658_s14 + $0x158] sm:$0xff] }
 0x8e6   : > { %v11166_v20 = vpop.f32.mrf.mxu3  ;;  %v11168_v25 = vpop.f32.mrf.mxu2  ;;  %3996 = vmatpush.bf16.msrb.mxu2 %v9326_v34  ;;  %v9315_v34 = vld [vmem:[%s13658_s14 + $0x198] sm:$0xff] }
 0x8e7   : > { %v3016_v15 = vpack.c.bf16 %v2952_v6, %v2936_v47  ;;  %v2604_v6 = vadd.f32 %v11100_v31, %v11231_v19  ;;  %v9321_v31 = vld [vmem:[%s13658_s14 + $0x1c8] sm:$0xff] }
 0x8e9   : > { %3864 = vmatpush.bf16.msrb.mxu1 %v9272_v43  ;;  %3974 = vmatpush.bf16.msra.mxu3 %v9317_v42  ;;  %v9322_v42 = vld [vmem:[%s13658_s14 + $0x1d0] sm:$0xff]  ;;  %v2967_v47 = vmax.f32 %v2604_v6, 0.0 }
 0x8ea   : > { %3997 = vmatpush.bf16.msrb.mxu2 %v9325_v52  ;;  %v2629_v52 = vadd.f32 %v11166_v20, %v11247_v26  ;;  %v9313_v20 = vld [vmem:[%s13658_s14 + $0x188] sm:$0xff] }
 0x8ec   : > { %v11179_v46 = vpop.f32.mrf.mxu0  ;;  %v11181_v13 = vpop.f32.mrf.mxu1  ;;  %v2984_v11 = vmax.f32 %v2629_v52, 0.0 }
 0x8ed   : > { %3949 = vmatpush.bf16.msra.mxu1 %v9311_v14  ;;  %v3014_v14 = vpack.c.bf16 %v2950_v44, %v2934_v61  ;;  %v2652_v44 = vadd.f32 %v11168_v25, %v11250_v49  ;;  %v2627_v25 = vadd.f32 %v11134_v37, %v11247_v26  ;;  %v2609_v52 = vadd.f32 %v11181_v13, %v11231_v19 }
 0x8ef   : > { %7928 = vmatmul.msk.bf16.gmra.mxu0 %vm1214_vm0, %v10875_v33  ;;  %7931 = vmatmul.msk.bf16.gmra.mxu1 %vm1214_vm0, %v10875_v33 }
 0x8f0   : > { %7934 = vmatmul.msk.bf16.gmra.mxu3 %vm1214_vm0, %v10875_v33  ;;  %7937 = vmatmul.msk.bf16.gmra.mxu2 %vm1214_vm0, %v10875_v33  ;;  %v9303_v33 = vld [vmem:[%s13658_s14 + $0x138] sm:$0xff] }
 0x8f1   : > { %3926 = vmatpush.bf16.msrb.mxu0 %v9303_v33  ;;  %3950 = vmatpush.bf16.msra.mxu1 %v9310_v7  ;;  %v9324_v33 = vld [vmem:[%s13658_s14 + $0x1e0] sm:$0xff]  ;;  %v9299_v7 = vld [vmem:[%s13658_s14 + $0x118] sm:$0xff] }
 0x8f2   : > { %3998 = vmatpush.bf16.msrb.mxu2 %v9324_v33  ;;  %v9312_v33 = vld [vmem:[%s13658_s14 + $0x180] sm:$0xff] }
 0x8f3   : > { %v11194_v22 = vpop.f32.mrf.mxu3  ;;  %v11196_v39 = vpop.f32.mrf.mxu2 }
 0x8f4   : > { %v2587_v50 = vpop.f32.mrf.mxu0  ;;  %v2610_v5 = vpop.f32.mrf.mxu1 }
 0x8f5   : > { %3951 = vmatpush.bf16.msra.mxu1 %v9309_v36  ;;  %v2937_v50 = vmax.f32 %v2645_v3, 0.0  ;;  %v2606_v3 = vadd.f32 %v11149_v35, %v11231_v19  ;;  %v9305_v35 = vld [vmem:[%s13658_s14 + $0x148] sm:$0xff]  ;;  %v9351_v19 = vld [vmem:[%s13658_s14 + $0x2b8] sm:$0xff] }
 0x8f6   : > { %3999 = vmatpush.bf16.msrb.mxu2 %v9323_v17 }
 0x8f7   : > { %v2983_v61 = vmax.f32 %v2606_v3, 0.0  ;;  %v2586_v3 = vadd.f32 %v11179_v46, %v11228_v60 }
 0x8f9   : > { %3952 = vmatpush.bf16.msra.mxu1 %v9308_v38  ;;  %v2966_v38 = vmax.f32 %v2581_v59, 0.0  ;;  %v2655_v59 = vadd.f32 %v11196_v39, %v11250_v49  ;;  %v2998_v6 = vmax.f32 %v2586_v3, 0.0  ;;  %v9343_v39 = vld [vmem:[%s13658_s14 + $0x278] sm:$0xff]  ;;  %v11416_v49 = vperm.slane %v11218_v30, 4 }
 0x8fa   : > { %4000 = vmatpush.bf16.msrb.mxu2 %v9322_v42 }
 0x8fb   : > { %v2633_v57 = vpop.f32.mrf.mxu3  ;;  %v2656_v63 = vpop.f32.mrf.mxu2  ;;  %v3046_v46 = vpack.c.bf16 %v2998_v6, %v2998_v6 }
 0x8fc   : > { %v11198_v54 = vpop.f32.mrf.mxu0  ;;  %v11200_v40 = vpop.f32.mrf.mxu1  ;;  %v9316_v63 = vld [vmem:[%s13658_s14 + $0x1a0] sm:$0xff] }
 0x8fd   : > { %3975 = vmatpush.bf16.msra.mxu3 %v9316_v63  ;;  %3953 = vmatpush.bf16.msra.mxu1 %v9307_v53  ;;  %v9304_v63 = vld [vmem:[%s13658_s14 + $0x140] sm:$0xff] }
 0x8fe   : > { %4001 = vmatpush.bf16.msrb.mxu2 %v9321_v31 }
 0x8ff   : > { %7929 = vmatmul.msk.bf16.gmra.mxu0 %vm1214_vm0, %v10892_v55  ;;  %7932 = vmatmul.msk.bf16.gmra.mxu1 %vm1214_vm0, %v10892_v55 }
 0x900   : > { %7935 = vmatmul.msk.bf16.gmra.mxu3 %vm1214_vm0, %v10892_v55  ;;  %7938 = vmatmul.msk.bf16.gmra.mxu2 %vm1214_vm0, %v10892_v55  ;;  %v9302_v55 = vld [vmem:[%s13658_s14 + $0x130] sm:$0xff] }
 0x901   : > { %3927 = vmatpush.bf16.msrb.mxu0 %v9302_v55  ;;  %v3017_v55 = vpack.c.bf16 %v2953_v27, %v2937_v50  ;;  %3976 = vmatpush.bf16.msra.mxu3 %v9315_v34  ;;  %v2982_v27 = vmax.f32 %v2583_v45, 0.0  ;;  %v3031_v34 = vpack.c.bf16 %v2983_v61, %v2967_v47  ;;  %v9334_v47 = vld [vmem:[%s13658_s14 + $0x230] sm:$0xff] }
 0x902   : > { %3954 = vmatpush.bf16.msra.mxu1 %v9306_v58 }
 0x903   : > { %v11233_v21 = vpop.f32.mrf.mxu3  ;;  %v11235_v23 = vpop.f32.mrf.mxu2  ;;  %v3030_v53 = vpack.c.bf16 %v2982_v27, %v2966_v38 }
 0x904   : > { %v11252_v32 = vpop.f32.mrf.mxu0  ;;  %v11254_v9 = vpop.f32.mrf.mxu1 }
 0x905   : > { %3928 = vmatpush.bf16.msrb.mxu0 %v9301_v10  ;;  %3977 = vmatpush.bf16.msra.mxu3 %v9314_v41 }
 0x906   : > { %3955 = vmatpush.bf16.msra.mxu1 %v9305_v35 }
 0x909   : > { %3929 = vmatpush.bf16.msrb.mxu0 %v9300_v1  ;;  %v2985_v1 = vmax.f32 %v2652_v44, 0.0  ;;  %3978 = vmatpush.bf16.msra.mxu3 %v9313_v20  ;;  %v2632_v44 = vadd.f32 %v11194_v22, %v11247_v26  ;;  %v3001_v20 = vmax.f32 %v2655_v59, 0.0  ;;  %v9335_v22 = vld [vmem:[%s13658_s14 + $0x238] sm:$0xff] }
 0x90a   : > { %3956 = vmatpush.bf16.msra.mxu1 %v9304_v63  ;;  %v9359_v26 = vld [vmem:[%s13658_s14 + $0x2f8] sm:$0xff]  ;;  %v9350_v63 = vld [vmem:[%s13658_s14 + $0x2b0] sm:$0xff] }
 0x90b   : > { %v11287_v43 = vpop.f32.mrf.mxu3  ;;  %v11289_v29 = vpop.f32.mrf.mxu2  ;;  %v3000_v35 = vmax.f32 %v2632_v44, 0.0  ;;  %v3049_v13 = vpack.c.bf16 %v3001_v20, %v3001_v20  ;;  %v9340_v20 = vld [vmem:[%s13658_s14 + $0x260] sm:$0xff] }
 0x90c   : > { %v11297_v5 = vpop.f32.mrf.mxu0  ;;  %v11299_v57 = vpop.f32.mrf.mxu1 }
 0x90d   : > { %3930 = vmatpush.bf16.msrb.mxu0 %v9299_v7  ;;  %v9320_v7 = vld [vmem:[%s13658_s14 + $0x1c0] sm:$0xff]  ;;  %3979 = vmatpush.bf16.msra.mxu3 %v9312_v33  ;;  %v3048_v61 = vpack.c.bf16 %v3000_v35, %v3000_v35  ;;  %v11435_v33 = vperm.slane %v11218_v30, 6 }
 0x90e   : > { %4002 = vmatpush.bf16.msrb.mxu2 %v9320_v7 }
 0x90f   : > { %3842 = vmatmul.bf16.vlgmr.msra.gmra.mxu0 %v3014_v14  ;;  %3865 = vmatmul.bf16.vlgmr.msrb.gmra.mxu1 %v3015_v8  ;;  %v2968_v14 = vmax.f32 %v2627_v25, 0.0  ;;  %v2969_v8 = vmax.f32 %v2650_v16, 0.0 }
 0x910   : > { %3888 = vmatmul.bf16.vlgmr.msrb.gmra.mxu3 %v3016_v15  ;;  %3911 = vmatmul.bf16.vlgmr.msra.gmra.mxu2 %v3017_v55 }
 0x911   : > { %3931 = vmatpush.bf16.msrb.mxu0 %v9298_v28  ;;  %v3032_v17 = vpack.c.bf16 %v2984_v11, %v2968_v14  ;;  %v3033_v28 = vpack.c.bf16 %v2985_v1, %v2969_v8  ;;  %4041 = vmatpush.bf16.msrb.mxu1 %v9343_v39  ;;  %v11419_v11 = vperm.slane %v11218_v30, 5  ;;  %v11438_v14 = vperm.slane %v11218_v30, 7 }
 0x912   : > { %4064 = vmatpush.bf16.msrb.mxu3 %v9351_v19  ;;  %4087 = vmatpush.bf16.msra.mxu2 %v9359_v26  ;;  %v2716_v30 = vadd.f32 %v11287_v43, %v11435_v33  ;;  %v9349_v43 = vld [vmem:[%s13658_s14 + $0x2a8] sm:$0xff] }
 0x913   : > { %v11319_v0 = vpop.f32.mrf.mxu3  ;;  %v11321_v62 = vpop.f32.mrf.mxu2 }
 0x914   : > { %v11332_v10 = vpop.f32.mrf.mxu0  ;;  %v11334_v36 = vpop.f32.mrf.mxu1  ;;  %v2956_v44 = vmax.f32 %v2716_v30, 0.0  ;;  %v9330_v30 = vld [vmem:[%s13658_s14 + $0x210] sm:$0xff] }
 0x915   : > { %3932 = vmatpush.bf16.msrb.mxu0 %v9297_v24  ;;  %v2999_v24 = vmax.f32 %v2609_v52, 0.0 }
 0x916   : > { %4065 = vmatpush.bf16.msrb.mxu3 %v9350_v63  ;;  %v9347_v63 = vld [vmem:[%s13658_s14 + $0x298] sm:$0xff] }
 0x917   : > { %v3047_v60 = vpack.c.bf16 %v2999_v24, %v2999_v24 }
 0x919   : > { %3933 = vmatpush.bf16.msrb.mxu0 %v9296_v2  ;;  %v9342_v2 = vld [vmem:[%s13658_s14 + $0x270] sm:$0xff] }
 0x91a   : > { %4042 = vmatpush.bf16.msrb.mxu1 %v9342_v2  ;;  %4066 = vmatpush.bf16.msrb.mxu3 %v9349_v43  ;;  %v9339_v2 = vld [vmem:[%s13658_s14 + $0x258] sm:$0xff]  ;;  %v2675_v43 = vadd.f32 %v11332_v10, %v11416_v49  ;;  %v9329_v10 = vld [vmem:[%s13658_s14 + $0x208] sm:$0xff] }
 0x91b   : > { %v11367_v50 = vpop.f32.mrf.mxu3  ;;  %v11369_v37 = vpop.f32.mrf.mxu2 }
 0x91c   : > { %v11380_v15 = vpop.f32.mrf.mxu0  ;;  %v11382_v55 = vpop.f32.mrf.mxu1 }
 0x91d   : > { %4018 = vmatpush.bf16.msra.mxu0 %v9335_v22 }
 0x91f   : > { %3847 = vmatmul.bf16.gmra.mxu0 %v3030_v53  ;;  %3870 = vmatmul.bf16.gmra.mxu1 %v3031_v34  ;;  %v9358_v53 = vld [vmem:[%s13658_s14 + $0x2f0] sm:$0xff]  ;;  %v2670_v34 = vadd.f32 %v11252_v32, %v11416_v49  ;;  %v9333_v32 = vld [vmem:[%s13658_s14 + $0x228] sm:$0xff] }
 0x920   : > { %3893 = vmatmul.bf16.gmra.mxu3 %v3032_v17  ;;  %3916 = vmatmul.bf16.gmra.mxu2 %v3033_v28  ;;  %v2693_v17 = vadd.f32 %v11254_v9, %v11419_v11  ;;  %v2739_v28 = vadd.f32 %v11289_v29, %v11438_v14  ;;  %v9341_v9 = vld [vmem:[%s13658_s14 + $0x268] sm:$0xff]  ;;  %v2714_v29 = vadd.f32 %v11233_v21, %v11435_v33 }
 0x921   : > { %4019 = vmatpush.bf16.msra.mxu0 %v9334_v47  ;;  %4088 = vmatpush.bf16.msra.mxu2 %v9358_v53  ;;  %v2954_v3 = vmax.f32 %v2670_v34, 0.0  ;;  %v9331_v47 = vld [vmem:[%s13658_s14 + $0x218] sm:$0xff] }
 0x922   : > { %v2955_v52 = vmax.f32 %v2693_v17, 0.0  ;;  %4043 = vmatpush.bf16.msrb.mxu1 %v9341_v9  ;;  %v2957_v59 = vmax.f32 %v2739_v28, 0.0  ;;  %v9355_v53 = vld [vmem:[%s13658_s14 + $0x2d8] sm:$0xff]  ;;  %v9338_v28 = vld [vmem:[%s13658_s14 + $0x250] sm:$0xff] }
 0x923   : > { %v11387_v58 = vpop.f32.mrf.mxu3  ;;  %v11389_v41 = vpop.f32.mrf.mxu2  ;;  %v9354_v9 = vld [vmem:[%s13658_s14 + $0x2d0] sm:$0xff] }
 0x924   : > { %v2679_v42 = vpop.f32.mrf.mxu0  ;;  %v2702_v45 = vpop.f32.mrf.mxu1 }
 0x925   : > { %v2668_v42 = vadd.f32 %v11198_v54, %v11416_v49  ;;  %v2691_v45 = vadd.f32 %v11200_v40, %v11419_v11  ;;  %v2737_v54 = vadd.f32 %v11235_v23, %v11438_v14  ;;  %v9357_v40 = vld [vmem:[%s13658_s14 + $0x2e8] sm:$0xff]  ;;  %4020 = vmatpush.bf16.msra.mxu0 %v9333_v32  ;;  %v9332_v23 = vld [vmem:[%s13658_s14 + $0x220] sm:$0xff] }
 0x926   : > { %4089 = vmatpush.bf16.msra.mxu2 %v9357_v40  ;;  %4044 = vmatpush.bf16.msrb.mxu1 %v9340_v20  ;;  %v2744_v40 = vadd.f32 %v11369_v37, %v11438_v14  ;;  %v2719_v37 = vadd.f32 %v11319_v0, %v11435_v33 }
 0x927   : > { %v2938_v6 = vmax.f32 %v2668_v42, 0.0  ;;  %v2939_v24 = vmax.f32 %v2691_v45, 0.0  ;;  %v9346_v42 = vld [vmem:[%s13658_s14 + $0x290] sm:$0xff] }
 0x929   : > { %v3018_v22 = vpack.c.bf16 %v2954_v3, %v2938_v6  ;;  %v3019_v39 = vpack.c.bf16 %v2955_v52, %v2939_v24  ;;  %4021 = vmatpush.bf16.msra.mxu0 %v9332_v23  ;;  %v2673_v3 = vadd.f32 %v11297_v5, %v11416_v49  ;;  %v2696_v52 = vadd.f32 %v11299_v57, %v11419_v11  ;;  %v9353_v57 = vld [vmem:[%s13658_s14 + $0x2c8] sm:$0xff] }
 0x92a   : > { %4045 = vmatpush.bf16.msrb.mxu1 %v9339_v2  ;;  %v2742_v5 = vadd.f32 %v11321_v62, %v11438_v14  ;;  %v2989_v24 = vmax.f32 %v2744_v40, 0.0  ;;  %v9328_v62 = vld [vmem:[%s13658_s14 + $0x200] sm:$0xff]  ;;  %v2747_v40 = vadd.f32 %v11389_v41, %v11438_v14  ;;  %v9375_v41 = vld [vmem:[%s13658_s14 + $0x378] sm:$0xff] }
 0x92b   : > { %v2725_v25 = vpop.f32.mrf.mxu3  ;;  %v2748_v16 = vpop.f32.mrf.mxu2  ;;  %v2970_v23 = vmax.f32 %v2673_v3, 0.0  ;;  %v2971_v20 = vmax.f32 %v2696_v52, 0.0  ;;  %v9391_v14 = vld [vmem:[%s13658_s14 + $0x3f8] sm:$0xff] }
 0x92c   : > { %v11399_v31 = vpop.f32.mrf.mxu0  ;;  %v11401_v27 = vpop.f32.mrf.mxu1  ;;  %v9348_v25 = vld [vmem:[%s13658_s14 + $0x2a0] sm:$0xff]  ;;  %v2940_v16 = vmax.f32 %v2714_v29, 0.0  ;;  %v2698_v29 = vadd.f32 %v11334_v36, %v11419_v11  ;;  %v9337_v36 = vld [vmem:[%s13658_s14 + $0x248] sm:$0xff] }
 0x92d   : > { %4067 = vmatpush.bf16.msrb.mxu3 %v9348_v25  ;;  %4022 = vmatpush.bf16.msra.mxu0 %v9331_v47 }
 0x92e   : > { %v3020_v19 = vpack.c.bf16 %v2956_v44, %v2940_v16  ;;  %4046 = vmatpush.bf16.msrb.mxu1 %v9338_v28  ;;  %v2986_v44 = vmax.f32 %v2675_v43, 0.0  ;;  %v9336_v16 = vld [vmem:[%s13658_s14 + $0x240] sm:$0xff]  ;;  %v2678_v43 = vadd.f32 %v11380_v15, %v11416_v49 }
 0x92f   : > { %3852 = vmatmul.bf16.gmra.mxu0 %v3046_v46  ;;  %3875 = vmatmul.bf16.gmra.mxu1 %v3047_v60  ;;  %v2941_v46 = vmax.f32 %v2737_v54, 0.0  ;;  %v2721_v54 = vadd.f32 %v11367_v50, %v11435_v33  ;;  %v9345_v50 = vld [vmem:[%s13658_s14 + $0x288] sm:$0xff] }
 0x930   : > { %3898 = vmatmul.bf16.gmra.mxu3 %v3048_v61  ;;  %3921 = vmatmul.bf16.gmra.mxu2 %v3049_v13  ;;  %v9356_v13 = vld [vmem:[%s13658_s14 + $0x2e0] sm:$0xff]  ;;  %v3034_v47 = vpack.c.bf16 %v2986_v44, %v2970_v23  ;;  %v3002_v3 = vmax.f32 %v2678_v43, 0.0 }
 0x931   : > { %v3021_v26 = vpack.c.bf16 %v2957_v59, %v2941_v46  ;;  %4090 = vmatpush.bf16.msra.mxu2 %v9356_v13  ;;  %4068 = vmatpush.bf16.msrb.mxu3 %v9347_v63  ;;  %v2987_v59 = vmax.f32 %v2698_v29, 0.0  ;;  %v2988_v6 = vmax.f32 %v2721_v54, 0.0  ;;  %v9344_v46 = vld [vmem:[%s13658_s14 + $0x280] sm:$0xff]  ;;  %v2972_v13 = vmax.f32 %v2719_v37, 0.0 }
 0x932   : > { %4023 = vmatpush.bf16.msra.mxu0 %v9330_v30  ;;  %4047 = vmatpush.bf16.msrb.mxu1 %v9337_v36  ;;  %v2701_v29 = vadd.f32 %v11382_v55, %v11419_v11  ;;  %v2724_v54 = vadd.f32 %v11387_v58, %v11435_v33  ;;  %v3005_v36 = vmax.f32 %v2747_v40, 0.0  ;;  %v3050_v15 = vpack.c.bf16 %v3002_v3, %v3002_v3  ;;  %v9367_v58 = vld [vmem:[%s13658_s14 + $0x338] sm:$0xff]  ;;  %v11603_v33 = vld [vmem:[%s13657_s13 + $0x8] sm:$0xff] }
 0x933   : > { %v11421_v1 = vpop.f32.mrf.mxu3  ;;  %v11423_v38 = vpop.f32.mrf.mxu2  ;;  %v3035_v2 = vpack.c.bf16 %v2987_v59, %v2971_v20  ;;  %v3036_v63 = vpack.c.bf16 %v2988_v6, %v2972_v13  ;;  %v9383_v11 = vld [vmem:[%s13658_s14 + $0x3b8] sm:$0xff]  ;;  %v11609_v59 = vperm.slane %v11603_v33, 0  ;;  %v11612_v6 = vperm.slane %v11603_v33, 1  ;;  %v9366_v20 = vld [vmem:[%s13658_s14 + $0x330] sm:$0xff] }
 0x934   : > { %v11440_v8 = vpop.f32.mrf.mxu0  ;;  %v11442_v7 = vpop.f32.mrf.mxu1  ;;  %v3003_v52 = vmax.f32 %v2701_v29, 0.0  ;;  %v3053_v55 = vpack.c.bf16 %v3005_v36, %v3005_v36  ;;  %v11631_v13 = vperm.slane %v11603_v33, 3 }
 0x935   : > { %4091 = vmatpush.bf16.msra.mxu2 %v9355_v53  ;;  %4069 = vmatpush.bf16.msrb.mxu3 %v9346_v42  ;;  %v2783_v43 = vadd.f32 %v11401_v27, %v11612_v6  ;;  %v9389_v27 = vld [vmem:[%s13658_s14 + $0x3e8] sm:$0xff] }
 0x936   : > { %4024 = vmatpush.bf16.msra.mxu0 %v9329_v10  ;;  %4048 = vmatpush.bf16.msrb.mxu1 %v9336_v16  ;;  %v3004_v10 = vmax.f32 %v2724_v54, 0.0  ;;  %v3051_v49 = vpack.c.bf16 %v3003_v52, %v3003_v52  ;;  %v9382_v16 = vld [vmem:[%s13658_s14 + $0x3b0] sm:$0xff] }
 0x938   : > { %v3052_v44 = vpack.c.bf16 %v3004_v10, %v3004_v10  ;;  %v2943_v10 = vmax.f32 %v2783_v43, 0.0  ;;  %v9378_v43 = vld [vmem:[%s13658_s14 + $0x390] sm:$0xff] }
 0x939   : > { %4092 = vmatpush.bf16.msra.mxu2 %v9354_v9  ;;  %4070 = vmatpush.bf16.msrb.mxu3 %v9345_v50 }
 0x93a   : > { %4025 = vmatpush.bf16.msra.mxu0 %v9328_v62  ;;  %v9374_v62 = vld [vmem:[%s13658_s14 + $0x370] sm:$0xff] }
 0x93b   : > { %v11475_v35 = vpop.f32.mrf.mxu3  ;;  %v11477_v21 = vpop.f32.mrf.mxu2 }
 0x93c   : > { %v11488_v60 = vpop.f32.mrf.mxu0  ;;  %v11490_v61 = vpop.f32.mrf.mxu1 }
 0x93d   : > { %4093 = vmatpush.bf16.msra.mxu2 %v9353_v57  ;;  %4071 = vmatpush.bf16.msrb.mxu3 %v9344_v46  ;;  %v11628_v46 = vperm.slane %v11603_v33, 2 }
 0x93f   : > { %3934 = vmatmul.bf16.vlgmr.msrb.gmra.mxu0 %v3018_v22  ;;  %3957 = vmatmul.bf16.vlgmr.msra.gmra.mxu1 %v3019_v39  ;;  %v2973_v22 = vmax.f32 %v2742_v5, 0.0 }
 0x940   : > { %3980 = vmatmul.bf16.vlgmr.msra.gmra.mxu3 %v3020_v19  ;;  %4003 = vmatmul.bf16.vlgmr.msrb.gmra.mxu2 %v3021_v26  ;;  %v9352_v26 = vld [vmem:[%s13658_s14 + $0x2c0] sm:$0xff] }
 0x941   : > { %v3037_v53 = vpack.c.bf16 %v2989_v24, %v2973_v22  ;;  %4094 = vmatpush.bf16.msra.mxu2 %v9352_v26  ;;  %4110 = vmatpush.bf16.msrb.mxu0 %v9367_v58  ;;  %v9388_v58 = vld [vmem:[%s13658_s14 + $0x3e0] sm:$0xff] }
 0x942   : > { %4133 = vmatpush.bf16.msra.mxu1 %v9375_v41  ;;  %4156 = vmatpush.bf16.msra.mxu3 %v9383_v11 }
 0x943   : > { %v11507_v34 = vpop.f32.mrf.mxu3  ;;  %v11509_v17 = vpop.f32.mrf.mxu2 }
 0x944   : > { %v11520_v45 = vpop.f32.mrf.mxu0  ;;  %v11522_v32 = vpop.f32.mrf.mxu1 }
 0x945   : > { %4179 = vmatpush.bf16.msrb.mxu2 %v9391_v14  ;;  %4111 = vmatpush.bf16.msrb.mxu0 %v9366_v20 }
 0x946   : > { %4134 = vmatpush.bf16.msra.mxu1 %v9374_v62  ;;  %4157 = vmatpush.bf16.msra.mxu3 %v9382_v16  ;;  %v9363_v62 = vld [vmem:[%s13658_s14 + $0x318] sm:$0xff] }
 0x947   : > { %v9371_v16 = vld [vmem:[%s13658_s14 + $0x358] sm:$0xff] }
 0x94b   : > { %v11555_v25 = vpop.f32.mrf.mxu3  ;;  %v11557_v0 = vpop.f32.mrf.mxu2 }
 0x94c   : > { %v11568_v39 = vpop.f32.mrf.mxu0  ;;  %v11570_v19 = vpop.f32.mrf.mxu1 }
 0x94f   : > { %3939 = vmatmul.bf16.gmra.mxu0 %v3034_v47  ;;  %3962 = vmatmul.bf16.gmra.mxu1 %v3035_v2  ;;  %v9390_v47 = vld [vmem:[%s13658_s14 + $0x3f0] sm:$0xff]  ;;  %v2762_v2 = vadd.f32 %v11440_v8, %v11609_v59  ;;  %v9365_v8 = vld [vmem:[%s13658_s14 + $0x328] sm:$0xff] }
 0x950   : > { %3985 = vmatmul.bf16.gmra.mxu3 %v3036_v63  ;;  %4008 = vmatmul.bf16.gmra.mxu2 %v3037_v53  ;;  %v2785_v63 = vadd.f32 %v11442_v7, %v11612_v6  ;;  %v2808_v53 = vadd.f32 %v11475_v35, %v11628_v46  ;;  %v9373_v7 = vld [vmem:[%s13658_s14 + $0x368] sm:$0xff] }
 0x951   : > { %4180 = vmatpush.bf16.msrb.mxu2 %v9390_v47  ;;  %v9381_v35 = vld [vmem:[%s13658_s14 + $0x3a8] sm:$0xff]  ;;  %v2958_v29 = vmax.f32 %v2762_v2, 0.0  ;;  %4112 = vmatpush.bf16.msrb.mxu0 %v9365_v8  ;;  %v9379_v47 = vld [vmem:[%s13658_s14 + $0x398] sm:$0xff] }
 0x952   : > { %v2959_v54 = vmax.f32 %v2785_v63, 0.0  ;;  %4135 = vmatpush.bf16.msra.mxu1 %v9373_v7  ;;  %v2960_v40 = vmax.f32 %v2808_v53, 0.0  ;;  %4158 = vmatpush.bf16.msra.mxu3 %v9381_v35  ;;  %v9387_v2 = vld [vmem:[%s13658_s14 + $0x3d8] sm:$0xff]  ;;  %v9386_v35 = vld [vmem:[%s13658_s14 + $0x3d0] sm:$0xff] }
 0x953   : > { %v11575_v30 = vpop.f32.mrf.mxu3  ;;  %v11577_v28 = vpop.f32.mrf.mxu2 }
 0x954   : > { %v2771_v42 = vpop.f32.mrf.mxu0  ;;  %v2794_v9 = vpop.f32.mrf.mxu1  ;;  %v3023_v11 = vpack.c.bf16 %v2959_v54, %v2943_v10  ;;  %v2765_v54 = vadd.f32 %v11488_v60, %v11609_v59  ;;  %v2834_v60 = vadd.f32 %v11509_v17, %v11631_v13  ;;  %v9360_v17 = vld [vmem:[%s13658_s14 + $0x300] sm:$0xff] }
 0x955   : > { %v2831_v42 = vadd.f32 %v11477_v21, %v11631_v13  ;;  %v2760_v9 = vadd.f32 %v11399_v31, %v11609_v59  ;;  %v2806_v21 = vadd.f32 %v11421_v1, %v11628_v46  ;;  %v2829_v31 = vadd.f32 %v11423_v38, %v11631_v13  ;;  %4181 = vmatpush.bf16.msrb.mxu2 %v9389_v27  ;;  %v9364_v38 = vld [vmem:[%s13658_s14 + $0x320] sm:$0xff] }
 0x956   : > { %4113 = vmatpush.bf16.msrb.mxu0 %v9364_v38  ;;  %v2813_v27 = vadd.f32 %v11555_v25, %v11628_v46  ;;  %v9377_v25 = vld [vmem:[%s13658_s14 + $0x388] sm:$0xff] }
 0x957   : > { %v2961_v3 = vmax.f32 %v2831_v42, 0.0  ;;  %v2942_v52 = vmax.f32 %v2760_v9, 0.0  ;;  %v9362_v42 = vld [vmem:[%s13658_s14 + $0x310] sm:$0xff] }
 0x958   : > { %v9370_v9 = vld [vmem:[%s13658_s14 + $0x350] sm:$0xff]  ;;  %v2992_v10 = vmax.f32 %v2813_v27, 0.0  ;;  %v2793_v27 = vadd.f32 %v11570_v19, %v11612_v6 }
 0x959   : > { %v3022_v41 = vpack.c.bf16 %v2958_v29, %v2942_v52  ;;  %4182 = vmatpush.bf16.msrb.mxu2 %v9388_v58  ;;  %v2836_v29 = vadd.f32 %v11557_v0, %v11631_v13  ;;  %v2811_v0 = vadd.f32 %v11507_v34, %v11628_v46  ;;  %v9376_v58 = vld [vmem:[%s13658_s14 + $0x380] sm:$0xff] }
 0x95a   : > { %4114 = vmatpush.bf16.msrb.mxu0 %v9363_v62  ;;  %v9384_v62 = vld [vmem:[%s13658_s14 + $0x3c0] sm:$0xff] }
 0x95b   : > { %v2817_v50 = vpop.f32.mrf.mxu3  ;;  %v2840_v37 = vpop.f32.mrf.mxu2  ;;  %v2993_v38 = vmax.f32 %v2836_v29, 0.0  ;;  %v2816_v29 = vadd.f32 %v11575_v30, %v11628_v46  ;;  %v11785_v30 = vperm.slane %v11603_v33, 4 }
 0x95c   : > { %v11587_v5 = vpop.f32.mrf.mxu0  ;;  %v11589_v57 = vpop.f32.mrf.mxu1  ;;  %v9372_v50 = vld [vmem:[%s13658_s14 + $0x360] sm:$0xff]  ;;  %v2944_v37 = vmax.f32 %v2806_v21, 0.0  ;;  %v2767_v21 = vadd.f32 %v11520_v45, %v11609_v59  ;;  %v9361_v45 = vld [vmem:[%s13658_s14 + $0x308] sm:$0xff] }
 0x95d   : > { %4136 = vmatpush.bf16.msra.mxu1 %v9372_v50  ;;  %4183 = vmatpush.bf16.msrb.mxu2 %v9387_v2  ;;  %v2974_v50 = vmax.f32 %v2765_v54, 0.0  ;;  %v2839_v54 = vadd.f32 %v11577_v28, %v11631_v13  ;;  %v11788_v28 = vperm.slane %v11603_v33, 5  ;;  %v11795_v13 = vperm.slane %v11603_v33, 6 }
 0x95e   : > { %v3024_v14 = vpack.c.bf16 %v2960_v40, %v2944_v37  ;;  %4115 = vmatpush.bf16.msrb.mxu0 %v9362_v42  ;;  %v2788_v40 = vadd.f32 %v11490_v61, %v11612_v6  ;;  %v9385_v61 = vld [vmem:[%s13658_s14 + $0x3c8] sm:$0xff] }
 0x95f   : > { %3944 = vmatmul.bf16.gmra.mxu0 %v3050_v15  ;;  %3967 = vmatmul.bf16.gmra.mxu1 %v3051_v49  ;;  %v2945_v15 = vmax.f32 %v2829_v31, 0.0  ;;  %v2790_v31 = vadd.f32 %v11522_v32, %v11612_v6  ;;  %v9369_v32 = vld [vmem:[%s13658_s14 + $0x348] sm:$0xff] }
 0x960   : > { %3990 = vmatmul.bf16.gmra.mxu3 %v3052_v44  ;;  %4013 = vmatmul.bf16.gmra.mxu2 %v3053_v55  ;;  %v9380_v55 = vld [vmem:[%s13658_s14 + $0x3a0] sm:$0xff]  ;;  %v2975_v37 = vmax.f32 %v2788_v40, 0.0 }
 0x961   : > { %v3025_v20 = vpack.c.bf16 %v2961_v3, %v2945_v15  ;;  %4159 = vmatpush.bf16.msra.mxu3 %v9380_v55  ;;  %4137 = vmatpush.bf16.msra.mxu1 %v9371_v16  ;;  %v2990_v3 = vmax.f32 %v2767_v21, 0.0  ;;  %v2991_v52 = vmax.f32 %v2790_v31, 0.0  ;;  %v9368_v55 = vld [vmem:[%s13658_s14 + $0x340] sm:$0xff]  ;;  %v2770_v31 = vadd.f32 %v11568_v39, %v11609_v59 }
 0x962   : > { %4184 = vmatpush.bf16.msrb.mxu2 %v9386_v35  ;;  %4116 = vmatpush.bf16.msrb.mxu0 %v9361_v45  ;;  %v3007_v45 = vmax.f32 %v2793_v27, 0.0 }
 0x963   : > { %v11614_v24 = vpop.f32.mrf.mxu3  ;;  %v11616_v23 = vpop.f32.mrf.mxu2  ;;  %v3038_v16 = vpack.c.bf16 %v2990_v3, %v2974_v50  ;;  %v3006_v40 = vmax.f32 %v2770_v31, 0.0 }
 0x964   : > { %v11633_v22 = vpop.f32.mrf.mxu0  ;;  %v11635_v26 = vpop.f32.mrf.mxu1  ;;  %v3055_v59 = vpack.c.bf16 %v3007_v45, %v3007_v45 }
 0x965   : > { %4160 = vmatpush.bf16.msra.mxu3 %v9379_v47  ;;  %4138 = vmatpush.bf16.msra.mxu1 %v9370_v9  ;;  %v3039_v47 = vpack.c.bf16 %v2991_v52, %v2975_v37  ;;  %v3054_v39 = vpack.c.bf16 %v3006_v40, %v3006_v40  ;;  %v2854_v37 = vadd.f32 %v11633_v22, %v11785_v30 }
 0x966   : > { %4185 = vmatpush.bf16.msrb.mxu2 %v9385_v61  ;;  %4117 = vmatpush.bf16.msrb.mxu0 %v9360_v17  ;;  %v2877_v17 = vadd.f32 %v11635_v26, %v11788_v28 }
 0x968   : > { %v2963_v26 = vmax.f32 %v2877_v17, 0.0 }
 0x969   : > { %4161 = vmatpush.bf16.msra.mxu3 %v9378_v43  ;;  %4139 = vmatpush.bf16.msra.mxu1 %v9369_v32  ;;  %v3008_v32 = vmax.f32 %v2816_v29, 0.0 }
 0x96a   : > { %4186 = vmatpush.bf16.msrb.mxu2 %v9384_v62  ;;  %v2962_v62 = vmax.f32 %v2854_v37, 0.0 }
 0x96b   : > { %v11668_v36 = vpop.f32.mrf.mxu3  ;;  %v11670_v1 = vpop.f32.mrf.mxu2  ;;  %v3056_v52 = vpack.c.bf16 %v3008_v32, %v3008_v32 }
 0x96c   : > { %v11678_v49 = vpop.f32.mrf.mxu0  ;;  %v11680_v44 = vpop.f32.mrf.mxu1 }
 0x96d   : > { %4162 = vmatpush.bf16.msra.mxu3 %v9377_v25  ;;  %4140 = vmatpush.bf16.msra.mxu1 %v9368_v55  ;;  %v3009_v25 = vmax.f32 %v2839_v54, 0.0  ;;  %v2900_v55 = vadd.f32 %v11668_v36, %v11795_v13 }
 0x96f   : > { %4026 = vmatmul.bf16.vlgmr.msra.gmra.mxu0 %v3022_v41  ;;  %4049 = vmatmul.bf16.vlgmr.msrb.gmra.mxu1 %v3023_v11  ;;  %v2976_v41 = vmax.f32 %v2811_v0, 0.0  ;;  %v2977_v11 = vmax.f32 %v2834_v60, 0.0  ;;  %v3057_v19 = vpack.c.bf16 %v3009_v25, %v3009_v25 }
 0x970   : > { %4072 = vmatmul.bf16.vlgmr.msrb.gmra.mxu3 %v3024_v14  ;;  %4095 = vmatmul.bf16.vlgmr.msra.gmra.mxu2 %v3025_v20 }
 0x971   : > { %v3040_v2 = vpack.c.bf16 %v2992_v10, %v2976_v41  ;;  %v3041_v42 = vpack.c.bf16 %v2993_v38, %v2977_v11  ;;  %4163 = vmatpush.bf16.msra.mxu3 %v9376_v58  ;;  %v11798_v10 = vperm.slane %v11603_v33, 7  ;;  %v2852_v33 = vadd.f32 %v11587_v5, %v11785_v30 }
 0x972   : > { %v2875_v41 = vadd.f32 %v11589_v57, %v11788_v28  ;;  %v2898_v11 = vadd.f32 %v11614_v24, %v11795_v13 }
 0x973   : > { %v11700_v63 = vpop.f32.mrf.mxu3  ;;  %v11702_v53 = vpop.f32.mrf.mxu2  ;;  %v2923_v58 = vadd.f32 %v11670_v1, %v11798_v10  ;;  %v2921_v22 = vadd.f32 %v11616_v23, %v11798_v10  ;;  %v2946_v36 = vmax.f32 %v2852_v33, 0.0 }
 0x974   : > { %v11713_v8 = vpop.f32.mrf.mxu0  ;;  %v11715_v7 = vpop.f32.mrf.mxu1  ;;  %v2948_v5 = vmax.f32 %v2898_v11, 0.0 }
 0x975   : > { %v3026_v24 = vpack.c.bf16 %v2962_v62, %v2946_v36  ;;  %v2859_v32 = vadd.f32 %v11713_v8, %v11785_v30  ;;  %v2882_v25 = vadd.f32 %v11715_v7, %v11788_v28  ;;  %v2926_v8 = vadd.f32 %v11702_v53, %v11798_v10 }
 0x977   : > { %v2995_v7 = vmax.f32 %v2882_v25, 0.0  ;;  %v2981_v33 = vmax.f32 %v2926_v8, 0.0 }
 0x97b   : > { %v11748_v15 = vpop.f32.mrf.mxu3  ;;  %v11750_v34 = vpop.f32.mrf.mxu2 }
 0x97c   : > { %v11761_v14 = vpop.f32.mrf.mxu0  ;;  %v11763_v20 = vpop.f32.mrf.mxu1 }
 0x97f   : > { %4031 = vmatmul.bf16.gmra.mxu0 %v3038_v16  ;;  %4054 = vmatmul.bf16.gmra.mxu1 %v3039_v47  ;;  %v2964_v16 = vmax.f32 %v2900_v55, 0.0  ;;  %v2965_v47 = vmax.f32 %v2923_v58, 0.0 }
 0x980   : > { %4077 = vmatmul.bf16.gmra.mxu3 %v3040_v2  ;;  %4100 = vmatmul.bf16.gmra.mxu2 %v3041_v42  ;;  %v2947_v2 = vmax.f32 %v2875_v41, 0.0 }
 0x981   : > { %v3028_v27 = vpack.c.bf16 %v2964_v16, %v2948_v5  ;;  %v2862_v5 = vadd.f32 %v11761_v14, %v11785_v30 }
 0x982   : > { %v3027_v31 = vpack.c.bf16 %v2963_v26, %v2947_v2 }
 0x983   : > { %v11768_v9 = vpop.f32.mrf.mxu3  ;;  %v11770_v43 = vpop.f32.mrf.mxu2 }
 0x984   : > { %v2863_v35 = vpop.f32.mrf.mxu0  ;;  %v2886_v21 = vpop.f32.mrf.mxu1 }
 0x985   : > { %v2949_v35 = vmax.f32 %v2921_v22, 0.0 }
 0x987   : > { %v3029_v23 = vpack.c.bf16 %v2965_v47, %v2949_v35  ;;  %v2885_v35 = vadd.f32 %v11763_v20, %v11788_v28 }
 0x98b   : > { %v2909_v0 = vpop.f32.mrf.mxu3  ;;  %v2932_v60 = vpop.f32.mrf.mxu2 }
 0x98c   : > { %v11780_v61 = vpop.f32.mrf.mxu0  ;;  %v11782_v3 = vpop.f32.mrf.mxu1  ;;  %v2905_v0 = vadd.f32 %v11748_v15, %v11795_v13  ;;  %v2928_v60 = vadd.f32 %v11750_v34, %v11798_v10 }
 0x98e   : > { %v2996_v37 = vmax.f32 %v2905_v0, 0.0  ;;  %v2997_v17 = vmax.f32 %v2928_v60, 0.0 }
 0x98f   : > { %4036 = vmatmul.bf16.gmra.mxu0 %v3054_v39  ;;  %4059 = vmatmul.bf16.gmra.mxu1 %v3055_v59  ;;  %v2857_v39 = vadd.f32 %v11678_v49, %v11785_v30  ;;  %v2880_v59 = vadd.f32 %v11680_v44, %v11788_v28 }
 0x990   : > { %4082 = vmatmul.bf16.gmra.mxu3 %v3056_v52  ;;  %4105 = vmatmul.bf16.gmra.mxu2 %v3057_v19  ;;  %v2903_v52 = vadd.f32 %v11700_v63, %v11795_v13  ;;  %v2994_v19 = vmax.f32 %v2859_v32, 0.0  ;;  %v11859_v63 = vld [vmem:[%s13659_s15] ss:$0 sm:$0xff]  ;;  %v3045_v62 = vpack.c.bf16 %v2997_v17, %v2981_v33  ;;  %v3011_v32 = vmax.f32 %v2885_v35, 0.0 }
 0x991   : > { %v2978_v15 = vmax.f32 %v2857_v39, 0.0  ;;  %v2979_v55 = vmax.f32 %v2880_v59, 0.0  ;;  %v3844_v26 = vadd.f32 %v11859_v63, %v11780_v61 }
 0x992   : > { %v2980_v49 = vmax.f32 %v2903_v52, 0.0 }
 0x993   : > { %v11790_v6 = vpop.f32.mrf.mxu3  ;;  %v11792_v46 = vpop.f32.mrf.mxu2  ;;  %v3042_v53 = vpack.c.bf16 %v2994_v19, %v2978_v15  ;;  %v3043_v11 = vpack.c.bf16 %v2995_v7, %v2979_v55 }
 0x994   : > { %v11800_v38 = vpop.f32.mrf.mxu0  ;;  %v11802_v50 = vpop.f32.mrf.mxu1  ;;  %v3044_v22 = vpack.c.bf16 %v2996_v37, %v2980_v49 }
 0x99b   : > { %v11820_v42 = vpop.f32.mrf.mxu3  ;;  %v11822_v1 = vpop.f32.mrf.mxu2 }
 0x99c   : > { %v11824_v21 = vpop.f32.mrf.mxu0  ;;  %v11826_v57 = vpop.f32.mrf.mxu1 }
 0x99f   : > { %4118 = vmatmul.bf16.vlgmr.msrb.gmra.mxu0 %v3026_v24  ;;  %4141 = vmatmul.bf16.vlgmr.msra.gmra.mxu1 %v3027_v31  ;;  %v3867_v24 = vadd.f32 %v11782_v3, %v3844_v26  ;;  %v2908_v31 = vadd.f32 %v11768_v9, %v11795_v13  ;;  %v3059_v3 = vpack.c.bf16 %v3011_v32, %v3011_v32 }
 0x9a0   : > { %4164 = vmatmul.bf16.vlgmr.msra.gmra.mxu3 %v3028_v27  ;;  %4187 = vmatmul.bf16.vlgmr.msrb.gmra.mxu2 %v3029_v23  ;;  %v2931_v27 = vadd.f32 %v11770_v43, %v11798_v10  ;;  %v3010_v23 = vmax.f32 %v2862_v5, 0.0  ;;  %v3849_v43 = vadd.f32 %v11859_v63, %v11824_v21 }
 0x9a1   : > { %v3890_v61 = vadd.f32 %v11790_v6, %v3867_v24  ;;  %v3012_v25 = vmax.f32 %v2908_v31, 0.0 }
 0x9a2   : > { %v3013_v0 = vmax.f32 %v2931_v27, 0.0  ;;  %v3058_v28 = vpack.c.bf16 %v3010_v23, %v3010_v23  ;;  %v3872_v8 = vadd.f32 %v11826_v57, %v3849_v43 }
 0x9a3   : > { %v11828_v29 = vpop.f32.mrf.mxu3  ;;  %v11830_v54 = vpop.f32.mrf.mxu2  ;;  %v3913_v60 = vadd.f32 %v11792_v46, %v3890_v61  ;;  %v3060_v52 = vpack.c.bf16 %v3012_v25, %v3012_v25 }
 0x9a4   : > { %v11832_v40 = vpop.f32.mrf.mxu0  ;;  %v11834_v45 = vpop.f32.mrf.mxu1  ;;  %v3061_v9 = vpack.c.bf16 %v3013_v0, %v3013_v0  ;;  %v3895_v19 = vadd.f32 %v11828_v29, %v3872_v8 }
 0x9a6   : > { %v3918_v7 = vadd.f32 %v11830_v54, %v3895_v19 }
 0x9ab   : > { %v11852_v58 = vpop.f32.mrf.mxu3  ;;  %v11854_v34 = vpop.f32.mrf.mxu2 }
 0x9ac   : > { %v3853_v41 = vpop.f32.mrf.mxu0  ;;  %v3876_v44 = vpop.f32.mrf.mxu1 }
 0x9ad   : > { %v3854_v33 = vadd.f32 %v11859_v63, %v3853_v41 }
 0x9af   : > { %4123 = vmatmul.bf16.gmra.mxu0 %v3042_v53  ;;  %4146 = vmatmul.bf16.gmra.mxu1 %v3043_v11 }
 0x9b0   : > { %4169 = vmatmul.bf16.gmra.mxu3 %v3044_v22  ;;  %4192 = vmatmul.bf16.gmra.mxu2 %v3045_v62  ;;  %v3877_v62 = vadd.f32 %v3876_v44, %v3854_v33 }
 0x9b3   : > { %v3899_v16 = vpop.f32.mrf.mxu3  ;;  %v3922_v47 = vpop.f32.mrf.mxu2 }
 0x9b4   : > { %v3855_v36 = vpop.f32.mrf.mxu0  ;;  %v3878_v2 = vpop.f32.mrf.mxu1  ;;  %v3900_v57 = vadd.f32 %v3899_v16, %v3877_v62 }
 0x9b6   : > { %v3923_v26 = vadd.f32 %v3922_v47, %v3900_v57 }
 0x9bb   : > { %v3901_v14 = vpop.f32.mrf.mxu3  ;;  %v3924_v30 = vpop.f32.mrf.mxu2 }
 0x9bc   : > { %v3935_v39 = vpop.f32.mrf.mxu0  ;;  %v3958_v20 = vpop.f32.mrf.mxu1 }
 0x9bd   : > { %v3936_v59 = vadd.f32 %v3935_v39, %v3913_v60  ;;  %v3846_v39 = vadd.f32 %v11859_v63, %v11800_v38 }
 0x9bf   : > { %4128 = vmatmul.bf16.gmra.mxu0 %v3058_v28  ;;  %4151 = vmatmul.bf16.gmra.mxu1 %v3059_v3  ;;  %v3869_v43 = vadd.f32 %v11802_v50, %v3846_v39  ;;  %v3959_v19 = vadd.f32 %v3958_v20, %v3936_v59 }
 0x9c0   : > { %4174 = vmatmul.bf16.gmra.mxu3 %v3060_v52  ;;  %4197 = vmatmul.bf16.gmra.mxu2 %v3061_v9 }
 0x9c1   : > { %v3892_v8 = vadd.f32 %v11820_v42, %v3869_v43 }
 0x9c3   : > { %v3981_v6 = vpop.f32.mrf.mxu3  ;;  %v4004_v13 = vpop.f32.mrf.mxu2  ;;  %v3915_v33 = vadd.f32 %v11822_v1, %v3892_v8 }
 0x9c4   : > { %v3937_v10 = vpop.f32.mrf.mxu0  ;;  %v3960_v46 = vpop.f32.mrf.mxu1  ;;  %v3982_v62 = vadd.f32 %v3981_v6, %v3959_v19 }
 0x9cb   : > { %v3983_v37 = vpop.f32.mrf.mxu3  ;;  %v4006_v17 = vpop.f32.mrf.mxu2 }
 0x9cc   : > { %v3940_v15 = vpop.f32.mrf.mxu0  ;;  %v3963_v55 = vpop.f32.mrf.mxu1 }
 0x9cd   : > { %v3941_v49 = vadd.f32 %v3940_v15, %v3918_v7 }
 0x9d3   : > { %v3986_v53 = vpop.f32.mrf.mxu3  ;;  %v11880_v11 = vpop.f32.mrf.mxu2 }
 0x9d4   : > { %v11882_v21 = vpop.f32.mrf.mxu0  ;;  %v11884_v22 = vpop.f32.mrf.mxu1 }
 0x9db   : > { %v11886_v29 = vpop.f32.mrf.mxu3  ;;  %v11888_v54 = vpop.f32.mrf.mxu2 }
 0x9dc   : > { %v3945_v36 = vpop.f32.mrf.mxu0  ;;  %v11890_v2 = vpop.f32.mrf.mxu1 }
 0x9dd   : > { %v11892_v5 = vadd.f32 %v3945_v36, %v3923_v26  ;;  %v3938_v26 = vadd.f32 %v3937_v10, %v3915_v33  ;;  %v4005_v36 = vadd.f32 %v4004_v13, %v3982_v62  ;;  %v3964_v13 = vadd.f32 %v3963_v55, %v3941_v49 }
 0x9df   : > { %v3961_v50 = vadd.f32 %v3960_v46, %v3938_v26  ;;  %v3987_v46 = vadd.f32 %v3986_v53, %v3964_v13 }
 0x9e1   : > { %v3984_v59 = vadd.f32 %v3983_v37, %v3961_v50 }
 0x9e3   : > { %v11894_v41 = vpop.f32.mrf.mxu3  ;;  %v11896_v35 = vpop.f32.mrf.mxu2  ;;  %v4007_v43 = vadd.f32 %v4006_v17, %v3984_v59 }
 0x9e4   : > { %v3947_v24 = vpop.f32.mrf.mxu0  ;;  %v3970_v31 = vpop.f32.mrf.mxu1 }
 0x9e5   : > { %v3851_v24 = vadd.f32 %v11859_v63, %v11832_v40 }
 0x9e7   : > { %v3874_v1 = vadd.f32 %v11834_v45, %v3851_v24  ;;  %v4010_v45 = vadd.f32 %v11880_v11, %v3987_v46 }
 0x9e9   : > { %v3897_v39 = vadd.f32 %v11852_v58, %v3874_v1 }
 0x9eb   : > { %v3993_v27 = vpop.f32.mrf.mxu3  ;;  %v4016_v61 = vpop.f32.mrf.mxu2  ;;  %v3920_v63 = vadd.f32 %v11854_v34, %v3897_v39 }
 0x9ec   : > { %v4027_v44 = vpop.f32.mrf.mxu0  ;;  %v4050_v16 = vpop.f32.mrf.mxu1 }
 0x9ed   : > { %v4028_v31 = vadd.f32 %v4027_v44, %v4005_v36  ;;  %v3943_v37 = vadd.f32 %v11882_v21, %v3920_v63 }
 0x9ef   : > { %v4051_v6 = vadd.f32 %v4050_v16, %v4028_v31  ;;  %v3966_v58 = vadd.f32 %v11884_v22, %v3943_v37  ;;  %v3969_v22 = vadd.f32 %v11890_v2, %v11892_v5 }
 0x9f3   : > { %v4073_v47 = vpop.f32.mrf.mxu3  ;;  %v4096_v23 = vpop.f32.mrf.mxu2 }
 0x9f4   : > { %v4029_v32 = vpop.f32.mrf.mxu0  ;;  %v4052_v25 = vpop.f32.mrf.mxu1  ;;  %v4074_v10 = vadd.f32 %v4073_v47, %v4051_v6 }
 0x9f5   : > { %v4030_v8 = vadd.f32 %v4029_v32, %v4007_v43  ;;  %v3989_v32 = vadd.f32 %v11886_v29, %v3966_v58 }
 0x9f6   : > { %v4097_v44 = vadd.f32 %v4096_v23, %v4074_v10 }
 0x9f7   : > { %v4053_v26 = vadd.f32 %v4052_v25, %v4030_v8  ;;  %v4012_v25 = vadd.f32 %v11888_v54, %v3989_v32 }
 0x9fb   : > { %v4075_v0 = vpop.f32.mrf.mxu3  ;;  %v4098_v60 = vpop.f32.mrf.mxu2 }
 0x9fc   : > { %v4032_v14 = vpop.f32.mrf.mxu0  ;;  %v4055_v30 = vpop.f32.mrf.mxu1  ;;  %v4076_v16 = vadd.f32 %v4075_v0, %v4053_v26 }
 0x9fd   : > { %v4033_v17 = vadd.f32 %v4032_v14, %v4010_v45 }
 0x9fe   : > { %v4099_v34 = vadd.f32 %v4098_v60, %v4076_v16 }
 0x9ff   : > { %v4056_v50 = vadd.f32 %v4055_v30, %v4033_v17 }
 0xa03   : > { %v4078_v28 = vpop.f32.mrf.mxu3  ;;  %v11900_v3 = vpop.f32.mrf.mxu2 }
 0xa04   : > { %v4034_v52 = vpop.f32.mrf.mxu0  ;;  %v11902_v9 = vpop.f32.mrf.mxu1  ;;  %v4079_v59 = vadd.f32 %v4078_v28, %v4056_v50 }
 0xa05   : > { %v4035_v0 = vadd.f32 %v4034_v52, %v4012_v25 }
 0xa06   : > { %v4102_v30 = vadd.f32 %v11900_v3, %v4079_v59 }
 0xa07   : > { %v4058_v28 = vadd.f32 %v11902_v9, %v4035_v0 }
 0xa0b   : > { %v11906_v7 = vpop.f32.mrf.mxu3  ;;  %v11908_v15 = vpop.f32.mrf.mxu2 }
 0xa0c   : > { %v11911_v57 = vpop.f32.mrf.mxu0  ;;  %v11913_v38 = vpop.f32.mrf.mxu1  ;;  %v4081_v5 = vadd.f32 %v11906_v7, %v4058_v28 }
 0xa0e   : > { %v4104_v8 = vadd.f32 %v11908_v15, %v4081_v5 }
 0xa13   : > { %v11917_v42 = vpop.f32.mrf.mxu3  ;;  %v11919_v20 = vpop.f32.mrf.mxu2 }
 0xa14   : > { %v4039_v27 = vpop.f32.mrf.mxu0  ;;  %v4062_v61 = vpop.f32.mrf.mxu1 }
 0xa15   : > { %v3992_v61 = vadd.f32 %v11894_v41, %v3969_v22 }
 0xa17   : > { %v4015_v2 = vadd.f32 %v11896_v35, %v3992_v61 }
 0xa19   : > { %v4038_v43 = vadd.f32 %v11911_v57, %v4015_v2 }
 0xa1b   : > { %v4085_v19 = vpop.f32.mrf.mxu3  ;;  %v4108_v40 = vpop.f32.mrf.mxu2  ;;  %v4061_v63 = vadd.f32 %v11913_v38, %v4038_v43 }
 0xa1c   : > { %v4119_v33 = vpop.f32.mrf.mxu0  ;;  %v4142_v62 = vpop.f32.mrf.mxu1 }
 0xa1d   : > { %v4120_v36 = vadd.f32 %v4119_v33, %v4097_v44  ;;  %v4084_v7 = vadd.f32 %v11917_v42, %v4061_v63 }
 0xa1f   : > { %v4143_v55 = vadd.f32 %v4142_v62, %v4120_v36  ;;  %v4107_v37 = vadd.f32 %v11919_v20, %v4084_v7 }
 0xa23   : > { %v4165_v49 = vpop.f32.mrf.mxu3  ;;  %v4188_v47 = vpop.f32.mrf.mxu2 }
 0xa24   : > { %v4166_v53 = vadd.f32 %v4165_v49, %v4143_v55  ;;  %v4121_v23 = vpop.f32.mrf.mxu0  ;;  %v4144_v24 = vpop.f32.mrf.mxu1 }
 0xa25   : > { %v4122_v21 = vadd.f32 %v4121_v23, %v4099_v34 }
 0xa26   : > { %v4189_v31 = vadd.f32 %v4188_v47, %v4166_v53 }
 0xa27   : > { %v4145_v14 = vadd.f32 %v4144_v24, %v4122_v21 }
 0xa28   : > { %v4202_v11 = vadd.f32 %v4189_v31, %v10791_v12 }
 0xa2a   : > { %v4209_v27 = vsel %vm1214_vm0, %v4202_v11, 0.0 }
 0xa2b   : > { %v4167_v29 = vpop.f32.mrf.mxu3  ;;  %v4190_v60 = vpop.f32.mrf.mxu2  ;;  %4210 = vadd.xlane.f32.xlu0 %v4209_v27 }
 0xa2c   : > { %v4168_v1 = vadd.f32 %v4167_v29, %v4145_v14  ;;  %v4124_v6 = vpop.f32.mrf.mxu0  ;;  %v4147_v54 = vpop.f32.mrf.mxu1 }
 0xa2d   : > { %v4125_v39 = vadd.f32 %v4124_v6, %v4102_v30 }
 0xa2e   : > { %v4191_v12 = vadd.f32 %v4190_v60, %v4168_v1 }
 0xa2f   : > { %v4148_v10 = vadd.f32 %v4147_v54, %v4125_v39 }
 0xa30   : > { %v4203_v52 = vadd.f32 %v4191_v12, %v10794_v18 }
 0xa32   : > { %v4212_v41 = vsel %vm1214_vm0, %v4203_v52, 0.0 }
 0xa33   : > { %v4170_v13 = vpop.f32.mrf.mxu3  ;;  %v4193_v3 = vpop.f32.mrf.mxu2  ;;  %4213 = vadd.xlane.f32.xlu2 %v4212_v41  ;;  %v9392_v41 = vld [vmem:[%s13660_s16] sm:$0xff] }
 0xa34   : > { %v4171_v19 = vadd.f32 %v4170_v13, %v4148_v10  ;;  %v4126_v9 = vpop.f32.mrf.mxu0  ;;  %v4149_v40 = vpop.f32.mrf.mxu1 }
 0xa35   : > { %v4127_v46 = vadd.f32 %v4126_v9, %v4104_v8 }
 0xa36   : > { %v4194_v35 = vadd.f32 %v4193_v3, %v4171_v19 }
 0xa37   : > { %v4150_v57 = vadd.f32 %v4149_v40, %v4127_v46 }
 0xa38   : > { %v4204_v18 = vadd.f32 %v4194_v35, %v10868_v48 }
 0xa3a   : > { %v4215_v44 = vsel %vm1214_vm0, %v4204_v18, 0.0 }
 0xa3b   : > { %v4172_v33 = vpop.f32.mrf.mxu3  ;;  %v4195_v62 = vpop.f32.mrf.mxu2  ;;  %4216 = vadd.xlane.f32.xlu1 %v4215_v44 }
 0xa3c   : > { %v4173_v15 = vadd.f32 %v4172_v33, %v4150_v57  ;;  %v4129_v26 = vpop.f32.mrf.mxu0  ;;  %v4152_v36 = vpop.f32.mrf.mxu1 }
 0xa3d   : > { %v4130_v16 = vadd.f32 %v4129_v26, %v4107_v37 }
 0xa3e   : > { %v4196_v45 = vadd.f32 %v4195_v62, %v4173_v15 }
 0xa3f   : > { %v4153_v58 = vadd.f32 %v4152_v36, %v4130_v16 }
 0xa40   : > { %v4205_v38 = vadd.f32 %v4196_v45, %v10871_v51 }
 0xa42   : > { %v4218_v42 = vsel %vm1214_vm0, %v4205_v38, 0.0 }
 0xa43   : > { %v4175_v17 = vpop.f32.mrf.mxu3  ;;  %v4198_v48 = vpop.f32.mrf.mxu2  ;;  %4219 = vadd.xlane.f32.xlu0 %v4218_v42 }
 0xa44   : > { %v4176_v55 = vadd.f32 %v4175_v17, %v4153_v58  ;;  %v4131_v49 = vpop.f32.mrf.mxu0  ;;  %v4154_v47 = vpop.f32.mrf.mxu1  ;;  %v9701_v58 = vld [vmem:[%s13748_s23] ss:$0 sm:$0xff]  ;;  %s13756_s23 = smov 112  }
 0xa46   : > { %v4199_v32 = vadd.f32 %v4198_v48, %v4176_v55 }
 0xa48   : > { %v4206_v34 = vadd.f32 %v4199_v32, %v10888_v56  ;;  %v9702_v32 = vld [vmem:[%s13749_s0] ss:$0 sm:$0xff]  ;;  %s7674_s0 = sshll.u32 %s836_s9, 2 }
 0xa49   : > { %s838_s1 = scalar_lea.vmem [#allocation2], %s7674_s0  ;;  %s9929_s0 = scalar_lea.hbm %s13672_s28, 8 }
 0xa4a   : > { %v4221_v20 = vsel %vm2236_vm5, %v4206_v34, 0.0 }
 0xa4b   : > { %v4177_v53 = vpop.f32.mrf.mxu3  ;;  %v4200_v23 = vpop.f32.mrf.mxu2  ;;  %4222 = vadd.xlane.f32.xlu2 %v4221_v20 }
 0xa9e   : > { %v4211_v24 = vpop.xlane.xlu0 %4210 }
 0xa9f   : > { %v4224_v51 = vmul.f32 %v4211_v24, %v10692_v4 }
 0xaa1   : > { %v11952_v50 = vsub.f32 %v4202_v11, %v4224_v51 }
 0xaa3   : > { %v4234_v31 = vmul.f32 %v11952_v50, %v11952_v50 }
 0xaa5   : > { %v4239_v21 = vsel %vm1214_vm0, %v4234_v31, 0.0 }
 0xaa6   : > { %v4214_v25 = vpop.xlane.xlu2 %4213  ;;  %4240 = vadd.xlane.f32.xlu1 %v4239_v21 }
 0xaa7   : > { %v4225_v59 = vmul.f32 %v4214_v25, %v10692_v4 }
 0xaa9   : > { %v11958_v56 = vsub.f32 %v4203_v52, %v4225_v59  ;;  %v9393_v52 = vld [vmem:[%s13660_s16 + $0x8] sm:$0xff] }
 0xaaa   : > { %4665 = vmatpush.bf16.msra.mxu0 %v9393_v52 }
 0xaab   : > { %v4235_v22 = vmul.f32 %v11958_v56, %v11958_v56 }
 0xaad   : > { %v4242_v0 = vsel %vm1214_vm0, %v4235_v22, 0.0 }
 0xaae   : > { %v4217_v14 = vpop.xlane.xlu1 %4216  ;;  %4243 = vadd.xlane.f32.xlu0 %v4242_v0  ;;  %4666 = vmatpush.bf16.msra.mxu0 %v9392_v41 }
 0xaaf   : > { %v4226_v11 = vmul.f32 %v4217_v14, %v10692_v4 }
 0xab1   : > { %v11964_v27 = vsub.f32 %v4204_v18, %v4226_v11 }
 0xab3   : > { %v4236_v29 = vmul.f32 %v11964_v27, %v11964_v27 }
 0xab5   : > { %v4245_v60 = vsel %vm1214_vm0, %v4236_v29, 0.0 }
 0xab6   : > { %4246 = vadd.xlane.f32.xlu2 %v4245_v60  ;;  %v4220_v61 = vpop.xlane.xlu0 %4219 }
 0xab7   : > { %v4227_v30 = vmul.f32 %v4220_v61, %v10692_v4 }
 0xab9   : > { %v11970_v1 = vsub.f32 %v4205_v38, %v4227_v30 }
 0xabb   : > { %v4237_v6 = vmul.f32 %v11970_v1, %v11970_v1 }
 0xabd   : > { %v4248_v54 = vsel %vm1214_vm0, %v4237_v6, 0.0 }
 0xabe   : > { %v4223_v28 = vpop.xlane.xlu2 %4222  ;;  %4249 = vadd.xlane.f32.xlu1 %v4248_v54 }
 0xabf   : > { %v4228_v12 = vmul.f32 %v4223_v28, %v10692_v4 }
 0xac1   : > { %v11976_v39 = vsub.f32 %v4206_v34, %v4228_v12 }
 0xac3   : > { %v4238_v2 = vmul.f32 %v11976_v39, %v11976_v39 }
 0xac5   : > { %v4251_v5 = vsel %vm2236_vm5, %v4238_v2, 0.0 }
 0xac6   : > { %4252 = vadd.xlane.f32.xlu0 %v4251_v5 }
 0xb19   : > { %v4241_v43 = vpop.xlane.xlu1 %4240 }
 0xb1a   : > { %v4254_v10 = vmul.f32 %v4241_v43, %v10692_v4 }
 0xb1c   : > { %v4259_v13 = vadd.f32 1e-05, %v4254_v10 }
 0xb1e   : > { %9802 = vrsqrt.f32 %v4259_v13  ;;  %vm4270_vm13 = vweird.f32 %v4259_v13 }
 0xb21   : > { %v4244_v3 = vpop.xlane.xlu0 %4243 }
 0xb22   : > { %v4255_v8 = vmul.f32 %v4244_v3, %v10692_v4 }
 0xb24   : > { %v9803_v19 = vpop.eup %9802  ;;  %v4260_v9 = vadd.f32 1e-05, %v4255_v8 }
 0xb25   : > { %v4265_v40 = vmul.f32 %v9803_v19, %v4259_v13  ;;  %vm4271_vm12 = vweird.f32 %v9803_v19 }
 0xb26   : > { %9804 = vrsqrt.f32 %v4260_v9  ;;  %vm4272_vm14 = vmor %vm4270_vm13, %vm4271_vm12  ;;  %vm4280_vm6 = vweird.f32 %v4260_v9 }
 0xb27   : > { %v4266_v63 = vmul.f32 %v9803_v19, %v4265_v40 }
 0xb29   : > { %v4267_v35 = vmul.f32 0.5, %v4266_v63  ;;  %v4247_v46 = vpop.xlane.xlu2 %4246 }
 0xb2a   : > { %v4256_v7 = vmul.f32 %v4247_v46, %v10692_v4  ;;  %v9703_v46 = vld [vmem:[%s13661_s17] ss:$0 sm:$0xff] }
 0xb2b   : > { %v4268_v18 = vsub.f32 1.5, %v4267_v35 }
 0xb2c   : > { %v9805_v57 = vpop.eup %9804  ;;  %v4261_v44 = vadd.f32 1e-05, %v4256_v7 }
 0xb2d   : > { %v4269_v33 = vmul.f32 %v9803_v19, %v4268_v18  ;;  %v4275_v62 = vmul.f32 %v9805_v57, %v4260_v9  ;;  %vm4281_vm15 = vweird.f32 %v9805_v57 }
 0xb2e   : > { %9806 = vrsqrt.f32 %v4261_v44  ;;  %vm4282_vm7 = vmor %vm4280_vm6, %vm4281_vm15  ;;  %vm4290_vm9 = vweird.f32 %v4261_v44 }
 0xb2f   : > { %v4276_v37 = vmul.f32 %v9805_v57, %v4275_v62  ;;  %v4273_v15 = vsel %vm4272_vm14, %v9803_v19, %v4269_v33 }
 0xb30   : > { %v4314_v42 = vmul.f32 %v4273_v15, %v11952_v50 }
 0xb31   : > { %v4277_v26 = vmul.f32 0.5, %v4276_v37  ;;  %v4250_v36 = vpop.xlane.xlu1 %4249 }
 0xb32   : > { %v4257_v45 = vmul.f32 %v4250_v36, %v10692_v4  ;;  %v4322_v34 = vmul.f32 %v9701_v58, %v4314_v42 }
 0xb33   : > { %v4278_v16 = vsub.f32 1.5, %v4277_v26 }
 0xb34   : > { %v9807_v38 = vpop.eup %9806  ;;  %v4262_v17 = vadd.f32 1e-05, %v4257_v45  ;;  %v12000_v21 = vadd.f32 %v9702_v32, %v4322_v34 }
 0xb35   : > { %v4279_v48 = vmul.f32 %v9805_v57, %v4278_v16  ;;  %v4285_v55 = vmul.f32 %v9807_v38, %v4261_v44  ;;  %vm4291_vm8 = vweird.f32 %v9807_v38 }
 0xb36   : > { %9808 = vrsqrt.f32 %v4262_v17  ;;  %vm4292_vm10 = vmor %vm4290_vm9, %vm4291_vm8  ;;  %vm4300_vm12 = vweird.f32 %v4262_v17 }
 0xb37   : > { %v4283_v49 = vsel %vm4282_vm7, %v9805_v57, %v4279_v48  ;;  %v4286_v47 = vmul.f32 %v9807_v38, %v4285_v55 }
 0xb38   : > { %v4315_v20 = vmul.f32 %v4283_v49, %v11958_v56 }
 0xb39   : > { %v4287_v53 = vmul.f32 0.5, %v4286_v47  ;;  %v4253_v23 = vpop.xlane.xlu0 %4252 }
 0xb3a   : > { %v4323_v24 = vmul.f32 %v9701_v58, %v4315_v20  ;;  %v4258_v51 = vmul.f32 %v4253_v23, %v10692_v4 }
 0xb3b   : > { %v4288_v50 = vsub.f32 1.5, %v4287_v53 }
 0xb3c   : > { %v9809_v31 = vpop.eup %9808  ;;  %v12002_v25 = vadd.f32 %v9702_v32, %v4323_v24  ;;  %v4263_v59 = vadd.f32 1e-05, %v4258_v51  ;;  %v12077_v24 = vld [vmem:[%s13739_s7 + $0x10] sm:$0xff] }
 0xb3d   : > { %v4289_v22 = vmul.f32 %v9807_v38, %v4288_v50  ;;  %v4295_v0 = vmul.f32 %v9809_v31, %v4262_v17  ;;  %vm4301_vm11 = vweird.f32 %v9809_v31  ;;  %v12063_v17 = vld [vmem:[%s13739_s7] sm:$0xff] }
 0xb3e   : > { %v4631_v14 = vpack.c.bf16 %v12002_v25, %v12000_v21  ;;  %9810 = vrsqrt.f32 %v4263_v59  ;;  %vm4302_vm13 = vmor %vm4300_vm12, %vm4301_vm11  ;;  %vm4310_vm15 = vweird.f32 %v4263_v59 }
 0xb3f   : > { %v4296_v56 = vmul.f32 %v9809_v31, %v4295_v0  ;;  %v4293_v11 = vsel %vm4292_vm10, %v9807_v38, %v4289_v22  ;;  %v12084_v22 = vld [vmem:[%s13739_s7 + $0x18] sm:$0xff] }
 0xb40   : > { %8459 = vmatmul.msk.bf16.vlgmr.msra.gmra.mxu0 %vm1214_vm0, %v4631_v14  ;;  %v4316_v30 = vmul.f32 %v4293_v11, %v11964_v27 }
 0xb41   : > { %v4297_v29 = vmul.f32 0.5, %v4296_v56 }
 0xb42   : > { %v4324_v5 = vmul.f32 %v9701_v58, %v4316_v30 }
 0xb43   : > { %v4298_v60 = vsub.f32 1.5, %v4297_v29  ;;  %v12091_v29 = vld [vmem:[%s13739_s7 + $0x20] sm:$0xf] }
 0xb44   : > { %v9811_v61 = vpop.eup %9810  ;;  %v12009_v41 = vadd.f32 %v9702_v32, %v4324_v5 }
 0xb45   : > { %v4299_v6 = vmul.f32 %v9809_v31, %v4298_v60  ;;  %v4305_v54 = vmul.f32 %v9811_v61, %v4263_v59  ;;  %vm4311_vm14 = vweird.f32 %v9811_v61 }
 0xb46   : > { %vm4312_vm6 = vmor %vm4310_vm15, %vm4311_vm14 }
 0xb47   : > { %v4303_v28 = vsel %vm4302_vm13, %v9809_v31, %v4299_v6  ;;  %v4306_v12 = vmul.f32 %v9811_v61, %v4305_v54 }
 0xb48   : > { %v4317_v2 = vmul.f32 %v4303_v28, %v11970_v1 }
 0xb49   : > { %v4307_v52 = vmul.f32 0.5, %v4306_v12 }
 0xb4a   : > { %v4325_v43 = vmul.f32 %v9701_v58, %v4317_v2 }
 0xb4b   : > { %v4308_v10 = vsub.f32 1.5, %v4307_v52 }
 0xb4c   : > { %v12011_v13 = vadd.f32 %v9702_v32, %v4325_v43 }
 0xb4d   : > { %v4309_v3 = vmul.f32 %v9811_v61, %v4308_v10 }
 0xb4e   : > { %v4632_v27 = vpack.c.bf16 %v12011_v13, %v12009_v41 }
 0xb4f   : > { %v4313_v8 = vsel %vm4312_vm6, %v9811_v61, %v4309_v3 }
 0xb50   : > { %8460 = vmatmul.msk.bf16.gmra.mxu0 %vm1214_vm0, %v4632_v27  ;;  %v4318_v1 = vmul.f32 %v4313_v8, %v11976_v39 }
 0xb52   : > { %v4326_v19 = vmul.f32 %v9701_v58, %v4318_v1 }
 0xb54   : > { %v12017_v9 = vadd.f32 %v9702_v32, %v4326_v19  ;;  %v12070_v32 = vld [vmem:[%s13739_s7 + $0x8] sm:$0xff] }
 0xb56   : > { %v4633_v40 = vpack.c.bf16 %v12017_v9, %v12017_v9 }
 0xb60   : > { %8461 = vmatmul.msk.bf16.gmra.mxu0 %vm1214_vm0, %v4633_v40 }
 0xbbd   : > { %v4668_v63 = vpop.f32.mrf.mxu0 }
 0xbbe   : > { %v12029_v57 = vadd.f32 %v9703_v46, %v4668_v63 }
 0xbc5   : > { %v4670_v35 = vpop.f32.mrf.mxu0 }
 0xbc6   : > { %v12041_v15 = vadd.f32 %v9703_v46, %v4670_v35 }
 0xbc8   : > { %v12113_v19 = vpack.i.bf16 %v12029_v57, %v12041_v15 }
 0xbcd   : > { %v4673_v7 = vpop.f32.mrf.mxu0 }
 0xbce   : > { %v12025_v18 = vadd.f32 %v9703_v46, %v4673_v7 }
 0xbd0   : > { %4691 = vrot.lane.b32.xlu0 %v12025_v18, %s13750_s30 }
 0xbd5   : > { %v4675_v39 = vpop.f32.mrf.mxu0 }
 0xbd6   : > { %v12031_v44 = vadd.f32 %v9703_v46, %v4675_v39 }
 0xbd8   : > { %4693 = vrot.lane.b32.xlu1 %v12031_v44, %s13750_s30  ;;  %4687 = vrot.lane.b32.xlu0 %v12029_v57, %s13750_s30  ;;  %v12099_v30 = vpack.i.bf16 %v12025_v18, %v12031_v44 }
 0xbdd   : > { %v4678_v33 = vpop.f32.mrf.mxu0 }
 0xbde   : > { %v12037_v62 = vadd.f32 %v9703_v46, %v4678_v33 }
 0xbe0   : > { %4695 = vrot.lane.b32.xlu2 %v12037_v62, %s13750_s30 }
 0xbe5   : > { %v4680_v37 = vpop.f32.mrf.mxu0 }
 0xbe8   : > { %4689 = vrot.lane.b32.xlu2 %v12041_v15, %s13750_s30  ;;  %s13751_s30 = smov 64  }
 0xc3a   : > { %v4696_v26 = vpop.permute.xlu2 %4695 }
 0xc3b   : > { %8462 = vmatpush.xpose.msk.msrb.mxu1 %vm1262_vm1, %v4696_v26 }
 0xc42   : > { %v4692_v45 = vpop.permute.xlu0 %4691  ;;  %v4690_v16 = vpop.permute.xlu2 %4689 }
 0xc4a   : > { %v4694_v36 = vpop.permute.xlu1 %4693  ;;  %v4688_v38 = vpop.permute.xlu0 %4687 }
 0xc4b   : > { %8463 = vmatpush.xpose.msk.msrb.mxu1 %vm1262_vm1, %v4694_v36 }
 0xc4f   : > { %8464 = vmatpush.xpose.msk.msrb.mxu1 %vm1262_vm1, %v4692_v45 }
 0xc53   : > { %8465 = vmatpush.xpose.msk.msrb.mxu1 %vm1262_vm1, %v4690_v16 }
 0xc57   : > { %8466 = vmatpush.xpose.msk.msrb.mxu1 %vm1262_vm1, %v4688_v38 }
 0xc5a   : > { %8467 = vmatmul.msk.f32.vlgmr.msrb.gmra.mxu1 %vm1262_vm1, %v12029_v57 }
 0xc62   : > { %8468 = vmatmul.msk.f32.gmra.mxu1 %vm1262_vm1, %v12041_v15 }
 0xc6a   : > { %8469 = vmatmul.msk.f32.gmra.mxu1 %vm1262_vm1, %v12025_v18 }
 0xc72   : > { %8470 = vmatmul.msk.f32.gmra.mxu1 %vm1262_vm1, %v12031_v44 }
 0xc7a   : > { %8471 = vmatmul.msk.f32.gmra.mxu1 %vm1262_vm1, %v12037_v62 }
 0xcd7   : > { %v4734_v58 = vpop.f32.mrf.mxu1 }
 0xcd8   : > { %v4749_v42 = vmul.f32 0.35355338, %v4734_v58 }
 0xcda   : > { %v4754_v48 = vadd.f32 %v12063_v17, %v4749_v42 }
 0xcdc   : > { %v4759_v55 = vsel %vm1325_vm2, %v4754_v48, -inf }
 0xcdd   : > { %4760 = vmax.xlane.f32.xlu1 %v4759_v55 }
 0xcdf   : > { %v4737_v49 = vpop.f32.mrf.mxu1 }
 0xce0   : > { %v4750_v47 = vmul.f32 0.35355338, %v4737_v49 }
 0xce2   : > { %v4755_v34 = vadd.f32 %v12070_v32, %v4750_v47 }
 0xce4   : > { %v4762_v20 = vsel %vm1325_vm2, %v4755_v34, -inf }
 0xce5   : > { %4763 = vmax.xlane.f32.xlu2 %v4762_v20 }
 0xce7   : > { %v4740_v53 = vpop.f32.mrf.mxu1 }
 0xce8   : > { %v4751_v23 = vmul.f32 0.35355338, %v4740_v53 }
 0xcea   : > { %v4756_v51 = vadd.f32 %v12077_v24, %v4751_v23 }
 0xcec   : > { %v4765_v50 = vsel %vm1325_vm2, %v4756_v51, -inf }
 0xced   : > { %4766 = vmax.xlane.f32.xlu0 %v4765_v50 }
 0xcef   : > { %v4743_v31 = vpop.f32.mrf.mxu1 }
 0xcf0   : > { %v4752_v59 = vmul.f32 0.35355338, %v4743_v31 }
 0xcf2   : > { %v4757_v0 = vadd.f32 %v12084_v22, %v4752_v59 }
 0xcf4   : > { %v4768_v14 = vsel %vm1325_vm2, %v4757_v0, -inf }
 0xcf5   : > { %4769 = vmax.xlane.f32.xlu1 %v4768_v14 }
 0xcf7   : > { %v4746_v56 = vpop.f32.mrf.mxu1 }
 0xcf8   : > { %v4753_v11 = vmul.f32 0.35355338, %v4746_v56 }
 0xcfa   : > { %v4758_v60 = vadd.f32 %v12091_v29, %v4753_v11 }
 0xcfc   : > { %v4771_v61 = vsel %vm1338_vm3, %v4758_v60, -inf }
 0xcfd   : > { %4772 = vmax.xlane.f32.xlu2 %v4771_v61 }
 0xd0e   : > { %4822 = vrot.lane.b32.xlu1 %v12037_v62, %s13751_s30 }
 0xd15   : > { %9656 = vrot.lane.b32.xlu2 %v12099_v30, %s13751_s30 }
 0xd50   : > { %v4761_v6 = vpop.xlane.xlu1 %4760 }
 0xd51   : > { %v4774_v54 = vsub.f32 %v4754_v48, %v4761_v6 }
 0xd53   : > { %v4779_v28 = vmul.f32 1.442695, %v4774_v54 }
 0xd55   : > { %9812 = vpow2.f32 %v4779_v28 }
 0xd58   : > { %v4764_v12 = vpop.xlane.xlu2 %4763 }
 0xd59   : > { %v4775_v2 = vsub.f32 %v4755_v34, %v4764_v12 }
 0xd5b   : > { %v12103_v5 = vpop.eup %9812  ;;  %v4781_v52 = vmul.f32 1.442695, %v4775_v2 }
 0xd5c   : > { %v4789_v43 = vsel %vm1325_vm2, %v12103_v5, 0.0 }
 0xd5d   : > { %9814 = vpow2.f32 %v4781_v52  ;;  %4790 = vadd.xlane.f32.xlu0 %v4789_v43 }
 0xd60   : > { %v4767_v16 = vpop.xlane.xlu0 %4766 }
 0xd61   : > { %v4776_v38 = vsub.f32 %v4756_v51, %v4767_v16  ;;  %v4339_v51 = vld [vmem:[%s13662_s18] sm:$0xf] }
 0xd63   : > { %v12107_v10 = vpop.eup %9814  ;;  %v4783_v58 = vmul.f32 1.442695, %v4776_v38 }
 0xd64   : > { %v4792_v3 = vsel %vm1325_vm2, %v12107_v10, 0.0 }
 0xd65   : > { %4793 = vadd.xlane.f32.xlu1 %v4792_v3 }
 0xd68   : > { %v4770_v27 = vpop.xlane.xlu1 %4769 }
 0xd69   : > { %v4777_v8 = vsub.f32 %v4757_v0, %v4770_v27 }
 0xd6b   : > { %v4785_v1 = vmul.f32 1.442695, %v4777_v8 }
 0xd6d   : > { %9816 = vpow2.f32 %v4785_v1 }
 0xd70   : > { %v4773_v40 = vpop.xlane.xlu2 %4772 }
 0xd71   : > { %v4778_v63 = vsub.f32 %v4758_v60, %v4773_v40  ;;  %9661 = vrot.lane.b32.xlu0 %v12113_v19, %s13751_s30  ;;  %s13760_s30 = smov 40  }
 0xd73   : > { %v12117_v35 = vpop.eup %9816  ;;  %v4787_v46 = vmul.f32 1.442695, %v4778_v63 }
 0xd74   : > { %v4798_v7 = vsel %vm1325_vm2, %v12117_v35, 0.0 }
 0xd75   : > { %9818 = vpow2.f32 %v4787_v46  ;;  %4799 = vadd.xlane.f32.xlu2 %v4798_v7 }
 0xd76   : > { %9820 = vpow2.f32 %v4783_v58 }
 0xd78   : > { %v9657_v37 = vpop.permute.xlu2 %9656 }
 0xd79   : > { %v9658_v36 = vunpack.i.l.bf16 %v9657_v37  ;;  %v9659_v45 = vunpack.i.h.bf16 %v9657_v37 }
 0xd7b   : > { %v12121_v39 = vpop.eup %9818 }
 0xd7c   : > { %v4801_v33 = vsel %vm1338_vm3, %v12121_v39, 0.0  ;;  %v9821_v42 = vpop.eup %9820 }
 0xd7d   : > { %4802 = vadd.xlane.f32.xlu1 %v4801_v33  ;;  %v4795_v48 = vsel %vm1325_vm2, %v9821_v42, 0.0 }
 0xd80   : > { %v4823_v26 = vpop.permute.xlu1 %4822 }
 0xd81   : > { %8472 = vmatpush.msk.msrb.mxu3 %vm1411_vm4, %v4823_v26 }
 0xd83   : > { %4857 = vmatpush.msrb.mxu3 %v9658_v36 }
 0xd85   : > { %4858 = vmatpush.msrb.mxu3 %v9659_v45 }
 0xd8d   : > { %4896 = vrot.lane.b32.xlu2 %v12031_v44, %s13752_s12 }
 0xd95   : > { %4890 = vrot.lane.b32.xlu2 %v12029_v57, %s13752_s12 }
 0xd96   : > { %4894 = vrot.lane.b32.xlu1 %v12025_v18, %s13752_s12 }
 0xd9b   : > { %4796 = vadd.xlane.f32.xlu0 %v4795_v48 }
 0xd9d   : > { %4884 = vrot.lane.b32.xlu2 %v12025_v18, %s13753_s6 }
 0xd9e   : > { %4882 = vrot.lane.b32.xlu1 %v12041_v15, %s13753_s6 }
 0xda5   : > { %5169 = vrot.lane.b32.xlu2 %v12031_v44, %s13754_s29 }
 0xda6   : > { %5171 = vrot.lane.b32.xlu1 %v12037_v62, %s13754_s29 }
 0xdad   : > { %4888 = vrot.lane.b32.xlu2 %v12037_v62, %s13753_s6 }
 0xdae   : > { %5414 = vrot.lane.b32.xlu1 %v12037_v62, %s13755_s10 }
 0xdaf   : > { %4898 = vrot.lane.b32.xlu0 %v12037_v62, %s13752_s12 }
 0xdb5   : > { %5163 = vrot.lane.b32.xlu2 %v12029_v57, %s13754_s29 }
 0xdb6   : > { %5412 = vrot.lane.b32.xlu1 %v12031_v44, %s13755_s10 }
 0xdb7   : > { %4892 = vrot.lane.b32.xlu0 %v12041_v15, %s13752_s12 }
 0xdbd   : > { %5408 = vrot.lane.b32.xlu2 %v12041_v15, %s13755_s10 }
 0xdbe   : > { %5153 = vrot.lane.b32.xlu1 %v12029_v57, %s13756_s23 }
 0xdbf   : > { %4880 = vrot.lane.b32.xlu0 %v12029_v57, %s13753_s6 }
 0xdc5   : > { %5396 = vrot.lane.b32.xlu2 %v12029_v57, %s13757_s11 }
 0xdc6   : > { %5155 = vrot.lane.b32.xlu1 %v12041_v15, %s13756_s23 }
 0xdc7   : > { %4886 = vrot.lane.b32.xlu0 %v12031_v44, %s13753_s6 }
 0xdcd   : > { %5159 = vrot.lane.b32.xlu2 %v12031_v44, %s13756_s23 }
 0xdce   : > { %5398 = vrot.lane.b32.xlu1 %v12041_v15, %s13757_s11 }
 0xdcf   : > { %5167 = vrot.lane.b32.xlu0 %v12025_v18, %s13754_s29 }
 0xdd0   : > { %v4791_v55 = vpop.xlane.xlu0 %4790 }
 0xdd1   : > { %9822 = vrcp.f32 %v4791_v55 }
 0xdd5   : > { %5161 = vrot.lane.b32.xlu2 %v12037_v62, %s13756_s23 }
 0xdd6   : > { %5402 = vrot.lane.b32.xlu1 %v12031_v44, %s13757_s11 }
 0xdd7   : > { %5165 = vrot.lane.b32.xlu0 %v12041_v15, %s13754_s29  ;;  %v9823_v34 = vpop.eup %9822 }
 0xdd8   : > { %v4794_v49 = vpop.xlane.xlu1 %4793  ;;  %v4809_v23 = vmul.f32 %v9823_v34, %v12103_v5 }
 0xdd9   : > { %9824 = vrcp.f32 %v4794_v49 }
 0xddf   : > { %5410 = vrot.lane.b32.xlu0 %v12025_v18, %s13755_s10  ;;  %v9825_v44 = vpop.eup %9824 }
 0xde0   : > { %v4810_v15 = vmul.f32 %v9825_v44, %v12107_v10 }
 0xde3   : > { %v9662_v47 = vpop.permute.xlu0 %9661 }
 0xde4   : > { %v9663_v20 = vunpack.i.l.bf16 %v9662_v47  ;;  %v9664_v53 = vunpack.i.h.bf16 %v9662_v47 }
 0xde6   : > { %4859 = vmatpush.msrb.mxu3 %v9663_v20 }
 0xde7   : > { %5406 = vrot.lane.b32.xlu0 %v12029_v57, %s13755_s10  ;;  %v5128_v57 = vsel %vm1411_vm4, %v4339_v51, 0 }
 0xde8   : > { %4860 = vmatpush.msrb.mxu3 %v9664_v53  ;;  %5137 = vmatpush.bf16.msrb.mxu0 %v5128_v57  ;;  %v4800_v59 = vpop.xlane.xlu2 %4799 }
 0xde9   : > { %8473 = vmatmul.msk.f32.vlgmr.msrb.gmra.mxu3 %vm1325_vm2, %v4809_v23 }
 0xdef   : > { %5157 = vrot.lane.b32.xlu0 %v12025_v18, %s13756_s23 }
 0xdf0   : > { %v4803_v50 = vpop.xlane.xlu1 %4802 }
 0xdf1   : > { %8474 = vmatmul.msk.f32.gmra.mxu3 %vm1325_vm2, %v4810_v15 }
 0xdf7   : > { %5400 = vrot.lane.b32.xlu0 %v12025_v18, %s13757_s11  ;;  %v4897_v18 = vpop.permute.xlu2 %4896 }
 0xdff   : > { %5404 = vrot.lane.b32.xlu0 %v12037_v62, %s13757_s11  ;;  %v4891_v12 = vpop.permute.xlu2 %4890  ;;  %s13763_s11 = sld [smem:[#allocation24_spill]] }
 0xe07   : > { %v4885_v10 = vpop.permute.xlu2 %4884 }
 0xe08   : > { %v4895_v31 = vpop.permute.xlu1 %4894 }
 0xe0e   : > { %v4797_v0 = vpop.xlane.xlu0 %4796 }
 0xe0f   : > { %9826 = vrcp.f32 %v4797_v0  ;;  %v5170_v27 = vpop.permute.xlu2 %5169 }
 0xe10   : > { %v4883_v14 = vpop.permute.xlu1 %4882  ;;  %9828 = vrcp.f32 %v4800_v59 }
 0xe11   : > { %9830 = vrcp.f32 %v4803_v50 }
 0xe15   : > { %v9827_v56 = vpop.eup %9826 }
 0xe16   : > { %v4811_v11 = vmul.f32 %v9827_v56, %v9821_v42  ;;  %v9829_v61 = vpop.eup %9828 }
 0xe17   : > { %v4812_v6 = vmul.f32 %v9829_v61, %v12117_v35  ;;  %v9831_v2 = vpop.eup %9830  ;;  %v4889_v1 = vpop.permute.xlu2 %4888 }
 0xe18   : > { %v5172_v60 = vpop.permute.xlu1 %5171  ;;  %8475 = vmatmul.msk.f32.gmra.mxu3 %vm1325_vm2, %v4811_v11  ;;  %v4813_v5 = vmul.f32 %v9831_v2, %v12121_v39 }
 0xe1f   : > { %v5164_v35 = vpop.permute.xlu2 %5163 }
 0xe20   : > { %v5415_v54 = vpop.permute.xlu1 %5414  ;;  %8476 = vmatmul.msk.f32.gmra.mxu3 %vm1325_vm2, %v4812_v6 }
 0xe21   : > { %v4899_v28 = vpop.permute.xlu0 %4898  ;;  %8519 = vmatpush.xpose.msk.msra.mxu0 %vm1262_vm1, %v5415_v54 }
 0xe22   : > { %8478 = vmatpush.xpose.msk.msra.mxu2 %vm1262_vm1, %v4899_v28 }
 0xe26   : > { %8479 = vmatpush.xpose.msk.msra.mxu2 %vm1262_vm1, %v4897_v18 }
 0xe27   : > { %v5409_v7 = vpop.permute.xlu2 %5408 }
 0xe28   : > { %v5413_v52 = vpop.permute.xlu1 %5412  ;;  %8477 = vmatmul.msk.f32.gmra.mxu3 %vm1325_vm2, %v4813_v5 }
 0xe29   : > { %v4893_v43 = vpop.permute.xlu0 %4892  ;;  %8520 = vmatpush.xpose.msk.msra.mxu0 %vm1262_vm1, %v5413_v52 }
 0xe2a   : > { %8480 = vmatpush.xpose.msk.msra.mxu2 %vm1262_vm1, %v4895_v31 }
 0xe2e   : > { %8481 = vmatpush.xpose.msk.msra.mxu2 %vm1262_vm1, %v4893_v43 }
 0xe2f   : > { %v5397_v26 = vpop.permute.xlu2 %5396 }
 0xe30   : > { %v5154_v33 = vpop.permute.xlu1 %5153 }
 0xe31   : > { %v4881_v3 = vpop.permute.xlu0 %4880 }
 0xe32   : > { %8482 = vmatpush.xpose.msk.msra.mxu2 %vm1262_vm1, %v4891_v12 }
 0xe35   : > { %8483 = vmatmul.msk.f32.vlgmr.msra.gmra.mxu2 %vm1262_vm1, %v4881_v3 }
 0xe36   : > { %8500 = vmatpush.xpose.msk.msrb.mxu2 %vm1262_vm1, %v5172_v60 }
 0xe37   : > { %v5160_v16 = vpop.permute.xlu2 %5159 }
 0xe38   : > { %v5156_v37 = vpop.permute.xlu1 %5155 }
 0xe39   : > { %v4887_v8 = vpop.permute.xlu0 %4886 }
 0xe3a   : > { %8501 = vmatpush.xpose.msk.msrb.mxu2 %vm1262_vm1, %v5170_v27 }
 0xe3d   : > { %8484 = vmatmul.msk.f32.gmra.mxu2 %vm1262_vm1, %v4883_v14 }
 0xe3f   : > { %v5162_v42 = vpop.permute.xlu2 %5161 }
 0xe40   : > { %v5399_v14 = vpop.permute.xlu1 %5398 }
 0xe41   : > { %v5168_v40 = vpop.permute.xlu0 %5167 }
 0xe42   : > { %8502 = vmatpush.xpose.msk.msrb.mxu2 %vm1262_vm1, %v5168_v40 }
 0xe45   : > { %8485 = vmatmul.msk.f32.gmra.mxu2 %vm1262_vm1, %v4885_v10 }
 0xe48   : > { %v5403_v2 = vpop.permute.xlu1 %5402 }
 0xe49   : > { %v5166_v63 = vpop.permute.xlu0 %5165 }
 0xe4a   : > { %8503 = vmatpush.xpose.msk.msrb.mxu2 %vm1262_vm1, %v5166_v63 }
 0xe4d   : > { %8486 = vmatmul.msk.f32.gmra.mxu2 %vm1262_vm1, %v4887_v8 }
 0xe4e   : > { %8504 = vmatpush.xpose.msk.msrb.mxu2 %vm1262_vm1, %v5164_v35 }
 0xe51   : > { %v5411_v46 = vpop.permute.xlu0 %5410 }
 0xe52   : > { %8521 = vmatpush.xpose.msk.msra.mxu0 %vm1262_vm1, %v5411_v46 }
 0xe55   : > { %8487 = vmatmul.msk.f32.gmra.mxu2 %vm1262_vm1, %v4889_v1 }
 0xe56   : > { %8522 = vmatpush.xpose.msk.msra.mxu0 %vm1262_vm1, %v5409_v7 }
 0xe59   : > { %v5407_v39 = vpop.permute.xlu0 %5406 }
 0xe5a   : > { %8523 = vmatpush.xpose.msk.msra.mxu0 %vm1262_vm1, %v5407_v39 }
 0xe5d   : > { %8505 = vmatmul.msk.f32.vlgmr.msrb.gmra.mxu2 %vm1262_vm1, %v5154_v33 }
 0xe61   : > { %v5158_v36 = vpop.permute.xlu0 %5157 }
 0xe65   : > { %8506 = vmatmul.msk.f32.gmra.mxu2 %vm1262_vm1, %v5156_v37 }
 0xe69   : > { %v5401_v61 = vpop.permute.xlu0 %5400 }
 0xe6c   : > { %v4862_v45 = vpop.f32.mrf.mxu3 }
 0xe6d   : > { %8507 = vmatmul.msk.f32.gmra.mxu2 %vm1262_vm1, %v5158_v36 }
 0xe71   : > { %v5405_v3 = vpop.permute.xlu0 %5404 }
 0xe74   : > { %v4865_v38 = vpop.f32.mrf.mxu3 }
 0xe75   : > { %v4877_v58 = vpack.c.bf16 %v4865_v38, %v4862_v45  ;;  %8508 = vmatmul.msk.f32.gmra.mxu2 %vm1262_vm1, %v5160_v16 }
 0xe77   : > { %8497 = vmatmul.msk.bf16.vlgmr.msrb.gmra.mxu0 %vm1262_vm1, %v4877_v58 }
 0xe7d   : > { %8509 = vmatmul.msk.f32.gmra.mxu2 %vm1262_vm1, %v5162_v42 }
 0xe9b   : > { %v4868_v48 = vpop.f32.mrf.mxu3 }
 0xea3   : > { %v4871_v55 = vpop.f32.mrf.mxu3 }
 0xea4   : > { %v4878_v49 = vpack.c.bf16 %v4871_v55, %v4868_v48 }
 0xea6   : > { %8498 = vmatmul.msk.bf16.gmra.mxu0 %vm1262_vm1, %v4878_v49 }
 0xeab   : > { %v4874_v47 = vpop.f32.mrf.mxu3 }
 0xeac   : > { %v4879_v34 = vpack.c.bf16 %v4874_v47, %v4874_v47 }
 0xeb6   : > { %8499 = vmatmul.msk.bf16.gmra.mxu0 %vm1262_vm1, %v4879_v34 }
 0xeb8   : > { %v4937_v20 = vpop.f32.mrf.mxu2 }
 0xeb9   : > { %v4952_v53 = vmul.f32 0.35355338, %v4937_v20 }
 0xebb   : > { %v4957_v23 = vadd.f32 %v12063_v17, %v4952_v53 }
 0xebd   : > { %v4962_v44 = vsel %vm1325_vm2, %v4957_v23, -inf }
 0xebe   : > { %4963 = vmax.xlane.f32.xlu1 %v4962_v44 }
 0xec0   : > { %v4940_v15 = vpop.f32.mrf.mxu2 }
 0xec1   : > { %v4953_v51 = vmul.f32 0.35355338, %v4940_v15 }
 0xec3   : > { %v4958_v57 = vadd.f32 %v12070_v32, %v4953_v51 }
 0xec5   : > { %v4965_v50 = vsel %vm1325_vm2, %v4958_v57, -inf }
 0xec6   : > { %4966 = vmax.xlane.f32.xlu2 %v4965_v50  ;;  %8524 = vmatmul.msk.f32.vlgmr.msra.gmra.mxu0 %vm1262_vm1, %v5397_v26 }
 0xec8   : > { %v4943_v31 = vpop.f32.mrf.mxu2 }
 0xec9   : > { %v4954_v59 = vmul.f32 0.35355338, %v4943_v31 }
 0xecb   : > { %v4959_v0 = vadd.f32 %v12077_v24, %v4954_v59 }
 0xecd   : > { %v4968_v56 = vsel %vm1325_vm2, %v4959_v0, -inf }
 0xece   : > { %4969 = vmax.xlane.f32.xlu0 %v4968_v56  ;;  %8525 = vmatmul.msk.f32.gmra.mxu0 %vm1262_vm1, %v5399_v14 }
 0xed0   : > { %v4946_v11 = vpop.f32.mrf.mxu2 }
 0xed1   : > { %v4955_v18 = vmul.f32 0.35355338, %v4946_v11 }
 0xed3   : > { %v12237_v60 = vadd.f32 %v12084_v22, %v4955_v18 }
 0xed5   : > { %v4971_v6 = vsel %vm1325_vm2, %v12237_v60, -inf }
 0xed6   : > { %4972 = vmax.xlane.f32.xlu1 %v4971_v6  ;;  %8526 = vmatmul.msk.f32.gmra.mxu0 %vm1262_vm1, %v5401_v61 }
 0xed8   : > { %v4949_v54 = vpop.f32.mrf.mxu2 }
 0xed9   : > { %v4956_v28 = vmul.f32 0.35355338, %v4949_v54 }
 0xedb   : > { %v12243_v12 = vadd.f32 %v12091_v29, %v4956_v28 }
 0xedd   : > { %v4974_v5 = vsel %vm1338_vm3, %v12243_v12, -inf }
 0xede   : > { %4975 = vmax.xlane.f32.xlu2 %v4974_v5  ;;  %8527 = vmatmul.msk.f32.gmra.mxu0 %vm1262_vm1, %v5403_v2 }
 0xee0   : > { %v5210_v52 = vpop.f32.mrf.mxu2 }
 0xee1   : > { %v5225_v43 = vmul.f32 0.35355338, %v5210_v52 }
 0xee3   : > { %v5230_v10 = vadd.f32 %v12063_v17, %v5225_v43 }
 0xee5   : > { %v5235_v27 = vsel %vm1325_vm2, %v5230_v10, -inf }
 0xee6   : > { %5236 = vmax.xlane.f32.xlu0 %v5235_v27  ;;  %8528 = vmatmul.msk.f32.gmra.mxu0 %vm1262_vm1, %v5405_v3 }
 0xee8   : > { %v5213_v1 = vpop.f32.mrf.mxu2 }
 0xee9   : > { %v5226_v48 = vmul.f32 0.35355338, %v5213_v1 }
 0xeeb   : > { %v12281_v34 = vadd.f32 %v12070_v32, %v5226_v48 }
 0xeef   : > { %9666 = vrot.lane.b32.xlu1 %v12099_v30, %s13758_s8 }
 0xef0   : > { %v5216_v63 = vpop.f32.mrf.mxu2 }
 0xef1   : > { %v5227_v35 = vmul.f32 0.35355338, %v5216_v63 }
 0xef3   : > { %v12266_v7 = vadd.f32 %v12077_v24, %v5227_v35 }
 0xef4   : > { %v12259_v8 = vpop.f32.mrf.mxu0 }
 0xef5   : > { %v5241_v33 = vsel %vm1325_vm2, %v12266_v7, -inf }
 0xef7   : > { %9676 = vrot.lane.b32.xlu1 %v12099_v30, %s13759_s4 }
 0xef8   : > { %v5219_v59 = vpop.f32.mrf.mxu2 }
 0xef9   : > { %v5228_v56 = vmul.f32 0.35355338, %v5219_v59 }
 0xefa   : > { %5025 = vrot.lane.b32.xlu0 %v12037_v62, %s13758_s8 }
 0xefb   : > { %v12297_v6 = vadd.f32 %v12084_v22, %v5228_v56 }
 0xefc   : > { %v12261_v40 = vpop.f32.mrf.mxu0 }
 0xefd   : > { %v5244_v5 = vsel %vm1325_vm2, %v12297_v6, -inf }
 0xf00   : > { %v5222_v52 = vpop.f32.mrf.mxu2 }
 0xf01   : > { %v5229_v1 = vmul.f32 0.35355338, %v5222_v52 }
 0xf02   : > { %9671 = vrot.lane.b32.xlu0 %v12113_v19, %s13758_s8  ;;  %s9227_s8 = sshll.u32 %s10152_s3, 2  ;;  %s7608_s3 = sshll.u32 %s838_s1, 4  ;;  %s7609_s3 = int_to_ptr.vmem [resolvable:$true] %s7608_s3 }
 0xf03   : > { %s7606_s29 = scalar_lea.hbm %s13672_s28, %s9227_s8 }
 0xf04   : > { %s7610_s7 = sshll.u32 %s7606_s29, 4  ;;  %s7611_s7 = int_to_ptr.hbm [resolvable:$true] %s7610_s7 }
 0xf23   : > { %v12263_v46 = vpop.f32.mrf.mxu0 }
 0xf2b   : > { %v12268_v39 = vpop.f32.mrf.mxu0 }
 0xf2c   : > { %5242 = vmax.xlane.f32.xlu0 %v5241_v33 }
 0xf31   : > { %v4964_v37 = vpop.xlane.xlu1 %4963 }
 0xf32   : > { %v4977_v26 = vsub.f32 %v4957_v23, %v4964_v37  ;;  %v5238_v23 = vsel %vm1325_vm2, %v12281_v34, -inf }
 0xf33   : > { %v12272_v36 = vpop.f32.mrf.mxu0 }
 0xf34   : > { %v4982_v45 = vmul.f32 1.442695, %v4977_v26  ;;  %v12317_v26 = vadd.f32 %v12091_v29, %v5229_v1 }
 0xf36   : > { %9832 = vpow2.f32 %v4982_v45 }
 0xf39   : > { %v4967_v16 = vpop.xlane.xlu2 %4966 }
 0xf3a   : > { %v4978_v42 = vsub.f32 %v4958_v57, %v4967_v16 }
 0xf3b   : > { %v5151_v38 = vpop.f32.mrf.mxu0 }
 0xf3c   : > { %v12274_v58 = vpop.eup %9832  ;;  %v4984_v49 = vmul.f32 1.442695, %v4978_v42 }
 0xf3d   : > { %v4992_v55 = vsel %vm1325_vm2, %v12274_v58, 0.0 }
 0xf3e   : > { %4993 = vadd.xlane.f32.xlu2 %v4992_v55  ;;  %9834 = vpow2.f32 %v4984_v49  ;;  %v5247_v55 = vsel %vm1338_vm3, %v12317_v26, -inf }
 0xf40   : > { %5541 = vrot.lane.b32.xlu0 %v12037_v62, %s13760_s30 }
 0xf41   : > { %v4970_v47 = vpop.xlane.xlu0 %4969 }
 0xf42   : > { %v4979_v53 = vsub.f32 %v4959_v0, %v4970_v47 }
 0xf43   : > { %v5453_v20 = vpop.f32.mrf.mxu0 }
 0xf44   : > { %v4986_v44 = vmul.f32 1.442695, %v4979_v53  ;;  %v12285_v15 = vpop.eup %9834  ;;  %v5468_v63 = vmul.f32 0.35355338, %v5453_v20 }
 0xf45   : > { %v4995_v57 = vsel %vm1325_vm2, %v12285_v15, 0.0 }
 0xf46   : > { %5239 = vmax.xlane.f32.xlu2 %v5238_v23  ;;  %9836 = vpow2.f32 %v4986_v44  ;;  %v12320_v45 = vadd.f32 %v12063_v17, %v5468_v63 }
 0xf48   : > { %v5478_v49 = vsel %vm1325_vm2, %v12320_v45, -inf }
 0xf49   : > { %v4973_v50 = vpop.xlane.xlu1 %4972 }
 0xf4a   : > { %v4980_v0 = vsub.f32 %v12237_v60, %v4973_v50 }
 0xf4b   : > { %v12287_v51 = vpop.f32.mrf.mxu0 }
 0xf4c   : > { %v12291_v31 = vpop.eup %9836  ;;  %v4988_v18 = vmul.f32 1.442695, %v4980_v0 }
 0xf4d   : > { %v4998_v11 = vsel %vm1325_vm2, %v12291_v31, 0.0 }
 0xf4e   : > { %4996 = vadd.xlane.f32.xlu2 %v4995_v57  ;;  %9838 = vpow2.f32 %v4988_v18 }
 0xf53   : > { %v5459_v14 = vpop.f32.mrf.mxu0 }
 0xf54   : > { %v12303_v60 = vpop.eup %9838  ;;  %v5470_v42 = vmul.f32 0.35355338, %v5459_v14 }
 0xf55   : > { %v5001_v35 = vsel %vm1325_vm2, %v12303_v60, 0.0 }
 0xf56   : > { %4999 = vadd.xlane.f32.xlu2 %v4998_v11  ;;  %v12328_v17 = vadd.f32 %v12077_v24, %v5470_v42  ;;  %v4976_v24 = vpop.xlane.xlu2 %4975 }
 0xf57   : > { %v4981_v44 = vsub.f32 %v12243_v12, %v4976_v24 }
 0xf58   : > { %v5484_v53 = vsel %vm1325_vm2, %v12328_v17, -inf }
 0xf59   : > { %v5237_v61 = vpop.xlane.xlu0 %5236  ;;  %v4990_v57 = vmul.f32 1.442695, %v4981_v44 }
 0xf5a   : > { %v5250_v54 = vsub.f32 %v5230_v10, %v5237_v61 }
 0xf5b   : > { %v12299_v28 = vpop.f32.mrf.mxu0 }
 0xf5c   : > { %v5255_v2 = vmul.f32 1.442695, %v5250_v54  ;;  %v5471_v61 = vmul.f32 0.35355338, %v12299_v28 }
 0xf5e   : > { %9840 = vpow2.f32 %v5255_v2  ;;  %5245 = vmax.xlane.f32.xlu2 %v5244_v5  ;;  %v12356_v2 = vadd.f32 %v12084_v22, %v5471_v61  ;;  %v4340_v61 = vld [vmem:[%s13662_s18 + $0x4] sm:$0xf] }
 0xf5f   : > { %9842 = vpow2.f32 %v4990_v57 }
 0xf61   : > { %v9667_v16 = vpop.permute.xlu1 %9666 }
 0xf62   : > { %v9668_v48 = vunpack.i.l.bf16 %v9667_v16 }
 0xf63   : > { %v5465_v43 = vpop.f32.mrf.mxu0 }
 0xf64   : > { %v12305_v3 = vpop.eup %9840  ;;  %v5472_v27 = vmul.f32 0.35355338, %v5465_v43 }
 0xf65   : > { %v5265_v10 = vsel %vm1325_vm2, %v12305_v3, 0.0  ;;  %v12341_v0 = vpop.eup %9842 }
 0xf66   : > { %5266 = vadd.xlane.f32.xlu1 %v5265_v10  ;;  %5002 = vadd.xlane.f32.xlu2 %v5001_v35  ;;  %v12312_v33 = vadd.f32 %v12091_v29, %v5472_v27  ;;  %v9669_v29 = vunpack.i.h.bf16 %v9667_v16 }
 0xf68   : > { %v5490_v37 = vsel %vm1338_vm3, %v12312_v33, -inf }
 0xf69   : > { %v9677_v43 = vpop.permute.xlu1 %9676 }
 0xf6a   : > { %5491 = vmax.xlane.f32.xlu0 %v5490_v37 }
 0xf6c   : > { %v5026_v38 = vpop.permute.xlu0 %5025 }
 0xf6d   : > { %8488 = vmatpush.msk.msra.mxu1 %vm1411_vm4, %v5026_v38 }
 0xf6e   : > { %5248 = vmax.xlane.f32.xlu2 %v5247_v55  ;;  %5479 = vmax.xlane.f32.xlu1 %v5478_v49  ;;  %v9678_v55 = vunpack.i.l.bf16 %v9677_v43 }
 0xf6f   : > { %5060 = vmatpush.msra.mxu1 %v9668_v48 }
 0xf71   : > { %5061 = vmatpush.msra.mxu1 %v9669_v29 }
 0xf74   : > { %v9672_v47 = vpop.permute.xlu0 %9671 }
 0xf75   : > { %v9673_v20 = vunpack.i.l.bf16 %v9672_v47  ;;  %v9674_v23 = vunpack.i.h.bf16 %v9672_v47 }
 0xf76   : > { %5485 = vmax.xlane.f32.xlu1 %v5484_v53 }
 0xf77   : > { %5062 = vmatpush.msra.mxu1 %v9673_v20 }
 0xf79   : > { %5063 = vmatpush.msra.mxu1 %v9674_v23 }
 0xf86   : > { %5298 = vrot.lane.b32.xlu2 %v12037_v62, %s13759_s4  ;;  %v5469_v62 = vmul.f32 0.35355338, %v12287_v51 }
 0xf88   : > { %v12349_v18 = vadd.f32 %v12070_v32, %v5469_v62 }
 0xf8a   : > { %v5481_v54 = vsel %vm1325_vm2, %v12349_v18, -inf }
 0xf8e   : > { %9681 = vrot.lane.b32.xlu2 %v12099_v30, %s13760_s30  ;;  %v5004_v30 = vsel %vm1338_vm3, %v12341_v0, 0.0 }
 0xf8f   : > { %9686 = vrot.lane.b32.xlu1 %v12113_v19, %s13759_s4  ;;  %s7596_s4 = scalar_lea.sflag [#allocation3], %s836_s9 }
 0xf9f   : > { %v12339_v50 = vpop.xlane.xlu0 %5242 }
 0xfa0   : > { %v5252_v24 = vsub.f32 %v12266_v7, %v12339_v50 }
 0xfa2   : > { %v5259_v44 = vmul.f32 1.442695, %v5252_v24 }
 0xfb1   : > { %v4994_v59 = vpop.xlane.xlu2 %4993 }
 0xfb2   : > { %9844 = vrcp.f32 %v4994_v59  ;;  %v5542_v14 = vpop.permute.xlu0 %5541 }
 0xfb3   : > { %8529 = vmatpush.msk.msra.mxu2 %vm1411_vm4, %v5542_v14 }
 0xfb7   : > { %5005 = vadd.xlane.f32.xlu2 %v5004_v30 }
 0xfb8   : > { %v9845_v56 = vpop.eup %9844 }
 0xfb9   : > { %v5012_v12 = vmul.f32 %v9845_v56, %v12274_v58  ;;  %v5240_v11 = vpop.xlane.xlu2 %5239  ;;  %v5487_v58 = vsel %vm1325_vm2, %v12356_v2, -inf }
 0xfbb   : > { %8489 = vmatmul.msk.f32.vlgmr.msra.gmra.mxu1 %vm1325_vm2, %v5012_v12 }
 0xfbf   : > { %5482 = vmax.xlane.f32.xlu2 %v5481_v54  ;;  %v5093_v54 = vsel %vm1411_vm4, %v4340_v61, 0 }
 0xfc0   : > { %5102 = vmatpush.bf16.msra.mxu3 %v5093_v54 }
 0xfc1   : > { %v4997_v51 = vpop.xlane.xlu2 %4996 }
 0xfc2   : > { %9846 = vrcp.f32 %v4997_v51 }
 0xfc7   : > { %5488 = vmax.xlane.f32.xlu2 %v5487_v58 }
 0xfc8   : > { %v9847_v5 = vpop.eup %9846 }
 0xfc9   : > { %v5000_v32 = vpop.xlane.xlu2 %4999  ;;  %v5013_v52 = vmul.f32 %v9847_v5, %v12285_v15 }
 0xfca   : > { %9848 = vrcp.f32 %v5000_v32 }
 0xfcb   : > { %8490 = vmatmul.msk.f32.gmra.mxu1 %vm1325_vm2, %v5013_v52 }
 0xfd0   : > { %v9849_v28 = vpop.eup %9848 }
 0xfd1   : > { %v12362_v27 = vpop.xlane.xlu2 %5245  ;;  %v5014_v1 = vmul.f32 %v9849_v28, %v12291_v31  ;;  %v5251_v31 = vsub.f32 %v12281_v34, %v5240_v11 }
 0xfd2   : > { %v5253_v28 = vsub.f32 %v12297_v6, %v12362_v27 }
 0xfd3   : > { %8491 = vmatmul.msk.f32.gmra.mxu1 %vm1325_vm2, %v5014_v1  ;;  %v5257_v42 = vmul.f32 1.442695, %v5251_v31 }
 0xfd9   : > { %v5267_v22 = vpop.xlane.xlu1 %5266  ;;  %v5003_v63 = vpop.xlane.xlu2 %5002 }
 0xfda   : > { %9850 = vrcp.f32 %v5003_v63  ;;  %v5261_v63 = vmul.f32 1.442695, %v5253_v28 }
 0xfdf   : > { %9691 = vrot.lane.b32.xlu2 %v12113_v19, %s13760_s30  ;;  %v9679_v19 = vunpack.i.h.bf16 %v9677_v43  ;;  %s9923_s30 = sshra.s32 %s7611_s7, 4  ;;  %s9924_s30 = int_to_ptr.hbm [resolvable:$true] %s9923_s30 }
 0xfe0   : > { %v9851_v10 = vpop.eup %9850  ;;  %s9925_s8 = scalar_lea.hbm %s9924_s30, 4  ;;  %p9930_p0 = scmp.lt.s32.totalorder %s9924_s30, %s13672_s28 }
 0xfe1   : > { %v5249_v35 = vpop.xlane.xlu2 %5248  ;;  %v5480_v15 = vpop.xlane.xlu1 %5479  ;;  %v5015_v16 = vmul.f32 %v9851_v10, %v12303_v60  ;;  %p9926_p11 = scmp.ne.s32.totalorder %s9924_s30, %s9925_s8  ;;  %p9931_p1 = scmp.lt.s32.totalorder %s9929_s0, %s9925_s8 }
 0xfe2   : > { %v5493_v37 = vsub.f32 %v12320_v45, %v5480_v15  ;;  %v5254_v59 = vsub.f32 %v12317_v26, %v5249_v35  ;;  %v5492_v35 = vpop.xlane.xlu0 %5491 }
 0xfe3   : > { %8492 = vmatmul.msk.f32.gmra.mxu1 %vm1325_vm2, %v5015_v16  ;;  %p9927_p12 = pnand %p9926_p11, %p10169_p5  ;;  %p9932_p2 = por %p9931_p1, %p9930_p0 }
 0xfe4   : > { %v5498_v38 = vmul.f32 1.442695, %v5493_v37  ;;  %v5263_v30 = vmul.f32 1.442695, %v5254_v59 }
 0xfe5   : > { %p9928_p13 = pneg %p9927_p12 }
 0xfe6   : > { %9852 = vpow2.f32 %v5498_v38 }
 0xfe7   : > { %9854 = vpow2.f32 %v5257_v42  ;;  %p9933_p3 = pnand %p9932_p2, %p9928_p13 }
 0xfe9   : > { %v5299_v48 = vpop.permute.xlu2 %5298  ;;  %v5486_v49 = vpop.xlane.xlu1 %5485 }
 0xfea   : > { %8510 = vmatpush.msk.msrb.mxu1 %vm1411_vm4, %v5299_v48  ;;  %v5495_v45 = vsub.f32 %v12328_v17, %v5486_v49 }
 0xfec   : > { %5333 = vmatpush.msrb.mxu1 %v9678_v55  ;;  %v12373_v29 = vpop.eup %9852  ;;  %v5502_v34 = vmul.f32 1.442695, %v5495_v45 }
 0xfed   : > { %v5508_v60 = vsel %vm1325_vm2, %v12373_v29, 0.0  ;;  %v12378_v53 = vpop.eup %9854 }
 0xfee   : > { %5334 = vmatpush.msrb.mxu1 %v9679_v19  ;;  %5509 = vadd.xlane.f32.xlu0 %v5508_v60  ;;  %9856 = vpow2.f32 %v5502_v34  ;;  %v5268_v17 = vsel %vm1325_vm2, %v12378_v53, 0.0 }
 0xfef   : > { %9858 = vpow2.f32 %v5259_v44 }
 0xff0   : > { %9860 = vpow2.f32 %v5263_v30 }
 0xff1   : > { %v9682_v47 = vpop.permute.xlu2 %9681 }
 0xff2   : > { %v9683_v20 = vunpack.i.l.bf16 %v9682_v47  ;;  %v9684_v23 = vunpack.i.h.bf16 %v9682_v47 }
 0xff4   : > { %5576 = vmatpush.msra.mxu2 %v9683_v20  ;;  %v12384_v57 = vpop.eup %9856 }
 0xff5   : > { %v5514_v14 = vsel %vm1325_vm2, %v12384_v57, 0.0  ;;  %v12389_v12 = vpop.eup %9858 }
 0xff6   : > { %5577 = vmatpush.msra.mxu2 %v9684_v23  ;;  %5269 = vadd.xlane.f32.xlu0 %v5268_v17  ;;  %v5271_v50 = vsel %vm1325_vm2, %v12389_v12, 0.0  ;;  %v12393_v11 = vpop.eup %9860 }
 0xff7   : > { %v5277_v26 = vsel %vm1338_vm3, %v12393_v11, 0.0 }
 0xffe   : > { %5515 = vadd.xlane.f32.xlu0 %v5514_v14 }
0x1001   : > { %v9687_v62 = vpop.permute.xlu1 %9686 }
0x1002   : > { %v9688_v56 = vunpack.i.l.bf16 %v9687_v62  ;;  %v9689_v7 = vunpack.i.h.bf16 %v9687_v62 }
0x1004   : > { %5335 = vmatpush.msrb.mxu1 %v9688_v56 }
0x1006   : > { %5336 = vmatpush.msrb.mxu1 %v9689_v7 }
0x1008   : > { %5272 = vadd.xlane.f32.xlu2 %v5271_v50 }
0x1010   : > { %5278 = vadd.xlane.f32.xlu2 %v5277_v26 }
0x102a   : > { %v5006_v51 = vpop.xlane.xlu2 %5005 }
0x102b   : > { %9862 = vrcp.f32 %v5006_v51 }
0x102c   : > { %9864 = vrcp.f32 %v5267_v22 }
0x1031   : > { %v9863_v58 = vpop.eup %9862 }
0x1032   : > { %v5483_v5 = vpop.xlane.xlu2 %5482  ;;  %v5016_v32 = vmul.f32 %v9863_v58, %v12341_v0  ;;  %v9865_v1 = vpop.eup %9864 }
0x1033   : > { %v5494_v52 = vsub.f32 %v12349_v18, %v5483_v5  ;;  %v5285_v10 = vmul.f32 %v9865_v1, %v12305_v3  ;;  %v5497_v18 = vsub.f32 %v12312_v33, %v5492_v35 }
0x1034   : > { %8493 = vmatmul.msk.f32.gmra.mxu1 %vm1325_vm2, %v5016_v32 }
0x1035   : > { %v5500_v43 = vmul.f32 1.442695, %v5494_v52  ;;  %v5506_v27 = vmul.f32 1.442695, %v5497_v18 }
0x1037   : > { %9866 = vpow2.f32 %v5500_v43 }
0x1038   : > { %9868 = vpow2.f32 %v5261_v63  ;;  %v5065_v6 = vpop.f32.mrf.mxu1 }
0x103a   : > { %v5489_v15 = vpop.xlane.xlu2 %5488 }
0x103b   : > { %v5496_v22 = vsub.f32 %v12356_v2, %v5489_v15 }
0x103c   : > { %8511 = vmatmul.msk.f32.vlgmr.msrb.gmra.mxu1 %vm1325_vm2, %v5285_v10 }
0x103d   : > { %v9867_v0 = vpop.eup %9866  ;;  %v5504_v37 = vmul.f32 1.442695, %v5496_v22 }
0x103e   : > { %v5511_v16 = vsel %vm1325_vm2, %v9867_v0, 0.0  ;;  %v9869_v31 = vpop.eup %9868 }
0x103f   : > { %9870 = vpow2.f32 %v5504_v37  ;;  %5512 = vadd.xlane.f32.xlu1 %v5511_v16  ;;  %v5274_v2 = vsel %vm1325_vm2, %v9869_v31, 0.0  ;;  %v4342_v37 = vld [vmem:[%s13662_s18 + $0xc] sm:$0xf] }
0x1040   : > { %9872 = vpow2.f32 %v5506_v27  ;;  %v5609_v16 = vsel %vm1411_vm4, %v4342_v37, 0 }
0x1041   : > { %5618 = vmatpush.bf16.msra.mxu1 %v5609_v16 }
0x1042   : > { %v9692_v38 = vpop.permute.xlu2 %9691 }
0x1043   : > { %v9693_v3 = vunpack.i.l.bf16 %v9692_v38  ;;  %v9694_v48 = vunpack.i.h.bf16 %v9692_v38 }
0x1045   : > { %v9871_v42 = vpop.eup %9870  ;;  %5578 = vmatpush.msra.mxu2 %v9693_v3 }
0x1046   : > { %v5517_v55 = vsel %vm1325_vm2, %v9871_v42, 0.0  ;;  %v9873_v19 = vpop.eup %9872 }
0x1047   : > { %5275 = vadd.xlane.f32.xlu1 %v5274_v2  ;;  %5579 = vmatpush.msra.mxu2 %v9694_v48  ;;  %v5520_v45 = vsel %vm1338_vm3, %v9873_v19, 0.0 }
0x1048   : > { %5518 = vadd.xlane.f32.xlu0 %v5517_v55  ;;  %v5068_v33 = vpop.f32.mrf.mxu1 }
0x1049   : > { %v5080_v49 = vpack.c.bf16 %v5068_v33, %v5065_v6 }
0x104b   : > { %8494 = vmatmul.msk.bf16.vlgmr.msra.gmra.mxu3 %vm1262_vm1, %v5080_v49 }
0x104f   : > { %5521 = vadd.xlane.f32.xlu1 %v5520_v45 }
0x1050   : > { %v5071_v60 = vpop.f32.mrf.mxu1 }
0x1060   : > { %v5074_v34 = vpop.f32.mrf.mxu1 }
0x1061   : > { %v5081_v47 = vpack.c.bf16 %v5074_v34, %v5071_v60  ;;  %v5510_v20 = vpop.xlane.xlu0 %5509 }
0x1062   : > { %9874 = vrcp.f32 %v5510_v20 }
0x1063   : > { %8495 = vmatmul.msk.bf16.gmra.mxu3 %vm1262_vm1, %v5081_v47 }
0x1068   : > { %v9875_v23 = vpop.eup %9874 }
0x1069   : > { %v5528_v24 = vmul.f32 %v9875_v23, %v12373_v29  ;;  %v5270_v17 = vpop.xlane.xlu0 %5269 }
0x106a   : > { %9876 = vrcp.f32 %v5270_v17 }
0x106b   : > { %8530 = vmatmul.msk.f32.vlgmr.msra.gmra.mxu2 %vm1325_vm2, %v5528_v24 }
0x1070   : > { %v9877_v44 = vpop.eup %9876 }
0x1071   : > { %v5286_v59 = vmul.f32 %v9877_v44, %v12378_v53  ;;  %v5516_v29 = vpop.xlane.xlu0 %5515 }
0x1073   : > { %8512 = vmatmul.msk.f32.gmra.mxu1 %vm1325_vm2, %v5286_v59 }
0x107b   : > { %v5273_v14 = vpop.xlane.xlu2 %5272 }
0x107c   : > { %9878 = vrcp.f32 %v5273_v14 }
0x1082   : > { %v9879_v62 = vpop.eup %9878 }
0x1083   : > { %v5287_v30 = vmul.f32 %v9879_v62, %v12389_v12  ;;  %v5279_v54 = vpop.xlane.xlu2 %5278 }
0x1085   : > { %8513 = vmatmul.msk.f32.gmra.mxu1 %vm1325_vm2, %v5287_v30  ;;  %v9704_v30 = vld [vmem:[%s13663_s19] ss:$0 sm:$0xff] }
0x10b1   : > { %v5077_v56 = vpop.f32.mrf.mxu1 }
0x10b2   : > { %v5082_v7 = vpack.c.bf16 %v5077_v56, %v5077_v56  ;;  %v5513_v50 = vpop.xlane.xlu1 %5512 }
0x10b3   : > { %9880 = vrcp.f32 %v5513_v50 }
0x10b4   : > { %8496 = vmatmul.msk.bf16.gmra.mxu3 %vm1262_vm1, %v5082_v7  ;;  %9882 = vrcp.f32 %v5516_v29 }
0x10b9   : > { %v9881_v26 = vpop.eup %9880  ;;  %v5338_v22 = vpop.f32.mrf.mxu1 }
0x10ba   : > { %v5276_v61 = vpop.xlane.xlu1 %5275  ;;  %v5529_v53 = vmul.f32 %v9881_v26, %v9867_v0  ;;  %v9883_v58 = vpop.eup %9882 }
0x10bb   : > { %9884 = vrcp.f32 %v5276_v61  ;;  %v5519_v51 = vpop.xlane.xlu0 %5518  ;;  %v5530_v32 = vmul.f32 %v9883_v58, %v12384_v57  ;;  %v4341_v57 = vld [vmem:[%s13662_s18 + $0x8] sm:$0xf] }
0x10bc   : > { %8531 = vmatmul.msk.f32.gmra.mxu2 %vm1325_vm2, %v5529_v53  ;;  %9886 = vrcp.f32 %v5279_v54  ;;  %v5366_v35 = vsel %vm1411_vm4, %v4341_v57, 0 }
0x10bd   : > { %9888 = vrcp.f32 %v5519_v51  ;;  %5375 = vmatpush.bf16.msrb.mxu3 %v5366_v35 }
0x10c1   : > { %v9885_v12 = vpop.eup %9884 }
0x10c2   : > { %v5288_v5 = vmul.f32 %v9885_v12, %v9869_v31  ;;  %v9887_v52 = vpop.eup %9886  ;;  %v5522_v28 = vpop.xlane.xlu1 %5521 }
0x10c3   : > { %v9889_v43 = vpop.eup %9888  ;;  %9890 = vrcp.f32 %v5522_v28  ;;  %v5289_v1 = vmul.f32 %v9887_v52, %v12393_v11 }
0x10c4   : > { %8514 = vmatmul.msk.f32.gmra.mxu1 %vm1325_vm2, %v5288_v5  ;;  %8532 = vmatmul.msk.f32.gmra.mxu2 %vm1325_vm2, %v5530_v32  ;;  %v5531_v63 = vmul.f32 %v9889_v43, %v9871_v42 }
0x10c9   : > { %v9891_v10 = vpop.eup %9890 }
0x10ca   : > { %v5532_v15 = vmul.f32 %v9891_v10, %v9873_v19 }
0x10cc   : > { %8515 = vmatmul.msk.f32.gmra.mxu1 %vm1325_vm2, %v5289_v1  ;;  %8533 = vmatmul.msk.f32.gmra.mxu2 %vm1325_vm2, %v5531_v63 }
0x10ce   : > { %v5104_v11 = vpop.f32.mrf.mxu3 }
0x10cf   : > { %v5140_v17 = vadd.f32 %v12259_v8, %v5104_v11 }
0x10d4   : > { %8534 = vmatmul.msk.f32.gmra.mxu2 %vm1325_vm2, %v5532_v15 }
0x10d6   : > { %v5106_v6 = vpop.f32.mrf.mxu3 }
0x10d7   : > { %v5142_v7 = vadd.f32 %v12261_v40, %v5106_v6 }
0x10e6   : > { %v5109_v27 = vpop.f32.mrf.mxu3 }
0x10e7   : > { %v5145_v51 = vadd.f32 %v12263_v46, %v5109_v27 }
0x10ee   : > { %v5111_v38 = vpop.f32.mrf.mxu3  ;;  %v5581_v31 = vpop.f32.mrf.mxu2 }
0x10ef   : > { %v5147_v28 = vadd.f32 %v12268_v39, %v5111_v38 }
0x10f0   : > { %v5341_v0 = vpop.f32.mrf.mxu1 }
0x10f1   : > { %v5353_v18 = vpack.c.bf16 %v5341_v0, %v5338_v22 }
0x10f3   : > { %8516 = vmatmul.msk.bf16.vlgmr.msrb.gmra.mxu3 %vm1262_vm1, %v5353_v18 }
0x1102   : > { %v5344_v42 = vpop.f32.mrf.mxu1 }
0x1137   : > { %v5114_v3 = vpop.f32.mrf.mxu3 }
0x1138   : > { %v5150_v35 = vadd.f32 %v12272_v36, %v5114_v3 }
0x113f   : > { %v5116_v48 = vpop.f32.mrf.mxu3  ;;  %v5584_v2 = vpop.f32.mrf.mxu2 }
0x1140   : > { %v5596_v55 = vpack.c.bf16 %v5584_v2, %v5581_v31 }
0x1141   : > { %v5347_v33 = vpop.f32.mrf.mxu1 }
0x1142   : > { %v5354_v49 = vpack.c.bf16 %v5347_v33, %v5344_v42  ;;  %8535 = vmatmul.msk.bf16.vlgmr.msra.gmra.mxu1 %vm1262_vm1, %v5596_v55 }
0x1144   : > { %8517 = vmatmul.msk.bf16.gmra.mxu3 %vm1262_vm1, %v5354_v49 }
0x1147   : > { %v5587_v19 = vpop.f32.mrf.mxu2 }
0x1149   : > { %v5350_v45 = vpop.f32.mrf.mxu1 }
0x114a   : > { %v5355_v47 = vpack.c.bf16 %v5350_v45, %v5350_v45 }
0x114f   : > { %v5590_v60 = vpop.f32.mrf.mxu2 }
0x1150   : > { %v5597_v34 = vpack.c.bf16 %v5590_v60, %v5587_v19 }
0x1152   : > { %8536 = vmatmul.msk.bf16.gmra.mxu1 %vm1262_vm1, %v5597_v34 }
0x1154   : > { %8518 = vmatmul.msk.bf16.gmra.mxu3 %vm1262_vm1, %v5355_v47 }
0x1157   : > { %v5593_v20 = vpop.f32.mrf.mxu2 }
0x1158   : > { %v5598_v23 = vpack.c.bf16 %v5593_v20, %v5593_v20 }
0x1162   : > { %8537 = vmatmul.msk.bf16.gmra.mxu1 %vm1262_vm1, %v5598_v23 }
0x1176   : > { %v5377_v24 = vpop.f32.mrf.mxu3 }
0x1177   : > { %v5391_v44 = vadd.f32 %v5377_v24, %v5140_v17 }
0x117e   : > { %v5379_v59 = vpop.f32.mrf.mxu3 }
0x117f   : > { %v5392_v29 = vadd.f32 %v5379_v59, %v5142_v7 }
0x11bf   : > { %v5620_v14 = vpop.f32.mrf.mxu1 }
0x11c0   : > { %v5634_v62 = vadd.f32 %v5620_v14, %v5391_v44 }
0x11c2   : > { %v5639_v56 = vadd.f32 %v5634_v62, %v12000_v21  ;;  %v9410_v62 = vld [vmem:[%s13668_s24 + $0x84] sm:$0xf] }
0x11c4   : > { %v5648_v50 = vadd.f32 %v9704_v30, %v5639_v56  ;;  %v8612_v56 = vld [vmem:[%s13668_s24 + $0x88] sm:$0xf] }
0x11c6   : > { %v5655_v26 = vsel %vm1214_vm0, %v5648_v50, 0.0 }
0x11c7   : > { %v5382_v61 = vpop.f32.mrf.mxu3  ;;  %5656 = vadd.xlane.f32.xlu0 %v5655_v26  ;;  %v5622_v53 = vpop.f32.mrf.mxu1  ;;  %v8614_v26 = vld [vmem:[%s13668_s24 + $0xc8] sm:$0xf0] }
0x11c8   : > { %v5635_v8 = vadd.f32 %v5622_v53, %v5392_v29  ;;  %v5393_v12 = vadd.f32 %v5382_v61, %v5145_v51  ;;  %v9411_v29 = vld [vmem:[%s13668_s24 + $0x8c] sm:$0xf]  ;;  %v9418_v51 = vld [vmem:[%s13668_s24 + $0xbc] sm:$0xf0] }
0x11ca   : > { %v5640_v54 = vadd.f32 %v5635_v8, %v12002_v25  ;;  %v8617_v8 = vor.u32 %v9411_v29, %v8614_v26 }
0x11cc   : > { %v5649_v58 = vadd.f32 %v9704_v30, %v5640_v54  ;;  %v8604_v54 = vld [vmem:[%s13668_s24 + $0x80] sm:$0xf]  ;;  %6064 = vmatpush.bf16.msrb.mxu1 %v8617_v8 }
0x11ce   : > { %v5658_v5 = vsel %vm1214_vm0, %v5649_v58, 0.0 }
0x11cf   : > { %v5384_v32 = vpop.f32.mrf.mxu3  ;;  %5659 = vadd.xlane.f32.xlu2 %v5658_v5  ;;  %v5625_v21 = vpop.f32.mrf.mxu1  ;;  %v8540_v5 = vld [vmem:[%s13668_s24] sm:$0xf] }
0x11d0   : > { %v5636_v40 = vadd.f32 %v5625_v21, %v5393_v12  ;;  %v5394_v1 = vadd.f32 %v5384_v32, %v5147_v28  ;;  %v8605_v12 = vor.u32 %v9418_v51, %v8604_v54  ;;  %v9402_v32 = vld [vmem:[%s13668_s24 + $0x3c] sm:$0xf0]  ;;  %v9394_v21 = vld [vmem:[%s13668_s24 + $0x4] sm:$0xf] }
0x11d1   : > { %v8542_v28 = vld [vmem:[%s13668_s24 + $0x40] sm:$0xf0] }
0x11d2   : > { %v5641_v52 = vadd.f32 %v5636_v40, %v12009_v41  ;;  %5995 = vmatpush.bf16.msrb.mxu0 %v8605_v12 }
0x11d4   : > { %v5650_v43 = vadd.f32 %v9704_v30, %v5641_v52  ;;  %v8541_v52 = vor.u32 %v9402_v32, %v8540_v5 }
0x11d6   : > { %v5661_v63 = vsel %vm1214_vm0, %v5650_v43, 0.0  ;;  %5996 = vmatpush.bf16.msrb.mxu0 %v8541_v52 }
0x11d7   : > { %v5387_v10 = vpop.f32.mrf.mxu3  ;;  %5662 = vadd.xlane.f32.xlu1 %v5661_v63  ;;  %v5627_v25 = vpop.f32.mrf.mxu1  ;;  %v9403_v63 = vld [vmem:[%s13668_s24 + $0x44] sm:$0xf0] }
0x11d8   : > { %v5637_v46 = vadd.f32 %v5627_v25, %v5394_v1  ;;  %v5395_v22 = vadd.f32 %v5387_v10, %v5150_v35  ;;  %v8545_v1 = vor.u32 %v9394_v21, %v8542_v28  ;;  %v9395_v10 = vld [vmem:[%s13668_s24 + $0xc] sm:$0xf] }
0x11d9   : > { %v8550_v25 = vld [vmem:[%s13668_s24 + $0x48] sm:$0xf0] }
0x11da   : > { %v5642_v57 = vadd.f32 %v5637_v46, %v12011_v13 }
0x11dc   : > { %v5651_v15 = vadd.f32 %v9704_v30, %v5642_v57  ;;  %v8553_v57 = vor.u32 %v9395_v10, %v8550_v25  ;;  %v9413_v10 = vld [vmem:[%s13668_s24 + $0x9c] sm:$0xf] }
0x11dd   : > { %v8630_v25 = vld [vmem:[%s13668_s24 + $0xd8] sm:$0xf0] }
0x11de   : > { %v5664_v0 = vsel %vm1214_vm0, %v5651_v15, 0.0  ;;  %6065 = vmatpush.bf16.msrb.mxu1 %v8553_v57 }
0x11df   : > { %v5389_v18 = vpop.f32.mrf.mxu3  ;;  %5665 = vadd.xlane.f32.xlu0 %v5664_v0  ;;  %v5630_v41 = vpop.f32.mrf.mxu1 }
0x11e0   : > { %v5638_v39 = vadd.f32 %v5630_v41, %v5395_v22 }
0x11e2   : > { %v5643_v11 = vadd.f32 %v5638_v39, %v12017_v9 }
0x11e4   : > { %v5652_v37 = vadd.f32 %v9704_v30, %v5643_v11  ;;  %v8606_v30 = vld [vmem:[%s13668_s24 + $0xc0] sm:$0xf0] }
0x11e5   : > { %v8609_v7 = vor.u32 %v9410_v62, %v8606_v30  ;;  %v9421_v62 = vld [vmem:[%s13668_s24 + $0xd4] sm:$0xf0]  ;;  %v12569_v30 = vld [vmem:[%s13665_s21] ss:$0 sm:$0xff] }
0x11e6   : > { %v5667_v16 = vsel %vm2236_vm5, %v5652_v37, 0.0 }
0x11e7   : > { %v5632_v6 = vpop.f32.mrf.mxu1  ;;  %5668 = vadd.xlane.f32.xlu2 %v5667_v16  ;;  %6018 = vmatpush.bf16.msra.mxu3 %v8609_v7 }
0x11eb   : > { %6019 = vmatpush.bf16.msra.mxu3 %v8545_v1  ;;  %v9420_v1 = vld [vmem:[%s13668_s24 + $0xcc] sm:$0xf0] }
0x123a   : > { %v5657_v27 = vpop.xlane.xlu0 %5656 }
0x123b   : > { %v5670_v13 = vmul.f32 %v5657_v27, %v10692_v4 }
0x123d   : > { %v12464_v38 = vsub.f32 %v5648_v50, %v5670_v13  ;;  %v9419_v50 = vld [vmem:[%s13668_s24 + $0xc4] sm:$0xf0] }
0x123e   : > { %v8613_v53 = vor.u32 %v9419_v50, %v8612_v56 }
0x123f   : > { %v5680_v36 = vmul.f32 %v12464_v38, %v12464_v38 }
0x1240   : > { %6041 = vmatpush.bf16.msrb.mxu2 %v8613_v53 }
0x1241   : > { %v5685_v31 = vsel %vm1214_vm0, %v5680_v36, 0.0 }
0x1242   : > { %v5660_v3 = vpop.xlane.xlu2 %5659  ;;  %5686 = vadd.xlane.f32.xlu1 %v5685_v31 }
0x1243   : > { %v5671_v42 = vmul.f32 %v5660_v3, %v10692_v4 }
0x1245   : > { %v12470_v9 = vsub.f32 %v5649_v58, %v5671_v42 }
0x1247   : > { %v5681_v48 = vmul.f32 %v12470_v9, %v12470_v9 }
0x1249   : > { %v5688_v2 = vsel %vm1214_vm0, %v5681_v48, 0.0 }
0x124a   : > { %v5663_v55 = vpop.xlane.xlu1 %5662  ;;  %5689 = vadd.xlane.f32.xlu0 %v5688_v2 }
0x124b   : > { %v5672_v33 = vmul.f32 %v5663_v55, %v10692_v4 }
0x124d   : > { %v12476_v49 = vsub.f32 %v5650_v43, %v5672_v33  ;;  %v8548_v43 = vld [vmem:[%s13668_s24 + $0x8] sm:$0xf] }
0x124e   : > { %v8549_v46 = vor.u32 %v9403_v63, %v8548_v43  ;;  %v8620_v43 = vld [vmem:[%s13668_s24 + $0x90] sm:$0xf] }
0x124f   : > { %v5682_v19 = vmul.f32 %v12476_v49, %v12476_v49  ;;  %v8621_v63 = vor.u32 %v9420_v1, %v8620_v43 }
0x1250   : > { %6042 = vmatpush.bf16.msrb.mxu2 %v8549_v46  ;;  %v8556_v46 = vld [vmem:[%s13668_s24 + $0x10] sm:$0xf] }
0x1251   : > { %v5691_v45 = vsel %vm1214_vm0, %v5682_v19, 0.0  ;;  %v12548_v19 = vld [vmem:[%s13664_s20] ss:$0 sm:$0xff]  ;;  %6087 = vmatpush.bf16.msra.mxu0 %v8621_v63  ;;  %v9416_v63 = vld [vmem:[%s13668_s24 + $0xb4] sm:$0xf] }
0x1252   : > { %v5666_v60 = vpop.xlane.xlu0 %5665  ;;  %5692 = vadd.xlane.f32.xlu2 %v5691_v45 }
0x1253   : > { %v5673_v34 = vmul.f32 %v5666_v60, %v10692_v4 }
0x1255   : > { %v12482_v47 = vsub.f32 %v5651_v15, %v5673_v34 }
0x1257   : > { %v5683_v20 = vmul.f32 %v12482_v47, %v12482_v47 }
0x1259   : > { %v5694_v23 = vsel %vm1214_vm0, %v5683_v20, 0.0 }
0x125a   : > { %5695 = vadd.xlane.f32.xlu1 %v5694_v23  ;;  %v5669_v24 = vpop.xlane.xlu2 %5668  ;;  %v9412_v23 = vld [vmem:[%s13668_s24 + $0x94] sm:$0xf] }
0x125b   : > { %v5674_v17 = vmul.f32 %v5669_v24, %v10692_v4  ;;  %v8622_v24 = vld [vmem:[%s13668_s24 + $0xd0] sm:$0xf0] }
0x125d   : > { %v12488_v44 = vsub.f32 %v5652_v37, %v5674_v17 }
0x125f   : > { %v5684_v59 = vmul.f32 %v12488_v44, %v12488_v44 }
0x1261   : > { %v5697_v14 = vsel %vm2236_vm5, %v5684_v59, 0.0 }
0x1262   : > { %5698 = vadd.xlane.f32.xlu0 %v5697_v14  ;;  %v8625_v14 = vor.u32 %v9412_v23, %v8622_v24 }
0x1264   : > { %6110 = vmatpush.bf16.msrb.mxu3 %v8625_v14 }
0x12b5   : > { %v5687_v61 = vpop.xlane.xlu1 %5686 }
0x12b6   : > { %v5700_v58 = vmul.f32 %v5687_v61, %v10692_v4 }
0x12b8   : > { %v5705_v40 = vadd.f32 1e-05, %v5700_v58 }
0x12ba   : > { %9892 = vrsqrt.f32 %v5705_v40  ;;  %vm5716_vm2 = vweird.f32 %v5705_v40 }
0x12bd   : > { %v5690_v35 = vpop.xlane.xlu0 %5689 }
0x12be   : > { %v5701_v15 = vmul.f32 %v5690_v35, %v10692_v4  ;;  %v8633_v35 = vor.u32 %v9413_v10, %v8630_v25  ;;  %v8654_v10 = vld [vmem:[%s13668_s24 + $0xf0] sm:$0xf0]  ;;  %v8660_v25 = vld [vmem:[%s13668_s24 + $0xb8] sm:$0xf] }
0x12c0   : > { %v9893_v22 = vpop.eup %9892  ;;  %v5706_v0 = vadd.f32 1e-05, %v5701_v15  ;;  %v9404_v15 = vld [vmem:[%s13668_s24 + $0x4c] sm:$0xf0]  ;;  %6156 = vmatpush.bf16.msra.mxu1 %v8633_v35 }
0x12c1   : > { %v5711_v18 = vmul.f32 %v9893_v22, %v5705_v40  ;;  %vm5717_vm1 = vweird.f32 %v9893_v22  ;;  %v9407_v40 = vld [vmem:[%s13668_s24 + $0x64] sm:$0xf0]  ;;  %v8652_v35 = vld [vmem:[%s13668_s24 + $0xb0] sm:$0xf] }
0x12c2   : > { %9894 = vrsqrt.f32 %v5706_v0  ;;  %vm5718_vm3 = vmor %vm5716_vm2, %vm5717_vm1  ;;  %vm5726_vm7 = vweird.f32 %v5706_v0 }
0x12c3   : > { %v5712_v41 = vmul.f32 %v9893_v22, %v5711_v18 }
0x12c5   : > { %v5713_v39 = vmul.f32 0.5, %v5712_v41  ;;  %v5693_v11 = vpop.xlane.xlu2 %5692  ;;  %v8557_v41 = vor.u32 %v9404_v15, %v8556_v46  ;;  %v8657_v46 = vor.u32 %v9416_v63, %v8654_v10  ;;  %v9424_v15 = vld [vmem:[%s13668_s24 + $0xec] sm:$0xf0] }
0x12c6   : > { %v5702_v37 = vmul.f32 %v5693_v11, %v10692_v4  ;;  %v8564_v11 = vld [vmem:[%s13668_s24 + $0x18] sm:$0xf]  ;;  %v9452_v63 = vld [vmem:[%s13670_s26 + $0xd0] sm:$0xff] }
0x12c7   : > { %v5714_v16 = vsub.f32 1.5, %v5713_v39  ;;  %v8558_v39 = vld [vmem:[%s13668_s24 + $0x50] sm:$0xf0]  ;;  %6088 = vmatpush.bf16.msra.mxu0 %v8557_v41  ;;  %v8662_v41 = vld [vmem:[%s13668_s24 + $0xf8] sm:$0xf0] }
0x12c8   : > { %v9895_v6 = vpop.eup %9894  ;;  %v5707_v27 = vadd.f32 1e-05, %v5702_v37  ;;  %v9405_v37 = vld [vmem:[%s13668_s24 + $0x54] sm:$0xf0] }
0x12c9   : > { %v5715_v13 = vmul.f32 %v9893_v22, %v5714_v16  ;;  %v5721_v36 = vmul.f32 %v9895_v6, %v5706_v0  ;;  %vm5727_vm4 = vweird.f32 %v9895_v6 }
0x12ca   : > { %9896 = vrsqrt.f32 %v5707_v27  ;;  %vm5728_vm8 = vmor %vm5726_vm7, %vm5727_vm4  ;;  %vm5736_vm10 = vweird.f32 %v5707_v27 }
0x12cb   : > { %v5722_v31 = vmul.f32 %v9895_v6, %v5721_v36  ;;  %v5719_v3 = vsel %vm5718_vm3, %v9893_v22, %v5715_v13  ;;  %v9396_v22 = vld [vmem:[%s13668_s24 + $0x14] sm:$0xf]  ;;  %v8566_v13 = vld [vmem:[%s13668_s24 + $0x58] sm:$0xf0]  ;;  %v8565_v36 = vor.u32 %v9405_v37, %v8564_v11  ;;  %v8588_v11 = vld [vmem:[%s13668_s24 + $0x30] sm:$0xf] }
0x12cc   : > { %v5760_v45 = vmul.f32 %v5719_v3, %v12464_v38  ;;  %v8628_v38 = vld [vmem:[%s13668_s24 + $0x98] sm:$0xf]  ;;  %v9408_v37 = vld [vmem:[%s13668_s24 + $0x6c] sm:$0xf0] }
0x12cd   : > { %v5723_v42 = vmul.f32 0.5, %v5722_v31  ;;  %v5696_v48 = vpop.xlane.xlu1 %5695  ;;  %v8629_v50 = vor.u32 %v9421_v62, %v8628_v38  ;;  %v8644_v38 = vld [vmem:[%s13668_s24 + $0xa8] sm:$0xf] }
0x12ce   : > { %v5703_v2 = vmul.f32 %v5696_v48, %v10692_v4  ;;  %v5768_v56 = vmul.f32 %v12548_v19, %v5760_v45 }
0x12cf   : > { %v5724_v55 = vsub.f32 1.5, %v5723_v42  ;;  %6133 = vmatpush.bf16.msra.mxu2 %v8629_v50  ;;  %v9422_v50 = vld [vmem:[%s13668_s24 + $0xdc] sm:$0xf0] }
0x12d0   : > { %v9897_v33 = vpop.eup %9896  ;;  %v12551_v60 = vadd.f32 1e-05, %v5703_v2  ;;  %v12576_v51 = vadd.f32 %v12569_v30, %v5768_v56 }
0x12d1   : > { %v5725_v34 = vmul.f32 %v9895_v6, %v5724_v55  ;;  %v5731_v20 = vmul.f32 %v9897_v33, %v5707_v27  ;;  %vm5737_vm9 = vweird.f32 %v9897_v33  ;;  %v9397_v27 = vld [vmem:[%s13668_s24 + $0x1c] sm:$0xf] }
0x12d2   : > { %9898 = vrsqrt.f32 %v12551_v60  ;;  %vm12583_vm11 = vmor %vm5736_vm10, %vm5737_vm9  ;;  %vm5746_vm13 = vweird.f32 %v12551_v60  ;;  %v8569_v31 = vor.u32 %v9397_v27, %v8566_v13  ;;  %v8596_v27 = vld [vmem:[%s13668_s24 + $0x38] sm:$0xf] }
0x12d3   : > { %v5729_v17 = vsel %vm5728_vm8, %v9895_v6, %v5725_v34  ;;  %v5732_v59 = vmul.f32 %v9897_v33, %v5731_v20  ;;  %6134 = vmatpush.bf16.msra.mxu2 %v8565_v36  ;;  %v9409_v13 = vld [vmem:[%s13668_s24 + $0x74] sm:$0xf0] }
0x12d4   : > { %v5761_v7 = vmul.f32 %v5729_v17, %v12470_v9  ;;  %6157 = vmatpush.bf16.msra.mxu1 %v8569_v31  ;;  %v8597_v31 = vor.u32 %v9409_v13, %v8596_v27 }
0x12d5   : > { %v5733_v29 = vmul.f32 0.5, %v5732_v59  ;;  %v5699_v26 = vpop.xlane.xlu0 %5698 }
0x12d6   : > { %v5769_v61 = vmul.f32 %v12548_v19, %v5761_v7  ;;  %v5704_v53 = vmul.f32 %v5699_v26, %v10692_v4  ;;  %v8636_v7 = vld [vmem:[%s13668_s24 + $0xa0] sm:$0xf] }
0x12d7   : > { %v5734_v8 = vsub.f32 1.5, %v5733_v29  ;;  %v9415_v29 = vld [vmem:[%s13668_s24 + $0xac] sm:$0xf]  ;;  %v8637_v26 = vor.u32 %v9422_v50, %v8636_v7 }
0x12d8   : > { %v9899_v54 = vpop.eup %9898  ;;  %v5777_v58 = vadd.f32 %v12569_v30, %v5769_v61  ;;  %v5709_v12 = vadd.f32 1e-05, %v5704_v53  ;;  %v8646_v61 = vld [vmem:[%s13668_s24 + $0xe8] sm:$0xf0]  ;;  %v8572_v53 = vld [vmem:[%s13668_s24 + $0x20] sm:$0xf] }
0x12d9   : > { %v5735_v5 = vmul.f32 %v9897_v33, %v5734_v8  ;;  %v5741_v9 = vmul.f32 %v9899_v54, %v12551_v60  ;;  %vm5747_vm12 = vweird.f32 %v9899_v54  ;;  %v9406_v8 = vld [vmem:[%s13668_s24 + $0x5c] sm:$0xf0]  ;;  %v9455_v7 = vld [vmem:[%s13670_s26 + $0xe8] sm:$0xff] }
0x12da   : > { %v12581_v32 = vpack.c.bf16 %v5777_v58, %v12576_v51  ;;  %9900 = vrsqrt.f32 %v5709_v12  ;;  %vm5748_vm14 = vmor %vm5746_vm13, %vm5747_vm12  ;;  %vm5756_vm6 = vweird.f32 %v5709_v12  ;;  %v9398_v58 = vld [vmem:[%s13668_s24 + $0x24] sm:$0xf] }
0x12db   : > { %v5742_v21 = vmul.f32 %v9899_v54, %v5741_v9  ;;  %v5739_v52 = vsel %vm12583_vm11, %v9897_v33, %v5735_v5  ;;  %v8580_v5 = vld [vmem:[%s13668_s24 + $0x28] sm:$0xf]  ;;  %v8573_v9 = vor.u32 %v9406_v8, %v8572_v53  ;;  %v9446_v53 = vld [vmem:[%s13670_s26 + $0xa0] sm:$0xff] }
0x12dc   : > { %8666 = vmatmul.msk.bf16.vlgmr.msrb.gmra.mxu0 %vm1214_vm0, %v12581_v32  ;;  %8669 = vmatmul.msk.bf16.vlgmr.msra.gmra.mxu3 %vm1214_vm0, %v12581_v32  ;;  %v5762_v18 = vmul.f32 %v5739_v52, %v12476_v49  ;;  %v8561_v49 = vor.u32 %v9396_v22, %v8558_v39  ;;  %v9399_v52 = vld [vmem:[%s13668_s24 + $0x2c] sm:$0xf]  ;;  %v8581_v43 = vor.u32 %v9407_v40, %v8580_v5  ;;  %v9437_v5 = vld [vmem:[%s13670_s26 + $0x58] sm:$0xff] }
0x12dd   : > { %v5743_v28 = vmul.f32 0.5, %v5742_v21  ;;  %8672 = vmatmul.msk.bf16.vlgmr.msrb.gmra.mxu2 %vm1214_vm0, %v12581_v32  ;;  %8675 = vmatmul.msk.bf16.vlgmr.msrb.gmra.mxu1 %vm1214_vm0, %v12581_v32 }
0x12de   : > { %6111 = vmatpush.bf16.msrb.mxu3 %v8561_v49  ;;  %v5770_v48 = vmul.f32 %v12548_v19, %v5762_v18  ;;  %6179 = vmatpush.bf16.msrb.mxu0 %v8637_v26  ;;  %v9417_v18 = vld [vmem:[%s13668_s24 + $0xbc] sm:$0xf]  ;;  %v8590_v49 = vld [vmem:[%s13668_s24 + $0x70] sm:$0xf0]  ;;  %v9430_v26 = vld [vmem:[%s13670_s26 + $0x20] sm:$0xff] }
0x12df   : > { %v5744_v57 = vsub.f32 1.5, %v5743_v28  ;;  %v8582_v28 = vld [vmem:[%s13668_s24 + $0x68] sm:$0xf0]  ;;  %v8665_v39 = vor.u32 %v9417_v18, %v8662_v41  ;;  %v9434_v18 = vld [vmem:[%s13670_s26 + $0x40] sm:$0xff] }
0x12e0   : > { %v9901_v0 = vpop.eup %9900  ;;  %v5778_v60 = vadd.f32 %v12569_v30, %v5770_v48  ;;  %v8585_v1 = vor.u32 %v9399_v52, %v8582_v28  ;;  %v9428_v28 = vld [vmem:[%s13670_s26 + $0x10] sm:$0xff]  ;;  %v9442_v41 = vld [vmem:[%s13670_s26 + $0x80] sm:$0xff] }
0x12e1   : > { %v5745_v16 = vmul.f32 %v9899_v54, %v5744_v57  ;;  %v5751_v6 = vmul.f32 %v9901_v0, %v5709_v12  ;;  %vm5757_vm15 = vweird.f32 %v9901_v0  ;;  %v8574_v12 = vld [vmem:[%s13668_s24 + $0x60] sm:$0xf0]  ;;  %v9425_v57 = vld [vmem:[%s13668_s24 + $0xf4] sm:$0xf0] }
0x12e2   : > { %vm5758_vm1 = vmor %vm5756_vm6, %vm5757_vm15  ;;  %v8577_v21 = vor.u32 %v9398_v58, %v8574_v12  ;;  %6180 = vmatpush.bf16.msrb.mxu0 %v8573_v9  ;;  %v8661_v22 = vor.u32 %v9425_v57, %v8660_v25  ;;  %v9429_v12 = vld [vmem:[%s13670_s26 + $0x18] sm:$0xff]  ;;  %v9427_v25 = vld [vmem:[%s13670_s26 + $0x8] sm:$0xff] }
0x12e3   : > { %v5749_v3 = vsel %vm5748_vm14, %v9899_v54, %v5745_v16  ;;  %v5752_v42 = vmul.f32 %v9901_v0, %v5751_v6  ;;  %v8649_v54 = vor.u32 %v9415_v29, %v8646_v61  ;;  %v9400_v16 = vld [vmem:[%s13668_s24 + $0x34] sm:$0xf]  ;;  %v8589_v6 = vor.u32 %v9408_v37, %v8588_v11  ;;  %v9438_v61 = vld [vmem:[%s13670_s26 + $0x60] sm:$0xff]  ;;  %v9445_v9 = vld [vmem:[%s13670_s26 + $0x98] sm:$0xff] }
0x12e4   : > { %v5763_v2 = vmul.f32 %v5749_v3, %v12482_v47  ;;  %v8593_v36 = vor.u32 %v9400_v16, %v8590_v49  ;;  %v9401_v3 = vld [vmem:[%s13668_s24 + $0x3c] sm:$0xf]  ;;  %v9443_v57 = vld [vmem:[%s13670_s26 + $0x88] sm:$0xff]  ;;  %v9450_v11 = vld [vmem:[%s13670_s26 + $0xc0] sm:$0xff] }
0x12e5   : > { %v5753_v55 = vmul.f32 0.5, %v5752_v42  ;;  %6248 = vmatpush.bf16.msrb.mxu1 %v8649_v54  ;;  %v8598_v42 = vld [vmem:[%s13668_s24 + $0x78] sm:$0xf0]  ;;  %v9454_v54 = vld [vmem:[%s13670_s26 + $0xe0] sm:$0xff] }
0x12e6   : > { %v5771_v33 = vmul.f32 %v12548_v19, %v5763_v2  ;;  %v8601_v48 = vor.u32 %v9401_v3, %v8598_v42  ;;  %v9473_v42 = vld [vmem:[%s13670_s26 + $0x178] sm:$0xff] }
0x12e7   : > { %v5754_v45 = vsub.f32 1.5, %v5753_v55 }
0x12e8   : > { %v5779_v34 = vadd.f32 %v12569_v30, %v5771_v33  ;;  %v9433_v33 = vld [vmem:[%s13670_s26 + $0x38] sm:$0xff] }
0x12e9   : > { %v5755_v20 = vmul.f32 %v9901_v0, %v5754_v45  ;;  %6249 = vmatpush.bf16.msrb.mxu1 %v8585_v1  ;;  %v9441_v45 = vld [vmem:[%s13670_s26 + $0x78] sm:$0xff] }
0x12ea   : > { %v12641_v23 = vpack.c.bf16 %v5779_v34, %v5778_v60  ;;  %v9449_v60 = vld [vmem:[%s13670_s26 + $0xb8] sm:$0xff] }
0x12eb   : > { %v5759_v24 = vsel %vm5758_vm1, %v9901_v0, %v5755_v20  ;;  %v8653_v0 = vor.u32 %v9424_v15, %v8652_v35  ;;  %v9457_v34 = vld [vmem:[%s13670_s26 + $0xf8] sm:$0xff]  ;;  %v9451_v35 = vld [vmem:[%s13670_s26 + $0xc8] sm:$0xff] }
0x12ec   : > { %8667 = vmatmul.msk.bf16.gmra.mxu0 %vm1214_vm0, %v12641_v23  ;;  %8670 = vmatmul.msk.bf16.gmra.mxu3 %vm1214_vm0, %v12641_v23  ;;  %v5764_v47 = vmul.f32 %v5759_v24, %v12488_v44  ;;  %v9414_v44 = vld [vmem:[%s13668_s24 + $0xa4] sm:$0xf] }
0x12ed   : > { %8673 = vmatmul.msk.bf16.gmra.mxu2 %vm1214_vm0, %v12641_v23  ;;  %8676 = vmatmul.msk.bf16.gmra.mxu1 %vm1214_vm0, %v12641_v23 }
0x12ee   : > { %v5772_v17 = vmul.f32 %v12548_v19, %v5764_v47  ;;  %v8638_v19 = vld [vmem:[%s13668_s24 + $0xe0] sm:$0xf0]  ;;  %v9432_v47 = vld [vmem:[%s13670_s26 + $0x30] sm:$0xff] }
0x12ef   : > { %v8641_v62 = vor.u32 %v9414_v44, %v8638_v19  ;;  %v9456_v19 = vld [vmem:[%s13670_s26 + $0xf0] sm:$0xff] }
0x12f0   : > { %v5780_v59 = vadd.f32 %v12569_v30, %v5772_v17  ;;  %v9423_v30 = vld [vmem:[%s13668_s24 + $0xe4] sm:$0xf0]  ;;  %v9440_v17 = vld [vmem:[%s13670_s26 + $0x70] sm:$0xff] }
0x12f1   : > { %v8645_v56 = vor.u32 %v9423_v30, %v8644_v38  ;;  %6202 = vmatpush.bf16.msra.mxu3 %v8641_v62  ;;  %v9431_v62 = vld [vmem:[%s13670_s26 + $0x28] sm:$0xff] }
0x12f2   : > { %v12654_v14 = vpack.c.bf16 %v5780_v59, %v5780_v59  ;;  %v9448_v59 = vld [vmem:[%s13670_s26 + $0xb0] sm:$0xff]  ;;  %v9439_v30 = vld [vmem:[%s13670_s26 + $0x68] sm:$0xff] }
0x12f3   : > { %6225 = vmatpush.bf16.msrb.mxu2 %v8645_v56  ;;  %v9447_v56 = vld [vmem:[%s13670_s26 + $0xa8] sm:$0xff] }
0x12f5   : > { %6203 = vmatpush.bf16.msra.mxu3 %v8577_v21  ;;  %v9453_v21 = vld [vmem:[%s13670_s26 + $0xd8] sm:$0xff] }
0x12f7   : > { %6226 = vmatpush.bf16.msrb.mxu2 %v8581_v43  ;;  %v9444_v43 = vld [vmem:[%s13670_s26 + $0x90] sm:$0xff] }
0x12fc   : > { %8668 = vmatmul.msk.bf16.gmra.mxu0 %vm1214_vm0, %v12654_v14  ;;  %8671 = vmatmul.msk.bf16.gmra.mxu3 %vm1214_vm0, %v12654_v14 }
0x12fd   : > { %8674 = vmatmul.msk.bf16.gmra.mxu2 %vm1214_vm0, %v12654_v14  ;;  %8677 = vmatmul.msk.bf16.gmra.mxu1 %vm1214_vm0, %v12654_v14 }
0x130c   : > { %8678 = vmatmul.msk.bf16.vlgmr.msra.gmra.mxu0 %vm1214_vm0, %v12581_v32  ;;  %8681 = vmatmul.msk.bf16.vlgmr.msrb.gmra.mxu3 %vm1214_vm0, %v12581_v32 }
0x130d   : > { %8684 = vmatmul.msk.bf16.vlgmr.msra.gmra.mxu2 %vm1214_vm0, %v12581_v32  ;;  %8687 = vmatmul.msk.bf16.vlgmr.msra.gmra.mxu1 %vm1214_vm0, %v12581_v32 }
0x130e   : > { %6294 = vmatpush.bf16.msrb.mxu3 %v8657_v46  ;;  %6317 = vmatpush.bf16.msra.mxu2 %v8661_v22  ;;  %v9435_v46 = vld [vmem:[%s13670_s26 + $0x48] sm:$0xff] }
0x130f   : > { %6271 = vmatpush.bf16.msra.mxu0 %v8653_v0  ;;  %6340 = vmatpush.bf16.msra.mxu1 %v8665_v39  ;;  %v9426_v0 = vld [vmem:[%s13670_s26] sm:$0xff] }
0x1312   : > { %6295 = vmatpush.bf16.msrb.mxu3 %v8593_v36  ;;  %6318 = vmatpush.bf16.msra.mxu2 %v8597_v31 }
0x1313   : > { %6272 = vmatpush.bf16.msra.mxu0 %v8589_v6  ;;  %6341 = vmatpush.bf16.msra.mxu1 %v8601_v48  ;;  %v9481_v48 = vld [vmem:[%s13670_s26 + $0x1b8] sm:$0xff] }
0x131c   : > { %8679 = vmatmul.msk.bf16.gmra.mxu0 %vm1214_vm0, %v12641_v23  ;;  %8682 = vmatmul.msk.bf16.gmra.mxu3 %vm1214_vm0, %v12641_v23 }
0x131d   : > { %8685 = vmatmul.msk.bf16.gmra.mxu2 %vm1214_vm0, %v12641_v23  ;;  %8688 = vmatmul.msk.bf16.gmra.mxu1 %vm1214_vm0, %v12641_v23 }
0x132c   : > { %8680 = vmatmul.msk.bf16.gmra.mxu0 %vm1214_vm0, %v12654_v14  ;;  %8683 = vmatmul.msk.bf16.gmra.mxu3 %vm1214_vm0, %v12654_v14 }
0x132d   : > { %8686 = vmatmul.msk.bf16.gmra.mxu2 %vm1214_vm0, %v12654_v14  ;;  %8689 = vmatmul.msk.bf16.gmra.mxu1 %vm1214_vm0, %v12654_v14 }
0x133c   : > { %8690 = vmatmul.msk.bf16.vlgmr.msrb.gmra.mxu0 %vm1214_vm0, %v12581_v32  ;;  %8693 = vmatmul.msk.bf16.vlgmr.msra.gmra.mxu3 %vm1214_vm0, %v12581_v32 }
0x133d   : > { %8696 = vmatmul.msk.bf16.vlgmr.msrb.gmra.mxu2 %vm1214_vm0, %v12581_v32  ;;  %8699 = vmatmul.msk.bf16.vlgmr.msrb.gmra.mxu1 %vm1214_vm0, %v12581_v32 }
0x133e   : > { %7257 = vmatpush.bf16.msrb.mxu0 %v9433_v33  ;;  %7276 = vmatpush.bf16.msra.mxu3 %v9441_v45  ;;  %v12980_v33 = vld [vmem:[%s13669_s25] sm:$0xff]  ;;  %v9489_v45 = vld [vmem:[%s13670_s26 + $0x1f8] sm:$0xff] }
0x133f   : > { %7295 = vmatpush.bf16.msrb.mxu2 %v9449_v60  ;;  %7314 = vmatpush.bf16.msrb.mxu1 %v9457_v34  ;;  %v12992_v34 = vperm.slane %v12980_v33, 0 }
0x1342   : > { %7258 = vmatpush.bf16.msrb.mxu0 %v9432_v47  ;;  %7277 = vmatpush.bf16.msra.mxu3 %v9440_v17  ;;  %v12995_v47 = vperm.slane %v12980_v33, 1 }
0x1343   : > { %7296 = vmatpush.bf16.msrb.mxu2 %v9448_v59  ;;  %7315 = vmatpush.bf16.msrb.mxu1 %v9456_v19  ;;  %v9472_v59 = vld [vmem:[%s13670_s26 + $0x170] sm:$0xff] }
0x1344   : > { %v9480_v19 = vld [vmem:[%s13670_s26 + $0x1b0] sm:$0xff] }
0x1346   : > { %7259 = vmatpush.bf16.msrb.mxu0 %v9431_v62  ;;  %7278 = vmatpush.bf16.msra.mxu3 %v9439_v30  ;;  %v13009_v62 = vperm.slane %v12980_v33, 3  ;;  %v13012_v30 = vperm.slane %v12980_v33, 2 }
0x1347   : > { %7297 = vmatpush.bf16.msrb.mxu2 %v9447_v56  ;;  %7316 = vmatpush.bf16.msrb.mxu1 %v9455_v7  ;;  %v9488_v7 = vld [vmem:[%s13670_s26 + $0x1f0] sm:$0xff] }
0x134a   : > { %7260 = vmatpush.bf16.msrb.mxu0 %v9430_v26  ;;  %7279 = vmatpush.bf16.msra.mxu3 %v9438_v61 }
0x134b   : > { %7298 = vmatpush.bf16.msrb.mxu2 %v9446_v53  ;;  %7317 = vmatpush.bf16.msrb.mxu1 %v9454_v54 }
0x134c   : > { %8691 = vmatmul.msk.bf16.gmra.mxu0 %vm1214_vm0, %v12641_v23  ;;  %8694 = vmatmul.msk.bf16.gmra.mxu3 %vm1214_vm0, %v12641_v23 }
0x134d   : > { %8697 = vmatmul.msk.bf16.gmra.mxu2 %vm1214_vm0, %v12641_v23  ;;  %8700 = vmatmul.msk.bf16.gmra.mxu1 %vm1214_vm0, %v12641_v23 }
0x134e   : > { %7261 = vmatpush.bf16.msrb.mxu0 %v9429_v12  ;;  %7280 = vmatpush.bf16.msra.mxu3 %v9437_v5 }
0x134f   : > { %7299 = vmatpush.bf16.msrb.mxu2 %v9445_v9  ;;  %7318 = vmatpush.bf16.msrb.mxu1 %v9453_v21  ;;  %v9471_v9 = vld [vmem:[%s13670_s26 + $0x168] sm:$0xff] }
0x1352   : > { %7262 = vmatpush.bf16.msrb.mxu0 %v9428_v28 }
0x1353   : > { %7300 = vmatpush.bf16.msrb.mxu2 %v9444_v43  ;;  %7319 = vmatpush.bf16.msrb.mxu1 %v9452_v63 }
0x1356   : > { %7263 = vmatpush.bf16.msrb.mxu0 %v9427_v25 }
0x1357   : > { %7301 = vmatpush.bf16.msrb.mxu2 %v9443_v57  ;;  %7320 = vmatpush.bf16.msrb.mxu1 %v9451_v35  ;;  %v9470_v57 = vld [vmem:[%s13670_s26 + $0x160] sm:$0xff] }
0x1359   : > { %v12800_v2 = vpop.f32.mrf.mxu0 }
0x135a   : > { %v12802_v55 = vpop.f32.mrf.mxu1  ;;  %7264 = vmatpush.bf16.msrb.mxu0 %v9426_v0  ;;  %v5999_v5 = vadd.f32 %v12800_v2, %v12992_v34 }
0x135b   : > { %7302 = vmatpush.bf16.msrb.mxu2 %v9442_v41  ;;  %7321 = vmatpush.bf16.msrb.mxu1 %v9450_v11  ;;  %v9478_v41 = vld [vmem:[%s13670_s26 + $0x1a0] sm:$0xff] }
0x135c   : > { %8692 = vmatmul.msk.bf16.gmra.mxu0 %vm1214_vm0, %v12654_v14  ;;  %8695 = vmatmul.msk.bf16.gmra.mxu3 %vm1214_vm0, %v12654_v14  ;;  %v6357_v25 = vmax.f32 %v5999_v5, 0.0  ;;  %v9486_v11 = vld [vmem:[%s13670_s26 + $0x1e0] sm:$0xff] }
0x135d   : > { %8698 = vmatmul.msk.bf16.gmra.mxu2 %vm1214_vm0, %v12654_v14  ;;  %8701 = vmatmul.msk.bf16.gmra.mxu1 %vm1214_vm0, %v12654_v14 }
0x135f   : > { %v12824_v20 = vpop.f32.mrf.mxu3 }
0x1360   : > { %v12826_v24 = vpop.f32.mrf.mxu2 }
0x1361   : > { %v12837_v44 = vpop.f32.mrf.mxu0  ;;  %v6045_v2 = vadd.f32 %v12826_v24, %v13012_v30  ;;  %v9462_v24 = vld [vmem:[%s13670_s26 + $0x120] sm:$0xff] }
0x1362   : > { %v12842_v38 = vpop.f32.mrf.mxu1  ;;  %v6001_v26 = vadd.f32 %v12837_v44, %v12992_v34  ;;  %v6022_v44 = vadd.f32 %v12824_v20, %v12995_v47  ;;  %v9487_v20 = vld [vmem:[%s13670_s26 + $0x1e8] sm:$0xff] }
0x1363   : > { %v6070_v54 = vadd.f32 %v12842_v38, %v13009_v62  ;;  %v9479_v38 = vld [vmem:[%s13670_s26 + $0x1a8] sm:$0xff]  ;;  %v6359_v0 = vmax.f32 %v6045_v2, 0.0 }
0x1364   : > { %v6373_v21 = vmax.f32 %v6001_v26, 0.0  ;;  %v9468_v26 = vld [vmem:[%s13670_s26 + $0x150] sm:$0xff]  ;;  %v9467_v2 = vld [vmem:[%s13670_s26 + $0x148] sm:$0xff] }
0x1367   : > { %v12856_v50 = vpop.f32.mrf.mxu3 }
0x1368   : > { %v12858_v29 = vpop.f32.mrf.mxu2  ;;  %v6024_v61 = vadd.f32 %v12856_v50, %v12995_v47  ;;  %v9463_v50 = vld [vmem:[%s13670_s26 + $0x128] sm:$0xff] }
0x1369   : > { %v12869_v8 = vpop.f32.mrf.mxu0  ;;  %v6047_v12 = vadd.f32 %v12858_v29, %v13012_v30  ;;  %v6068_v29 = vadd.f32 %v12802_v55, %v13009_v62 }
0x136a   : > { %v12874_v58 = vpop.f32.mrf.mxu1  ;;  %v6374_v28 = vmax.f32 %v6024_v61, 0.0  ;;  %v9476_v61 = vld [vmem:[%s13670_s26 + $0x190] sm:$0xff] }
0x136b   : > { %v6375_v43 = vmax.f32 %v6047_v12, 0.0  ;;  %v6360_v35 = vmax.f32 %v6068_v29, 0.0  ;;  %v9484_v12 = vld [vmem:[%s13670_s26 + $0x1d0] sm:$0xff]  ;;  %v6004_v29 = vadd.f32 %v12869_v8, %v12992_v34 }
0x136c   : > { %8702 = vmatmul.msk.bf16.vlgmr.msra.gmra.mxu0 %vm1214_vm0, %v12581_v32  ;;  %8705 = vmatmul.msk.bf16.vlgmr.msrb.gmra.mxu3 %vm1214_vm0, %v12581_v32 }
0x136d   : > { %8708 = vmatmul.msk.bf16.vlgmr.msra.gmra.mxu2 %vm1214_vm0, %v12581_v32  ;;  %8711 = vmatmul.msk.bf16.vlgmr.msra.gmra.mxu1 %vm1214_vm0, %v12581_v32  ;;  %v9436_v32 = vld [vmem:[%s13670_s26 + $0x50] sm:$0xff] }
0x136e   : > { %7281 = vmatpush.bf16.msra.mxu3 %v9436_v32  ;;  %7371 = vmatpush.bf16.msra.mxu2 %v9481_v48  ;;  %v6376_v32 = vmax.f32 %v6070_v54, 0.0  ;;  %v9469_v48 = vld [vmem:[%s13670_s26 + $0x158] sm:$0xff] }
0x136f   : > { %v12896_v40 = vpop.f32.mrf.mxu3  ;;  %7390 = vmatpush.bf16.msra.mxu1 %v9489_v45  ;;  %v9477_v45 = vld [vmem:[%s13670_s26 + $0x198] sm:$0xff] }
0x1370   : > { %v12898_v52 = vpop.f32.mrf.mxu2 }
0x1371   : > { %v12909_v1 = vpop.f32.mrf.mxu0  ;;  %v6050_v8 = vadd.f32 %v12898_v52, %v13012_v30  ;;  %v9458_v52 = vld [vmem:[%s13670_s26 + $0x100] sm:$0xff] }
0x1372   : > { %v12914_v10 = vpop.f32.mrf.mxu1  ;;  %7282 = vmatpush.bf16.msra.mxu3 %v9435_v46  ;;  %7372 = vmatpush.bf16.msra.mxu2 %v9480_v19  ;;  %v6358_v46 = vmax.f32 %v6022_v44, 0.0  ;;  %v6006_v5 = vadd.f32 %v12909_v1, %v12992_v34  ;;  %v6027_v1 = vadd.f32 %v12896_v40, %v12995_v47  ;;  %v9483_v40 = vld [vmem:[%s13670_s26 + $0x1c8] sm:$0xff] }
0x1373   : > { %7391 = vmatpush.bf16.msra.mxu1 %v9488_v7  ;;  %v9460_v7 = vld [vmem:[%s13670_s26 + $0x110] sm:$0xff] }
0x1376   : > { %7283 = vmatpush.bf16.msra.mxu3 %v9434_v18  ;;  %7373 = vmatpush.bf16.msra.mxu2 %v9479_v38 }
0x1377   : > { %v12928_v15 = vpop.f32.mrf.mxu3  ;;  %7392 = vmatpush.bf16.msra.mxu1 %v9487_v20  ;;  %v6405_v20 = vmax.f32 %v6006_v5, 0.0 }
0x1378   : > { %v12930_v22 = vpop.f32.mrf.mxu2  ;;  %v6029_v44 = vadd.f32 %v12928_v15, %v12995_v47  ;;  %v9459_v15 = vld [vmem:[%s13670_s26 + $0x108] sm:$0xff] }
0x1379   : > { %v12941_v39 = vpop.f32.mrf.mxu0  ;;  %v6052_v38 = vadd.f32 %v12930_v22, %v13012_v30  ;;  %v6073_v22 = vadd.f32 %v12874_v58, %v13009_v62 }
0x137a   : > { %v12946_v37 = vpop.f32.mrf.mxu1  ;;  %7352 = vmatpush.bf16.msrb.mxu3 %v9473_v42  ;;  %7374 = vmatpush.bf16.msra.mxu2 %v9478_v41  ;;  %v9461_v42 = vld [vmem:[%s13670_s26 + $0x118] sm:$0xff] }
0x137b   : > { %7393 = vmatpush.bf16.msra.mxu1 %v9486_v11  ;;  %v9482_v11 = vld [vmem:[%s13670_s26 + $0x1c0] sm:$0xff] }
0x137c   : > { %8703 = vmatmul.msk.bf16.gmra.mxu0 %vm1214_vm0, %v12641_v23  ;;  %8706 = vmatmul.msk.bf16.gmra.mxu3 %vm1214_vm0, %v12641_v23 }
0x137d   : > { %8709 = vmatmul.msk.bf16.gmra.mxu2 %vm1214_vm0, %v12641_v23  ;;  %8712 = vmatmul.msk.bf16.gmra.mxu1 %vm1214_vm0, %v12641_v23  ;;  %v9465_v23 = vld [vmem:[%s13670_s26 + $0x138] sm:$0xff] }
0x137e   : > { %7333 = vmatpush.bf16.msra.mxu0 %v9465_v23  ;;  %7353 = vmatpush.bf16.msrb.mxu3 %v9472_v59  ;;  %v6439_v23 = vpack.c.bf16 %v6375_v43, %v6359_v0  ;;  %v6391_v0 = vmax.f32 %v6050_v8, 0.0  ;;  %v13180_v8 = vperm.slane %v12980_v33, 4 }
0x137f   : > { %v12956_v16 = vpop.f32.mrf.mxu3  ;;  %7375 = vmatpush.bf16.msra.mxu2 %v9477_v45 }
0x1380   : > { %v12958_v6 = vpop.f32.mrf.mxu2 }
0x1381   : > { %v6010_v49 = vpop.f32.mrf.mxu0  ;;  %v6055_v5 = vadd.f32 %v12958_v6, %v13012_v30  ;;  %v9505_v6 = vld [vmem:[%s13670_s26 + $0x278] sm:$0xff] }
0x1382   : > { %v6079_v27 = vpop.f32.mrf.mxu1  ;;  %7354 = vmatpush.bf16.msrb.mxu3 %v9471_v9  ;;  %v6437_v49 = vpack.c.bf16 %v6373_v21, %v6357_v25  ;;  %v6075_v9 = vadd.f32 %v12914_v10, %v13009_v62  ;;  %v9475_v10 = vld [vmem:[%s13670_s26 + $0x188] sm:$0xff]  ;;  %v6406_v21 = vmax.f32 %v6029_v44, 0.0  ;;  %v6389_v25 = vmax.f32 %v6004_v29, 0.0  ;;  %v9521_v30 = vld [vmem:[%s13670_s26 + $0x2f8] sm:$0xff] }
0x1383   : > { %v6438_v27 = vpack.c.bf16 %v6374_v28, %v6358_v46  ;;  %7376 = vmatpush.bf16.msra.mxu2 %v9476_v61  ;;  %v6390_v46 = vmax.f32 %v6027_v1, 0.0  ;;  %v6423_v29 = vmax.f32 %v6055_v5, 0.0  ;;  %v9502_v5 = vld [vmem:[%s13670_s26 + $0x260] sm:$0xff] }
0x1384   : > { %v6408_v28 = vmax.f32 %v6075_v9, 0.0 }
0x1386   : > { %7355 = vmatpush.bf16.msrb.mxu3 %v9470_v57  ;;  %v9474_v57 = vld [vmem:[%s13670_s26 + $0x180] sm:$0xff] }
0x1387   : > { %v6033_v13 = vpop.f32.mrf.mxu3  ;;  %7377 = vmatpush.bf16.msra.mxu2 %v9475_v10 }
0x1388   : > { %v6056_v36 = vpop.f32.mrf.mxu2 }
0x1389   : > { %v12960_v31 = vpop.f32.mrf.mxu0  ;;  %v6440_v36 = vpack.c.bf16 %v6376_v32, %v6360_v35  ;;  %v6407_v32 = vmax.f32 %v6052_v38, 0.0  ;;  %v6392_v35 = vmax.f32 %v6073_v22, 0.0 }
0x138a   : > { %v12962_v3 = vpop.f32.mrf.mxu1  ;;  %7356 = vmatpush.bf16.msrb.mxu3 %v9469_v48 }
0x138b   : > { %7378 = vmatpush.bf16.msra.mxu2 %v9474_v57 }
0x138c   : > { %8704 = vmatmul.msk.bf16.gmra.mxu0 %vm1214_vm0, %v12654_v14  ;;  %8707 = vmatmul.msk.bf16.gmra.mxu3 %vm1214_vm0, %v12654_v14 }
0x138d   : > { %8710 = vmatmul.msk.bf16.gmra.mxu2 %vm1214_vm0, %v12654_v14  ;;  %8713 = vmatmul.msk.bf16.gmra.mxu1 %vm1214_vm0, %v12654_v14  ;;  %v9464_v14 = vld [vmem:[%s13670_s26 + $0x130] sm:$0xff] }
0x138e   : > { %7334 = vmatpush.bf16.msra.mxu0 %v9464_v14  ;;  %v9485_v14 = vld [vmem:[%s13670_s26 + $0x1d8] sm:$0xff]  ;;  %7357 = vmatpush.bf16.msrb.mxu3 %v9468_v26  ;;  %v6032_v26 = vadd.f32 %v12956_v16, %v12995_v47  ;;  %v6471_v47 = vpack.c.bf16 %v6423_v29, %v6423_v29 }
0x138f   : > { %v12989_v60 = vpop.f32.mrf.mxu3  ;;  %7394 = vmatpush.bf16.msra.mxu1 %v9485_v14 }
0x1390   : > { %v12997_v17 = vpop.f32.mrf.mxu2  ;;  %v6422_v9 = vmax.f32 %v6032_v26, 0.0 }
0x1391   : > { %v13014_v56 = vpop.f32.mrf.mxu0 }
0x1392   : > { %v13023_v53 = vpop.f32.mrf.mxu1  ;;  %7335 = vmatpush.bf16.msra.mxu0 %v9463_v50  ;;  %7358 = vmatpush.bf16.msrb.mxu3 %v9467_v2  ;;  %v6093_v57 = vadd.f32 %v13014_v56, %v13180_v8 }
0x1393   : > { %7395 = vmatpush.bf16.msra.mxu1 %v9484_v12  ;;  %v6078_v12 = vadd.f32 %v12946_v37, %v13009_v62  ;;  %v9497_v37 = vld [vmem:[%s13670_s26 + $0x238] sm:$0xff] }
0x1394   : > { %v9513_v62 = vld [vmem:[%s13670_s26 + $0x2b8] sm:$0xff] }
0x1395   : > { %v6424_v38 = vmax.f32 %v6078_v12, 0.0 }
0x1396   : > { %7336 = vmatpush.bf16.msra.mxu0 %v9462_v24  ;;  %v9466_v24 = vld [vmem:[%s13670_s26 + $0x140] sm:$0xff] }
0x1397   : > { %v13049_v63 = vpop.f32.mrf.mxu3  ;;  %7396 = vmatpush.bf16.msra.mxu1 %v9483_v40  ;;  %7359 = vmatpush.bf16.msrb.mxu3 %v9466_v24  ;;  %v6472_v16 = vpack.c.bf16 %v6424_v38, %v6424_v38  ;;  %v13183_v40 = vperm.slane %v12980_v33, 5  ;;  %v9520_v24 = vld [vmem:[%s13670_s26 + $0x2f0] sm:$0xff] }
0x1398   : > { %v13051_v55 = vpop.f32.mrf.mxu2 }
0x1399   : > { %v13059_v18 = vpop.f32.mrf.mxu0  ;;  %v6114_v56 = vadd.f32 %v12989_v60, %v13183_v40  ;;  %v9519_v60 = vld [vmem:[%s13670_s26 + $0x2e8] sm:$0xff] }
0x139a   : > { %v13067_v13 = vpop.f32.mrf.mxu1  ;;  %7337 = vmatpush.bf16.msra.mxu0 %v9461_v42  ;;  %v6456_v42 = vpack.c.bf16 %v6408_v28, %v6392_v35  ;;  %v9504_v28 = vld [vmem:[%s13670_s26 + $0x270] sm:$0xff]  ;;  %v6116_v35 = vadd.f32 %v13049_v63, %v13183_v40  ;;  %v9495_v63 = vld [vmem:[%s13670_s26 + $0x228] sm:$0xff] }
0x139b   : > { %7397 = vmatpush.bf16.msra.mxu1 %v9482_v11  ;;  %v6362_v12 = vmax.f32 %v6114_v56, 0.0 }
0x139c   : > { %7265 = vmatmul.bf16.vlgmr.msrb.gmra.mxu0 %v6437_v49  ;;  %7284 = vmatmul.bf16.vlgmr.msra.gmra.mxu3 %v6438_v27  ;;  %v6453_v27 = vpack.c.bf16 %v6405_v20, %v6389_v25  ;;  %v13197_v25 = vperm.slane %v12980_v33, 7 }
0x139d   : > { %7303 = vmatmul.bf16.vlgmr.msrb.gmra.mxu2 %v6439_v23  ;;  %7322 = vmatmul.bf16.vlgmr.msrb.gmra.mxu1 %v6440_v36  ;;  %v6454_v36 = vpack.c.bf16 %v6406_v21, %v6390_v46  ;;  %v6455_v23 = vpack.c.bf16 %v6407_v32, %v6391_v0  ;;  %v9496_v21 = vld [vmem:[%s13670_s26 + $0x230] sm:$0xff]  ;;  %v13200_v46 = vperm.slane %v12980_v33, 6 }
0x139e   : > { %7338 = vmatpush.bf16.msra.mxu0 %v9460_v7  ;;  %v6009_v7 = vadd.f32 %v12941_v39, %v12992_v34  ;;  %v6470_v39 = vpack.c.bf16 %v6422_v9, %v6422_v9  ;;  %7428 = vmatpush.bf16.msra.mxu3 %v9505_v6  ;;  %v9512_v32 = vld [vmem:[%s13670_s26 + $0x2b0] sm:$0xff]  ;;  %v6162_v33 = vadd.f32 %v13023_v53, %v13197_v25  ;;  %v9511_v53 = vld [vmem:[%s13670_s26 + $0x2a8] sm:$0xff]  ;;  %v9501_v6 = vld [vmem:[%s13670_s26 + $0x258] sm:$0xff] }
0x139f   : > { %v13081_v59 = vpop.f32.mrf.mxu3  ;;  %7447 = vmatpush.bf16.msrb.mxu2 %v9513_v62  ;;  %7466 = vmatpush.bf16.msrb.mxu1 %v9521_v30  ;;  %v6139_v11 = vadd.f32 %v13051_v55, %v13200_v46  ;;  %v6160_v55 = vadd.f32 %v12962_v3, %v13197_v25  ;;  %v9509_v62 = vld [vmem:[%s13670_s26 + $0x298] sm:$0xff] }
0x13a0   : > { %v13083_v19 = vpop.f32.mrf.mxu2  ;;  %v6421_v44 = vmax.f32 %v6009_v7, 0.0  ;;  %v9517_v30 = vld [vmem:[%s13670_s26 + $0x2d8] sm:$0xff] }
0x13a1   : > { %v13094_v54 = vpop.f32.mrf.mxu0  ;;  %v6379_v7 = vmax.f32 %v6139_v11, 0.0  ;;  %v6364_v9 = vmax.f32 %v6160_v55, 0.0  ;;  %v9499_v55 = vld [vmem:[%s13670_s26 + $0x248] sm:$0xff] }
0x13a2   : > { %v13103_v50 = vpop.f32.mrf.mxu1  ;;  %7339 = vmatpush.bf16.msra.mxu0 %v9459_v15  ;;  %v6469_v10 = vpack.c.bf16 %v6421_v44, %v6421_v44  ;;  %7429 = vmatpush.bf16.msra.mxu3 %v9504_v28  ;;  %v9510_v44 = vld [vmem:[%s13670_s26 + $0x2a0] sm:$0xff]  ;;  %v6098_v11 = vadd.f32 %v13094_v54, %v13180_v8  ;;  %v6119_v54 = vadd.f32 %v13081_v59, %v13183_v40  ;;  %v9515_v59 = vld [vmem:[%s13670_s26 + $0x2c8] sm:$0xff] }
0x13a3   : > { %7448 = vmatpush.bf16.msrb.mxu2 %v9512_v32  ;;  %7467 = vmatpush.bf16.msrb.mxu1 %v9520_v24  ;;  %v9492_v32 = vld [vmem:[%s13670_s26 + $0x210] sm:$0xff] }
0x13a4   : > { %v9500_v24 = vld [vmem:[%s13670_s26 + $0x250] sm:$0xff] }
0x13a6   : > { %7340 = vmatpush.bf16.msra.mxu0 %v9458_v52 }
0x13a7   : > { %v13129_v43 = vpop.f32.mrf.mxu3  ;;  %7449 = vmatpush.bf16.msrb.mxu2 %v9511_v53  ;;  %7468 = vmatpush.bf16.msrb.mxu1 %v9519_v60  ;;  %v6096_v53 = vadd.f32 %v13059_v18, %v13180_v8  ;;  %v6142_v18 = vadd.f32 %v13083_v19, %v13200_v46  ;;  %v9490_v19 = vld [vmem:[%s13670_s26 + $0x200] sm:$0xff] }
0x13a8   : > { %v13131_v58 = vpop.f32.mrf.mxu2 }
0x13a9   : > { %v13142_v41 = vpop.f32.mrf.mxu0 }
0x13aa   : > { %v13147_v49 = vpop.f32.mrf.mxu1  ;;  %7409 = vmatpush.bf16.msrb.mxu0 %v9497_v37  ;;  %v9493_v37 = vld [vmem:[%s13670_s26 + $0x218] sm:$0xff] }
0x13ab   : > { %7450 = vmatpush.bf16.msrb.mxu2 %v9510_v44  ;;  %v6395_v44 = vmax.f32 %v6142_v18, 0.0 }
0x13ac   : > { %7269 = vmatmul.bf16.gmra.mxu0 %v6453_v27  ;;  %7288 = vmatmul.bf16.gmra.mxu3 %v6454_v36  ;;  %v6091_v27 = vadd.f32 %v12960_v31, %v13180_v8  ;;  %v9503_v36 = vld [vmem:[%s13670_s26 + $0x268] sm:$0xff]  ;;  %v6137_v31 = vadd.f32 %v12997_v17, %v13200_v46  ;;  %v9494_v17 = vld [vmem:[%s13670_s26 + $0x220] sm:$0xff] }
0x13ad   : > { %7307 = vmatmul.bf16.gmra.mxu2 %v6455_v23  ;;  %7326 = vmatmul.bf16.gmra.mxu1 %v6456_v42  ;;  %v6377_v23 = vmax.f32 %v6093_v57, 0.0  ;;  %v6378_v42 = vmax.f32 %v6116_v35, 0.0  ;;  %v9508_v57 = vld [vmem:[%s13670_s26 + $0x290] sm:$0xff] }
0x13ae   : > { %7410 = vmatpush.bf16.msrb.mxu0 %v9496_v21  ;;  %7430 = vmatpush.bf16.msra.mxu3 %v9503_v36  ;;  %v6363_v38 = vmax.f32 %v6137_v31, 0.0  ;;  %v6144_v36 = vadd.f32 %v13131_v58, %v13200_v46  ;;  %v6165_v58 = vadd.f32 %v13067_v13, %v13197_v25  ;;  %v6409_v31 = vmax.f32 %v6098_v11, 0.0 }
0x13af   : > { %v13149_v48 = vpop.f32.mrf.mxu3  ;;  %7451 = vmatpush.bf16.msrb.mxu2 %v9509_v62 }
0x13b0   : > { %v13151_v45 = vpop.f32.mrf.mxu2 }
0x13b1   : > { %v6102_v14 = vpop.f32.mrf.mxu0 }
0x13b2   : > { %v6171_v61 = vpop.f32.mrf.mxu1  ;;  %7411 = vmatpush.bf16.msrb.mxu0 %v9495_v63  ;;  %v6380_v14 = vmax.f32 %v6162_v33, 0.0  ;;  %7431 = vmatpush.bf16.msra.mxu3 %v9502_v5  ;;  %v9516_v33 = vld [vmem:[%s13670_s26 + $0x2d0] sm:$0xff]  ;;  %v6167_v63 = vadd.f32 %v13103_v50, %v13197_v25  ;;  %v9507_v50 = vld [vmem:[%s13670_s26 + $0x288] sm:$0xff]  ;;  %v6396_v5 = vmax.f32 %v6165_v58, 0.0 }
0x13b3   : > { %v6361_v61 = vmax.f32 %v6091_v27, 0.0  ;;  %v6121_v27 = vadd.f32 %v13129_v43, %v13183_v40  ;;  %7452 = vmatpush.bf16.msrb.mxu2 %v9508_v57  ;;  %v9491_v43 = vld [vmem:[%s13670_s26 + $0x208] sm:$0xff]  ;;  %v6170_v57 = vadd.f32 %v13147_v49, %v13197_v25  ;;  %v9529_v49 = vld [vmem:[%s13670_s26 + $0x338] sm:$0xff] }
0x13b4   : > { %v9545_v25 = vld [vmem:[%s13670_s26 + $0x3b8] sm:$0xff] }
0x13b5   : > { %v6410_v60 = vmax.f32 %v6121_v27, 0.0 }
0x13b6   : > { %7412 = vmatpush.bf16.msrb.mxu0 %v9494_v17  ;;  %7432 = vmatpush.bf16.msra.mxu3 %v9501_v6  ;;  %v9506_v17 = vld [vmem:[%s13670_s26 + $0x280] sm:$0xff] }
0x13b7   : > { %v6125_v1 = vpop.f32.mrf.mxu3  ;;  %7453 = vmatpush.bf16.msrb.mxu2 %v9507_v50  ;;  %v9553_v50 = vld [vmem:[%s13670_s26 + $0x3f8] sm:$0xff] }
0x13b8   : > { %v6148_v15 = vpop.f32.mrf.mxu2  ;;  %v9518_v1 = vld [vmem:[%s13670_s26 + $0x2e0] sm:$0xff] }
0x13b9   : > { %v13161_v2 = vpop.f32.mrf.mxu0  ;;  %v6441_v15 = vpack.c.bf16 %v6377_v23, %v6361_v61  ;;  %7469 = vmatpush.bf16.msrb.mxu1 %v9518_v1  ;;  %v6412_v23 = vmax.f32 %v6167_v63, 0.0  ;;  %v6394_v61 = vmax.f32 %v6119_v54, 0.0  ;;  %v6428_v63 = vmax.f32 %v6170_v57, 0.0 }
0x13ba   : > { %v13163_v34 = vpop.f32.mrf.mxu1  ;;  %7413 = vmatpush.bf16.msrb.mxu0 %v9493_v37  ;;  %7433 = vmatpush.bf16.msra.mxu3 %v9500_v24 }
0x13bb   : > { %7454 = vmatpush.bf16.msrb.mxu2 %v9506_v17 }
0x13bc   : > { %7272 = vmatmul.bf16.gmra.mxu0 %v6469_v10  ;;  %7291 = vmatmul.bf16.gmra.mxu3 %v6470_v39  ;;  %v6442_v10 = vpack.c.bf16 %v6378_v42, %v6362_v12  ;;  %v6411_v42 = vmax.f32 %v6144_v36, 0.0  ;;  %v9498_v12 = vld [vmem:[%s13670_s26 + $0x240] sm:$0xff] }
0x13bd   : > { %7310 = vmatmul.bf16.gmra.mxu2 %v6471_v47  ;;  %7329 = vmatmul.bf16.gmra.mxu1 %v6472_v16  ;;  %v6444_v16 = vpack.c.bf16 %v6380_v14, %v6364_v9  ;;  %v6443_v47 = vpack.c.bf16 %v6379_v7, %v6363_v38  ;;  %v6393_v7 = vmax.f32 %v6096_v53, 0.0  ;;  %v9514_v38 = vld [vmem:[%s13670_s26 + $0x2c0] sm:$0xff] }
0x13be   : > { %7470 = vmatpush.bf16.msrb.mxu1 %v9517_v30  ;;  %7414 = vmatpush.bf16.msrb.mxu0 %v9492_v32  ;;  %v6101_v30 = vadd.f32 %v13142_v41, %v13180_v8  ;;  %v6124_v32 = vadd.f32 %v13149_v48, %v13183_v40  ;;  %v6476_v48 = vpack.c.bf16 %v6428_v63, %v6428_v63 }
0x13bf   : > { %v13177_v22 = vpop.f32.mrf.mxu3  ;;  %7434 = vmatpush.bf16.msra.mxu3 %v9499_v55 }
0x13c0   : > { %v13185_v20 = vpop.f32.mrf.mxu2  ;;  %v6425_v11 = vmax.f32 %v6101_v30, 0.0  ;;  %v6426_v27 = vmax.f32 %v6124_v32, 0.0 }
0x13c1   : > { %v13202_v52 = vpop.f32.mrf.mxu0 }
0x13c2   : > { %v13211_v0 = vpop.f32.mrf.mxu1  ;;  %7471 = vmatpush.bf16.msrb.mxu1 %v9516_v33  ;;  %7415 = vmatpush.bf16.msrb.mxu0 %v9491_v43  ;;  %v6147_v33 = vadd.f32 %v13151_v45, %v13200_v46  ;;  %v6473_v55 = vpack.c.bf16 %v6425_v11, %v6425_v11  ;;  %v6474_v41 = vpack.c.bf16 %v6426_v27, %v6426_v27  ;;  %v9537_v45 = vld [vmem:[%s13670_s26 + $0x378] sm:$0xff]  ;;  %v13365_v46 = vld [vmem:[%s13669_s25 + $0x8] sm:$0xff]  ;;  %v9534_v11 = vld [vmem:[%s13670_s26 + $0x360] sm:$0xff] }
0x13c3   : > { %7435 = vmatpush.bf16.msra.mxu3 %v9498_v12  ;;  %v13373_v18 = vperm.slane %v13365_v46, 0  ;;  %v9552_v12 = vld [vmem:[%s13670_s26 + $0x3f0] sm:$0xff] }
0x13c4   : > { %v6427_v36 = vmax.f32 %v6147_v33, 0.0 }
0x13c5   : > { %v6185_v17 = vadd.f32 %v13202_v52, %v13373_v18 }
0x13c6   : > { %7472 = vmatpush.bf16.msrb.mxu1 %v9515_v59  ;;  %7416 = vmatpush.bf16.msrb.mxu0 %v9490_v19  ;;  %v6475_v40 = vpack.c.bf16 %v6427_v36, %v6427_v36  ;;  %v13376_v59 = vperm.slane %v13365_v46, 1 }
0x13c7   : > { %v13237_v26 = vpop.f32.mrf.mxu3 }
0x13c8   : > { %v13239_v3 = vpop.f32.mrf.mxu2  ;;  %v6206_v52 = vadd.f32 %v13177_v22, %v13376_v59  ;;  %v9551_v22 = vld [vmem:[%s13670_s26 + $0x3e8] sm:$0xff] }
0x13c9   : > { %v13250_v29 = vpop.f32.mrf.mxu0 }
0x13ca   : > { %v13255_v39 = vpop.f32.mrf.mxu1  ;;  %7473 = vmatpush.bf16.msrb.mxu1 %v9514_v38  ;;  %v6366_v33 = vmax.f32 %v6206_v52, 0.0 }
0x13cc   : > { %7341 = vmatmul.bf16.vlgmr.msra.gmra.mxu0 %v6441_v15  ;;  %7360 = vmatmul.bf16.vlgmr.msrb.gmra.mxu3 %v6442_v10  ;;  %v6457_v15 = vpack.c.bf16 %v6409_v31, %v6393_v7  ;;  %v6458_v10 = vpack.c.bf16 %v6410_v60, %v6394_v61  ;;  %v9528_v60 = vld [vmem:[%s13670_s26 + $0x330] sm:$0xff]  ;;  %v13390_v7 = vperm.slane %v13365_v46, 3  ;;  %v13393_v61 = vperm.slane %v13365_v46, 2 }
0x13cd   : > { %7379 = vmatmul.bf16.vlgmr.msra.gmra.mxu2 %v6443_v47  ;;  %7398 = vmatmul.bf16.vlgmr.msra.gmra.mxu1 %v6444_v16  ;;  %v6459_v16 = vpack.c.bf16 %v6411_v42, %v6395_v44  ;;  %v6460_v47 = vpack.c.bf16 %v6412_v23, %v6396_v5  ;;  %v9536_v23 = vld [vmem:[%s13670_s26 + $0x370] sm:$0xff]  ;;  %v6208_v5 = vadd.f32 %v13237_v26, %v13376_v59  ;;  %v9527_v26 = vld [vmem:[%s13670_s26 + $0x328] sm:$0xff] }
0x13ce   : > { %7485 = vmatpush.bf16.msra.mxu0 %v9529_v49  ;;  %7504 = vmatpush.bf16.msrb.mxu3 %v9537_v45  ;;  %v9544_v42 = vld [vmem:[%s13670_s26 + $0x3b0] sm:$0xff]  ;;  %v6254_v38 = vadd.f32 %v13211_v0, %v13390_v7  ;;  %v9543_v0 = vld [vmem:[%s13670_s26 + $0x3a8] sm:$0xff]  ;;  %v9525_v45 = vld [vmem:[%s13670_s26 + $0x318] sm:$0xff] }
0x13cf   : > { %v13269_v21 = vpop.f32.mrf.mxu3  ;;  %7523 = vmatpush.bf16.msra.mxu2 %v9545_v25  ;;  %7542 = vmatpush.bf16.msra.mxu1 %v9553_v50  ;;  %v9533_v25 = vld [vmem:[%s13670_s26 + $0x358] sm:$0xff] }
0x13d0   : > { %v13271_v28 = vpop.f32.mrf.mxu2  ;;  %v6384_v30 = vmax.f32 %v6254_v38, 0.0  ;;  %v9541_v50 = vld [vmem:[%s13670_s26 + $0x398] sm:$0xff] }
0x13d1   : > { %v13282_v35 = vpop.f32.mrf.mxu0 }
0x13d2   : > { %v13291_v56 = vpop.f32.mrf.mxu1  ;;  %7486 = vmatpush.bf16.msra.mxu0 %v9528_v60  ;;  %7505 = vmatpush.bf16.msrb.mxu3 %v9536_v23  ;;  %v9549_v60 = vld [vmem:[%s13670_s26 + $0x3d8] sm:$0xff] }
0x13d3   : > { %7524 = vmatpush.bf16.msra.mxu2 %v9544_v42  ;;  %7543 = vmatpush.bf16.msra.mxu1 %v9552_v12  ;;  %v9524_v12 = vld [vmem:[%s13670_s26 + $0x310] sm:$0xff] }
0x13d6   : > { %7487 = vmatpush.bf16.msra.mxu0 %v9527_v26 }
0x13d7   : > { %v13317_v14 = vpop.f32.mrf.mxu3  ;;  %7525 = vmatpush.bf16.msra.mxu2 %v9543_v0  ;;  %7544 = vmatpush.bf16.msra.mxu1 %v9551_v22  ;;  %v9531_v0 = vld [vmem:[%s13670_s26 + $0x348] sm:$0xff]  ;;  %v6188_v22 = vadd.f32 %v13250_v29, %v13373_v18 }
0x13d8   : > { %v13319_v13 = vpop.f32.mrf.mxu2  ;;  %v6213_v52 = vadd.f32 %v13317_v14, %v13376_v59  ;;  %v9539_v14 = vld [vmem:[%s13670_s26 + $0x388] sm:$0xff] }
0x13d9   : > { %v13330_v9 = vpop.f32.mrf.mxu0  ;;  %v6397_v29 = vmax.f32 %v6188_v22, 0.0 }
0x13da   : > { %v13335_v1 = vpop.f32.mrf.mxu1 }
0x13dc   : > { %7345 = vmatmul.bf16.gmra.mxu0 %v6457_v15  ;;  %7364 = vmatmul.bf16.gmra.mxu3 %v6458_v10  ;;  %v6231_v15 = vadd.f32 %v13239_v3, %v13393_v61  ;;  %v6183_v10 = vadd.f32 %v13161_v2, %v13373_v18  ;;  %v6252_v3 = vadd.f32 %v13163_v34, %v13390_v7 }
0x13dd   : > { %7383 = vmatmul.bf16.gmra.mxu2 %v6459_v16  ;;  %7402 = vmatmul.bf16.gmra.mxu1 %v6460_v47  ;;  %v9535_v16 = vld [vmem:[%s13670_s26 + $0x368] sm:$0xff]  ;;  %v6229_v2 = vadd.f32 %v13185_v20, %v13393_v61  ;;  %v6381_v47 = vmax.f32 %v6185_v17, 0.0  ;;  %v9526_v20 = vld [vmem:[%s13670_s26 + $0x320] sm:$0xff]  ;;  %v9532_v17 = vld [vmem:[%s13670_s26 + $0x350] sm:$0xff] }
0x13de   : > { %7506 = vmatpush.bf16.msrb.mxu3 %v9535_v16  ;;  %v6383_v32 = vmax.f32 %v6231_v15, 0.0  ;;  %v6365_v57 = vmax.f32 %v6183_v10, 0.0  ;;  %v6368_v27 = vmax.f32 %v6252_v3, 0.0  ;;  %7488 = vmatpush.bf16.msra.mxu0 %v9526_v20  ;;  %v9548_v15 = vld [vmem:[%s13670_s26 + $0x3d0] sm:$0xff]  ;;  %v6190_v10 = vadd.f32 %v13282_v35, %v13373_v18  ;;  %v9523_v16 = vld [vmem:[%s13670_s26 + $0x308] sm:$0xff] }
0x13df   : > { %v13337_v37 = vpop.f32.mrf.mxu3  ;;  %v6367_v63 = vmax.f32 %v6229_v2, 0.0  ;;  %v6259_v3 = vadd.f32 %v13291_v56, %v13390_v7  ;;  %v6236_v35 = vadd.f32 %v13319_v13, %v13393_v61  ;;  %v9547_v2 = vld [vmem:[%s13670_s26 + $0x3c8] sm:$0xff]  ;;  %v6257_v56 = vadd.f32 %v13255_v39, %v13390_v7  ;;  %v9522_v39 = vld [vmem:[%s13670_s26 + $0x300] sm:$0xff] }
0x13e0   : > { %v13339_v6 = vpop.f32.mrf.mxu2  ;;  %v6234_v13 = vadd.f32 %v13271_v28, %v13393_v61  ;;  %v9538_v28 = vld [vmem:[%s13670_s26 + $0x380] sm:$0xff] }
0x13e1   : > { %v6194_v62 = vpop.f32.mrf.mxu0  ;;  %v6447_v49 = vpack.c.bf16 %v6383_v32, %v6367_v63  ;;  %v6416_v32 = vmax.f32 %v6259_v3, 0.0 }
0x13e2   : > { %v6263_v24 = vpop.f32.mrf.mxu1  ;;  %v6382_v62 = vmax.f32 %v6208_v5, 0.0  ;;  %7507 = vmatpush.bf16.msrb.mxu3 %v9534_v11  ;;  %7489 = vmatpush.bf16.msra.mxu0 %v9525_v45  ;;  %v9540_v5 = vld [vmem:[%s13670_s26 + $0x390] sm:$0xff]  ;;  %v6399_v63 = vmax.f32 %v6234_v13, 0.0 }
0x13e6   : > { %7508 = vmatpush.bf16.msrb.mxu3 %v9533_v25  ;;  %7490 = vmatpush.bf16.msra.mxu0 %v9524_v12  ;;  %v6193_v12 = vadd.f32 %v13330_v9, %v13373_v18  ;;  %v9707_v9 = vld [vmem:[%s13671_s27] ss:$0 sm:$0xff] }
0x13e7   : > { %v6217_v53 = vpop.f32.mrf.mxu3 }
0x13e8   : > { %v6240_v54 = vpop.f32.mrf.mxu2  ;;  %v9542_v53 = vld [vmem:[%s13670_s26 + $0x3a0] sm:$0xff] }
0x13e9   : > { %v13349_v43 = vpop.f32.mrf.mxu0  ;;  %v9550_v54 = vld [vmem:[%s13670_s26 + $0x3e0] sm:$0xff]  ;;  %7526 = vmatpush.bf16.msra.mxu2 %v9542_v53 }
0x13ea   : > { %v13351_v8 = vpop.f32.mrf.mxu1  ;;  %7545 = vmatpush.bf16.msra.mxu1 %v9550_v54  ;;  %7509 = vmatpush.bf16.msrb.mxu3 %v9532_v17  ;;  %v9546_v54 = vld [vmem:[%s13670_s26 + $0x3c0] sm:$0xff]  ;;  %v6216_v17 = vadd.f32 %v13337_v37, %v13376_v59 }
0x13eb   : > { %7491 = vmatpush.bf16.msra.mxu0 %v9523_v16 }
0x13ec   : > { %7348 = vmatmul.bf16.gmra.mxu0 %v6473_v55  ;;  %7367 = vmatmul.bf16.gmra.mxu3 %v6474_v41  ;;  %v6445_v55 = vpack.c.bf16 %v6381_v47, %v6365_v57  ;;  %v6446_v41 = vpack.c.bf16 %v6382_v62, %v6366_v33  ;;  %v6211_v47 = vadd.f32 %v13269_v21, %v13376_v59  ;;  %v6413_v62 = vmax.f32 %v6190_v10, 0.0  ;;  %v9530_v21 = vld [vmem:[%s13670_s26 + $0x340] sm:$0xff] }
0x13ed   : > { %7386 = vmatmul.bf16.gmra.mxu2 %v6475_v40  ;;  %7405 = vmatmul.bf16.gmra.mxu1 %v6476_v48  ;;  %v6448_v40 = vpack.c.bf16 %v6384_v30, %v6368_v27  ;;  %v6414_v30 = vmax.f32 %v6213_v52, 0.0  ;;  %v6415_v57 = vmax.f32 %v6236_v35, 0.0  ;;  %v6400_v27 = vmax.f32 %v6257_v56, 0.0 }
0x13ee   : > { %7527 = vmatpush.bf16.msra.mxu2 %v9541_v50  ;;  %7546 = vmatpush.bf16.msra.mxu1 %v9549_v60  ;;  %v6398_v20 = vmax.f32 %v6211_v47, 0.0  ;;  %v6239_v10 = vadd.f32 %v13339_v6, %v13393_v61  ;;  %v6429_v52 = vmax.f32 %v6193_v12, 0.0  ;;  %v6430_v16 = vmax.f32 %v6216_v17, 0.0 }
0x13ef   : > { %v13370_v58 = vpop.f32.mrf.mxu3  ;;  %7510 = vmatpush.bf16.msrb.mxu3 %v9531_v0  ;;  %7492 = vmatpush.bf16.msra.mxu0 %v9522_v39  ;;  %v6464_v45 = vpack.c.bf16 %v6416_v32, %v6400_v27  ;;  %v13549_v61 = vperm.slane %v13365_v46, 5 }
0x13f0   : > { %v13378_v31 = vpop.f32.mrf.mxu2  ;;  %v6431_v3 = vmax.f32 %v6239_v10, 0.0  ;;  %v6477_v22 = vpack.c.bf16 %v6429_v52, %v6429_v52  ;;  %v6478_v47 = vpack.c.bf16 %v6430_v16, %v6430_v16 }
0x13f1   : > { %v13395_v19 = vpop.f32.mrf.mxu0 }
0x13f2   : > { %v13404_v44 = vpop.f32.mrf.mxu1  ;;  %7528 = vmatpush.bf16.msra.mxu2 %v9540_v5  ;;  %7547 = vmatpush.bf16.msra.mxu1 %v9548_v15  ;;  %v6262_v15 = vadd.f32 %v13335_v1, %v13390_v7  ;;  %v6479_v59 = vpack.c.bf16 %v6431_v3, %v6431_v3  ;;  %v13546_v7 = vperm.slane %v13365_v46, 4 }
0x13f3   : > { %7511 = vmatpush.bf16.msrb.mxu3 %v9530_v21 }
0x13f4   : > { %v6432_v0 = vmax.f32 %v6262_v15, 0.0  ;;  %v6275_v27 = vadd.f32 %v13349_v43, %v13546_v7 }
0x13f6   : > { %7529 = vmatpush.bf16.msra.mxu2 %v9539_v14  ;;  %7548 = vmatpush.bf16.msra.mxu1 %v9547_v2  ;;  %v6480_v18 = vpack.c.bf16 %v6432_v0, %v6432_v0 }
0x13f7   : > { %v13430_v24 = vpop.f32.mrf.mxu3 }
0x13f8   : > { %v13432_v34 = vpop.f32.mrf.mxu2 }
0x13f9   : > { %v13440_v36 = vpop.f32.mrf.mxu0 }
0x13fa   : > { %v13448_v48 = vpop.f32.mrf.mxu1  ;;  %7530 = vmatpush.bf16.msra.mxu2 %v9538_v28  ;;  %7549 = vmatpush.bf16.msra.mxu1 %v9546_v54 }
0x13fc   : > { %7417 = vmatmul.bf16.vlgmr.msrb.gmra.mxu0 %v6445_v55  ;;  %7436 = vmatmul.bf16.vlgmr.msra.gmra.mxu3 %v6446_v41  ;;  %v6461_v41 = vpack.c.bf16 %v6413_v62, %v6397_v29  ;;  %v13552_v62 = vperm.slane %v13365_v46, 7  ;;  %v6300_v29 = vadd.f32 %v13430_v24, %v13549_v61 }
0x13fd   : > { %7455 = vmatmul.bf16.vlgmr.msrb.gmra.mxu2 %v6447_v49  ;;  %7474 = vmatmul.bf16.vlgmr.msrb.gmra.mxu1 %v6448_v40  ;;  %v6462_v40 = vpack.c.bf16 %v6414_v30, %v6398_v20  ;;  %v6463_v49 = vpack.c.bf16 %v6415_v57, %v6399_v63  ;;  %v13555_v30 = vperm.slane %v13365_v46, 6  ;;  %v6277_v57 = vadd.f32 %v13395_v19, %v13546_v7 }
0x13fe   : > { %v6346_v21 = vadd.f32 %v13404_v44, %v13552_v62  ;;  %v6298_v46 = vadd.f32 %v13370_v58, %v13549_v61  ;;  %v6344_v19 = vadd.f32 %v13351_v8, %v13552_v62 }
0x13ff   : > { %v13462_v23 = vpop.f32.mrf.mxu3  ;;  %v6323_v28 = vadd.f32 %v13432_v34, %v13555_v30  ;;  %v6321_v24 = vadd.f32 %v13378_v31, %v13555_v30  ;;  %v6385_v54 = vmax.f32 %v6277_v57, 0.0  ;;  %v6369_v34 = vmax.f32 %v6275_v27, 0.0 }
0x1400   : > { %v13464_v42 = vpop.f32.mrf.mxu2  ;;  %v6388_v44 = vmax.f32 %v6346_v21, 0.0  ;;  %v6372_v43 = vmax.f32 %v6344_v19, 0.0 }
0x1401   : > { %v13475_v38 = vpop.f32.mrf.mxu0  ;;  %v6371_v12 = vmax.f32 %v6321_v24, 0.0  ;;  %v6449_v58 = vpack.c.bf16 %v6385_v54, %v6369_v34 }
0x1402   : > { %v13484_v26 = vpop.f32.mrf.mxu1  ;;  %v6452_v10 = vpack.c.bf16 %v6388_v44, %v6372_v43  ;;  %v6282_v0 = vadd.f32 %v13475_v38, %v13546_v7  ;;  %v6326_v38 = vadd.f32 %v13464_v42, %v13555_v30 }
0x1407   : > { %v13510_v33 = vpop.f32.mrf.mxu3 }
0x1408   : > { %v13512_v11 = vpop.f32.mrf.mxu2  ;;  %v6305_v3 = vadd.f32 %v13510_v33, %v13549_v61  ;;  %v6417_v33 = vmax.f32 %v6282_v0, 0.0 }
0x1409   : > { %v13523_v53 = vpop.f32.mrf.mxu0 }
0x140a   : > { %v13528_v55 = vpop.f32.mrf.mxu1  ;;  %v6285_v21 = vadd.f32 %v13523_v53, %v13546_v7 }
0x140c   : > { %7421 = vmatmul.bf16.gmra.mxu0 %v6461_v41  ;;  %7440 = vmatmul.bf16.gmra.mxu3 %v6462_v40  ;;  %v6386_v41 = vmax.f32 %v6300_v29, 0.0  ;;  %v6387_v40 = vmax.f32 %v6323_v28, 0.0  ;;  %v6433_v24 = vmax.f32 %v6285_v21, 0.0 }
0x140d   : > { %7459 = vmatmul.bf16.gmra.mxu2 %v6463_v49  ;;  %7478 = vmatmul.bf16.gmra.mxu1 %v6464_v45  ;;  %v6370_v45 = vmax.f32 %v6298_v46, 0.0  ;;  %v6354_v46 = vadd.f32 %v13528_v55, %v13552_v62 }
0x140e   : > { %v6451_v52 = vpack.c.bf16 %v6387_v40, %v6371_v12 }
0x140f   : > { %v13530_v25 = vpop.f32.mrf.mxu3 }
0x1410   : > { %v13532_v50 = vpop.f32.mrf.mxu2  ;;  %v6308_v28 = vadd.f32 %v13530_v25, %v13549_v61 }
0x1411   : > { %v6286_v60 = vpop.f32.mrf.mxu0  ;;  %v6331_v19 = vadd.f32 %v13532_v50, %v13555_v30 }
0x1412   : > { %v6355_v5 = vpop.f32.mrf.mxu1  ;;  %v6434_v54 = vmax.f32 %v6308_v28, 0.0 }
0x1413   : > { %v6450_v5 = vpack.c.bf16 %v6386_v41, %v6370_v45  ;;  %v6436_v41 = vmax.f32 %v6354_v46, 0.0  ;;  %v6435_v44 = vmax.f32 %v6331_v19, 0.0  ;;  %v6481_v45 = vpack.c.bf16 %v6433_v24, %v6433_v24 }
0x1415   : > { %v6484_v25 = vpack.c.bf16 %v6436_v41, %v6436_v41 }
0x1417   : > { %v6309_v35 = vpop.f32.mrf.mxu3 }
0x1418   : > { %v6332_v14 = vpop.f32.mrf.mxu2 }
0x1419   : > { %v7266_v2 = vpop.f32.mrf.mxu0  ;;  %v6351_v14 = vadd.f32 %v13484_v26, %v13552_v62 }
0x141a   : > { %v7323_v37 = vpop.f32.mrf.mxu1  ;;  %v7267_v1 = vadd.f32 %v9707_v9, %v7266_v2  ;;  %v6328_v2 = vadd.f32 %v13512_v11, %v13555_v30  ;;  %v6349_v9 = vadd.f32 %v13448_v48, %v13552_v62 }
0x141c   : > { %7424 = vmatmul.bf16.gmra.mxu0 %v6477_v22  ;;  %7443 = vmatmul.bf16.gmra.mxu3 %v6478_v47  ;;  %v6280_v22 = vadd.f32 %v13440_v36, %v13546_v7  ;;  %v6303_v47 = vadd.f32 %v13462_v23, %v13549_v61  ;;  %v6483_v61 = vpack.c.bf16 %v6435_v44, %v6435_v44 }
0x141d   : > { %7462 = vmatmul.bf16.gmra.mxu2 %v6479_v59  ;;  %7481 = vmatmul.bf16.gmra.mxu1 %v6480_v18  ;;  %v6420_v18 = vmax.f32 %v6351_v14, 0.0  ;;  %v6419_v59 = vmax.f32 %v6328_v2, 0.0 }
0x141f   : > { %v7285_v6 = vpop.f32.mrf.mxu3 }
0x1420   : > { %v7286_v56 = vadd.f32 %v7285_v6, %v7267_v1  ;;  %v7304_v13 = vpop.f32.mrf.mxu2  ;;  %v6401_v1 = vmax.f32 %v6280_v22, 0.0  ;;  %v6402_v6 = vmax.f32 %v6303_v47, 0.0 }
0x1421   : > { %v7268_v32 = vpop.f32.mrf.mxu0 }
0x1422   : > { %v7305_v20 = vadd.f32 %v7304_v13, %v7286_v56  ;;  %v7325_v39 = vpop.f32.mrf.mxu1  ;;  %v6404_v56 = vmax.f32 %v6349_v9, 0.0  ;;  %v6403_v13 = vmax.f32 %v6326_v38, 0.0  ;;  %v6465_v57 = vpack.c.bf16 %v6417_v33, %v6401_v1 }
0x1424   : > { %v13569_v63 = vadd.f32 %v7323_v37, %v7305_v20  ;;  %v6418_v37 = vmax.f32 %v6305_v3, 0.0  ;;  %v6467_v29 = vpack.c.bf16 %v6419_v59, %v6403_v13  ;;  %v6468_v20 = vpack.c.bf16 %v6420_v18, %v6404_v56 }
0x1426   : > { %v6466_v23 = vpack.c.bf16 %v6418_v37, %v6402_v6 }
0x1427   : > { %v7287_v49 = vpop.f32.mrf.mxu3 }
0x1428   : > { %v7306_v60 = vpop.f32.mrf.mxu2 }
0x1429   : > { %v7270_v17 = vpop.f32.mrf.mxu0  ;;  %v6482_v60 = vpack.c.bf16 %v6434_v54, %v6434_v54 }
0x142a   : > { %v7327_v15 = vpop.f32.mrf.mxu1 }
0x142c   : > { %7493 = vmatmul.bf16.vlgmr.msra.gmra.mxu0 %v6449_v58  ;;  %7512 = vmatmul.bf16.vlgmr.msrb.gmra.mxu3 %v6450_v5 }
0x142d   : > { %7531 = vmatmul.bf16.vlgmr.msra.gmra.mxu2 %v6451_v52  ;;  %7550 = vmatmul.bf16.vlgmr.msra.gmra.mxu1 %v6452_v10 }
0x142f   : > { %v7289_v8 = vpop.f32.mrf.mxu3 }
0x1430   : > { %v7308_v31 = vpop.f32.mrf.mxu2 }
0x1431   : > { %v7271_v16 = vpop.f32.mrf.mxu0 }
0x1432   : > { %v7328_v35 = vpop.f32.mrf.mxu1 }
0x1437   : > { %v7290_v26 = vpop.f32.mrf.mxu3 }
0x1438   : > { %v7309_v11 = vpop.f32.mrf.mxu2 }
0x1439   : > { %v7273_v36 = vpop.f32.mrf.mxu0 }
0x143a   : > { %v7330_v32 = vpop.f32.mrf.mxu1 }
0x143c   : > { %7497 = vmatmul.bf16.gmra.mxu0 %v6465_v57  ;;  %7516 = vmatmul.bf16.gmra.mxu3 %v6466_v23 }
0x143d   : > { %7535 = vmatmul.bf16.gmra.mxu2 %v6467_v29  ;;  %7554 = vmatmul.bf16.gmra.mxu1 %v6468_v20 }
0x143f   : > { %v7292_v48 = vpop.f32.mrf.mxu3 }
0x1440   : > { %v7311_v42 = vpop.f32.mrf.mxu2 }
0x1441   : > { %v7274_v39 = vpop.f32.mrf.mxu0 }
0x1442   : > { %v7331_v27 = vpop.f32.mrf.mxu1 }
0x1447   : > { %v7293_v40 = vpop.f32.mrf.mxu3 }
0x1448   : > { %v7312_v49 = vpop.f32.mrf.mxu2 }
0x1449   : > { %v7342_v34 = vpop.f32.mrf.mxu0 }
0x144a   : > { %v7343_v53 = vadd.f32 %v7342_v34, %v13569_v63  ;;  %v7399_v7 = vpop.f32.mrf.mxu1 }
0x144c   : > { %7500 = vmatmul.bf16.gmra.mxu0 %v6481_v45  ;;  %7519 = vmatmul.bf16.gmra.mxu3 %v6482_v60 }
0x144d   : > { %7538 = vmatmul.bf16.gmra.mxu2 %v6483_v61  ;;  %7557 = vmatmul.bf16.gmra.mxu1 %v6484_v25 }
0x144f   : > { %v7361_v55 = vpop.f32.mrf.mxu3 }
0x1450   : > { %v7362_v50 = vadd.f32 %v7361_v55, %v7343_v53  ;;  %v7380_v62 = vpop.f32.mrf.mxu2 }
0x1451   : > { %v7344_v30 = vpop.f32.mrf.mxu0 }
0x1452   : > { %v7381_v43 = vadd.f32 %v7380_v62, %v7362_v50  ;;  %v7401_v12 = vpop.f32.mrf.mxu1 }
0x1454   : > { %v7400_v17 = vadd.f32 %v7399_v7, %v7381_v43 }
0x1457   : > { %v7363_v58 = vpop.f32.mrf.mxu3 }
0x1458   : > { %v7382_v5 = vpop.f32.mrf.mxu2 }
0x1459   : > { %v7346_v15 = vpop.f32.mrf.mxu0 }
0x145a   : > { %v7403_v10 = vpop.f32.mrf.mxu1 }
0x145f   : > { %v7365_v52 = vpop.f32.mrf.mxu3 }
0x1460   : > { %v7384_v63 = vpop.f32.mrf.mxu2 }
0x1461   : > { %v7347_v8 = vpop.f32.mrf.mxu0 }
0x1462   : > { %v7404_v31 = vpop.f32.mrf.mxu1 }
0x1467   : > { %v7366_v16 = vpop.f32.mrf.mxu3 }
0x1468   : > { %v7385_v0 = vpop.f32.mrf.mxu2 }
0x1469   : > { %v7349_v3 = vpop.f32.mrf.mxu0 }
0x146a   : > { %v7406_v35 = vpop.f32.mrf.mxu1 }
0x146f   : > { %v7368_v14 = vpop.f32.mrf.mxu3 }
0x1470   : > { %v7387_v2 = vpop.f32.mrf.mxu2 }
0x1471   : > { %v7350_v22 = vpop.f32.mrf.mxu0 }
0x1472   : > { %v7407_v47 = vpop.f32.mrf.mxu1 }
0x1477   : > { %v7369_v9 = vpop.f32.mrf.mxu3 }
0x1478   : > { %v7388_v38 = vpop.f32.mrf.mxu2 }
0x1479   : > { %v7418_v33 = vpop.f32.mrf.mxu0 }
0x147a   : > { %v7475_v37 = vpop.f32.mrf.mxu1  ;;  %v7419_v27 = vadd.f32 %v7418_v33, %v7400_v17 }
0x147f   : > { %v7437_v18 = vpop.f32.mrf.mxu3 }
0x1480   : > { %v7456_v59 = vpop.f32.mrf.mxu2  ;;  %v7438_v19 = vadd.f32 %v7437_v18, %v7419_v27 }
0x1481   : > { %v7420_v26 = vpop.f32.mrf.mxu0 }
0x1482   : > { %v7477_v1 = vpop.f32.mrf.mxu1  ;;  %v7457_v54 = vadd.f32 %v7456_v59, %v7438_v19 }
0x1484   : > { %v7476_v49 = vadd.f32 %v7475_v37, %v7457_v54 }
0x1487   : > { %v7439_v6 = vpop.f32.mrf.mxu3 }
0x1488   : > { %v7458_v11 = vpop.f32.mrf.mxu2 }
0x1489   : > { %v7422_v56 = vpop.f32.mrf.mxu0 }
0x148a   : > { %v7479_v13 = vpop.f32.mrf.mxu1 }
0x148b   : > { %v9708_v13 = vld [vmem:[%s13666_s22] ss:$0 sm:$0xff] }
0x148f   : > { %v7441_v36 = vpop.f32.mrf.mxu3 }
0x1490   : > { %v7460_v32 = vpop.f32.mrf.mxu2 }
0x1491   : > { %v7423_v57 = vpop.f32.mrf.mxu0  ;;  %v9709_v32 = vld [vmem:[%s13763_s11] ss:$0 sm:$0xff] }
0x1492   : > { %v7480_v23 = vpop.f32.mrf.mxu1 }
0x1497   : > { %v7442_v29 = vpop.f32.mrf.mxu3 }
0x1498   : > { %v7461_v20 = vpop.f32.mrf.mxu2 }
0x1499   : > { %v7425_v48 = vpop.f32.mrf.mxu0 }
0x149a   : > { %v7482_v42 = vpop.f32.mrf.mxu1 }
0x149f   : > { %v7444_v39 = vpop.f32.mrf.mxu3 }
0x14a0   : > { %v7463_v21 = vpop.f32.mrf.mxu2 }
0x14a1   : > { %v7426_v28 = vpop.f32.mrf.mxu0 }
0x14a2   : > { %v7483_v46 = vpop.f32.mrf.mxu1 }
0x14a7   : > { %v7445_v24 = vpop.f32.mrf.mxu3 }
0x14a8   : > { %v7464_v41 = vpop.f32.mrf.mxu2 }
0x14a9   : > { %v7494_v44 = vpop.f32.mrf.mxu0 }
0x14aa   : > { %v7551_v40 = vpop.f32.mrf.mxu1  ;;  %v7495_v34 = vadd.f32 %v7494_v44, %v7476_v49 }
0x14af   : > { %v7513_v45 = vpop.f32.mrf.mxu3 }
0x14b0   : > { %v7514_v60 = vadd.f32 %v7513_v45, %v7495_v34  ;;  %v7532_v53 = vpop.f32.mrf.mxu2 }
0x14b1   : > { %v7496_v7 = vpop.f32.mrf.mxu0 }
0x14b2   : > { %v7533_v25 = vadd.f32 %v7532_v53, %v7514_v60  ;;  %v7553_v61 = vpop.f32.mrf.mxu1 }
0x14b4   : > { %v7552_v55 = vadd.f32 %v7551_v40, %v7533_v25 }
0x14b6   : > { %v7561_v50 = vadd.f32 %v7552_v55, %v12576_v51 }
0x14b7   : > { %v7515_v62 = vpop.f32.mrf.mxu3 }
0x14b8   : > { %v7534_v30 = vpop.f32.mrf.mxu2  ;;  %v7564_v43 = vsel %vm1214_vm0, %v7561_v50, 0.0 }
0x14b9   : > { %v7498_v12 = vpop.f32.mrf.mxu0  ;;  %7565 = vadd.xlane.f32.xlu2 %v7564_v43 }
0x14ba   : > { %v7555_v17 = vpop.f32.mrf.mxu1 }
0x14bf   : > { %v7517_v58 = vpop.f32.mrf.mxu3 }
0x14c0   : > { %v7536_v5 = vpop.f32.mrf.mxu2 }
0x14c1   : > { %v7499_v15 = vpop.f32.mrf.mxu0 }
0x14c2   : > { %v7556_v10 = vpop.f32.mrf.mxu1 }
0x14c7   : > { %v7518_v52 = vpop.f32.mrf.mxu3 }
0x14c8   : > { %v7537_v63 = vpop.f32.mrf.mxu2 }
0x14c9   : > { %v7501_v8 = vpop.f32.mrf.mxu0 }
0x14ca   : > { %v7558_v31 = vpop.f32.mrf.mxu1 }
0x14cf   : > { %v7520_v16 = vpop.f32.mrf.mxu3 }
0x14d0   : > { %v7539_v0 = vpop.f32.mrf.mxu2 }
0x14d1   : > { %v7502_v3 = vpop.f32.mrf.mxu0 }
0x14d2   : > { %v7559_v35 = vpop.f32.mrf.mxu1 }
0x14d7   : > { %v7521_v51 = vpop.f32.mrf.mxu3 }
0x14d8   : > { %v7540_v14 = vpop.f32.mrf.mxu2 }
0x152c   : > { %v7566_v2 = vpop.xlane.xlu2 %7565 }
0x152d   : > { %v7567_v22 = vmul.f32 %v7566_v2, %v10692_v4 }
0x152f   : > { %v7568_v47 = vsub.f32 %v7561_v50, %v7567_v22 }
0x1531   : > { %v7569_v9 = vmul.f32 %v7568_v47, %v7568_v47 }
0x1533   : > { %v7570_v38 = vsel %vm1214_vm0, %v7569_v9, 0.0 }
0x1534   : > { %7571 = vadd.xlane.f32.xlu1 %v7570_v38 }
0x15a7   : > { %v7572_v33 = vpop.xlane.xlu1 %7571 }
0x15a8   : > { %v7573_v37 = vmul.f32 %v7572_v33, %v10692_v4 }
0x15aa   : > { %v7574_v18 = vadd.f32 1e-05, %v7573_v37 }
0x15ac   : > { %9902 = vrsqrt.f32 %v7574_v18  ;;  %vm7581_vm3 = vweird.f32 %v7574_v18 }
0x15b2   : > { %v9903_v59 = vpop.eup %9902 }
0x15b3   : > { %v7576_v26 = vmul.f32 %v9903_v59, %v7574_v18  ;;  %vm7582_vm2 = vweird.f32 %v9903_v59 }
0x15b4   : > { %vm7583_vm4 = vmor %vm7581_vm3, %vm7582_vm2 }
0x15b5   : > { %v7577_v1 = vmul.f32 %v9903_v59, %v7576_v26 }
0x15b7   : > { %v7578_v6 = vmul.f32 0.5, %v7577_v1 }
0x15b9   : > { %v7579_v11 = vsub.f32 1.5, %v7578_v6 }
0x15bb   : > { %v7580_v56 = vmul.f32 %v9903_v59, %v7579_v11 }
0x15bd   : > { %v7584_v4 = vsel %vm7583_vm4, %v9903_v59, %v7580_v56 }
0x15be   : > { %v7585_v36 = vmul.f32 %v7584_v4, %v7568_v47 }
0x15c0   : > { %v7589_v57 = vmul.f32 %v9708_v13, %v7585_v36 }
0x15c2   : > { %v7593_v23 = vadd.f32 %v9709_v32, %v7589_v57 }
0x15c4   : > { %7594 = vst.msk [vmem:[%s838_s1] sm:$0xf] %vm2236_vm5, %v7593_v23 }
0x15c5   : > { %9936 = shalt.err (!%p9933_p3)
}
0x15c6   : > { %9560 = dma.vmem_to_hbm [thread:$0]  (%p10169_p5), %s7609_s3, 64, %s7611_s7, %s7596_s4  }
0x15c7 PF: > { %s13764_s1 = sld [smem:[#allocation7_spill]] }
0x15c8   : > { %s13765_s9 = sld [smem:[#allocation5_spill]] }
0x15cd   : > { %p9566_p4 = scmp.ge.s32.totalorder %s13764_s1, 2 }
0x15ce   : > { %s7622_s11 = sand.u32 1, %s13765_s9  }
0x15cf   : > { %p9563_p7 = pnand %p9566_p4, %p10173_p6  ;;  %s7623_s12 = scalar_lea.sflag [#allocation3], %s7622_s11 }
0x15d1   : > { %p9564_p8 = pneg %p9563_p7 }
0x15d3   : > { %9954 = dma.done.wait (%p9564_p8), %s7623_s12, 64  }
0x15d4   : > { %9956 = vsyncadd (%p9564_p8), %s7623_s12, 4294967232  ;;  %s13767_s30 = sld [smem:[#allocation8_spill]]  ;;  %s13770_s8 = smov %s9963_s5 }
0x15d5   : > { %s13768_s6 = sld [smem:[#allocation6_spill]] }
0x15d6   : > { %s13769_s9 = sld [smem:[#allocation9_spill]] }
0x15da   : > { %p38_p9 = scmp.ge.s32.totalorder %s13767_s30, 4  }
0x15db   : > { %s13771_s5 = smov %s13768_s6 }
0x15dc   :  { %40 = sbr.rel (!%p38_p9) target bundleno = 18 (0x12), region = 167 }
0x15e1   :  { %7629 = vsyncpa [#allocation3], 1 }
0x15e2   :  { %7631 = vsyncpa [#allocation3 + $0x1], 1 }

</bundles_post_ra>
